<compile_context>
chip_gen: v7x
topology: tpu7x:2x2x1
jax: 0.10.0
libtpu: 0.0.40
codegen_flags: <defaults>
</compile_context>

<pallas_src>
import jax
import jax.numpy as jnp
from jax.experimental import pallas as pl
from jax.experimental.pallas import tpu as pltpu

_LANES = 128
_POOLS = [(2, 2), (2, 2), (2, 2), (1, 2), None]      # per the torch module


# ------------------------------ parameters ----------------------------------

def init_params(key, nc=1):
    """Deterministic synthetic params mirroring the torch module's shapes."""
    nm = [16, 32, 48, 64, 80]
    has_bn = [True, True, True, True, False]
    eps = 1e-5
    params = []
    cin = nc
    for i, cout in enumerate(nm):
        key, kw_, kb, kg, kbe, km, kv = jax.random.split(key, 7)
        w = 0.1 * jax.random.normal(kw_, (3, 3, cin, cout), jnp.float32)
        b = 0.05 * jax.random.normal(kb, (cout,), jnp.float32)
        if has_bn[i]:
            gamma = 1.0 + 0.1 * jax.random.normal(kg, (cout,), jnp.float32)
            beta = 0.05 * jax.random.normal(kbe, (cout,), jnp.float32)
            mean = 0.05 * jax.random.normal(km, (cout,), jnp.float32)
            var = 1.0 + 0.1 * jax.random.uniform(kv, (cout,), jnp.float32)
            inv = gamma / jnp.sqrt(var + eps)
            scale, shift = inv, (b - mean) * inv + beta       # BN folded
        else:
            scale, shift = jnp.ones((cout,), jnp.float32), b
        params.append((w, scale, shift))
        cin = cout
    return params


def _pick_batch_block(n, max_blk=8):
    """Largest divisor of n <= max_blk, preferring >=2 grid steps (v7x 2 TCs)."""
    divs = [d for d in range(1, n + 1) if n % d == 0 and d <= max_blk]
    two_step = [d for d in divs if n // d >= 2]
    return max(two_step) if two_step else max(divs)


# -------------------------------- forward -----------------------------------

def cnn_forward(x_nchw, params, batch_block=8):
    """Matches CNN.forward: returns (conv_features, 0)."""
    n, nc, H, W = x_nchw.shape
    assert H % 16 == 0, "imgH has to be a multiple of 16"
    nl = len(params)                                   # 5 conv layers
    B = _pick_batch_block(n, batch_block)              # images per grid step
    g = n // B

    # conv-input spatial dims per layer (floor-division pooling like torch)
    dims = [(H, W)]
    for ph, pw in _POOLS[:nl - 1]:
        dims.append((dims[-1][0] // ph, dims[-1][1] // pw))
    for hi, wi in dims:
        assert hi >= 1 and wi >= 1

    # Flattened-activation geometry.  Layer 0 uses a compact im2col layout
    # (row = h*W + w, no halo rows); layers 1..4 use a zero-padded layout
    # (row = h*(w_i+2) + w, halo rows all zero).  Rows with w >= w_i ("seam")
    # and rows between stacked images hold garbage conv outputs but are never
    # selected by pool anchors or the final row gather.
    row_stride = [dims[0][1]] + [dims[i][1] + 2 for i in range(1, nl)]
    img_stride = [dims[0][0] * dims[0][1]] + \
                 [(dims[i][0] + 2) * (dims[i][1] + 2) for i in range(1, nl)]

    def conv_rows(i):                              # M of layer i's conv dots
        hi, wi = dims[i]
        if i == 0:
            return B * img_stride[0]
        return (B - 1) * img_stride[i] + (hi - 1) * row_stride[i] + wi

    # --------------------------- constant packing ---------------------------
    k0 = 9 * nc
    k0p = max(16, -(-k0 // 16) * 16)
    w0, sc0, sh0 = params[0]
    w0p = (w0 * sc0[None, None, None, :]).reshape(k0, -1)
    w0p = jnp.pad(w0p, ((0, k0p - k0), (0, _LANES - w0p.shape[1])))
    w0p = w0p.astype(jnp.bfloat16)                                  # (k0p,128)

    wst, shifts = [], [jnp.pad(sh0, (0, _LANES - sh0.shape[0]))]
    for (w, s, t) in params[1:]:
        cin, cout = w.shape[2], w.shape[3]
        wk = (w * s[None, None, None, :]).reshape(9, cin, cout)
        wk = jnp.pad(wk, ((0, 0), (0, _LANES - cin), (0, _LANES - cout)))
        wst.append(wk)
        shifts.append(jnp.pad(t, (0, _LANES - cout)))
    wst = jnp.concatenate(wst, axis=0).astype(jnp.bfloat16)   # (9*(nl-1),128,128)
    shifts = jnp.stack(shifts, axis=0).astype(jnp.float32)    # (nl, 128)

    # ------------------ wrapper-side im2col of layer 0 ONLY -----------------
    x = jnp.transpose(x_nchw, (0, 2, 3, 1)).astype(jnp.float32)     # NHWC
    xp = jnp.pad(x, ((0, 0), (1, 1), (1, 1), (0, 0)))
    cols = [xp[:, kh:kh + H, kw:kw + W, :]
            for kh in range(3) for kw in range(3)]
    x0 = jnp.concatenate(cols, axis=-1).reshape(n * H * W, k0)
    x0 = jnp.pad(x0, ((0, 0), (0, k0p - k0))).astype(jnp.bfloat16)

    h_out, w_out = dims[nl - 1]
    out_rows = h_out * w_out
    cout_last = params[-1][0].shape[-1]

    # -------------------------------- kernel --------------------------------
    def kernel(x0_ref, w0_ref, wst_ref, sh_ref, o_ref, *scratch):
        pis = scratch[:nl - 1]          # padded f32 inputs of layers 1..4
        pool_scr = scratch[nl - 1]      # shared pooled-max staging buffer
        sh = sh_ref[...]                # (nl, 128) f32

        def pool_to_next(i, out):
            """MaxPool layer i's ReLU output (f32, in-register) and scatter it
            into the zero-padded input of layer i+1 with strided row copies."""
            hi, wi = dims[i]
            ph, pw = _POOLS[i]
            ho, wo = hi // ph, wi // pw
            rs, istr = row_stride[i], img_stride[i]
            lp = (hi - ph) * rs + (wi - pw) + 1
            lp_tot = (B - 1) * istr + lp
            m = None
            for dh in range(ph):
                for dw in range(pw):
                    sl = out[dh * rs + dw: dh * rs + dw + lp_tot, :]
                    m = sl if m is None else jnp.maximum(m, sl)
            pool_scr[pl.ds(0, lp_tot), :] = m
            dst = pis[i]
            dst[...] = jnp.zeros_like(dst)        # zero halo every grid step
            rsn, istrn = row_stride[i + 1], img_stride[i + 1]
            for b in range(B):
                for oh in range(ho):
                    anchors = pool_scr[pl.ds(b * istr + ph * oh * rs, wo,
                                             stride=pw), :]
                    dst[pl.ds(b * istrn + (1 + oh) * rsn + 1, wo), :] = anchors

        # ---- layer 0: single K-fused dot over the im2col'd input (bf16) ----
        acc = jnp.dot(x0_ref[...], w0_ref[...],
                      preferred_element_type=jnp.float32)
        out = jnp.maximum(acc + sh[0:1, :], 0.0)
        pool_to_next(0, out)

        # ---- layers 1..4: 9 shifted taps per conv, big batched M ----
        for i in range(1, nl):
            rs, istr = row_stride[i], img_stride[i]
            mtot = conv_rows(i)
            src = pis[i - 1]
            acc = None
            for t in range(9):
                kh, kw = divmod(t, 3)
                tap = src[pl.ds(kh * rs + kw, mtot), :].astype(jnp.bfloat16)
                d = jnp.dot(tap, wst_ref[(i - 1) * 9 + t],
                            preferred_element_type=jnp.float32)
                acc = d if acc is None else acc + d
            out = jnp.maximum(acc + sh[i:i + 1, :], 0.0)
            if i < nl - 1:
                pool_to_next(i, out)
            else:
                # gather the valid (h, w) rows per image into the lane-dense
                # compact output block
                for b in range(B):
                    rows = [out[b * istr + hh * rs: b * istr + hh * rs + w_out, :]
                            for hh in range(h_out)]
                    o_ref[b] = (jnp.concatenate(rows, axis=0)
                                if len(rows) > 1 else rows[0])

    # ------------------------------ scratch ---------------------------------
    pool_rows = 0
    for i in range(nl - 1):
        hi, wi = dims[i]
        ph, pw = _POOLS[i]
        lp = (hi - ph) * row_stride[i] + (wi - pw) + 1
        pool_rows = max(pool_rows, (B - 1) * img_stride[i] + lp)
    pool_rows = -(-pool_rows // 8) * 8

    scratch_shapes = [pltpu.VMEM((B * img_stride[i], _LANES), jnp.float32)
                      for i in range(1, nl)]
    scratch_shapes.append(pltpu.VMEM((pool_rows, _LANES), jnp.float32))

    out = pl.pallas_call(
        kernel,
        out_shape=jax.ShapeDtypeStruct((n, out_rows, _LANES), jnp.float32),
        grid=(g,),
        in_specs=[
            pl.BlockSpec((B * H * W, k0p), lambda i: (i, 0)),      # im2col x0
            pl.BlockSpec(w0p.shape, lambda i: (0, 0)),             # layer-0 W
            pl.BlockSpec(wst.shape, lambda i: (0, 0, 0)),          # layer-1..4 W
            pl.BlockSpec(shifts.shape, lambda i: (0, 0)),          # BN shifts
        ],
        out_specs=pl.BlockSpec((B, out_rows, _LANES), lambda i: (i, 0, 0)),
        scratch_shapes=scratch_shapes,
        compiler_params=pltpu.CompilerParams(
            dimension_semantics=("parallel",)),     # both TCs on v7x
    )(x0, w0p, wst, shifts)

    feat = out[:, :, :cout_last].reshape(n, h_out, w_out, cout_last)
    conv = jnp.transpose(feat, (0, 3, 1, 2))
    # TODO(synk): nn.Dropout(0.2) on conv2-4 is an inference-mode identity here.
    return conv, 0


# ------------------------- pure-JAX reference (check) ------------------------

def _reference_forward(x_nchw, params):
    x = jnp.transpose(x_nchw, (0, 2, 3, 1)).astype(jnp.float32)
    for (w, scale, shift), pool in zip(params, _POOLS):
        n, h, wd, _ = x.shape
        xp = jnp.pad(x, ((0, 0), (1, 1), (1, 1), (0, 0)))
        acc = 0.0
        for kh in range(3):
            for kw in range(3):
                acc = acc + jnp.einsum(
                    "nhwc,cd->nhwd", xp[:, kh:kh + h, kw:kw + wd, :], w[kh, kw],
                    precision=jax.lax.Precision.HIGHEST)
        x = jnp.maximum(acc * scale + shift, 0.0)
        if pool is not None:
            ph, pw = pool
            ho, wo = h // ph, wd // pw
            x = x[:, :ho * ph, :wo * pw, :]
            x = x.reshape(n, ho, ph, wo, pw, -1).max(axis=(2, 4))
    return jnp.transpose(x, (0, 3, 1, 2)), 0


if __name__ == "__main__":
    key = jax.random.PRNGKey(0)
    kp, kx = jax.random.split(key)
    params = init_params(kp, nc=1)

    # image_height must be a multiple of 16; batch 8 -> 2 grid steps of 4.
    x = jax.random.normal(kx, (8, 1, 16, 16), jnp.float32)

    fwd = jax.jit(lambda inp: cnn_forward(inp, params))
    conv, zero = fwd(x)
    conv = jax.block_until_ready(conv)

    # expected: H 16->8->4->2->2, W 16->8->4->2->1, C=80 => (8, 80, 2, 1)
    assert conv.shape == (8, 80, 2, 1), conv.shape
    assert zero == 0
    assert bool(jnp.all(jnp.isfinite(conv)))

    ref, _ = _reference_forward(x, params)
    err = float(jnp.max(jnp.abs(conv - ref)))
    scl = float(jnp.max(jnp.abs(ref)))
    assert err <= 0.1 * scl + 0.1, (err, scl)

    print("KERNEL_OK")
</pallas_src>

<mosaic_0001>
module attributes {stable_mosaic.version = 11 : i64} {
  func.func @kernel(%arg0: i32, %arg1: memref<1024x16xbf16, #tpu.memory_space<vmem>>, %arg2: memref<16x128xbf16, #tpu.memory_space<vmem>>, %arg3: memref<36x128x128xbf16, #tpu.memory_space<vmem>>, %arg4: memref<5x128xf32, #tpu.memory_space<vmem>>, %arg5: memref<4x2x128xf32, #tpu.memory_space<vmem>>, %arg6: memref<400x128xf32, #tpu.memory_space<vmem>>, %arg7: memref<144x128xf32, #tpu.memory_space<vmem>>, %arg8: memref<64x128xf32, #tpu.memory_space<vmem>>, %arg9: memref<48x128xf32, #tpu.memory_space<vmem>>, %arg10: memref<1008x128xf32, #tpu.memory_space<vmem>>) attributes {dimension_semantics = [#tpu.dimension_semantics<parallel>], iteration_bounds = array<i64: 2>, scalar_prefetch = 0 : i64, scratch_operands = 5 : i64, tpu.core_type = #tpu.core_type<tc>, window_params = [{transform_indices = @transform_0, window_bounds = array<i64: 1024, 16>}, {pipeline_mode = #tpu.pipeline_mode<synchronous>, transform_indices = @transform_1, window_bounds = array<i64: 16, 128>}, {pipeline_mode = #tpu.pipeline_mode<synchronous>, transform_indices = @transform_2, window_bounds = array<i64: 36, 128, 128>}, {pipeline_mode = #tpu.pipeline_mode<synchronous>, transform_indices = @transform_3, window_bounds = array<i64: 5, 128>}, {transform_indices = @transform_4, window_bounds = array<i64: 4, 2, 128>}]} {
    %c0 = arith.constant 0 : index
    %c0_0 = arith.constant 0 : index
    %0 = vector.load %arg4[%c0, %c0_0] : memref<5x128xf32, #tpu.memory_space<vmem>>, vector<5x128xf32>
    %c0_1 = arith.constant 0 : index
    %c0_2 = arith.constant 0 : index
    %1 = vector.load %arg1[%c0_1, %c0_2] : memref<1024x16xbf16, #tpu.memory_space<vmem>>, vector<1024x16xbf16>
    %c0_3 = arith.constant 0 : index
    %c0_4 = arith.constant 0 : index
    %2 = vector.load %arg2[%c0_3, %c0_4] : memref<16x128xbf16, #tpu.memory_space<vmem>>, vector<16x128xbf16>
    %cst = arith.constant dense<0.000000e+00> : vector<1024x128xf32>
    %3 = tpu.matmul %1, %2, %cst {dimension_numbers = #tpu.dot_dimension_numbers<[1], [0], [0], [1], [0, 0, 1, 1], [], []>} : vector<1024x16xbf16>, vector<16x128xbf16>, vector<1024x128xf32> -> vector<1024x128xf32>
    %4 = vector.extract_strided_slice %0 {offsets = [0, 0], sizes = [1, 128], strides = [1, 1]} : vector<5x128xf32> to vector<1x128xf32>
    %5 = vector.broadcast %4 : vector<1x128xf32> to vector<1024x128xf32>
    %6 = arith.addf %3, %5 : vector<1024x128xf32>
    %cst_5 = arith.constant 0.000000e+00 : f32
    %7 = vector.broadcast %cst_5 : f32 to vector<1024x128xf32>
    %8 = arith.maximumf %6, %7 : vector<1024x128xf32>
    %9 = vector.extract_strided_slice %8 {offsets = [0, 0], sizes = [1007, 128], strides = [1, 1]} : vector<1024x128xf32> to vector<1007x128xf32>
    %10 = vector.extract_strided_slice %8 {offsets = [1, 0], sizes = [1007, 128], strides = [1, 1]} : vector<1024x128xf32> to vector<1007x128xf32>
    %11 = arith.maximumf %9, %10 : vector<1007x128xf32>
    %12 = vector.extract_strided_slice %8 {offsets = [16, 0], sizes = [1007, 128], strides = [1, 1]} : vector<1024x128xf32> to vector<1007x128xf32>
    %13 = arith.maximumf %11, %12 : vector<1007x128xf32>
    %14 = vector.extract_strided_slice %8 {offsets = [17, 0], sizes = [1007, 128], strides = [1, 1]} : vector<1024x128xf32> to vector<1007x128xf32>
    %15 = arith.maximumf %13, %14 : vector<1007x128xf32>
    %c0_6 = arith.constant 0 : index
    %c0_7 = arith.constant 0 : index
    %16 = vector.load %arg10[%c0_6, %c0_7] : memref<1008x128xf32, #tpu.memory_space<vmem>>, vector<1007x128xf32>
    tpu.vector_store %arg10[%c0_6, %c0_7], %15 {strides = array<i32>} : memref<1008x128xf32, #tpu.memory_space<vmem>>, vector<1007x128xf32>,
    %cst_8 = arith.constant 0.000000e+00 : f32
    %17 = vector.broadcast %cst_8 : f32 to vector<400x128xf32>
    %c0_9 = arith.constant 0 : index
    %c0_10 = arith.constant 0 : index
    %18 = vector.load %arg6[%c0_9, %c0_10] : memref<400x128xf32, #tpu.memory_space<vmem>>, vector<400x128xf32>
    tpu.vector_store %arg6[%c0_9, %c0_10], %17 {strides = array<i32>} : memref<400x128xf32, #tpu.memory_space<vmem>>, vector<400x128xf32>,
    %c0_11 = arith.constant 0 : index
    %c0_12 = arith.constant 0 : index
    %19 = tpu.strided_load %arg10[%c0_11, %c0_12] {strides = array<i32: 2, 1>} : memref<1008x128xf32, #tpu.memory_space<vmem>>, vector<8x128xf32>
    %c11 = arith.constant 11 : index
    %c0_13 = arith.constant 0 : index
    %20 = vector.load %arg6[%c11, %c0_13] : memref<400x128xf32, #tpu.memory_space<vmem>>, vector<8x128xf32>
    tpu.vector_store %arg6[%c11, %c0_13], %19 {strides = array<i32>} : memref<400x128xf32, #tpu.memory_space<vmem>>, vector<8x128xf32>,
    %c32 = arith.constant 32 : index
    %c0_14 = arith.constant 0 : index
    %21 = tpu.strided_load %arg10[%c32, %c0_14] {strides = array<i32: 2, 1>} : memref<1008x128xf32, #tpu.memory_space<vmem>>, vector<8x128xf32>
    %c21 = arith.constant 21 : index
    %c0_15 = arith.constant 0 : index
    %22 = vector.load %arg6[%c21, %c0_15] : memref<400x128xf32, #tpu.memory_space<vmem>>, vector<8x128xf32>
    tpu.vector_store %arg6[%c21, %c0_15], %21 {strides = array<i32>} : memref<400x128xf32, #tpu.memory_space<vmem>>, vector<8x128xf32>,
    %c64 = arith.constant 64 : index
    %c0_16 = arith.constant 0 : index
    %23 = tpu.strided_load %arg10[%c64, %c0_16] {strides = array<i32: 2, 1>} : memref<1008x128xf32, #tpu.memory_space<vmem>>, vector<8x128xf32>
    %c31 = arith.constant 31 : index
    %c0_17 = arith.constant 0 : index
    %24 = vector.load %arg6[%c31, %c0_17] : memref<400x128xf32, #tpu.memory_space<vmem>>, vector<8x128xf32>
    tpu.vector_store %arg6[%c31, %c0_17], %23 {strides = array<i32>} : memref<400x128xf32, #tpu.memory_space<vmem>>, vector<8x128xf32>,
    %c96 = arith.constant 96 : index
    %c0_18 = arith.constant 0 : index
    %25 = tpu.strided_load %arg10[%c96, %c0_18] {strides = array<i32: 2, 1>} : memref<1008x128xf32, #tpu.memory_space<vmem>>, vector<8x128xf32>
    %c41 = arith.constant 41 : index
    %c0_19 = arith.constant 0 : index
    %26 = vector.load %arg6[%c41, %c0_19] : memref<400x128xf32, #tpu.memory_space<vmem>>, vector<8x128xf32>
    tpu.vector_store %arg6[%c41, %c0_19], %25 {strides = array<i32>} : memref<400x128xf32, #tpu.memory_space<vmem>>, vector<8x128xf32>,
    %c128 = arith.constant 128 : index
    %c0_20 = arith.constant 0 : index
    %27 = tpu.strided_load %arg10[%c128, %c0_20] {strides = array<i32: 2, 1>} : memref<1008x128xf32, #tpu.memory_space<vmem>>, vector<8x128xf32>
    %c51 = arith.constant 51 : index
    %c0_21 = arith.constant 0 : index
    %28 = vector.load %arg6[%c51, %c0_21] : memref<400x128xf32, #tpu.memory_space<vmem>>, vector<8x128xf32>
    tpu.vector_store %arg6[%c51, %c0_21], %27 {strides = array<i32>} : memref<400x128xf32, #tpu.memory_space<vmem>>, vector<8x128xf32>,
    %c160 = arith.constant 160 : index
    %c0_22 = arith.constant 0 : index
    %29 = tpu.strided_load %arg10[%c160, %c0_22] {strides = array<i32: 2, 1>} : memref<1008x128xf32, #tpu.memory_space<vmem>>, vector<8x128xf32>
    %c61 = arith.constant 61 : index
    %c0_23 = arith.constant 0 : index
    %30 = vector.load %arg6[%c61, %c0_23] : memref<400x128xf32, #tpu.memory_space<vmem>>, vector<8x128xf32>
    tpu.vector_store %arg6[%c61, %c0_23], %29 {strides = array<i32>} : memref<400x128xf32, #tpu.memory_space<vmem>>, vector<8x128xf32>,
    %c192 = arith.constant 192 : index
    %c0_24 = arith.constant 0 : index
    %31 = tpu.strided_load %arg10[%c192, %c0_24] {strides = array<i32: 2, 1>} : memref<1008x128xf32, #tpu.memory_space<vmem>>, vector<8x128xf32>
    %c71 = arith.constant 71 : index
    %c0_25 = arith.constant 0 : index
    %32 = vector.load %arg6[%c71, %c0_25] : memref<400x128xf32, #tpu.memory_space<vmem>>, vector<8x128xf32>
    tpu.vector_store %arg6[%c71, %c0_25], %31 {strides = array<i32>} : memref<400x128xf32, #tpu.memory_space<vmem>>, vector<8x128xf32>,
    %c224 = arith.constant 224 : index
    %c0_26 = arith.constant 0 : index
    %33 = tpu.strided_load %arg10[%c224, %c0_26] {strides = array<i32: 2, 1>} : memref<1008x128xf32, #tpu.memory_space<vmem>>, vector<8x128xf32>
    %c81 = arith.constant 81 : index
    %c0_27 = arith.constant 0 : index
    %34 = vector.load %arg6[%c81, %c0_27] : memref<400x128xf32, #tpu.memory_space<vmem>>, vector<8x128xf32>
    tpu.vector_store %arg6[%c81, %c0_27], %33 {strides = array<i32>} : memref<400x128xf32, #tpu.memory_space<vmem>>, vector<8x128xf32>,
    %c256 = arith.constant 256 : index
    %c0_28 = arith.constant 0 : index
    %35 = tpu.strided_load %arg10[%c256, %c0_28] {strides = array<i32: 2, 1>} : memref<1008x128xf32, #tpu.memory_space<vmem>>, vector<8x128xf32>
    %c111 = arith.constant 111 : index
    %c0_29 = arith.constant 0 : index
    %36 = vector.load %arg6[%c111, %c0_29] : memref<400x128xf32, #tpu.memory_space<vmem>>, vector<8x128xf32>
    tpu.vector_store %arg6[%c111, %c0_29], %35 {strides = array<i32>} : memref<400x128xf32, #tpu.memory_space<vmem>>, vector<8x128xf32>,
    %c288 = arith.constant 288 : index
    %c0_30 = arith.constant 0 : index
    %37 = tpu.strided_load %arg10[%c288, %c0_30] {strides = array<i32: 2, 1>} : memref<1008x128xf32, #tpu.memory_space<vmem>>, vector<8x128xf32>
    %c121 = arith.constant 121 : index
    %c0_31 = arith.constant 0 : index
    %38 = vector.load %arg6[%c121, %c0_31] : memref<400x128xf32, #tpu.memory_space<vmem>>, vector<8x128xf32>
    tpu.vector_store %arg6[%c121, %c0_31], %37 {strides = array<i32>} : memref<400x128xf32, #tpu.memory_space<vmem>>, vector<8x128xf32>,
    %c320 = arith.constant 320 : index
    %c0_32 = arith.constant 0 : index
    %39 = tpu.strided_load %arg10[%c320, %c0_32] {strides = array<i32: 2, 1>} : memref<1008x128xf32, #tpu.memory_space<vmem>>, vector<8x128xf32>
    %c131 = arith.constant 131 : index
    %c0_33 = arith.constant 0 : index
    %40 = vector.load %arg6[%c131, %c0_33] : memref<400x128xf32, #tpu.memory_space<vmem>>, vector<8x128xf32>
    tpu.vector_store %arg6[%c131, %c0_33], %39 {strides = array<i32>} : memref<400x128xf32, #tpu.memory_space<vmem>>, vector<8x128xf32>,
    %c352 = arith.constant 352 : index
    %c0_34 = arith.constant 0 : index
    %41 = tpu.strided_load %arg10[%c352, %c0_34] {strides = array<i32: 2, 1>} : memref<1008x128xf32, #tpu.memory_space<vmem>>, vector<8x128xf32>
    %c141 = arith.constant 141 : index
    %c0_35 = arith.constant 0 : index
    %42 = vector.load %arg6[%c141, %c0_35] : memref<400x128xf32, #tpu.memory_space<vmem>>, vector<8x128xf32>
    tpu.vector_store %arg6[%c141, %c0_35], %41 {strides = array<i32>} : memref<400x128xf32, #tpu.memory_space<vmem>>, vector<8x128xf32>,
    %c384 = arith.constant 384 : index
    %c0_36 = arith.constant 0 : index
    %43 = tpu.strided_load %arg10[%c384, %c0_36] {strides = array<i32: 2, 1>} : memref<1008x128xf32, #tpu.memory_space<vmem>>, vector<8x128xf32>
    %c151 = arith.constant 151 : index
    %c0_37 = arith.constant 0 : index
    %44 = vector.load %arg6[%c151, %c0_37] : memref<400x128xf32, #tpu.memory_space<vmem>>, vector<8x128xf32>
    tpu.vector_store %arg6[%c151, %c0_37], %43 {strides = array<i32>} : memref<400x128xf32, #tpu.memory_space<vmem>>, vector<8x128xf32>,
    %c416 = arith.constant 416 : index
    %c0_38 = arith.constant 0 : index
    %45 = tpu.strided_load %arg10[%c416, %c0_38] {strides = array<i32: 2, 1>} : memref<1008x128xf32, #tpu.memory_space<vmem>>, vector<8x128xf32>
    %c161 = arith.constant 161 : index
    %c0_39 = arith.constant 0 : index
    %46 = vector.load %arg6[%c161, %c0_39] : memref<400x128xf32, #tpu.memory_space<vmem>>, vector<8x128xf32>
    tpu.vector_store %arg6[%c161, %c0_39], %45 {strides = array<i32>} : memref<400x128xf32, #tpu.memory_space<vmem>>, vector<8x128xf32>,
    %c448 = arith.constant 448 : index
    %c0_40 = arith.constant 0 : index
    %47 = tpu.strided_load %arg10[%c448, %c0_40] {strides = array<i32: 2, 1>} : memref<1008x128xf32, #tpu.memory_space<vmem>>, vector<8x128xf32>
    %c171 = arith.constant 171 : index
    %c0_41 = arith.constant 0 : index
    %48 = vector.load %arg6[%c171, %c0_41] : memref<400x128xf32, #tpu.memory_space<vmem>>, vector<8x128xf32>
    tpu.vector_store %arg6[%c171, %c0_41], %47 {strides = array<i32>} : memref<400x128xf32, #tpu.memory_space<vmem>>, vector<8x128xf32>,
    %c480 = arith.constant 480 : index
    %c0_42 = arith.constant 0 : index
    %49 = tpu.strided_load %arg10[%c480, %c0_42] {strides = array<i32: 2, 1>} : memref<1008x128xf32, #tpu.memory_space<vmem>>, vector<8x128xf32>
    %c181 = arith.constant 181 : index
    %c0_43 = arith.constant 0 : index
    %50 = vector.load %arg6[%c181, %c0_43] : memref<400x128xf32, #tpu.memory_space<vmem>>, vector<8x128xf32>
    tpu.vector_store %arg6[%c181, %c0_43], %49 {strides = array<i32>} : memref<400x128xf32, #tpu.memory_space<vmem>>, vector<8x128xf32>,
    %c512 = arith.constant 512 : index
    %c0_44 = arith.constant 0 : index
    %51 = tpu.strided_load %arg10[%c512, %c0_44] {strides = array<i32: 2, 1>} : memref<1008x128xf32, #tpu.memory_space<vmem>>, vector<8x128xf32>
    %c211 = arith.constant 211 : index
    %c0_45 = arith.constant 0 : index
    %52 = vector.load %arg6[%c211, %c0_45] : memref<400x128xf32, #tpu.memory_space<vmem>>, vector<8x128xf32>
    tpu.vector_store %arg6[%c211, %c0_45], %51 {strides = array<i32>} : memref<400x128xf32, #tpu.memory_space<vmem>>, vector<8x128xf32>,
    %c544 = arith.constant 544 : index
    %c0_46 = arith.constant 0 : index
    %53 = tpu.strided_load %arg10[%c544, %c0_46] {strides = array<i32: 2, 1>} : memref<1008x128xf32, #tpu.memory_space<vmem>>, vector<8x128xf32>
    %c221 = arith.constant 221 : index
    %c0_47 = arith.constant 0 : index
    %54 = vector.load %arg6[%c221, %c0_47] : memref<400x128xf32, #tpu.memory_space<vmem>>, vector<8x128xf32>
    tpu.vector_store %arg6[%c221, %c0_47], %53 {strides = array<i32>} : memref<400x128xf32, #tpu.memory_space<vmem>>, vector<8x128xf32>,
    %c576 = arith.constant 576 : index
    %c0_48 = arith.constant 0 : index
    %55 = tpu.strided_load %arg10[%c576, %c0_48] {strides = array<i32: 2, 1>} : memref<1008x128xf32, #tpu.memory_space<vmem>>, vector<8x128xf32>
    %c231 = arith.constant 231 : index
    %c0_49 = arith.constant 0 : index
    %56 = vector.load %arg6[%c231, %c0_49] : memref<400x128xf32, #tpu.memory_space<vmem>>, vector<8x128xf32>
    tpu.vector_store %arg6[%c231, %c0_49], %55 {strides = array<i32>} : memref<400x128xf32, #tpu.memory_space<vmem>>, vector<8x128xf32>,
    %c608 = arith.constant 608 : index
    %c0_50 = arith.constant 0 : index
    %57 = tpu.strided_load %arg10[%c608, %c0_50] {strides = array<i32: 2, 1>} : memref<1008x128xf32, #tpu.memory_space<vmem>>, vector<8x128xf32>
    %c241 = arith.constant 241 : index
    %c0_51 = arith.constant 0 : index
    %58 = vector.load %arg6[%c241, %c0_51] : memref<400x128xf32, #tpu.memory_space<vmem>>, vector<8x128xf32>
    tpu.vector_store %arg6[%c241, %c0_51], %57 {strides = array<i32>} : memref<400x128xf32, #tpu.memory_space<vmem>>, vector<8x128xf32>,
    %c640 = arith.constant 640 : index
    %c0_52 = arith.constant 0 : index
    %59 = tpu.strided_load %arg10[%c640, %c0_52] {strides = array<i32: 2, 1>} : memref<1008x128xf32, #tpu.memory_space<vmem>>, vector<8x128xf32>
    %c251 = arith.constant 251 : index
    %c0_53 = arith.constant 0 : index
    %60 = vector.load %arg6[%c251, %c0_53] : memref<400x128xf32, #tpu.memory_space<vmem>>, vector<8x128xf32>
    tpu.vector_store %arg6[%c251, %c0_53], %59 {strides = array<i32>} : memref<400x128xf32, #tpu.memory_space<vmem>>, vector<8x128xf32>,
    %c672 = arith.constant 672 : index
    %c0_54 = arith.constant 0 : index
    %61 = tpu.strided_load %arg10[%c672, %c0_54] {strides = array<i32: 2, 1>} : memref<1008x128xf32, #tpu.memory_space<vmem>>, vector<8x128xf32>
    %c261 = arith.constant 261 : index
    %c0_55 = arith.constant 0 : index
    %62 = vector.load %arg6[%c261, %c0_55] : memref<400x128xf32, #tpu.memory_space<vmem>>, vector<8x128xf32>
    tpu.vector_store %arg6[%c261, %c0_55], %61 {strides = array<i32>} : memref<400x128xf32, #tpu.memory_space<vmem>>, vector<8x128xf32>,
    %c704 = arith.constant 704 : index
    %c0_56 = arith.constant 0 : index
    %63 = tpu.strided_load %arg10[%c704, %c0_56] {strides = array<i32: 2, 1>} : memref<1008x128xf32, #tpu.memory_space<vmem>>, vector<8x128xf32>
    %c271 = arith.constant 271 : index
    %c0_57 = arith.constant 0 : index
    %64 = vector.load %arg6[%c271, %c0_57] : memref<400x128xf32, #tpu.memory_space<vmem>>, vector<8x128xf32>
    tpu.vector_store %arg6[%c271, %c0_57], %63 {strides = array<i32>} : memref<400x128xf32, #tpu.memory_space<vmem>>, vector<8x128xf32>,
    %c736 = arith.constant 736 : index
    %c0_58 = arith.constant 0 : index
    %65 = tpu.strided_load %arg10[%c736, %c0_58] {strides = array<i32: 2, 1>} : memref<1008x128xf32, #tpu.memory_space<vmem>>, vector<8x128xf32>
    %c281 = arith.constant 281 : index
    %c0_59 = arith.constant 0 : index
    %66 = vector.load %arg6[%c281, %c0_59] : memref<400x128xf32, #tpu.memory_space<vmem>>, vector<8x128xf32>
    tpu.vector_store %arg6[%c281, %c0_59], %65 {strides = array<i32>} : memref<400x128xf32, #tpu.memory_space<vmem>>, vector<8x128xf32>,
    %c768 = arith.constant 768 : index
    %c0_60 = arith.constant 0 : index
    %67 = tpu.strided_load %arg10[%c768, %c0_60] {strides = array<i32: 2, 1>} : memref<1008x128xf32, #tpu.memory_space<vmem>>, vector<8x128xf32>
    %c311 = arith.constant 311 : index
    %c0_61 = arith.constant 0 : index
    %68 = vector.load %arg6[%c311, %c0_61] : memref<400x128xf32, #tpu.memory_space<vmem>>, vector<8x128xf32>
    tpu.vector_store %arg6[%c311, %c0_61], %67 {strides = array<i32>} : memref<400x128xf32, #tpu.memory_space<vmem>>, vector<8x128xf32>,
    %c800 = arith.constant 800 : index
    %c0_62 = arith.constant 0 : index
    %69 = tpu.strided_load %arg10[%c800, %c0_62] {strides = array<i32: 2, 1>} : memref<1008x128xf32, #tpu.memory_space<vmem>>, vector<8x128xf32>
    %c321 = arith.constant 321 : index
    %c0_63 = arith.constant 0 : index
    %70 = vector.load %arg6[%c321, %c0_63] : memref<400x128xf32, #tpu.memory_space<vmem>>, vector<8x128xf32>
    tpu.vector_store %arg6[%c321, %c0_63], %69 {strides = array<i32>} : memref<400x128xf32, #tpu.memory_space<vmem>>, vector<8x128xf32>,
    %c832 = arith.constant 832 : index
    %c0_64 = arith.constant 0 : index
    %71 = tpu.strided_load %arg10[%c832, %c0_64] {strides = array<i32: 2, 1>} : memref<1008x128xf32, #tpu.memory_space<vmem>>, vector<8x128xf32>
    %c331 = arith.constant 331 : index
    %c0_65 = arith.constant 0 : index
    %72 = vector.load %arg6[%c331, %c0_65] : memref<400x128xf32, #tpu.memory_space<vmem>>, vector<8x128xf32>
    tpu.vector_store %arg6[%c331, %c0_65], %71 {strides = array<i32>} : memref<400x128xf32, #tpu.memory_space<vmem>>, vector<8x128xf32>,
    %c864 = arith.constant 864 : index
    %c0_66 = arith.constant 0 : index
    %73 = tpu.strided_load %arg10[%c864, %c0_66] {strides = array<i32: 2, 1>} : memref<1008x128xf32, #tpu.memory_space<vmem>>, vector<8x128xf32>
    %c341 = arith.constant 341 : index
    %c0_67 = arith.constant 0 : index
    %74 = vector.load %arg6[%c341, %c0_67] : memref<400x128xf32, #tpu.memory_space<vmem>>, vector<8x128xf32>
    tpu.vector_store %arg6[%c341, %c0_67], %73 {strides = array<i32>} : memref<400x128xf32, #tpu.memory_space<vmem>>, vector<8x128xf32>,
    %c896 = arith.constant 896 : index
    %c0_68 = arith.constant 0 : index
    %75 = tpu.strided_load %arg10[%c896, %c0_68] {strides = array<i32: 2, 1>} : memref<1008x128xf32, #tpu.memory_space<vmem>>, vector<8x128xf32>
    %c351 = arith.constant 351 : index
    %c0_69 = arith.constant 0 : index
    %76 = vector.load %arg6[%c351, %c0_69] : memref<400x128xf32, #tpu.memory_space<vmem>>, vector<8x128xf32>
    tpu.vector_store %arg6[%c351, %c0_69], %75 {strides = array<i32>} : memref<400x128xf32, #tpu.memory_space<vmem>>, vector<8x128xf32>,
    %c928 = arith.constant 928 : index
    %c0_70 = arith.constant 0 : index
    %77 = tpu.strided_load %arg10[%c928, %c0_70] {strides = array<i32: 2, 1>} : memref<1008x128xf32, #tpu.memory_space<vmem>>, vector<8x128xf32>
    %c361 = arith.constant 361 : index
    %c0_71 = arith.constant 0 : index
    %78 = vector.load %arg6[%c361, %c0_71] : memref<400x128xf32, #tpu.memory_space<vmem>>, vector<8x128xf32>
    tpu.vector_store %arg6[%c361, %c0_71], %77 {strides = array<i32>} : memref<400x128xf32, #tpu.memory_space<vmem>>, vector<8x128xf32>,
    %c960 = arith.constant 960 : index
    %c0_72 = arith.constant 0 : index
    %79 = tpu.strided_load %arg10[%c960, %c0_72] {strides = array<i32: 2, 1>} : memref<1008x128xf32, #tpu.memory_space<vmem>>, vector<8x128xf32>
    %c371 = arith.constant 371 : index
    %c0_73 = arith.constant 0 : index
    %80 = vector.load %arg6[%c371, %c0_73] : memref<400x128xf32, #tpu.memory_space<vmem>>, vector<8x128xf32>
    tpu.vector_store %arg6[%c371, %c0_73], %79 {strides = array<i32>} : memref<400x128xf32, #tpu.memory_space<vmem>>, vector<8x128xf32>,
    %c992 = arith.constant 992 : index
    %c0_74 = arith.constant 0 : index
    %81 = tpu.strided_load %arg10[%c992, %c0_74] {strides = array<i32: 2, 1>} : memref<1008x128xf32, #tpu.memory_space<vmem>>, vector<8x128xf32>
    %c381 = arith.constant 381 : index
    %c0_75 = arith.constant 0 : index
    %82 = vector.load %arg6[%c381, %c0_75] : memref<400x128xf32, #tpu.memory_space<vmem>>, vector<8x128xf32>
    tpu.vector_store %arg6[%c381, %c0_75], %81 {strides = array<i32>} : memref<400x128xf32, #tpu.memory_space<vmem>>, vector<8x128xf32>,
    %c0_76 = arith.constant 0 : index
    %c0_77 = arith.constant 0 : index
    %83 = vector.load %arg6[%c0_76, %c0_77] : memref<400x128xf32, #tpu.memory_space<vmem>>, vector<378x128xf32>
    %84 = arith.truncf %83 : vector<378x128xf32> to vector<378x128xbf16>
    %c0_78 = arith.constant 0 : index
    %c0_79 = arith.constant 0 : index
    %c0_80 = arith.constant 0 : index
    %85 = vector.load %arg3[%c0_78, %c0_79, %c0_80] : memref<36x128x128xbf16, #tpu.memory_space<vmem>>, vector<1x128x128xbf16>
    %86 = vector.shape_cast %85 : vector<1x128x128xbf16> to vector<128x128xbf16>
    %cst_81 = arith.constant dense<0.000000e+00> : vector<378x128xf32>
    %87 = tpu.matmul %84, %86, %cst_81 {dimension_numbers = #tpu.dot_dimension_numbers<[1], [0], [0], [1], [0, 0, 1, 1], [], []>} : vector<378x128xbf16>, vector<128x128xbf16>, vector<378x128xf32> -> vector<378x128xf32>
    %c1 = arith.constant 1 : index
    %c0_82 = arith.constant 0 : index
    %88 = vector.load %arg6[%c1, %c0_82] : memref<400x128xf32, #tpu.memory_space<vmem>>, vector<378x128xf32>
    %89 = arith.truncf %88 : vector<378x128xf32> to vector<378x128xbf16>
    %c1_83 = arith.constant 1 : index
    %c0_84 = arith.constant 0 : index
    %c0_85 = arith.constant 0 : index
    %90 = vector.load %arg3[%c1_83, %c0_84, %c0_85] : memref<36x128x128xbf16, #tpu.memory_space<vmem>>, vector<1x128x128xbf16>
    %91 = vector.shape_cast %90 : vector<1x128x128xbf16> to vector<128x128xbf16>
    %cst_86 = arith.constant dense<0.000000e+00> : vector<378x128xf32>
    %92 = tpu.matmul %89, %91, %cst_86 {dimension_numbers = #tpu.dot_dimension_numbers<[1], [0], [0], [1], [0, 0, 1, 1], [], []>} : vector<378x128xbf16>, vector<128x128xbf16>, vector<378x128xf32> -> vector<378x128xf32>
    %93 = arith.addf %87, %92 : vector<378x128xf32>
    %c2 = arith.constant 2 : index
    %c0_87 = arith.constant 0 : index
    %94 = vector.load %arg6[%c2, %c0_87] : memref<400x128xf32, #tpu.memory_space<vmem>>, vector<378x128xf32>
    %95 = arith.truncf %94 : vector<378x128xf32> to vector<378x128xbf16>
    %c2_88 = arith.constant 2 : index
    %c0_89 = arith.constant 0 : index
    %c0_90 = arith.constant 0 : index
    %96 = vector.load %arg3[%c2_88, %c0_89, %c0_90] : memref<36x128x128xbf16, #tpu.memory_space<vmem>>, vector<1x128x128xbf16>
    %97 = vector.shape_cast %96 : vector<1x128x128xbf16> to vector<128x128xbf16>
    %cst_91 = arith.constant dense<0.000000e+00> : vector<378x128xf32>
    %98 = tpu.matmul %95, %97, %cst_91 {dimension_numbers = #tpu.dot_dimension_numbers<[1], [0], [0], [1], [0, 0, 1, 1], [], []>} : vector<378x128xbf16>, vector<128x128xbf16>, vector<378x128xf32> -> vector<378x128xf32>
    %99 = arith.addf %93, %98 : vector<378x128xf32>
    %c10 = arith.constant 10 : index
    %c0_92 = arith.constant 0 : index
    %100 = vector.load %arg6[%c10, %c0_92] : memref<400x128xf32, #tpu.memory_space<vmem>>, vector<378x128xf32>
    %101 = arith.truncf %100 : vector<378x128xf32> to vector<378x128xbf16>
    %c3 = arith.constant 3 : index
    %c0_93 = arith.constant 0 : index
    %c0_94 = arith.constant 0 : index
    %102 = vector.load %arg3[%c3, %c0_93, %c0_94] : memref<36x128x128xbf16, #tpu.memory_space<vmem>>, vector<1x128x128xbf16>
    %103 = vector.shape_cast %102 : vector<1x128x128xbf16> to vector<128x128xbf16>
    %cst_95 = arith.constant dense<0.000000e+00> : vector<378x128xf32>
    %104 = tpu.matmul %101, %103, %cst_95 {dimension_numbers = #tpu.dot_dimension_numbers<[1], [0], [0], [1], [0, 0, 1, 1], [], []>} : vector<378x128xbf16>, vector<128x128xbf16>, vector<378x128xf32> -> vector<378x128xf32>
    %105 = arith.addf %99, %104 : vector<378x128xf32>
    %c11_96 = arith.constant 11 : index
    %c0_97 = arith.constant 0 : index
    %106 = vector.load %arg6[%c11_96, %c0_97] : memref<400x128xf32, #tpu.memory_space<vmem>>, vector<378x128xf32>
    %107 = arith.truncf %106 : vector<378x128xf32> to vector<378x128xbf16>
    %c4 = arith.constant 4 : index
    %c0_98 = arith.constant 0 : index
    %c0_99 = arith.constant 0 : index
    %108 = vector.load %arg3[%c4, %c0_98, %c0_99] : memref<36x128x128xbf16, #tpu.memory_space<vmem>>, vector<1x128x128xbf16>
    %109 = vector.shape_cast %108 : vector<1x128x128xbf16> to vector<128x128xbf16>
    %cst_100 = arith.constant dense<0.000000e+00> : vector<378x128xf32>
    %110 = tpu.matmul %107, %109, %cst_100 {dimension_numbers = #tpu.dot_dimension_numbers<[1], [0], [0], [1], [0, 0, 1, 1], [], []>} : vector<378x128xbf16>, vector<128x128xbf16>, vector<378x128xf32> -> vector<378x128xf32>
    %111 = arith.addf %105, %110 : vector<378x128xf32>
    %c12 = arith.constant 12 : index
    %c0_101 = arith.constant 0 : index
    %112 = vector.load %arg6[%c12, %c0_101] : memref<400x128xf32, #tpu.memory_space<vmem>>, vector<378x128xf32>
    %113 = arith.truncf %112 : vector<378x128xf32> to vector<378x128xbf16>
    %c5 = arith.constant 5 : index
    %c0_102 = arith.constant 0 : index
    %c0_103 = arith.constant 0 : index
    %114 = vector.load %arg3[%c5, %c0_102, %c0_103] : memref<36x128x128xbf16, #tpu.memory_space<vmem>>, vector<1x128x128xbf16>
    %115 = vector.shape_cast %114 : vector<1x128x128xbf16> to vector<128x128xbf16>
    %cst_104 = arith.constant dense<0.000000e+00> : vector<378x128xf32>
    %116 = tpu.matmul %113, %115, %cst_104 {dimension_numbers = #tpu.dot_dimension_numbers<[1], [0], [0], [1], [0, 0, 1, 1], [], []>} : vector<378x128xbf16>, vector<128x128xbf16>, vector<378x128xf32> -> vector<378x128xf32>
    %117 = arith.addf %111, %116 : vector<378x128xf32>
    %c20 = arith.constant 20 : index
    %c0_105 = arith.constant 0 : index
    %118 = vector.load %arg6[%c20, %c0_105] : memref<400x128xf32, #tpu.memory_space<vmem>>, vector<378x128xf32>
    %119 = arith.truncf %118 : vector<378x128xf32> to vector<378x128xbf16>
    %c6 = arith.constant 6 : index
    %c0_106 = arith.constant 0 : index
    %c0_107 = arith.constant 0 : index
    %120 = vector.load %arg3[%c6, %c0_106, %c0_107] : memref<36x128x128xbf16, #tpu.memory_space<vmem>>, vector<1x128x128xbf16>
    %121 = vector.shape_cast %120 : vector<1x128x128xbf16> to vector<128x128xbf16>
    %cst_108 = arith.constant dense<0.000000e+00> : vector<378x128xf32>
    %122 = tpu.matmul %119, %121, %cst_108 {dimension_numbers = #tpu.dot_dimension_numbers<[1], [0], [0], [1], [0, 0, 1, 1], [], []>} : vector<378x128xbf16>, vector<128x128xbf16>, vector<378x128xf32> -> vector<378x128xf32>
    %123 = arith.addf %117, %122 : vector<378x128xf32>
    %c21_109 = arith.constant 21 : index
    %c0_110 = arith.constant 0 : index
    %124 = vector.load %arg6[%c21_109, %c0_110] : memref<400x128xf32, #tpu.memory_space<vmem>>, vector<378x128xf32>
    %125 = arith.truncf %124 : vector<378x128xf32> to vector<378x128xbf16>
    %c7 = arith.constant 7 : index
    %c0_111 = arith.constant 0 : index
    %c0_112 = arith.constant 0 : index
    %126 = vector.load %arg3[%c7, %c0_111, %c0_112] : memref<36x128x128xbf16, #tpu.memory_space<vmem>>, vector<1x128x128xbf16>
    %127 = vector.shape_cast %126 : vector<1x128x128xbf16> to vector<128x128xbf16>
    %cst_113 = arith.constant dense<0.000000e+00> : vector<378x128xf32>
    %128 = tpu.matmul %125, %127, %cst_113 {dimension_numbers = #tpu.dot_dimension_numbers<[1], [0], [0], [1], [0, 0, 1, 1], [], []>} : vector<378x128xbf16>, vector<128x128xbf16>, vector<378x128xf32> -> vector<378x128xf32>
    %129 = arith.addf %123, %128 : vector<378x128xf32>
    %c22 = arith.constant 22 : index
    %c0_114 = arith.constant 0 : index
    %130 = vector.load %arg6[%c22, %c0_114] : memref<400x128xf32, #tpu.memory_space<vmem>>, vector<378x128xf32>
    %131 = arith.truncf %130 : vector<378x128xf32> to vector<378x128xbf16>
    %c8 = arith.constant 8 : index
    %c0_115 = arith.constant 0 : index
    %c0_116 = arith.constant 0 : index
    %132 = vector.load %arg3[%c8, %c0_115, %c0_116] : memref<36x128x128xbf16, #tpu.memory_space<vmem>>, vector<1x128x128xbf16>
    %133 = vector.shape_cast %132 : vector<1x128x128xbf16> to vector<128x128xbf16>
    %cst_117 = arith.constant dense<0.000000e+00> : vector<378x128xf32>
    %134 = tpu.matmul %131, %133, %cst_117 {dimension_numbers = #tpu.dot_dimension_numbers<[1], [0], [0], [1], [0, 0, 1, 1], [], []>} : vector<378x128xbf16>, vector<128x128xbf16>, vector<378x128xf32> -> vector<378x128xf32>
    %135 = arith.addf %129, %134 : vector<378x128xf32>
    %136 = vector.extract_strided_slice %0 {offsets = [1, 0], sizes = [1, 128], strides = [1, 1]} : vector<5x128xf32> to vector<1x128xf32>
    %137 = vector.broadcast %136 : vector<1x128xf32> to vector<378x128xf32>
    %138 = arith.addf %135, %137 : vector<378x128xf32>
    %cst_118 = arith.constant 0.000000e+00 : f32
    %139 = vector.broadcast %cst_118 : f32 to vector<378x128xf32>
    %140 = arith.maximumf %138, %139 : vector<378x128xf32>
    %141 = vector.extract_strided_slice %140 {offsets = [0, 0], sizes = [367, 128], strides = [1, 1]} : vector<378x128xf32> to vector<367x128xf32>
    %142 = vector.extract_strided_slice %140 {offsets = [1, 0], sizes = [367, 128], strides = [1, 1]} : vector<378x128xf32> to vector<367x128xf32>
    %143 = arith.maximumf %141, %142 : vector<367x128xf32>
    %144 = vector.extract_strided_slice %140 {offsets = [10, 0], sizes = [367, 128], strides = [1, 1]} : vector<378x128xf32> to vector<367x128xf32>
    %145 = arith.maximumf %143, %144 : vector<367x128xf32>
    %146 = vector.extract_strided_slice %140 {offsets = [11, 0], sizes = [367, 128], strides = [1, 1]} : vector<378x128xf32> to vector<367x128xf32>
    %147 = arith.maximumf %145, %146 : vector<367x128xf32>
    %c0_119 = arith.constant 0 : index
    %c0_120 = arith.constant 0 : index
    %148 = vector.load %arg10[%c0_119, %c0_120] : memref<1008x128xf32, #tpu.memory_space<vmem>>, vector<367x128xf32>
    tpu.vector_store %arg10[%c0_119, %c0_120], %147 {strides = array<i32>} : memref<1008x128xf32, #tpu.memory_space<vmem>>, vector<367x128xf32>,
    %cst_121 = arith.constant 0.000000e+00 : f32
    %149 = vector.broadcast %cst_121 : f32 to vector<144x128xf32>
    %c0_122 = arith.constant 0 : index
    %c0_123 = arith.constant 0 : index
    %150 = vector.load %arg7[%c0_122, %c0_123] : memref<144x128xf32, #tpu.memory_space<vmem>>, vector<144x128xf32>
    tpu.vector_store %arg7[%c0_122, %c0_123], %149 {strides = array<i32>} : memref<144x128xf32, #tpu.memory_space<vmem>>, vector<144x128xf32>,
    %c0_124 = arith.constant 0 : index
    %c0_125 = arith.constant 0 : index
    %151 = tpu.strided_load %arg10[%c0_124, %c0_125] {strides = array<i32: 2, 1>} : memref<1008x128xf32, #tpu.memory_space<vmem>>, vector<4x128xf32>
    %c7_126 = arith.constant 7 : index
    %c0_127 = arith.constant 0 : index
    %152 = vector.load %arg7[%c7_126, %c0_127] : memref<144x128xf32, #tpu.memory_space<vmem>>, vector<4x128xf32>
    tpu.vector_store %arg7[%c7_126, %c0_127], %151 {strides = array<i32>} : memref<144x128xf32, #tpu.memory_space<vmem>>, vector<4x128xf32>,
    %c20_128 = arith.constant 20 : index
    %c0_129 = arith.constant 0 : index
    %153 = tpu.strided_load %arg10[%c20_128, %c0_129] {strides = array<i32: 2, 1>} : memref<1008x128xf32, #tpu.memory_space<vmem>>, vector<4x128xf32>
    %c13 = arith.constant 13 : index
    %c0_130 = arith.constant 0 : index
    %154 = vector.load %arg7[%c13, %c0_130] : memref<144x128xf32, #tpu.memory_space<vmem>>, vector<4x128xf32>
    tpu.vector_store %arg7[%c13, %c0_130], %153 {strides = array<i32>} : memref<144x128xf32, #tpu.memory_space<vmem>>, vector<4x128xf32>,
    %c40 = arith.constant 40 : index
    %c0_131 = arith.constant 0 : index
    %155 = tpu.strided_load %arg10[%c40, %c0_131] {strides = array<i32: 2, 1>} : memref<1008x128xf32, #tpu.memory_space<vmem>>, vector<4x128xf32>
    %c19 = arith.constant 19 : index
    %c0_132 = arith.constant 0 : index
    %156 = vector.load %arg7[%c19, %c0_132] : memref<144x128xf32, #tpu.memory_space<vmem>>, vector<4x128xf32>
    tpu.vector_store %arg7[%c19, %c0_132], %155 {strides = array<i32>} : memref<144x128xf32, #tpu.memory_space<vmem>>, vector<4x128xf32>,
    %c60 = arith.constant 60 : index
    %c0_133 = arith.constant 0 : index
    %157 = tpu.strided_load %arg10[%c60, %c0_133] {strides = array<i32: 2, 1>} : memref<1008x128xf32, #tpu.memory_space<vmem>>, vector<4x128xf32>
    %c25 = arith.constant 25 : index
    %c0_134 = arith.constant 0 : index
    %158 = vector.load %arg7[%c25, %c0_134] : memref<144x128xf32, #tpu.memory_space<vmem>>, vector<4x128xf32>
    tpu.vector_store %arg7[%c25, %c0_134], %157 {strides = array<i32>} : memref<144x128xf32, #tpu.memory_space<vmem>>, vector<4x128xf32>,
    %c100 = arith.constant 100 : index
    %c0_135 = arith.constant 0 : index
    %159 = tpu.strided_load %arg10[%c100, %c0_135] {strides = array<i32: 2, 1>} : memref<1008x128xf32, #tpu.memory_space<vmem>>, vector<4x128xf32>
    %c43 = arith.constant 43 : index
    %c0_136 = arith.constant 0 : index
    %160 = vector.load %arg7[%c43, %c0_136] : memref<144x128xf32, #tpu.memory_space<vmem>>, vector<4x128xf32>
    tpu.vector_store %arg7[%c43, %c0_136], %159 {strides = array<i32>} : memref<144x128xf32, #tpu.memory_space<vmem>>, vector<4x128xf32>,
    %c120 = arith.constant 120 : index
    %c0_137 = arith.constant 0 : index
    %161 = tpu.strided_load %arg10[%c120, %c0_137] {strides = array<i32: 2, 1>} : memref<1008x128xf32, #tpu.memory_space<vmem>>, vector<4x128xf32>
    %c49 = arith.constant 49 : index
    %c0_138 = arith.constant 0 : index
    %162 = vector.load %arg7[%c49, %c0_138] : memref<144x128xf32, #tpu.memory_space<vmem>>, vector<4x128xf32>
    tpu.vector_store %arg7[%c49, %c0_138], %161 {strides = array<i32>} : memref<144x128xf32, #tpu.memory_space<vmem>>, vector<4x128xf32>,
    %c140 = arith.constant 140 : index
    %c0_139 = arith.constant 0 : index
    %163 = tpu.strided_load %arg10[%c140, %c0_139] {strides = array<i32: 2, 1>} : memref<1008x128xf32, #tpu.memory_space<vmem>>, vector<4x128xf32>
    %c55 = arith.constant 55 : index
    %c0_140 = arith.constant 0 : index
    %164 = vector.load %arg7[%c55, %c0_140] : memref<144x128xf32, #tpu.memory_space<vmem>>, vector<4x128xf32>
    tpu.vector_store %arg7[%c55, %c0_140], %163 {strides = array<i32>} : memref<144x128xf32, #tpu.memory_space<vmem>>, vector<4x128xf32>,
    %c160_141 = arith.constant 160 : index
    %c0_142 = arith.constant 0 : index
    %165 = tpu.strided_load %arg10[%c160_141, %c0_142] {strides = array<i32: 2, 1>} : memref<1008x128xf32, #tpu.memory_space<vmem>>, vector<4x128xf32>
    %c61_143 = arith.constant 61 : index
    %c0_144 = arith.constant 0 : index
    %166 = vector.load %arg7[%c61_143, %c0_144] : memref<144x128xf32, #tpu.memory_space<vmem>>, vector<4x128xf32>
    tpu.vector_store %arg7[%c61_143, %c0_144], %165 {strides = array<i32>} : memref<144x128xf32, #tpu.memory_space<vmem>>, vector<4x128xf32>,
    %c200 = arith.constant 200 : index
    %c0_145 = arith.constant 0 : index
    %167 = tpu.strided_load %arg10[%c200, %c0_145] {strides = array<i32: 2, 1>} : memref<1008x128xf32, #tpu.memory_space<vmem>>, vector<4x128xf32>
    %c79 = arith.constant 79 : index
    %c0_146 = arith.constant 0 : index
    %168 = vector.load %arg7[%c79, %c0_146] : memref<144x128xf32, #tpu.memory_space<vmem>>, vector<4x128xf32>
    tpu.vector_store %arg7[%c79, %c0_146], %167 {strides = array<i32>} : memref<144x128xf32, #tpu.memory_space<vmem>>, vector<4x128xf32>,
    %c220 = arith.constant 220 : index
    %c0_147 = arith.constant 0 : index
    %169 = tpu.strided_load %arg10[%c220, %c0_147] {strides = array<i32: 2, 1>} : memref<1008x128xf32, #tpu.memory_space<vmem>>, vector<4x128xf32>
    %c85 = arith.constant 85 : index
    %c0_148 = arith.constant 0 : index
    %170 = vector.load %arg7[%c85, %c0_148] : memref<144x128xf32, #tpu.memory_space<vmem>>, vector<4x128xf32>
    tpu.vector_store %arg7[%c85, %c0_148], %169 {strides = array<i32>} : memref<144x128xf32, #tpu.memory_space<vmem>>, vector<4x128xf32>,
    %c240 = arith.constant 240 : index
    %c0_149 = arith.constant 0 : index
    %171 = tpu.strided_load %arg10[%c240, %c0_149] {strides = array<i32: 2, 1>} : memref<1008x128xf32, #tpu.memory_space<vmem>>, vector<4x128xf32>
    %c91 = arith.constant 91 : index
    %c0_150 = arith.constant 0 : index
    %172 = vector.load %arg7[%c91, %c0_150] : memref<144x128xf32, #tpu.memory_space<vmem>>, vector<4x128xf32>
    tpu.vector_store %arg7[%c91, %c0_150], %171 {strides = array<i32>} : memref<144x128xf32, #tpu.memory_space<vmem>>, vector<4x128xf32>,
    %c260 = arith.constant 260 : index
    %c0_151 = arith.constant 0 : index
    %173 = tpu.strided_load %arg10[%c260, %c0_151] {strides = array<i32: 2, 1>} : memref<1008x128xf32, #tpu.memory_space<vmem>>, vector<4x128xf32>
    %c97 = arith.constant 97 : index
    %c0_152 = arith.constant 0 : index
    %174 = vector.load %arg7[%c97, %c0_152] : memref<144x128xf32, #tpu.memory_space<vmem>>, vector<4x128xf32>
    tpu.vector_store %arg7[%c97, %c0_152], %173 {strides = array<i32>} : memref<144x128xf32, #tpu.memory_space<vmem>>, vector<4x128xf32>,
    %c300 = arith.constant 300 : index
    %c0_153 = arith.constant 0 : index
    %175 = tpu.strided_load %arg10[%c300, %c0_153] {strides = array<i32: 2, 1>} : memref<1008x128xf32, #tpu.memory_space<vmem>>, vector<4x128xf32>
    %c115 = arith.constant 115 : index
    %c0_154 = arith.constant 0 : index
    %176 = vector.load %arg7[%c115, %c0_154] : memref<144x128xf32, #tpu.memory_space<vmem>>, vector<4x128xf32>
    tpu.vector_store %arg7[%c115, %c0_154], %175 {strides = array<i32>} : memref<144x128xf32, #tpu.memory_space<vmem>>, vector<4x128xf32>,
    %c320_155 = arith.constant 320 : index
    %c0_156 = arith.constant 0 : index
    %177 = tpu.strided_load %arg10[%c320_155, %c0_156] {strides = array<i32: 2, 1>} : memref<1008x128xf32, #tpu.memory_space<vmem>>, vector<4x128xf32>
    %c121_157 = arith.constant 121 : index
    %c0_158 = arith.constant 0 : index
    %178 = vector.load %arg7[%c121_157, %c0_158] : memref<144x128xf32, #tpu.memory_space<vmem>>, vector<4x128xf32>
    tpu.vector_store %arg7[%c121_157, %c0_158], %177 {strides = array<i32>} : memref<144x128xf32, #tpu.memory_space<vmem>>, vector<4x128xf32>,
    %c340 = arith.constant 340 : index
    %c0_159 = arith.constant 0 : index
    %179 = tpu.strided_load %arg10[%c340, %c0_159] {strides = array<i32: 2, 1>} : memref<1008x128xf32, #tpu.memory_space<vmem>>, vector<4x128xf32>
    %c127 = arith.constant 127 : index
    %c0_160 = arith.constant 0 : index
    %180 = vector.load %arg7[%c127, %c0_160] : memref<144x128xf32, #tpu.memory_space<vmem>>, vector<4x128xf32>
    tpu.vector_store %arg7[%c127, %c0_160], %179 {strides = array<i32>} : memref<144x128xf32, #tpu.memory_space<vmem>>, vector<4x128xf32>,
    %c360 = arith.constant 360 : index
    %c0_161 = arith.constant 0 : index
    %181 = tpu.strided_load %arg10[%c360, %c0_161] {strides = array<i32: 2, 1>} : memref<1008x128xf32, #tpu.memory_space<vmem>>, vector<4x128xf32>
    %c133 = arith.constant 133 : index
    %c0_162 = arith.constant 0 : index
    %182 = vector.load %arg7[%c133, %c0_162] : memref<144x128xf32, #tpu.memory_space<vmem>>, vector<4x128xf32>
    tpu.vector_store %arg7[%c133, %c0_162], %181 {strides = array<i32>} : memref<144x128xf32, #tpu.memory_space<vmem>>, vector<4x128xf32>,
    %c0_163 = arith.constant 0 : index
    %c0_164 = arith.constant 0 : index
    %183 = vector.load %arg7[%c0_163, %c0_164] : memref<144x128xf32, #tpu.memory_space<vmem>>, vector<130x128xf32>
    %184 = arith.truncf %183 : vector<130x128xf32> to vector<130x128xbf16>
    %c9 = arith.constant 9 : index
    %c0_165 = arith.constant 0 : index
    %c0_166 = arith.constant 0 : index
    %185 = vector.load %arg3[%c9, %c0_165, %c0_166] : memref<36x128x128xbf16, #tpu.memory_space<vmem>>, vector<1x128x128xbf16>
    %186 = vector.shape_cast %185 : vector<1x128x128xbf16> to vector<128x128xbf16>
    %cst_167 = arith.constant dense<0.000000e+00> : vector<130x128xf32>
    %187 = tpu.matmul %184, %186, %cst_167 {dimension_numbers = #tpu.dot_dimension_numbers<[1], [0], [0], [1], [0, 0, 1, 1], [], []>} : vector<130x128xbf16>, vector<128x128xbf16>, vector<130x128xf32> -> vector<130x128xf32>
    %c1_168 = arith.constant 1 : index
    %c0_169 = arith.constant 0 : index
    %188 = vector.load %arg7[%c1_168, %c0_169] : memref<144x128xf32, #tpu.memory_space<vmem>>, vector<130x128xf32>
    %189 = arith.truncf %188 : vector<130x128xf32> to vector<130x128xbf16>
    %c10_170 = arith.constant 10 : index
    %c0_171 = arith.constant 0 : index
    %c0_172 = arith.constant 0 : index
    %190 = vector.load %arg3[%c10_170, %c0_171, %c0_172] : memref<36x128x128xbf16, #tpu.memory_space<vmem>>, vector<1x128x128xbf16>
    %191 = vector.shape_cast %190 : vector<1x128x128xbf16> to vector<128x128xbf16>
    %cst_173 = arith.constant dense<0.000000e+00> : vector<130x128xf32>
    %192 = tpu.matmul %189, %191, %cst_173 {dimension_numbers = #tpu.dot_dimension_numbers<[1], [0], [0], [1], [0, 0, 1, 1], [], []>} : vector<130x128xbf16>, vector<128x128xbf16>, vector<130x128xf32> -> vector<130x128xf32>
    %193 = arith.addf %187, %192 : vector<130x128xf32>
    %c2_174 = arith.constant 2 : index
    %c0_175 = arith.constant 0 : index
    %194 = vector.load %arg7[%c2_174, %c0_175] : memref<144x128xf32, #tpu.memory_space<vmem>>, vector<130x128xf32>
    %195 = arith.truncf %194 : vector<130x128xf32> to vector<130x128xbf16>
    %c11_176 = arith.constant 11 : index
    %c0_177 = arith.constant 0 : index
    %c0_178 = arith.constant 0 : index
    %196 = vector.load %arg3[%c11_176, %c0_177, %c0_178] : memref<36x128x128xbf16, #tpu.memory_space<vmem>>, vector<1x128x128xbf16>
    %197 = vector.shape_cast %196 : vector<1x128x128xbf16> to vector<128x128xbf16>
    %cst_179 = arith.constant dense<0.000000e+00> : vector<130x128xf32>
    %198 = tpu.matmul %195, %197, %cst_179 {dimension_numbers = #tpu.dot_dimension_numbers<[1], [0], [0], [1], [0, 0, 1, 1], [], []>} : vector<130x128xbf16>, vector<128x128xbf16>, vector<130x128xf32> -> vector<130x128xf32>
    %199 = arith.addf %193, %198 : vector<130x128xf32>
    %c6_180 = arith.constant 6 : index
    %c0_181 = arith.constant 0 : index
    %200 = vector.load %arg7[%c6_180, %c0_181] : memref<144x128xf32, #tpu.memory_space<vmem>>, vector<130x128xf32>
    %201 = arith.truncf %200 : vector<130x128xf32> to vector<130x128xbf16>
    %c12_182 = arith.constant 12 : index
    %c0_183 = arith.constant 0 : index
    %c0_184 = arith.constant 0 : index
    %202 = vector.load %arg3[%c12_182, %c0_183, %c0_184] : memref<36x128x128xbf16, #tpu.memory_space<vmem>>, vector<1x128x128xbf16>
    %203 = vector.shape_cast %202 : vector<1x128x128xbf16> to vector<128x128xbf16>
    %cst_185 = arith.constant dense<0.000000e+00> : vector<130x128xf32>
    %204 = tpu.matmul %201, %203, %cst_185 {dimension_numbers = #tpu.dot_dimension_numbers<[1], [0], [0], [1], [0, 0, 1, 1], [], []>} : vector<130x128xbf16>, vector<128x128xbf16>, vector<130x128xf32> -> vector<130x128xf32>
    %205 = arith.addf %199, %204 : vector<130x128xf32>
    %c7_186 = arith.constant 7 : index
    %c0_187 = arith.constant 0 : index
    %206 = vector.load %arg7[%c7_186, %c0_187] : memref<144x128xf32, #tpu.memory_space<vmem>>, vector<130x128xf32>
    %207 = arith.truncf %206 : vector<130x128xf32> to vector<130x128xbf16>
    %c13_188 = arith.constant 13 : index
    %c0_189 = arith.constant 0 : index
    %c0_190 = arith.constant 0 : index
    %208 = vector.load %arg3[%c13_188, %c0_189, %c0_190] : memref<36x128x128xbf16, #tpu.memory_space<vmem>>, vector<1x128x128xbf16>
    %209 = vector.shape_cast %208 : vector<1x128x128xbf16> to vector<128x128xbf16>
    %cst_191 = arith.constant dense<0.000000e+00> : vector<130x128xf32>
    %210 = tpu.matmul %207, %209, %cst_191 {dimension_numbers = #tpu.dot_dimension_numbers<[1], [0], [0], [1], [0, 0, 1, 1], [], []>} : vector<130x128xbf16>, vector<128x128xbf16>, vector<130x128xf32> -> vector<130x128xf32>
    %211 = arith.addf %205, %210 : vector<130x128xf32>
    %c8_192 = arith.constant 8 : index
    %c0_193 = arith.constant 0 : index
    %212 = vector.load %arg7[%c8_192, %c0_193] : memref<144x128xf32, #tpu.memory_space<vmem>>, vector<130x128xf32>
    %213 = arith.truncf %212 : vector<130x128xf32> to vector<130x128xbf16>
    %c14 = arith.constant 14 : index
    %c0_194 = arith.constant 0 : index
    %c0_195 = arith.constant 0 : index
    %214 = vector.load %arg3[%c14, %c0_194, %c0_195] : memref<36x128x128xbf16, #tpu.memory_space<vmem>>, vector<1x128x128xbf16>
    %215 = vector.shape_cast %214 : vector<1x128x128xbf16> to vector<128x128xbf16>
    %cst_196 = arith.constant dense<0.000000e+00> : vector<130x128xf32>
    %216 = tpu.matmul %213, %215, %cst_196 {dimension_numbers = #tpu.dot_dimension_numbers<[1], [0], [0], [1], [0, 0, 1, 1], [], []>} : vector<130x128xbf16>, vector<128x128xbf16>, vector<130x128xf32> -> vector<130x128xf32>
    %217 = arith.addf %211, %216 : vector<130x128xf32>
    %c12_197 = arith.constant 12 : index
    %c0_198 = arith.constant 0 : index
    %218 = vector.load %arg7[%c12_197, %c0_198] : memref<144x128xf32, #tpu.memory_space<vmem>>, vector<130x128xf32>
    %219 = arith.truncf %218 : vector<130x128xf32> to vector<130x128xbf16>
    %c15 = arith.constant 15 : index
    %c0_199 = arith.constant 0 : index
    %c0_200 = arith.constant 0 : index
    %220 = vector.load %arg3[%c15, %c0_199, %c0_200] : memref<36x128x128xbf16, #tpu.memory_space<vmem>>, vector<1x128x128xbf16>
    %221 = vector.shape_cast %220 : vector<1x128x128xbf16> to vector<128x128xbf16>
    %cst_201 = arith.constant dense<0.000000e+00> : vector<130x128xf32>
    %222 = tpu.matmul %219, %221, %cst_201 {dimension_numbers = #tpu.dot_dimension_numbers<[1], [0], [0], [1], [0, 0, 1, 1], [], []>} : vector<130x128xbf16>, vector<128x128xbf16>, vector<130x128xf32> -> vector<130x128xf32>
    %223 = arith.addf %217, %222 : vector<130x128xf32>
    %c13_202 = arith.constant 13 : index
    %c0_203 = arith.constant 0 : index
    %224 = vector.load %arg7[%c13_202, %c0_203] : memref<144x128xf32, #tpu.memory_space<vmem>>, vector<130x128xf32>
    %225 = arith.truncf %224 : vector<130x128xf32> to vector<130x128xbf16>
    %c16 = arith.constant 16 : index
    %c0_204 = arith.constant 0 : index
    %c0_205 = arith.constant 0 : index
    %226 = vector.load %arg3[%c16, %c0_204, %c0_205] : memref<36x128x128xbf16, #tpu.memory_space<vmem>>, vector<1x128x128xbf16>
    %227 = vector.shape_cast %226 : vector<1x128x128xbf16> to vector<128x128xbf16>
    %cst_206 = arith.constant dense<0.000000e+00> : vector<130x128xf32>
    %228 = tpu.matmul %225, %227, %cst_206 {dimension_numbers = #tpu.dot_dimension_numbers<[1], [0], [0], [1], [0, 0, 1, 1], [], []>} : vector<130x128xbf16>, vector<128x128xbf16>, vector<130x128xf32> -> vector<130x128xf32>
    %229 = arith.addf %223, %228 : vector<130x128xf32>
    %c14_207 = arith.constant 14 : index
    %c0_208 = arith.constant 0 : index
    %230 = vector.load %arg7[%c14_207, %c0_208] : memref<144x128xf32, #tpu.memory_space<vmem>>, vector<130x128xf32>
    %231 = arith.truncf %230 : vector<130x128xf32> to vector<130x128xbf16>
    %c17 = arith.constant 17 : index
    %c0_209 = arith.constant 0 : index
    %c0_210 = arith.constant 0 : index
    %232 = vector.load %arg3[%c17, %c0_209, %c0_210] : memref<36x128x128xbf16, #tpu.memory_space<vmem>>, vector<1x128x128xbf16>
    %233 = vector.shape_cast %232 : vector<1x128x128xbf16> to vector<128x128xbf16>
    %cst_211 = arith.constant dense<0.000000e+00> : vector<130x128xf32>
    %234 = tpu.matmul %231, %233, %cst_211 {dimension_numbers = #tpu.dot_dimension_numbers<[1], [0], [0], [1], [0, 0, 1, 1], [], []>} : vector<130x128xbf16>, vector<128x128xbf16>, vector<130x128xf32> -> vector<130x128xf32>
    %235 = arith.addf %229, %234 : vector<130x128xf32>
    %236 = vector.extract_strided_slice %0 {offsets = [2, 0], sizes = [1, 128], strides = [1, 1]} : vector<5x128xf32> to vector<1x128xf32>
    %237 = vector.broadcast %236 : vector<1x128xf32> to vector<130x128xf32>
    %238 = arith.addf %235, %237 : vector<130x128xf32>
    %cst_212 = arith.constant 0.000000e+00 : f32
    %239 = vector.broadcast %cst_212 : f32 to vector<130x128xf32>
    %240 = arith.maximumf %238, %239 : vector<130x128xf32>
    %241 = vector.extract_strided_slice %240 {offsets = [0, 0], sizes = [123, 128], strides = [1, 1]} : vector<130x128xf32> to vector<123x128xf32>
    %242 = vector.extract_strided_slice %240 {offsets = [1, 0], sizes = [123, 128], strides = [1, 1]} : vector<130x128xf32> to vector<123x128xf32>
    %243 = arith.maximumf %241, %242 : vector<123x128xf32>
    %244 = vector.extract_strided_slice %240 {offsets = [6, 0], sizes = [123, 128], strides = [1, 1]} : vector<130x128xf32> to vector<123x128xf32>
    %245 = arith.maximumf %243, %244 : vector<123x128xf32>
    %246 = vector.extract_strided_slice %240 {offsets = [7, 0], sizes = [123, 128], strides = [1, 1]} : vector<130x128xf32> to vector<123x128xf32>
    %247 = arith.maximumf %245, %246 : vector<123x128xf32>
    %c0_213 = arith.constant 0 : index
    %c0_214 = arith.constant 0 : index
    %248 = vector.load %arg10[%c0_213, %c0_214] : memref<1008x128xf32, #tpu.memory_space<vmem>>, vector<123x128xf32>
    tpu.vector_store %arg10[%c0_213, %c0_214], %247 {strides = array<i32>} : memref<1008x128xf32, #tpu.memory_space<vmem>>, vector<123x128xf32>,
    %cst_215 = arith.constant 0.000000e+00 : f32
    %249 = vector.broadcast %cst_215 : f32 to vector<64x128xf32>
    %c0_216 = arith.constant 0 : index
    %c0_217 = arith.constant 0 : index
    %250 = vector.load %arg8[%c0_216, %c0_217] : memref<64x128xf32, #tpu.memory_space<vmem>>, vector<64x128xf32>
    tpu.vector_store %arg8[%c0_216, %c0_217], %249 {strides = array<i32>} : memref<64x128xf32, #tpu.memory_space<vmem>>, vector<64x128xf32>,
    %c0_218 = arith.constant 0 : index
    %c0_219 = arith.constant 0 : index
    %251 = tpu.strided_load %arg10[%c0_218, %c0_219] {strides = array<i32: 2, 1>} : memref<1008x128xf32, #tpu.memory_space<vmem>>, vector<2x128xf32>
    %c5_220 = arith.constant 5 : index
    %c0_221 = arith.constant 0 : index
    %252 = vector.load %arg8[%c5_220, %c0_221] : memref<64x128xf32, #tpu.memory_space<vmem>>, vector<2x128xf32>
    tpu.vector_store %arg8[%c5_220, %c0_221], %251 {strides = array<i32>} : memref<64x128xf32, #tpu.memory_space<vmem>>, vector<2x128xf32>,
    %c12_222 = arith.constant 12 : index
    %c0_223 = arith.constant 0 : index
    %253 = tpu.strided_load %arg10[%c12_222, %c0_223] {strides = array<i32: 2, 1>} : memref<1008x128xf32, #tpu.memory_space<vmem>>, vector<2x128xf32>
    %c9_224 = arith.constant 9 : index
    %c0_225 = arith.constant 0 : index
    %254 = vector.load %arg8[%c9_224, %c0_225] : memref<64x128xf32, #tpu.memory_space<vmem>>, vector<2x128xf32>
    tpu.vector_store %arg8[%c9_224, %c0_225], %253 {strides = array<i32>} : memref<64x128xf32, #tpu.memory_space<vmem>>, vector<2x128xf32>,
    %c36 = arith.constant 36 : index
    %c0_226 = arith.constant 0 : index
    %255 = tpu.strided_load %arg10[%c36, %c0_226] {strides = array<i32: 2, 1>} : memref<1008x128xf32, #tpu.memory_space<vmem>>, vector<2x128xf32>
    %c21_227 = arith.constant 21 : index
    %c0_228 = arith.constant 0 : index
    %256 = vector.load %arg8[%c21_227, %c0_228] : memref<64x128xf32, #tpu.memory_space<vmem>>, vector<2x128xf32>
    tpu.vector_store %arg8[%c21_227, %c0_228], %255 {strides = array<i32>} : memref<64x128xf32, #tpu.memory_space<vmem>>, vector<2x128xf32>,
    %c48 = arith.constant 48 : index
    %c0_229 = arith.constant 0 : index
    %257 = tpu.strided_load %arg10[%c48, %c0_229] {strides = array<i32: 2, 1>} : memref<1008x128xf32, #tpu.memory_space<vmem>>, vector<2x128xf32>
    %c25_230 = arith.constant 25 : index
    %c0_231 = arith.constant 0 : index
    %258 = vector.load %arg8[%c25_230, %c0_231] : memref<64x128xf32, #tpu.memory_space<vmem>>, vector<2x128xf32>
    tpu.vector_store %arg8[%c25_230, %c0_231], %257 {strides = array<i32>} : memref<64x128xf32, #tpu.memory_space<vmem>>, vector<2x128xf32>,
    %c72 = arith.constant 72 : index
    %c0_232 = arith.constant 0 : index
    %259 = tpu.strided_load %arg10[%c72, %c0_232] {strides = array<i32: 2, 1>} : memref<1008x128xf32, #tpu.memory_space<vmem>>, vector<2x128xf32>
    %c37 = arith.constant 37 : index
    %c0_233 = arith.constant 0 : index
    %260 = vector.load %arg8[%c37, %c0_233] : memref<64x128xf32, #tpu.memory_space<vmem>>, vector<2x128xf32>
    tpu.vector_store %arg8[%c37, %c0_233], %259 {strides = array<i32>} : memref<64x128xf32, #tpu.memory_space<vmem>>, vector<2x128xf32>,
    %c84 = arith.constant 84 : index
    %c0_234 = arith.constant 0 : index
    %261 = tpu.strided_load %arg10[%c84, %c0_234] {strides = array<i32: 2, 1>} : memref<1008x128xf32, #tpu.memory_space<vmem>>, vector<2x128xf32>
    %c41_235 = arith.constant 41 : index
    %c0_236 = arith.constant 0 : index
    %262 = vector.load %arg8[%c41_235, %c0_236] : memref<64x128xf32, #tpu.memory_space<vmem>>, vector<2x128xf32>
    tpu.vector_store %arg8[%c41_235, %c0_236], %261 {strides = array<i32>} : memref<64x128xf32, #tpu.memory_space<vmem>>, vector<2x128xf32>,
    %c108 = arith.constant 108 : index
    %c0_237 = arith.constant 0 : index
    %263 = tpu.strided_load %arg10[%c108, %c0_237] {strides = array<i32: 2, 1>} : memref<1008x128xf32, #tpu.memory_space<vmem>>, vector<2x128xf32>
    %c53 = arith.constant 53 : index
    %c0_238 = arith.constant 0 : index
    %264 = vector.load %arg8[%c53, %c0_238] : memref<64x128xf32, #tpu.memory_space<vmem>>, vector<2x128xf32>
    tpu.vector_store %arg8[%c53, %c0_238], %263 {strides = array<i32>} : memref<64x128xf32, #tpu.memory_space<vmem>>, vector<2x128xf32>,
    %c120_239 = arith.constant 120 : index
    %c0_240 = arith.constant 0 : index
    %265 = tpu.strided_load %arg10[%c120_239, %c0_240] {strides = array<i32: 2, 1>} : memref<1008x128xf32, #tpu.memory_space<vmem>>, vector<2x128xf32>
    %c57 = arith.constant 57 : index
    %c0_241 = arith.constant 0 : index
    %266 = vector.load %arg8[%c57, %c0_241] : memref<64x128xf32, #tpu.memory_space<vmem>>, vector<2x128xf32>
    tpu.vector_store %arg8[%c57, %c0_241], %265 {strides = array<i32>} : memref<64x128xf32, #tpu.memory_space<vmem>>, vector<2x128xf32>,
    %c0_242 = arith.constant 0 : index
    %c0_243 = arith.constant 0 : index
    %267 = vector.load %arg8[%c0_242, %c0_243] : memref<64x128xf32, #tpu.memory_space<vmem>>, vector<54x128xf32>
    %268 = arith.truncf %267 : vector<54x128xf32> to vector<54x128xbf16>
    %c18 = arith.constant 18 : index
    %c0_244 = arith.constant 0 : index
    %c0_245 = arith.constant 0 : index
    %269 = vector.load %arg3[%c18, %c0_244, %c0_245] : memref<36x128x128xbf16, #tpu.memory_space<vmem>>, vector<1x128x128xbf16>
    %270 = vector.shape_cast %269 : vector<1x128x128xbf16> to vector<128x128xbf16>
    %cst_246 = arith.constant dense<0.000000e+00> : vector<54x128xf32>
    %271 = tpu.matmul %268, %270, %cst_246 {dimension_numbers = #tpu.dot_dimension_numbers<[1], [0], [0], [1], [0, 0, 1, 1], [], []>} : vector<54x128xbf16>, vector<128x128xbf16>, vector<54x128xf32> -> vector<54x128xf32>
    %c1_247 = arith.constant 1 : index
    %c0_248 = arith.constant 0 : index
    %272 = vector.load %arg8[%c1_247, %c0_248] : memref<64x128xf32, #tpu.memory_space<vmem>>, vector<54x128xf32>
    %273 = arith.truncf %272 : vector<54x128xf32> to vector<54x128xbf16>
    %c19_249 = arith.constant 19 : index
    %c0_250 = arith.constant 0 : index
    %c0_251 = arith.constant 0 : index
    %274 = vector.load %arg3[%c19_249, %c0_250, %c0_251] : memref<36x128x128xbf16, #tpu.memory_space<vmem>>, vector<1x128x128xbf16>
    %275 = vector.shape_cast %274 : vector<1x128x128xbf16> to vector<128x128xbf16>
    %cst_252 = arith.constant dense<0.000000e+00> : vector<54x128xf32>
    %276 = tpu.matmul %273, %275, %cst_252 {dimension_numbers = #tpu.dot_dimension_numbers<[1], [0], [0], [1], [0, 0, 1, 1], [], []>} : vector<54x128xbf16>, vector<128x128xbf16>, vector<54x128xf32> -> vector<54x128xf32>
    %277 = arith.addf %271, %276 : vector<54x128xf32>
    %c2_253 = arith.constant 2 : index
    %c0_254 = arith.constant 0 : index
    %278 = vector.load %arg8[%c2_253, %c0_254] : memref<64x128xf32, #tpu.memory_space<vmem>>, vector<54x128xf32>
    %279 = arith.truncf %278 : vector<54x128xf32> to vector<54x128xbf16>
    %c20_255 = arith.constant 20 : index
    %c0_256 = arith.constant 0 : index
    %c0_257 = arith.constant 0 : index
    %280 = vector.load %arg3[%c20_255, %c0_256, %c0_257] : memref<36x128x128xbf16, #tpu.memory_space<vmem>>, vector<1x128x128xbf16>
    %281 = vector.shape_cast %280 : vector<1x128x128xbf16> to vector<128x128xbf16>
    %cst_258 = arith.constant dense<0.000000e+00> : vector<54x128xf32>
    %282 = tpu.matmul %279, %281, %cst_258 {dimension_numbers = #tpu.dot_dimension_numbers<[1], [0], [0], [1], [0, 0, 1, 1], [], []>} : vector<54x128xbf16>, vector<128x128xbf16>, vector<54x128xf32> -> vector<54x128xf32>
    %283 = arith.addf %277, %282 : vector<54x128xf32>
    %c4_259 = arith.constant 4 : index
    %c0_260 = arith.constant 0 : index
    %284 = vector.load %arg8[%c4_259, %c0_260] : memref<64x128xf32, #tpu.memory_space<vmem>>, vector<54x128xf32>
    %285 = arith.truncf %284 : vector<54x128xf32> to vector<54x128xbf16>
    %c21_261 = arith.constant 21 : index
    %c0_262 = arith.constant 0 : index
    %c0_263 = arith.constant 0 : index
    %286 = vector.load %arg3[%c21_261, %c0_262, %c0_263] : memref<36x128x128xbf16, #tpu.memory_space<vmem>>, vector<1x128x128xbf16>
    %287 = vector.shape_cast %286 : vector<1x128x128xbf16> to vector<128x128xbf16>
    %cst_264 = arith.constant dense<0.000000e+00> : vector<54x128xf32>
    %288 = tpu.matmul %285, %287, %cst_264 {dimension_numbers = #tpu.dot_dimension_numbers<[1], [0], [0], [1], [0, 0, 1, 1], [], []>} : vector<54x128xbf16>, vector<128x128xbf16>, vector<54x128xf32> -> vector<54x128xf32>
    %289 = arith.addf %283, %288 : vector<54x128xf32>
    %c5_265 = arith.constant 5 : index
    %c0_266 = arith.constant 0 : index
    %290 = vector.load %arg8[%c5_265, %c0_266] : memref<64x128xf32, #tpu.memory_space<vmem>>, vector<54x128xf32>
    %291 = arith.truncf %290 : vector<54x128xf32> to vector<54x128xbf16>
    %c22_267 = arith.constant 22 : index
    %c0_268 = arith.constant 0 : index
    %c0_269 = arith.constant 0 : index
    %292 = vector.load %arg3[%c22_267, %c0_268, %c0_269] : memref<36x128x128xbf16, #tpu.memory_space<vmem>>, vector<1x128x128xbf16>
    %293 = vector.shape_cast %292 : vector<1x128x128xbf16> to vector<128x128xbf16>
    %cst_270 = arith.constant dense<0.000000e+00> : vector<54x128xf32>
    %294 = tpu.matmul %291, %293, %cst_270 {dimension_numbers = #tpu.dot_dimension_numbers<[1], [0], [0], [1], [0, 0, 1, 1], [], []>} : vector<54x128xbf16>, vector<128x128xbf16>, vector<54x128xf32> -> vector<54x128xf32>
    %295 = arith.addf %289, %294 : vector<54x128xf32>
    %c6_271 = arith.constant 6 : index
    %c0_272 = arith.constant 0 : index
    %296 = vector.load %arg8[%c6_271, %c0_272] : memref<64x128xf32, #tpu.memory_space<vmem>>, vector<54x128xf32>
    %297 = arith.truncf %296 : vector<54x128xf32> to vector<54x128xbf16>
    %c23 = arith.constant 23 : index
    %c0_273 = arith.constant 0 : index
    %c0_274 = arith.constant 0 : index
    %298 = vector.load %arg3[%c23, %c0_273, %c0_274] : memref<36x128x128xbf16, #tpu.memory_space<vmem>>, vector<1x128x128xbf16>
    %299 = vector.shape_cast %298 : vector<1x128x128xbf16> to vector<128x128xbf16>
    %cst_275 = arith.constant dense<0.000000e+00> : vector<54x128xf32>
    %300 = tpu.matmul %297, %299, %cst_275 {dimension_numbers = #tpu.dot_dimension_numbers<[1], [0], [0], [1], [0, 0, 1, 1], [], []>} : vector<54x128xbf16>, vector<128x128xbf16>, vector<54x128xf32> -> vector<54x128xf32>
    %301 = arith.addf %295, %300 : vector<54x128xf32>
    %c8_276 = arith.constant 8 : index
    %c0_277 = arith.constant 0 : index
    %302 = vector.load %arg8[%c8_276, %c0_277] : memref<64x128xf32, #tpu.memory_space<vmem>>, vector<54x128xf32>
    %303 = arith.truncf %302 : vector<54x128xf32> to vector<54x128xbf16>
    %c24 = arith.constant 24 : index
    %c0_278 = arith.constant 0 : index
    %c0_279 = arith.constant 0 : index
    %304 = vector.load %arg3[%c24, %c0_278, %c0_279] : memref<36x128x128xbf16, #tpu.memory_space<vmem>>, vector<1x128x128xbf16>
    %305 = vector.shape_cast %304 : vector<1x128x128xbf16> to vector<128x128xbf16>
    %cst_280 = arith.constant dense<0.000000e+00> : vector<54x128xf32>
    %306 = tpu.matmul %303, %305, %cst_280 {dimension_numbers = #tpu.dot_dimension_numbers<[1], [0], [0], [1], [0, 0, 1, 1], [], []>} : vector<54x128xbf16>, vector<128x128xbf16>, vector<54x128xf32> -> vector<54x128xf32>
    %307 = arith.addf %301, %306 : vector<54x128xf32>
    %c9_281 = arith.constant 9 : index
    %c0_282 = arith.constant 0 : index
    %308 = vector.load %arg8[%c9_281, %c0_282] : memref<64x128xf32, #tpu.memory_space<vmem>>, vector<54x128xf32>
    %309 = arith.truncf %308 : vector<54x128xf32> to vector<54x128xbf16>
    %c25_283 = arith.constant 25 : index
    %c0_284 = arith.constant 0 : index
    %c0_285 = arith.constant 0 : index
    %310 = vector.load %arg3[%c25_283, %c0_284, %c0_285] : memref<36x128x128xbf16, #tpu.memory_space<vmem>>, vector<1x128x128xbf16>
    %311 = vector.shape_cast %310 : vector<1x128x128xbf16> to vector<128x128xbf16>
    %cst_286 = arith.constant dense<0.000000e+00> : vector<54x128xf32>
    %312 = tpu.matmul %309, %311, %cst_286 {dimension_numbers = #tpu.dot_dimension_numbers<[1], [0], [0], [1], [0, 0, 1, 1], [], []>} : vector<54x128xbf16>, vector<128x128xbf16>, vector<54x128xf32> -> vector<54x128xf32>
    %313 = arith.addf %307, %312 : vector<54x128xf32>
    %c10_287 = arith.constant 10 : index
    %c0_288 = arith.constant 0 : index
    %314 = vector.load %arg8[%c10_287, %c0_288] : memref<64x128xf32, #tpu.memory_space<vmem>>, vector<54x128xf32>
    %315 = arith.truncf %314 : vector<54x128xf32> to vector<54x128xbf16>
    %c26 = arith.constant 26 : index
    %c0_289 = arith.constant 0 : index
    %c0_290 = arith.constant 0 : index
    %316 = vector.load %arg3[%c26, %c0_289, %c0_290] : memref<36x128x128xbf16, #tpu.memory_space<vmem>>, vector<1x128x128xbf16>
    %317 = vector.shape_cast %316 : vector<1x128x128xbf16> to vector<128x128xbf16>
    %cst_291 = arith.constant dense<0.000000e+00> : vector<54x128xf32>
    %318 = tpu.matmul %315, %317, %cst_291 {dimension_numbers = #tpu.dot_dimension_numbers<[1], [0], [0], [1], [0, 0, 1, 1], [], []>} : vector<54x128xbf16>, vector<128x128xbf16>, vector<54x128xf32> -> vector<54x128xf32>
    %319 = arith.addf %313, %318 : vector<54x128xf32>
    %320 = vector.extract_strided_slice %0 {offsets = [3, 0], sizes = [1, 128], strides = [1, 1]} : vector<5x128xf32> to vector<1x128xf32>
    %321 = vector.broadcast %320 : vector<1x128xf32> to vector<54x128xf32>
    %322 = arith.addf %319, %321 : vector<54x128xf32>
    %cst_292 = arith.constant 0.000000e+00 : f32
    %323 = vector.broadcast %cst_292 : f32 to vector<54x128xf32>
    %324 = arith.maximumf %322, %323 : vector<54x128xf32>
    %325 = vector.extract_strided_slice %324 {offsets = [0, 0], sizes = [53, 128], strides = [1, 1]} : vector<54x128xf32> to vector<53x128xf32>
    %326 = vector.extract_strided_slice %324 {offsets = [1, 0], sizes = [53, 128], strides = [1, 1]} : vector<54x128xf32> to vector<53x128xf32>
    %327 = arith.maximumf %325, %326 : vector<53x128xf32>
    %c0_293 = arith.constant 0 : index
    %c0_294 = arith.constant 0 : index
    %328 = vector.load %arg10[%c0_293, %c0_294] : memref<1008x128xf32, #tpu.memory_space<vmem>>, vector<53x128xf32>
    tpu.vector_store %arg10[%c0_293, %c0_294], %327 {strides = array<i32>} : memref<1008x128xf32, #tpu.memory_space<vmem>>, vector<53x128xf32>,
    %cst_295 = arith.constant 0.000000e+00 : f32
    %329 = vector.broadcast %cst_295 : f32 to vector<48x128xf32>
    %c0_296 = arith.constant 0 : index
    %c0_297 = arith.constant 0 : index
    %330 = vector.load %arg9[%c0_296, %c0_297] : memref<48x128xf32, #tpu.memory_space<vmem>>, vector<48x128xf32>
    tpu.vector_store %arg9[%c0_296, %c0_297], %329 {strides = array<i32>} : memref<48x128xf32, #tpu.memory_space<vmem>>, vector<48x128xf32>,
    %c0_298 = arith.constant 0 : index
    %c0_299 = arith.constant 0 : index
    %331 = tpu.strided_load %arg10[%c0_298, %c0_299] {strides = array<i32: 2, 1>} : memref<1008x128xf32, #tpu.memory_space<vmem>>, vector<1x128xf32>
    %c4_300 = arith.constant 4 : index
    %c0_301 = arith.constant 0 : index
    %332 = vector.load %arg9[%c4_300, %c0_301] : memref<48x128xf32, #tpu.memory_space<vmem>>, vector<1x128xf32>
    tpu.vector_store %arg9[%c4_300, %c0_301], %331 {strides = array<i32>} : memref<48x128xf32, #tpu.memory_space<vmem>>, vector<1x128xf32>,
    %c4_302 = arith.constant 4 : index
    %c0_303 = arith.constant 0 : index
    %333 = tpu.strided_load %arg10[%c4_302, %c0_303] {strides = array<i32: 2, 1>} : memref<1008x128xf32, #tpu.memory_space<vmem>>, vector<1x128xf32>
    %c7_304 = arith.constant 7 : index
    %c0_305 = arith.constant 0 : index
    %334 = vector.load %arg9[%c7_304, %c0_305] : memref<48x128xf32, #tpu.memory_space<vmem>>, vector<1x128xf32>
    tpu.vector_store %arg9[%c7_304, %c0_305], %333 {strides = array<i32>} : memref<48x128xf32, #tpu.memory_space<vmem>>, vector<1x128xf32>,
    %c16_306 = arith.constant 16 : index
    %c0_307 = arith.constant 0 : index
    %335 = tpu.strided_load %arg10[%c16_306, %c0_307] {strides = array<i32: 2, 1>} : memref<1008x128xf32, #tpu.memory_space<vmem>>, vector<1x128xf32>
    %c16_308 = arith.constant 16 : index
    %c0_309 = arith.constant 0 : index
    %336 = vector.load %arg9[%c16_308, %c0_309] : memref<48x128xf32, #tpu.memory_space<vmem>>, vector<1x128xf32>
    tpu.vector_store %arg9[%c16_308, %c0_309], %335 {strides = array<i32>} : memref<48x128xf32, #tpu.memory_space<vmem>>, vector<1x128xf32>,
    %c20_310 = arith.constant 20 : index
    %c0_311 = arith.constant 0 : index
    %337 = tpu.strided_load %arg10[%c20_310, %c0_311] {strides = array<i32: 2, 1>} : memref<1008x128xf32, #tpu.memory_space<vmem>>, vector<1x128xf32>
    %c19_312 = arith.constant 19 : index
    %c0_313 = arith.constant 0 : index
    %338 = vector.load %arg9[%c19_312, %c0_313] : memref<48x128xf32, #tpu.memory_space<vmem>>, vector<1x128xf32>
    tpu.vector_store %arg9[%c19_312, %c0_313], %337 {strides = array<i32>} : memref<48x128xf32, #tpu.memory_space<vmem>>, vector<1x128xf32>,
    %c32_314 = arith.constant 32 : index
    %c0_315 = arith.constant 0 : index
    %339 = tpu.strided_load %arg10[%c32_314, %c0_315] {strides = array<i32: 2, 1>} : memref<1008x128xf32, #tpu.memory_space<vmem>>, vector<1x128xf32>
    %c28 = arith.constant 28 : index
    %c0_316 = arith.constant 0 : index
    %340 = vector.load %arg9[%c28, %c0_316] : memref<48x128xf32, #tpu.memory_space<vmem>>, vector<1x128xf32>
    tpu.vector_store %arg9[%c28, %c0_316], %339 {strides = array<i32>} : memref<48x128xf32, #tpu.memory_space<vmem>>, vector<1x128xf32>,
    %c36_317 = arith.constant 36 : index
    %c0_318 = arith.constant 0 : index
    %341 = tpu.strided_load %arg10[%c36_317, %c0_318] {strides = array<i32: 2, 1>} : memref<1008x128xf32, #tpu.memory_space<vmem>>, vector<1x128xf32>
    %c31_319 = arith.constant 31 : index
    %c0_320 = arith.constant 0 : index
    %342 = vector.load %arg9[%c31_319, %c0_320] : memref<48x128xf32, #tpu.memory_space<vmem>>, vector<1x128xf32>
    tpu.vector_store %arg9[%c31_319, %c0_320], %341 {strides = array<i32>} : memref<48x128xf32, #tpu.memory_space<vmem>>, vector<1x128xf32>,
    %c48_321 = arith.constant 48 : index
    %c0_322 = arith.constant 0 : index
    %343 = tpu.strided_load %arg10[%c48_321, %c0_322] {strides = array<i32: 2, 1>} : memref<1008x128xf32, #tpu.memory_space<vmem>>, vector<1x128xf32>
    %c40_323 = arith.constant 40 : index
    %c0_324 = arith.constant 0 : index
    %344 = vector.load %arg9[%c40_323, %c0_324] : memref<48x128xf32, #tpu.memory_space<vmem>>, vector<1x128xf32>
    tpu.vector_store %arg9[%c40_323, %c0_324], %343 {strides = array<i32>} : memref<48x128xf32, #tpu.memory_space<vmem>>, vector<1x128xf32>,
    %c52 = arith.constant 52 : index
    %c0_325 = arith.constant 0 : index
    %345 = tpu.strided_load %arg10[%c52, %c0_325] {strides = array<i32: 2, 1>} : memref<1008x128xf32, #tpu.memory_space<vmem>>, vector<1x128xf32>
    %c43_326 = arith.constant 43 : index
    %c0_327 = arith.constant 0 : index
    %346 = vector.load %arg9[%c43_326, %c0_327] : memref<48x128xf32, #tpu.memory_space<vmem>>, vector<1x128xf32>
    tpu.vector_store %arg9[%c43_326, %c0_327], %345 {strides = array<i32>} : memref<48x128xf32, #tpu.memory_space<vmem>>, vector<1x128xf32>,
    %c0_328 = arith.constant 0 : index
    %c0_329 = arith.constant 0 : index
    %347 = vector.load %arg9[%c0_328, %c0_329] : memref<48x128xf32, #tpu.memory_space<vmem>>, vector<40x128xf32>
    %348 = arith.truncf %347 : vector<40x128xf32> to vector<40x128xbf16>
    %c27 = arith.constant 27 : index
    %c0_330 = arith.constant 0 : index
    %c0_331 = arith.constant 0 : index
    %349 = vector.load %arg3[%c27, %c0_330, %c0_331] : memref<36x128x128xbf16, #tpu.memory_space<vmem>>, vector<1x128x128xbf16>
    %350 = vector.shape_cast %349 : vector<1x128x128xbf16> to vector<128x128xbf16>
    %cst_332 = arith.constant dense<0.000000e+00> : vector<40x128xf32>
    %351 = tpu.matmul %348, %350, %cst_332 {dimension_numbers = #tpu.dot_dimension_numbers<[1], [0], [0], [1], [0, 0, 1, 1], [], []>} : vector<40x128xbf16>, vector<128x128xbf16>, vector<40x128xf32> -> vector<40x128xf32>
    %c1_333 = arith.constant 1 : index
    %c0_334 = arith.constant 0 : index
    %352 = vector.load %arg9[%c1_333, %c0_334] : memref<48x128xf32, #tpu.memory_space<vmem>>, vector<40x128xf32>
    %353 = arith.truncf %352 : vector<40x128xf32> to vector<40x128xbf16>
    %c28_335 = arith.constant 28 : index
    %c0_336 = arith.constant 0 : index
    %c0_337 = arith.constant 0 : index
    %354 = vector.load %arg3[%c28_335, %c0_336, %c0_337] : memref<36x128x128xbf16, #tpu.memory_space<vmem>>, vector<1x128x128xbf16>
    %355 = vector.shape_cast %354 : vector<1x128x128xbf16> to vector<128x128xbf16>
    %cst_338 = arith.constant dense<0.000000e+00> : vector<40x128xf32>
    %356 = tpu.matmul %353, %355, %cst_338 {dimension_numbers = #tpu.dot_dimension_numbers<[1], [0], [0], [1], [0, 0, 1, 1], [], []>} : vector<40x128xbf16>, vector<128x128xbf16>, vector<40x128xf32> -> vector<40x128xf32>
    %357 = arith.addf %351, %356 : vector<40x128xf32>
    %c2_339 = arith.constant 2 : index
    %c0_340 = arith.constant 0 : index
    %358 = vector.load %arg9[%c2_339, %c0_340] : memref<48x128xf32, #tpu.memory_space<vmem>>, vector<40x128xf32>
    %359 = arith.truncf %358 : vector<40x128xf32> to vector<40x128xbf16>
    %c29 = arith.constant 29 : index
    %c0_341 = arith.constant 0 : index
    %c0_342 = arith.constant 0 : index
    %360 = vector.load %arg3[%c29, %c0_341, %c0_342] : memref<36x128x128xbf16, #tpu.memory_space<vmem>>, vector<1x128x128xbf16>
    %361 = vector.shape_cast %360 : vector<1x128x128xbf16> to vector<128x128xbf16>
    %cst_343 = arith.constant dense<0.000000e+00> : vector<40x128xf32>
    %362 = tpu.matmul %359, %361, %cst_343 {dimension_numbers = #tpu.dot_dimension_numbers<[1], [0], [0], [1], [0, 0, 1, 1], [], []>} : vector<40x128xbf16>, vector<128x128xbf16>, vector<40x128xf32> -> vector<40x128xf32>
    %363 = arith.addf %357, %362 : vector<40x128xf32>
    %c3_344 = arith.constant 3 : index
    %c0_345 = arith.constant 0 : index
    %364 = vector.load %arg9[%c3_344, %c0_345] : memref<48x128xf32, #tpu.memory_space<vmem>>, vector<40x128xf32>
    %365 = arith.truncf %364 : vector<40x128xf32> to vector<40x128xbf16>
    %c30 = arith.constant 30 : index
    %c0_346 = arith.constant 0 : index
    %c0_347 = arith.constant 0 : index
    %366 = vector.load %arg3[%c30, %c0_346, %c0_347] : memref<36x128x128xbf16, #tpu.memory_space<vmem>>, vector<1x128x128xbf16>
    %367 = vector.shape_cast %366 : vector<1x128x128xbf16> to vector<128x128xbf16>
    %cst_348 = arith.constant dense<0.000000e+00> : vector<40x128xf32>
    %368 = tpu.matmul %365, %367, %cst_348 {dimension_numbers = #tpu.dot_dimension_numbers<[1], [0], [0], [1], [0, 0, 1, 1], [], []>} : vector<40x128xbf16>, vector<128x128xbf16>, vector<40x128xf32> -> vector<40x128xf32>
    %369 = arith.addf %363, %368 : vector<40x128xf32>
    %c4_349 = arith.constant 4 : index
    %c0_350 = arith.constant 0 : index
    %370 = vector.load %arg9[%c4_349, %c0_350] : memref<48x128xf32, #tpu.memory_space<vmem>>, vector<40x128xf32>
    %371 = arith.truncf %370 : vector<40x128xf32> to vector<40x128xbf16>
    %c31_351 = arith.constant 31 : index
    %c0_352 = arith.constant 0 : index
    %c0_353 = arith.constant 0 : index
    %372 = vector.load %arg3[%c31_351, %c0_352, %c0_353] : memref<36x128x128xbf16, #tpu.memory_space<vmem>>, vector<1x128x128xbf16>
    %373 = vector.shape_cast %372 : vector<1x128x128xbf16> to vector<128x128xbf16>
    %cst_354 = arith.constant dense<0.000000e+00> : vector<40x128xf32>
    %374 = tpu.matmul %371, %373, %cst_354 {dimension_numbers = #tpu.dot_dimension_numbers<[1], [0], [0], [1], [0, 0, 1, 1], [], []>} : vector<40x128xbf16>, vector<128x128xbf16>, vector<40x128xf32> -> vector<40x128xf32>
    %375 = arith.addf %369, %374 : vector<40x128xf32>
    %c5_355 = arith.constant 5 : index
    %c0_356 = arith.constant 0 : index
    %376 = vector.load %arg9[%c5_355, %c0_356] : memref<48x128xf32, #tpu.memory_space<vmem>>, vector<40x128xf32>
    %377 = arith.truncf %376 : vector<40x128xf32> to vector<40x128xbf16>
    %c32_357 = arith.constant 32 : index
    %c0_358 = arith.constant 0 : index
    %c0_359 = arith.constant 0 : index
    %378 = vector.load %arg3[%c32_357, %c0_358, %c0_359] : memref<36x128x128xbf16, #tpu.memory_space<vmem>>, vector<1x128x128xbf16>
    %379 = vector.shape_cast %378 : vector<1x128x128xbf16> to vector<128x128xbf16>
    %cst_360 = arith.constant dense<0.000000e+00> : vector<40x128xf32>
    %380 = tpu.matmul %377, %379, %cst_360 {dimension_numbers = #tpu.dot_dimension_numbers<[1], [0], [0], [1], [0, 0, 1, 1], [], []>} : vector<40x128xbf16>, vector<128x128xbf16>, vector<40x128xf32> -> vector<40x128xf32>
    %381 = arith.addf %375, %380 : vector<40x128xf32>
    %c6_361 = arith.constant 6 : index
    %c0_362 = arith.constant 0 : index
    %382 = vector.load %arg9[%c6_361, %c0_362] : memref<48x128xf32, #tpu.memory_space<vmem>>, vector<40x128xf32>
    %383 = arith.truncf %382 : vector<40x128xf32> to vector<40x128xbf16>
    %c33 = arith.constant 33 : index
    %c0_363 = arith.constant 0 : index
    %c0_364 = arith.constant 0 : index
    %384 = vector.load %arg3[%c33, %c0_363, %c0_364] : memref<36x128x128xbf16, #tpu.memory_space<vmem>>, vector<1x128x128xbf16>
    %385 = vector.shape_cast %384 : vector<1x128x128xbf16> to vector<128x128xbf16>
    %cst_365 = arith.constant dense<0.000000e+00> : vector<40x128xf32>
    %386 = tpu.matmul %383, %385, %cst_365 {dimension_numbers = #tpu.dot_dimension_numbers<[1], [0], [0], [1], [0, 0, 1, 1], [], []>} : vector<40x128xbf16>, vector<128x128xbf16>, vector<40x128xf32> -> vector<40x128xf32>
    %387 = arith.addf %381, %386 : vector<40x128xf32>
    %c7_366 = arith.constant 7 : index
    %c0_367 = arith.constant 0 : index
    %388 = vector.load %arg9[%c7_366, %c0_367] : memref<48x128xf32, #tpu.memory_space<vmem>>, vector<40x128xf32>
    %389 = arith.truncf %388 : vector<40x128xf32> to vector<40x128xbf16>
    %c34 = arith.constant 34 : index
    %c0_368 = arith.constant 0 : index
    %c0_369 = arith.constant 0 : index
    %390 = vector.load %arg3[%c34, %c0_368, %c0_369] : memref<36x128x128xbf16, #tpu.memory_space<vmem>>, vector<1x128x128xbf16>
    %391 = vector.shape_cast %390 : vector<1x128x128xbf16> to vector<128x128xbf16>
    %cst_370 = arith.constant dense<0.000000e+00> : vector<40x128xf32>
    %392 = tpu.matmul %389, %391, %cst_370 {dimension_numbers = #tpu.dot_dimension_numbers<[1], [0], [0], [1], [0, 0, 1, 1], [], []>} : vector<40x128xbf16>, vector<128x128xbf16>, vector<40x128xf32> -> vector<40x128xf32>
    %393 = arith.addf %387, %392 : vector<40x128xf32>
    %c8_371 = arith.constant 8 : index
    %c0_372 = arith.constant 0 : index
    %394 = vector.load %arg9[%c8_371, %c0_372] : memref<48x128xf32, #tpu.memory_space<vmem>>, vector<40x128xf32>
    %395 = arith.truncf %394 : vector<40x128xf32> to vector<40x128xbf16>
    %c35 = arith.constant 35 : index
    %c0_373 = arith.constant 0 : index
    %c0_374 = arith.constant 0 : index
    %396 = vector.load %arg3[%c35, %c0_373, %c0_374] : memref<36x128x128xbf16, #tpu.memory_space<vmem>>, vector<1x128x128xbf16>
    %397 = vector.shape_cast %396 : vector<1x128x128xbf16> to vector<128x128xbf16>
    %cst_375 = arith.constant dense<0.000000e+00> : vector<40x128xf32>
    %398 = tpu.matmul %395, %397, %cst_375 {dimension_numbers = #tpu.dot_dimension_numbers<[1], [0], [0], [1], [0, 0, 1, 1], [], []>} : vector<40x128xbf16>, vector<128x128xbf16>, vector<40x128xf32> -> vector<40x128xf32>
    %399 = arith.addf %393, %398 : vector<40x128xf32>
    %400 = vector.extract_strided_slice %0 {offsets = [4, 0], sizes = [1, 128], strides = [1, 1]} : vector<5x128xf32> to vector<1x128xf32>
    %401 = vector.broadcast %400 : vector<1x128xf32> to vector<40x128xf32>
    %402 = arith.addf %399, %401 : vector<40x128xf32>
    %cst_376 = arith.constant 0.000000e+00 : f32
    %403 = vector.broadcast %cst_376 : f32 to vector<40x128xf32>
    %404 = arith.maximumf %402, %403 : vector<40x128xf32>
    %405 = vector.extract_strided_slice %404 {offsets = [0, 0], sizes = [1, 128], strides = [1, 1]} : vector<40x128xf32> to vector<1x128xf32>
    %406 = vector.extract_strided_slice %404 {offsets = [3, 0], sizes = [1, 128], strides = [1, 1]} : vector<40x128xf32> to vector<1x128xf32>
    %407 = tpu.concatenate %405, %406 in 0 : vector<1x128xf32>, vector<1x128xf32> -> vector<2x128xf32>
    %c0_377 = arith.constant 0 : index
    %c0_378 = arith.constant 0 : index
    %c0_379 = arith.constant 0 : index
    %408 = vector.load %arg5[%c0_377, %c0_378, %c0_379] : memref<4x2x128xf32, #tpu.memory_space<vmem>>, vector<1x2x128xf32>
    %409 = vector.shape_cast %408 : vector<1x2x128xf32> to vector<2x128xf32>
    %410 = vector.shape_cast %407 : vector<2x128xf32> to vector<1x2x128xf32>
    tpu.vector_store %arg5[%c0_377, %c0_378, %c0_379], %410 {strides = array<i32>} : memref<4x2x128xf32, #tpu.memory_space<vmem>>, vector<1x2x128xf32>,
    %411 = vector.extract_strided_slice %404 {offsets = [12, 0], sizes = [1, 128], strides = [1, 1]} : vector<40x128xf32> to vector<1x128xf32>
    %412 = vector.extract_strided_slice %404 {offsets = [15, 0], sizes = [1, 128], strides = [1, 1]} : vector<40x128xf32> to vector<1x128xf32>
    %413 = tpu.concatenate %411, %412 in 0 : vector<1x128xf32>, vector<1x128xf32> -> vector<2x128xf32>
    %c1_380 = arith.constant 1 : index
    %c0_381 = arith.constant 0 : index
    %c0_382 = arith.constant 0 : index
    %414 = vector.load %arg5[%c1_380, %c0_381, %c0_382] : memref<4x2x128xf32, #tpu.memory_space<vmem>>, vector<1x2x128xf32>
    %415 = vector.shape_cast %414 : vector<1x2x128xf32> to vector<2x128xf32>
    %416 = vector.shape_cast %413 : vector<2x128xf32> to vector<1x2x128xf32>
    tpu.vector_store %arg5[%c1_380, %c0_381, %c0_382], %416 {strides = array<i32>} : memref<4x2x128xf32, #tpu.memory_space<vmem>>, vector<1x2x128xf32>,
    %417 = vector.extract_strided_slice %404 {offsets = [24, 0], sizes = [1, 128], strides = [1, 1]} : vector<40x128xf32> to vector<1x128xf32>
    %418 = vector.extract_strided_slice %404 {offsets = [27, 0], sizes = [1, 128], strides = [1, 1]} : vector<40x128xf32> to vector<1x128xf32>
    %419 = tpu.concatenate %417, %418 in 0 : vector<1x128xf32>, vector<1x128xf32> -> vector<2x128xf32>
    %c2_383 = arith.constant 2 : index
    %c0_384 = arith.constant 0 : index
    %c0_385 = arith.constant 0 : index
    %420 = vector.load %arg5[%c2_383, %c0_384, %c0_385] : memref<4x2x128xf32, #tpu.memory_space<vmem>>, vector<1x2x128xf32>
    %421 = vector.shape_cast %420 : vector<1x2x128xf32> to vector<2x128xf32>
    %422 = vector.shape_cast %419 : vector<2x128xf32> to vector<1x2x128xf32>
    tpu.vector_store %arg5[%c2_383, %c0_384, %c0_385], %422 {strides = array<i32>} : memref<4x2x128xf32, #tpu.memory_space<vmem>>, vector<1x2x128xf32>,
    %423 = vector.extract_strided_slice %404 {offsets = [36, 0], sizes = [1, 128], strides = [1, 1]} : vector<40x128xf32> to vector<1x128xf32>
    %424 = vector.extract_strided_slice %404 {offsets = [39, 0], sizes = [1, 128], strides = [1, 1]} : vector<40x128xf32> to vector<1x128xf32>
    %425 = tpu.concatenate %423, %424 in 0 : vector<1x128xf32>, vector<1x128xf32> -> vector<2x128xf32>
    %c3_386 = arith.constant 3 : index
    %c0_387 = arith.constant 0 : index
    %c0_388 = arith.constant 0 : index
    %426 = vector.load %arg5[%c3_386, %c0_387, %c0_388] : memref<4x2x128xf32, #tpu.memory_space<vmem>>, vector<1x2x128xf32>
    %427 = vector.shape_cast %426 : vector<1x2x128xf32> to vector<2x128xf32>
    %428 = vector.shape_cast %425 : vector<2x128xf32> to vector<1x2x128xf32>
    tpu.vector_store %arg5[%c3_386, %c0_387, %c0_388], %428 {strides = array<i32>} : memref<4x2x128xf32, #tpu.memory_space<vmem>>, vector<1x2x128xf32>,
    return
  }
  func.func @transform_0(%arg0: i32) -> (i32, i32) {
    %c0_i32 = arith.constant 0 : i32
    %c0_i32_0 = arith.constant 0 : i32
    return %arg0, %c0_i32 : i32, i32
  }
  func.func @transform_1(%arg0: i32) -> (i32, i32) {
    %c0_i32 = arith.constant 0 : i32
    %c0_i32_0 = arith.constant 0 : i32
    %c0_i32_1 = arith.constant 0 : i32
    return %c0_i32, %c0_i32_0 : i32, i32
  }
  func.func @transform_2(%arg0: i32) -> (i32, i32, i32) {
    %c0_i32 = arith.constant 0 : i32
    %c0_i32_0 = arith.constant 0 : i32
    %c0_i32_1 = arith.constant 0 : i32
    %c0_i32_2 = arith.constant 0 : i32
    return %c0_i32, %c0_i32_0, %c0_i32_1 : i32, i32, i32
  }
  func.func @transform_3(%arg0: i32) -> (i32, i32) {
    %c0_i32 = arith.constant 0 : i32
    %c0_i32_0 = arith.constant 0 : i32
    %c0_i32_1 = arith.constant 0 : i32
    return %c0_i32, %c0_i32_0 : i32, i32
  }
  func.func @transform_4(%arg0: i32) -> (i32, i32, i32) {
    %c0_i32 = arith.constant 0 : i32
    %c0_i32_0 = arith.constant 0 : i32
    %c0_i32_1 = arith.constant 0 : i32
    return %arg0, %c0_i32, %c0_i32_0 : i32, i32, i32
  }
}

</mosaic_0001>

<bundles_post_ra>
// kernel: _lambda_.1
= control target key start
LH: loop header
LB: loop body
LE: loop exit
PB: predicated region body
PF: predicated region fallthrough
CT: control target
= control target key end

     0   :  { %9 = vsyncpa [#allocation8], 0  ;;  %s19475_s0 = inlined_call_operand.vmem [shape: bf16[2048,16], index: 0, kind: input, shape index: {}]   ;;  %s19476_s1 = inlined_call_operand.vmem [shape: bf16[16,128], index: 1, kind: input, shape index: {}]   ;;  %s19477_s2 = inlined_call_operand.vmem [shape: bf16[36,128,128], index: 2, kind: input, shape index: {}]   ;;  %s19478_s3 = inlined_call_operand.vmem [shape: f32[5,128], index: 3, kind: input, shape index: {}]   ;;  %s19479_s4 = inlined_call_operand.hbm [shape: f32[8,2,128], index: 4, kind: output, shape index: {}]  }
   0x1   :  { %11 = vsyncpa [#allocation8 + $0x1], 0  ;;  %s16256_s15 = smov 0   ;;  %s16258_s16 = smov 0  }
   0x2   :  { %s16260_s17 = smov 0   ;;  %s16262_s18 = smov 0  }
   0x3 LB: > { %s11951_s19 = sadd.s32 4294967295, %s16224_s18   ;;  %s11952_s20 = sadd.s32 4294967294, %s16224_s18   ;;  %s16224_s18 = sphi %s16262_s18, %s19623_s18   ;;  %s16220_s17 = sphi %s16260_s17, %s19622_s17   ;;  %s16216_s16 = sphi %s16258_s16, %s19621_s16   ;;  %s16212_s15 = sphi %s16256_s15, %s19620_s15  }
   0x4   : > { %s16279_s21 = sadd.s32 1, %s16224_s18   ;;  %s113_s22 = sadd.s32 1, %s16220_s17 }
   0x5   : > { %s110_s23 = ssub.s32 %s16224_s18, %s16279_s21  ;;  %p123_p0 = scmp.ne.s32.totalorder %s16220_s17, %s16216_s16 }
   0x6   : > { %p111_p1 = scmp.eq.s32.totalorder %s110_s23, 0  ;;  %p124_p2 = scmp.eq.s32.totalorder %s11951_s19, 1 }
   0x7   : > { %p129_p3 = scmp.ne.s32.totalorder %s16216_s16, %s16212_s15  ;;  %p130_p4 = scmp.eq.s32.totalorder %s11952_s20, 1 }
   0x8   : > { %s16289_s24 = scalar_select %p111_p1, %s16220_s17, %s113_s22  }
   0x9   : > { %p16291_p5 = por %p124_p2, %p123_p0  ;;  %p16295_p6 = por %p130_p4, %p129_p3 }
   0xa   : > { %p11955_p7 = scmp.ge.s32.totalorder %s16224_s18, 1  ;;  %p166_p8 = scmp.lt.s32.totalorder %s16224_s18, 3 }
   0xc   : > { %p167_p9 = pnand %p11955_p7, %p166_p8 }
   0xe   : > { %170 = sbr.rel (%p167_p9) target bundleno = 3348 (0xd14), region = 36 }
  0x15   : > { %v15759_v0 = vld [vmem:[%s19476_s1] sm:$0xff]   ;;  %s16304_s29 = sshll.u32 %s11951_s19, 7  ;;  %vm661_vm0 = vcmask 130048   ;;  %v15821_v31 = vld [vmem:[%s19477_s2 + $0x48] sm:$0xff]   ;;  %v16226_v34 = vmov 0.0   ;;  %v15824_v35 = vld [vmem:[%s19477_s2 + $0x50] sm:$0xff]   ;;  %v331_v59 = vlaneseq }
  0x16   : > { %p193_p10 = scmp.lt.s32.totalorder %s16304_s29, 255  ;;  %13658 = vmatprep.subr.bf16.mxu0 %v15759_v0  ;;  %v15820_v30 = vld [vmem:[%s19477_s2 + $0x40] sm:$0xff]   ;;  %2544 = vst [vmem:[#allocation2] sm:$0xff] %v16226_v34  ;;  %2545 = vst [vmem:[#allocation2 + $0x8] sm:$0xff] %v16226_v34  ;;  %v15825_v37 = vld [vmem:[%s19477_s2 + $0x58] sm:$0xff]   ;;  %vm1653_vm1 = vcmask 1046528   ;;  %s19427_s6 = scalar_lea.hbm %s19479_s4, %s16304_s29 }
  0x17   : > { %13659 = vmatpush3.bf16.msra.mxu0 %v15759_v0  ;;  %13788 = vmatprep.subr.bf16.mxu1 %v15820_v30  ;;  %2546 = vst [vmem:[#allocation2 + $0x10] sm:$0xff] %v16226_v34  ;;  %2547 = vst [vmem:[#allocation2 + $0x18] sm:$0xff] %v16226_v34  ;;  %v15828_v39 = vld [vmem:[%s19477_s2 + $0x60] sm:$0xff]   ;;  %v15829_v42 = vld [vmem:[%s19477_s2 + $0x68] sm:$0xff]   ;;  %v16526_v62 = vshrl.u32 %v331_v59, 7  ;;  %vm16227_vm2 = vmmov 0  }
  0x18   : > { %s194_s30 = scalar_select %p193_p10, %s16304_s29, 255  ;;  %13789 = vmatpush3.bf16.msra.mxu1 %v15820_v30  ;;  %2548 = vst [vmem:[#allocation2 + $0x20] sm:$0xff] %v16226_v34  ;;  %2549 = vst [vmem:[#allocation2 + $0x28] sm:$0xff] %v16226_v34  ;;  %14364 = vmatprep.subr.bf16.mxu0 %v16226_v34  ;;  %v15830_v43 = vld [vmem:[%s19477_s2 + $0x70] sm:$0xff]   ;;  %v15831_v46 = vld [vmem:[%s19477_s2 + $0x78] sm:$0xff]   ;;  %vm6799_vm3 = vcmask 1044480  }
  0x19   : > { %13790 = vmatprep.subr.bf16.mxu1 %v15821_v31  ;;  %2550 = vst [vmem:[#allocation2 + $0x30] sm:$0xff] %v16226_v34  ;;  %2551 = vst [vmem:[#allocation2 + $0x38] sm:$0xff] %v16226_v34  ;;  %vm6613_vm4 = vcmask 1045504   ;;  %vm9086_vm5 = vcmask 1041408   ;;  %vm9152_vm6 = vcmask 1040384   ;;  %s189_s22 = sand.u32 1, %s16216_s16  }
  0x1a   : > { %s11958_s5 = sshll.u32 %s194_s30, 2  ;;  %2552 = vst [vmem:[#allocation2 + $0x40] sm:$0xff] %v16226_v34  ;;  %2553 = vst [vmem:[#allocation2 + $0x48] sm:$0xff] %v16226_v34  ;;  %s11956_s23 = sshll.u32 %s189_s22, 3 }
  0x1b   : > { %s16311_s8 = scalar_lea.vmem %s19475_s0, %s11958_s5  ;;  %2554 = vst [vmem:[#allocation2 + $0x50] sm:$0xff] %v16226_v34  ;;  %2555 = vst [vmem:[#allocation2 + $0x58] sm:$0xff] %v16226_v34  ;;  %s191_s27 = scalar_lea.vmem [#allocation7], %s11956_s23 }
  0x1c   : > { %v15760_v1 = vld [vmem:[%s16311_s8] sm:$0xff]   ;;  %v15761_v2 = vld [vmem:[%s16311_s8 + $0x8] sm:$0xff]   ;;  %v15762_v3 = vld [vmem:[%s16311_s8 + $0x10] sm:$0xff]   ;;  %13791 = vmatpush3.bf16.msra.mxu1 %v15821_v31  ;;  %2556 = vst [vmem:[#allocation2 + $0x60] sm:$0xff] %v16226_v34  ;;  %s11890_s28 = sshll.u32 %s191_s27, 4  ;;  %s19434_s7 = scalar_lea.sflag [#allocation8], %s189_s22  ;;  %s19429_s28 = int_to_ptr.vmem [resolvable:$true] %s11890_s28 }
  0x1d   : > { %13660 = vmatprep.mubr.msk.bf16.mxu0 %vm661_vm0, %v15760_v1  ;;  %v15763_v4 = vld [vmem:[%s16311_s8 + $0x18] sm:$0xff]   ;;  %v15764_v5 = vld [vmem:[%s16311_s8 + $0x20] sm:$0xff]   ;;  %v15765_v6 = vld [vmem:[%s16311_s8 + $0x28] sm:$0xff]   ;;  %2557 = vst [vmem:[#allocation2 + $0x68] sm:$0xff] %v16226_v34  ;;  %13792 = vmatprep.subr.bf16.mxu1 %v15824_v35  ;;  %s16162_s9 = scalar_lea.vmem %s19429_s28, 128  ;;  %s16228_s10 = smov [#allocation7]  }
  0x1e   : > { %13661 = vmatmul.mubr.msk.bf16.vlgmr.msra.gmra.mrb[0].mxu0 %vm661_vm0, %v15761_v2  ;;  %v15766_v7 = vld [vmem:[%s16311_s8 + $0x30] sm:$0xff]   ;;  %v15767_v8 = vld [vmem:[%s16311_s8 + $0x38] sm:$0xff]   ;;  %v15768_v9 = vld [vmem:[%s16311_s8 + $0x40] sm:$0xff]   ;;  %2558 = vst [vmem:[#allocation2 + $0x70] sm:$0xff] %v16226_v34  ;;  %p16163_p11 = scmp.ne.s32.totalorder %s19429_s28, %s16162_s9 }
  0x1f   : > { %13664 = vmatprep.mubr.msk.bf16.mxu0 %vm661_vm0, %v15762_v3  ;;  %v15769_v10 = vld [vmem:[%s16311_s8 + $0x48] sm:$0xff]   ;;  %v15770_v11 = vld [vmem:[%s16311_s8 + $0x50] sm:$0xff]   ;;  %v15771_v12 = vld [vmem:[%s16311_s8 + $0x58] sm:$0xff]   ;;  %2559 = vst [vmem:[#allocation2 + $0x78] sm:$0xff] %v16226_v34  ;;  %v333_v3 = vsub.s32 0, %v16526_v62 }
  0x20   : > { %v15772_v13 = vld [vmem:[%s16311_s8 + $0x60] sm:$0xff]   ;;  %v15773_v14 = vld [vmem:[%s16311_s8 + $0x68] sm:$0xff]   ;;  %v15774_v15 = vld [vmem:[%s16311_s8 + $0x70] sm:$0xff]   ;;  %2560 = vst [vmem:[#allocation2 + $0x80] sm:$0xff] %v16226_v34  ;;  %13793 = vmatpush3.bf16.msra.mxu1 %v15824_v35  ;;  %p16164_p12 = pnand %p16163_p11, %p16291_p5 }
  0x21   : > { %v15775_v16 = vld [vmem:[%s16311_s8 + $0x78] sm:$0xff]   ;;  %v15776_v17 = vld [vmem:[%s16311_s8 + $0x80] sm:$0xff]   ;;  %v15777_v18 = vld [vmem:[%s16311_s8 + $0x88] sm:$0xff]   ;;  %2561 = vst [vmem:[#allocation2 + $0x88] sm:$0xff] %v16226_v34  ;;  %13794 = vmatprep.subr.bf16.mxu1 %v15825_v37 }
  0x22   : > { %v15778_v19 = vld [vmem:[%s16311_s8 + $0x90] sm:$0xff]   ;;  %v15779_v20 = vld [vmem:[%s16311_s8 + $0x98] sm:$0xff]   ;;  %v15780_v21 = vld [vmem:[%s16311_s8 + $0xa0] sm:$0xff]   ;;  %2562 = vst [vmem:[#allocation2 + $0x90] sm:$0xff] %v16226_v34  ;;  %p16165_p13 = pneg %p16164_p12 }
  0x23   : > { %v15781_v22 = vld [vmem:[%s16311_s8 + $0xa8] sm:$0xff]   ;;  %v15782_v23 = vld [vmem:[%s16311_s8 + $0xb0] sm:$0xff]   ;;  %v15783_v24 = vld [vmem:[%s16311_s8 + $0xb8] sm:$0xff]   ;;  %2563 = vst [vmem:[#allocation2 + $0x98] sm:$0xff] %v16226_v34 }
  0x24   : > { %v15784_v25 = vld [vmem:[%s16311_s8 + $0xc0] sm:$0xff]   ;;  %v15785_v26 = vld [vmem:[%s16311_s8 + $0xc8] sm:$0xff]   ;;  %v15786_v27 = vld [vmem:[%s16311_s8 + $0xd0] sm:$0xff]   ;;  %2564 = vst [vmem:[#allocation2 + $0xa0] sm:$0xff] %v16226_v34  ;;  %13795 = vmatpush3.bf16.msra.mxu1 %v15825_v37 }
  0x25   : > { %v15787_v28 = vld [vmem:[%s16311_s8 + $0xd8] sm:$0xff]   ;;  %v15788_v29 = vld [vmem:[%s16311_s8 + $0xe0] sm:$0xff]   ;;  %v16378_v32 = vld [vmem:[%s16311_s8 + $0xe8] sm:$0xff]   ;;  %2565 = vst [vmem:[#allocation2 + $0xa8] sm:$0xff] %v16226_v34  ;;  %13796 = vmatprep.subr.bf16.mxu1 %v15828_v39 }
  0x26   : > { %13665 = vmatmul.mubr.msk.bf16.gmra.mrb[4].mxu0 %vm661_vm0, %v15763_v4  ;;  %v16381_v33 = vld [vmem:[%s16311_s8 + $0xf0] sm:$0xff]   ;;  %2566 = vst [vmem:[#allocation2 + $0xb0] sm:$0xff] %v16226_v34  ;;  %2567 = vst [vmem:[#allocation2 + $0xb8] sm:$0xff] %v16226_v34  ;;  %v15791_v36 = vld [vmem:[%s16311_s8 + $0xf8] sm:$0xff]  }
  0x27   : > { %13668 = vmatprep.mubr.msk.bf16.mxu0 %vm661_vm0, %v15764_v5  ;;  %2568 = vst [vmem:[#allocation2 + $0xc0] sm:$0xff] %v16226_v34  ;;  %2569 = vst [vmem:[#allocation2 + $0xc8] sm:$0xff] %v16226_v34  ;;  %v15792_v38 = vld [vmem:[%s16311_s8 + $0x100] sm:$0xff]   ;;  %v15793_v40 = vld [vmem:[%s16311_s8 + $0x108] sm:$0xff]  }
  0x28   : > { %2570 = vst [vmem:[#allocation2 + $0xd0] sm:$0xff] %v16226_v34  ;;  %2571 = vst [vmem:[#allocation2 + $0xd8] sm:$0xff] %v16226_v34  ;;  %13797 = vmatpush3.bf16.msra.mxu1 %v15828_v39  ;;  %v15794_v41 = vld [vmem:[%s16311_s8 + $0x110] sm:$0xff]   ;;  %v15795_v44 = vld [vmem:[%s16311_s8 + $0x118] sm:$0xff]  }
  0x29   : > { %2572 = vst [vmem:[#allocation2 + $0xe0] sm:$0xff] %v16226_v34  ;;  %2573 = vst [vmem:[#allocation2 + $0xe8] sm:$0xff] %v16226_v34  ;;  %13798 = vmatprep.subr.bf16.mxu1 %v15829_v42  ;;  %v15796_v45 = vld [vmem:[%s16311_s8 + $0x120] sm:$0xff]   ;;  %v15797_v47 = vld [vmem:[%s16311_s8 + $0x128] sm:$0xff]  }
  0x2a   : > { %2574 = vst [vmem:[#allocation2 + $0xf0] sm:$0xff] %v16226_v34  ;;  %2575 = vst [vmem:[#allocation2 + $0xf8] sm:$0xff] %v16226_v34  ;;  %v15798_v48 = vld [vmem:[%s16311_s8 + $0x130] sm:$0xff]   ;;  %v15799_v49 = vld [vmem:[%s16311_s8 + $0x138] sm:$0xff]  }
  0x2b   : > { %2576 = vst [vmem:[#allocation2 + $0x100] sm:$0xff] %v16226_v34  ;;  %2577 = vst [vmem:[#allocation2 + $0x108] sm:$0xff] %v16226_v34  ;;  %v15800_v50 = vld [vmem:[%s16311_s8 + $0x140] sm:$0xff]   ;;  %v15801_v51 = vld [vmem:[%s16311_s8 + $0x148] sm:$0xff]  }
  0x2c   : > { %2578 = vst [vmem:[#allocation2 + $0x110] sm:$0xff] %v16226_v34  ;;  %2579 = vst [vmem:[#allocation2 + $0x118] sm:$0xff] %v16226_v34  ;;  %13799 = vmatpush3.bf16.msra.mxu1 %v15829_v42  ;;  %v15802_v52 = vld [vmem:[%s16311_s8 + $0x150] sm:$0xff]   ;;  %v15803_v53 = vld [vmem:[%s16311_s8 + $0x158] sm:$0xff]  }
  0x2d   : > { %2580 = vst [vmem:[#allocation2 + $0x120] sm:$0xff] %v16226_v34  ;;  %2581 = vst [vmem:[#allocation2 + $0x128] sm:$0xff] %v16226_v34  ;;  %13800 = vmatprep.subr.bf16.mxu1 %v15830_v43  ;;  %v15804_v54 = vld [vmem:[%s16311_s8 + $0x160] sm:$0xff]   ;;  %v15805_v55 = vld [vmem:[%s16311_s8 + $0x168] sm:$0xff]  }
  0x2e   : > { %13669 = vmatmul.mubr.msk.bf16.gmra.mrb[8].mxu0 %vm661_vm0, %v15765_v6  ;;  %2582 = vst [vmem:[#allocation2 + $0x130] sm:$0xff] %v16226_v34  ;;  %2583 = vst [vmem:[#allocation2 + $0x138] sm:$0xff] %v16226_v34  ;;  %v15806_v56 = vld [vmem:[%s16311_s8 + $0x170] sm:$0xff]   ;;  %v15807_v57 = vld [vmem:[%s16311_s8 + $0x178] sm:$0xff]  }
  0x2f   : > { %13672 = vmatprep.mubr.msk.bf16.mxu0 %vm661_vm0, %v15766_v7  ;;  %2584 = vst [vmem:[#allocation2 + $0x140] sm:$0xff] %v16226_v34  ;;  %2585 = vst [vmem:[#allocation2 + $0x148] sm:$0xff] %v16226_v34  ;;  %v15808_v58 = vld [vmem:[%s16311_s8 + $0x180] sm:$0xff]   ;;  %v15809_v60 = vld [vmem:[%s16311_s8 + $0x188] sm:$0xff]  }
  0x30   : > { %2586 = vst [vmem:[#allocation2 + $0x150] sm:$0xff] %v16226_v34  ;;  %2587 = vst [vmem:[#allocation2 + $0x158] sm:$0xff] %v16226_v34  ;;  %13801 = vmatpush3.bf16.msra.mxu1 %v15830_v43  ;;  %v15810_v61 = vld [vmem:[%s16311_s8 + $0x190] sm:$0xff]   ;;  %v15811_v63 = vld [vmem:[%s16311_s8 + $0x198] sm:$0xff]  }
  0x31   : > { %2588 = vst [vmem:[#allocation2 + $0x160] sm:$0xff] %v16226_v34  ;;  %2589 = vst [vmem:[#allocation2 + $0x168] sm:$0xff] %v16226_v34  ;;  %13802 = vmatprep.subr.bf16.mxu1 %v15831_v46  ;;  %v15812_v0 = vld [vmem:[%s16311_s8 + $0x1a0] sm:$0xff]   ;;  %v15813_v1 = vld [vmem:[%s16311_s8 + $0x1a8] sm:$0xff]  }
  0x32   : > { %2590 = vst [vmem:[#allocation2 + $0x170] sm:$0xff] %v16226_v34  ;;  %2591 = vst [vmem:[#allocation2 + $0x178] sm:$0xff] %v16226_v34  ;;  %v200_v2 = vld [vmem:[%s19478_s3] sm:$0x1f]  ;;  %v15814_v4 = vld [vmem:[%s16311_s8 + $0x1b0] sm:$0xff]  }
  0x33   : > { %2592 = vst [vmem:[#allocation2 + $0x180] sm:$0xff] %v16226_v34  ;;  %2593 = vst [vmem:[#allocation2 + $0x188] sm:$0xff] %v16226_v34  ;;  %v16541_v5 = vrot.slane %v200_v2, %v333_v3 }
  0x34   : > { %7031 = vst [vmem:[#allocation3] sm:$0xff] %v16226_v34  ;;  %7032 = vst [vmem:[#allocation3 + $0x8] sm:$0xff] %v16226_v34  ;;  %13803 = vmatpush3.bf16.msra.mxu1 %v15831_v46 }
  0x35   : > { %7033 = vst [vmem:[#allocation3 + $0x10] sm:$0xff] %v16226_v34  ;;  %7034 = vst [vmem:[#allocation3 + $0x18] sm:$0xff] %v16226_v34 }
  0x36   : > { %13673 = vmatmul.mubr.msk.bf16.gmra.mrb[12].mxu0 %vm661_vm0, %v15767_v8  ;;  %7035 = vst [vmem:[#allocation3 + $0x20] sm:$0xff] %v16226_v34  ;;  %7036 = vst [vmem:[#allocation3 + $0x28] sm:$0xff] %v16226_v34 }
  0x37   : > { %13676 = vmatprep.mubr.msk.bf16.mxu0 %vm661_vm0, %v15768_v9  ;;  %7037 = vst [vmem:[#allocation3 + $0x30] sm:$0xff] %v16226_v34  ;;  %7038 = vst [vmem:[#allocation3 + $0x38] sm:$0xff] %v16226_v34  ;;  %v15815_v9 = vld [vmem:[%s16311_s8 + $0x1b8] sm:$0xff]  }
  0x38   : > { %7039 = vst [vmem:[#allocation3 + $0x40] sm:$0xff] %v16226_v34  ;;  %7040 = vst [vmem:[#allocation3 + $0x48] sm:$0xff] %v16226_v34 }
  0x39   : > { %7041 = vst [vmem:[#allocation3 + $0x50] sm:$0xff] %v16226_v34  ;;  %7042 = vst [vmem:[#allocation3 + $0x58] sm:$0xff] %v16226_v34 }
  0x3a   : > { %7043 = vst [vmem:[#allocation3 + $0x60] sm:$0xff] %v16226_v34  ;;  %7044 = vst [vmem:[#allocation3 + $0x68] sm:$0xff] %v16226_v34 }
  0x3b   : > { %7045 = vst [vmem:[#allocation3 + $0x70] sm:$0xff] %v16226_v34  ;;  %7046 = vst [vmem:[#allocation3 + $0x78] sm:$0xff] %v16226_v34 }
  0x3c   : > { %7047 = vst [vmem:[#allocation3 + $0x80] sm:$0xff] %v16226_v34  ;;  %7048 = vst [vmem:[#allocation3 + $0x88] sm:$0xff] %v16226_v34 }
  0x3d   : > { %9234 = vst [vmem:[#allocation4] sm:$0xff] %v16226_v34  ;;  %9235 = vst [vmem:[#allocation4 + $0x8] sm:$0xff] %v16226_v34 }
  0x3e   : > { %13677 = vmatmul.mubr.msk.bf16.gmra.mrb[16].mxu0 %vm661_vm0, %v15769_v10  ;;  %9236 = vst [vmem:[#allocation4 + $0x10] sm:$0xff] %v16226_v34  ;;  %9237 = vst [vmem:[#allocation4 + $0x18] sm:$0xff] %v16226_v34 }
  0x3f   : > { %13680 = vmatprep.mubr.msk.bf16.mxu0 %vm661_vm0, %v15770_v11  ;;  %9238 = vst [vmem:[#allocation4 + $0x20] sm:$0xff] %v16226_v34  ;;  %9239 = vst [vmem:[#allocation4 + $0x28] sm:$0xff] %v16226_v34 }
  0x40   : > { %9240 = vst [vmem:[#allocation4 + $0x30] sm:$0xff] %v16226_v34  ;;  %9241 = vst [vmem:[#allocation4 + $0x38] sm:$0xff] %v16226_v34 }
  0x41   : > { %10632 = vst [vmem:[#allocation5] sm:$0xff] %v16226_v34  ;;  %10633 = vst [vmem:[#allocation5 + $0x8] sm:$0xff] %v16226_v34 }
  0x42   : > { %10634 = vst [vmem:[#allocation5 + $0x10] sm:$0xff] %v16226_v34  ;;  %10635 = vst [vmem:[#allocation5 + $0x18] sm:$0xff] %v16226_v34 }
  0x43   : > { %10636 = vst [vmem:[#allocation5 + $0x20] sm:$0xff] %v16226_v34  ;;  %10637 = vst [vmem:[#allocation5 + $0x28] sm:$0xff] %v16226_v34 }
  0x44   : > { %19526 = vst [vmem:[#allocation10_spill] sm:$0xff] %v16526_v62 }
  0x46   : > { %13681 = vmatmul.mubr.msk.bf16.gmra.mrb[20].mxu0 %vm661_vm0, %v15771_v12  ;;  %v15816_v12 = vld [vmem:[%s16311_s8 + $0x1c0] sm:$0xff]  }
  0x47   : > { %13684 = vmatprep.mubr.msk.bf16.mxu0 %vm661_vm0, %v15772_v13 }
  0x4e   : > { %13685 = vmatmul.mubr.msk.bf16.gmra.mrb[24].mxu0 %vm661_vm0, %v15773_v14 }
  0x4f   : > { %13688 = vmatprep.mubr.msk.bf16.mxu0 %vm661_vm0, %v15774_v15 }
  0x56   : > { %13689 = vmatmul.mubr.msk.bf16.gmra.mrb[28].mxu0 %vm661_vm0, %v15775_v16 }
  0x57   : > { %13692 = vmatprep.mubr.msk.bf16.mxu0 %vm661_vm0, %v15776_v17 }
  0x5e   : > { %13693 = vmatmul.mubr.msk.bf16.gmra.mrb[32].mxu0 %vm661_vm0, %v15777_v18 }
  0x5f   : > { %13696 = vmatprep.mubr.msk.bf16.mxu0 %vm661_vm0, %v15778_v19 }
  0x66   : > { %13697 = vmatmul.mubr.msk.bf16.gmra.mrb[36].mxu0 %vm661_vm0, %v15779_v20 }
  0x67   : > { %13700 = vmatprep.mubr.msk.bf16.mxu0 %vm661_vm0, %v15780_v21 }
  0x6e   : > { %13701 = vmatmul.mubr.msk.bf16.gmra.mrb[40].mxu0 %vm661_vm0, %v15781_v22 }
  0x6f   : > { %13704 = vmatprep.mubr.msk.bf16.mxu0 %vm661_vm0, %v15782_v23 }
  0x76   : > { %13705 = vmatmul.mubr.msk.bf16.gmra.mrb[44].mxu0 %vm661_vm0, %v15783_v24 }
  0x77   : > { %13708 = vmatprep.mubr.msk.bf16.mxu0 %vm661_vm0, %v15784_v25 }
  0x7e   : > { %13709 = vmatmul.mubr.msk.bf16.gmra.mrb[48].mxu0 %vm661_vm0, %v15785_v26 }
  0x7f   : > { %13712 = vmatprep.mubr.msk.bf16.mxu0 %vm661_vm0, %v15786_v27 }
  0x86   : > { %13713 = vmatmul.mubr.msk.bf16.gmra.mrb[52].mxu0 %vm661_vm0, %v15787_v28  ;;  %v15817_v28 = vld [vmem:[%s16311_s8 + $0x1c8] sm:$0xff]  }
  0x87   : > { %13716 = vmatprep.mubr.msk.bf16.mxu0 %vm661_vm0, %v15788_v29 }
  0x8e   : > { %13717 = vmatmul.mubr.msk.bf16.gmra.mrb[56].mxu0 %vm661_vm0, %v16378_v32 }
  0x8f   : > { %13720 = vmatprep.mubr.msk.bf16.mxu0 %vm661_vm0, %v16381_v33  ;;  %v15818_v33 = vld [vmem:[%s16311_s8 + $0x1d0] sm:$0xff]  }
  0x96   : > { %13721 = vmatmul.mubr.msk.bf16.gmra.mrb[60].mxu0 %vm661_vm0, %v15791_v36 }
  0x97   : > { %13724 = vmatprep.mubr.msk.bf16.mxu0 %vm661_vm0, %v15792_v38 }
  0x9e   : > { %13725 = vmatmul.mubr.msk.bf16.gmra.mrb[64].mxu0 %vm661_vm0, %v15793_v40 }
  0x9f   : > { %13728 = vmatprep.mubr.msk.bf16.mxu0 %vm661_vm0, %v15794_v41 }
  0xa6   : > { %13729 = vmatmul.mubr.msk.bf16.gmra.mrb[68].mxu0 %vm661_vm0, %v15795_v44 }
  0xa7   : > { %13732 = vmatprep.mubr.msk.bf16.mxu0 %vm661_vm0, %v15796_v45 }
  0xae   : > { %13733 = vmatmul.mubr.msk.bf16.gmra.mrb[72].mxu0 %vm661_vm0, %v15797_v47 }
  0xaf   : > { %13736 = vmatprep.mubr.msk.bf16.mxu0 %vm661_vm0, %v15798_v48 }
  0xb6   : > { %13737 = vmatmul.mubr.msk.bf16.gmra.mrb[76].mxu0 %vm661_vm0, %v15799_v49 }
  0xb7   : > { %13740 = vmatprep.mubr.msk.bf16.mxu0 %vm661_vm0, %v15800_v50 }
  0xbe   : > { %13741 = vmatmul.mubr.msk.bf16.gmra.mrb[80].mxu0 %vm661_vm0, %v15801_v51 }
  0xbf   : > { %13744 = vmatprep.mubr.msk.bf16.mxu0 %vm661_vm0, %v15802_v52 }
  0xc6   : > { %13745 = vmatmul.mubr.msk.bf16.gmra.mrb[84].mxu0 %vm661_vm0, %v15803_v53 }
  0xc7   : > { %13748 = vmatprep.mubr.msk.bf16.mxu0 %vm661_vm0, %v15804_v54 }
  0xce   : > { %13749 = vmatmul.mubr.msk.bf16.gmra.mrb[88].mxu0 %vm661_vm0, %v15805_v55 }
  0xcf   : > { %13752 = vmatprep.mubr.msk.bf16.mxu0 %vm661_vm0, %v15806_v56  ;;  %v15819_v56 = vld [vmem:[%s16311_s8 + $0x1d8] sm:$0xff]  }
  0xd6   : > { %13753 = vmatmul.mubr.msk.bf16.gmra.mrb[92].mxu0 %vm661_vm0, %v15807_v57 }
  0xd7   : > { %13756 = vmatprep.mubr.msk.bf16.mxu0 %vm661_vm0, %v15808_v58 }
  0xde   : > { %13757 = vmatmul.mubr.msk.bf16.gmra.mrb[96].mxu0 %vm661_vm0, %v15809_v60 }
  0xdf   : > { %13760 = vmatprep.mubr.msk.bf16.mxu0 %vm661_vm0, %v15810_v61  ;;  %v15822_v61 = vld [vmem:[%s16311_s8 + $0x1e0] sm:$0xff]  }
  0xe6   : > { %13761 = vmatmul.mubr.msk.bf16.gmra.mrb[100].mxu0 %vm661_vm0, %v15811_v63 }
  0xe7   : > { %13764 = vmatprep.mubr.msk.bf16.mxu0 %vm661_vm0, %v15812_v0 }
  0xee   : > { %13765 = vmatmul.mubr.msk.bf16.gmra.mrb[104].mxu0 %vm661_vm0, %v15813_v1 }
  0xef   : > { %13768 = vmatprep.mubr.msk.bf16.mxu0 %vm661_vm0, %v15814_v4 }
  0xf1   : > { %v13662_v6 = vpop.f32.mrb[0].mxu0 }
  0xf2   : > { %v897_v7 = vadd.f32 %v13662_v6, %v16541_v5  ;;  %v888_v8 = vpop.f32.mrb[1].mxu0 }
  0xf3   : > { %v889_v10 = vadd.f32 %v888_v8, %v16541_v5  ;;  %v13663_v11 = vpop.f32.mrb[2].mxu0 }
  0xf4   : > { %v1401_v13 = vmax.f32 %v897_v7, 0.0  ;;  %v900_v14 = vadd.f32 %v13663_v11, %v16541_v5  ;;  %v891_v15 = vpop.f32.mrb[3].mxu0 }
  0xf5   : > { %v1399_v16 = vmax.f32 %v889_v10, 0.0  ;;  %v892_v17 = vadd.f32 %v891_v15, %v16541_v5 }
  0xf6   : > { %v1402_v18 = vmax.f32 %v900_v14, 0.0  ;;  %13769 = vmatmul.mubr.msk.bf16.gmra.mrb[108].mxu0 %vm661_vm0, %v15815_v9  ;;  %v1657_v19 = vrot.slane %v1401_v13, 1 }
  0xf7   : > { %v1400_v20 = vmax.f32 %v892_v17, 0.0  ;;  %13772 = vmatprep.mubr.msk.bf16.mxu0 %vm661_vm0, %v15816_v12  ;;  %v1654_v21 = vrot.slane %v1399_v16, 1 }
  0xf8   : > { %v1659_v22 = vrot.slane %v1402_v18, 1 }
  0xf9   : > { %v1655_v23 = vrot.slane %v1400_v20, 1  ;;  %v13666_v24 = vpop.f32.mrb[4].mxu0 }
  0xfa   : > { %v913_v25 = vadd.f32 %v13666_v24, %v16541_v5  ;;  %v904_v26 = vpop.f32.mrb[5].mxu0  ;;  %v1660_v27 = vsel %vm1653_vm1, %v1657_v19, %v1659_v22 }
  0xfb   : > { %v1656_v29 = vsel %vm1653_vm1, %v1654_v21, %v1655_v23  ;;  %v1658_v30 = vsel %vm1653_vm1, %v1655_v23, %v1657_v19  ;;  %v905_v31 = vadd.f32 %v904_v26, %v16541_v5  ;;  %v13667_v32 = vpop.f32.mrb[6].mxu0 }
  0xfc   : > { %v2031_v34 = vmax.f32 %v1399_v16, %v1656_v29  ;;  %v2032_v35 = vmax.f32 %v1400_v20, %v1658_v30  ;;  %v1405_v36 = vmax.f32 %v913_v25, 0.0  ;;  %v916_v37 = vadd.f32 %v13667_v32, %v16541_v5  ;;  %v907_v38 = vpop.f32.mrb[7].mxu0 }
  0xfd   : > { %v1403_v39 = vmax.f32 %v905_v31, 0.0  ;;  %v908_v40 = vadd.f32 %v907_v38, %v16541_v5 }
  0xfe   : > { %v2157_v41 = vmax.f32 %v2031_v34, %v1401_v13  ;;  %v2158_v42 = vmax.f32 %v2032_v35, %v1402_v18  ;;  %v1406_v43 = vmax.f32 %v916_v37, 0.0  ;;  %13773 = vmatmul.mubr.msk.bf16.gmra.mrb[112].mxu0 %vm661_vm0, %v15817_v28  ;;  %v1665_v46 = vrot.slane %v1405_v36, 1  ;;  %v15826_v28 = vld [vmem:[%s16311_s8 + $0x1f0] sm:$0xff]  }
  0xff   : > { %v1661_v44 = vrot.slane %v1403_v39, 1  ;;  %v1404_v45 = vmax.f32 %v908_v40, 0.0  ;;  %13776 = vmatprep.mubr.msk.bf16.mxu0 %vm661_vm0, %v15818_v33 }
 0x100   : > { %v2292_v47 = vmax.f32 %v2157_v41, %v1660_v27  ;;  %v1667_v48 = vrot.slane %v1406_v43, 1 }
 0x101   : > { %v1662_v49 = vsel %vm1653_vm1, %v1659_v22, %v1661_v44  ;;  %v1663_v50 = vrot.slane %v1404_v45, 1  ;;  %v13670_v51 = vpop.f32.mrb[8].mxu0  ;;  %v15823_v22 = vld [vmem:[%s16311_s8 + $0x1e8] sm:$0xff]  }
 0x102   : > { %2418 = vst [vmem:[#allocation6] sm:$0xff] %v2292_v47  ;;  %v2293_v52 = vmax.f32 %v2158_v42, %v1662_v49  ;;  %v929_v53 = vadd.f32 %v13670_v51, %v16541_v5  ;;  %v920_v54 = vpop.f32.mrb[9].mxu0  ;;  %v1668_v55 = vsel %vm1653_vm1, %v1665_v46, %v1667_v48 }
 0x103   : > { %v1664_v57 = vsel %vm1653_vm1, %v1661_v44, %v1663_v50  ;;  %v1666_v58 = vsel %vm1653_vm1, %v1663_v50, %v1665_v46  ;;  %v921_v59 = vadd.f32 %v920_v54, %v16541_v5  ;;  %v13671_v60 = vpop.f32.mrb[10].mxu0  ;;  %v2777_v44 = vld [vmem:[#allocation2 + $0x1] sm:$0xff] }
 0x104   : > { %v2035_v63 = vmax.f32 %v1403_v39, %v1664_v57  ;;  %v2036_v0 = vmax.f32 %v1404_v45, %v1666_v58  ;;  %2419 = vst [vmem:[#allocation6 + $0x8] sm:$0xff] %v2293_v52  ;;  %v1409_v1 = vmax.f32 %v929_v53, 0.0  ;;  %v932_v2 = vadd.f32 %v13671_v60, %v16541_v5  ;;  %v923_v3 = vpop.f32.mrb[11].mxu0  ;;  %v15827_v52 = vld [vmem:[%s16311_s8 + $0x1f8] sm:$0xff]   ;;  %s16166_s8 = sshll.u32 %s16228_s10, 4  ;;  %s16167_s8 = int_to_ptr.vmem [resolvable:$false] %s16166_s8 }
 0x105   : > { %v1407_v4 = vmax.f32 %v921_v59, 0.0  ;;  %v924_v6 = vadd.f32 %v923_v3, %v16541_v5  ;;  %s16168_s29 = scalar_lea.vmem %s16167_s8, 256  ;;  %p16169_p0 = scmp.lt.s32.totalorder %s19429_s28, %s16167_s8 }
 0x106   : > { %v2162_v7 = vmax.f32 %v2036_v0, %v1406_v43  ;;  %v2161_v8 = vmax.f32 %v2035_v63, %v1405_v36  ;;  %v1410_v9 = vmax.f32 %v932_v2, 0.0  ;;  %13777 = vmatmul.mubr.msk.bf16.gmra.mrb[116].mxu0 %vm661_vm0, %v15819_v56  ;;  %v1673_v12 = vrot.slane %v1409_v1, 1  ;;  %p16170_p1 = scmp.lt.s32.totalorder %s16168_s29, %s16162_s9 }
 0x107   : > { %v1669_v10 = vrot.slane %v1407_v4, 1  ;;  %v1408_v11 = vmax.f32 %v924_v6, 0.0  ;;  %13780 = vmatprep.mubr.msk.bf16.mxu0 %vm661_vm0, %v15822_v61 }
 0x108   : > { %v2296_v13 = vmax.f32 %v2161_v8, %v1668_v55  ;;  %v1675_v14 = vrot.slane %v1410_v9, 1  ;;  %p16171_p2 = por %p16170_p1, %p16169_p0 }
 0x109   : > { %v1670_v15 = vsel %vm1653_vm1, %v1667_v48, %v1669_v10  ;;  %v1671_v16 = vrot.slane %v1408_v11, 1  ;;  %v13674_v17 = vpop.f32.mrb[12].mxu0 }
 0x10a   : > { %2422 = vst [vmem:[#allocation6 + $0x20] sm:$0xff] %v2296_v13  ;;  %v2297_v18 = vmax.f32 %v2162_v7, %v1670_v15  ;;  %v945_v19 = vadd.f32 %v13674_v17, %v16541_v5  ;;  %v936_v20 = vpop.f32.mrb[13].mxu0  ;;  %v1676_v21 = vsel %vm1653_vm1, %v1673_v12, %v1675_v14  ;;  %p16172_p3 = pnand %p16171_p2, %p16165_p13 }
 0x10b   : > { %v2594_v23 = vld [vmem:[#allocation6] ss:$2 sm:$0xff]  ;;  %v1672_v24 = vsel %vm1653_vm1, %v1669_v10, %v1671_v16  ;;  %v1674_v25 = vsel %vm1653_vm1, %v1671_v16, %v1673_v12  ;;  %v937_v26 = vadd.f32 %v936_v20, %v16541_v5  ;;  %v13675_v27 = vpop.f32.mrb[14].mxu0 }
 0x10c   : > { %v2039_v29 = vmax.f32 %v1407_v4, %v1672_v24  ;;  %v2040_v30 = vmax.f32 %v1408_v11, %v1674_v25  ;;  %2423 = vst [vmem:[#allocation6 + $0x28] sm:$0xff] %v2297_v18  ;;  %v1413_v31 = vmax.f32 %v945_v19, 0.0  ;;  %v948_v32 = vadd.f32 %v13675_v27, %v16541_v5  ;;  %v939_v33 = vpop.f32.mrb[15].mxu0  ;;  %2595 = vst [vmem:[#allocation2 + $0xb] sm:$0xff] %v2594_v23 }
 0x10d   : > { %v1411_v34 = vmax.f32 %v937_v26, 0.0  ;;  %v940_v35 = vadd.f32 %v939_v33, %v16541_v5 }
 0x10e   : > { %v2166_v36 = vmax.f32 %v2040_v30, %v1410_v9  ;;  %v2165_v37 = vmax.f32 %v2039_v29, %v1409_v1  ;;  %v1414_v38 = vmax.f32 %v948_v32, 0.0  ;;  %13781 = vmatmul.mubr.msk.bf16.gmra.mrb[120].mxu0 %vm661_vm0, %v15823_v22  ;;  %v1681_v41 = vrot.slane %v1413_v31, 1 }
 0x10f   : > { %v1677_v39 = vrot.slane %v1411_v34, 1  ;;  %v1412_v40 = vmax.f32 %v940_v35, 0.0  ;;  %13784 = vmatprep.mubr.msk.bf16.mxu0 %vm661_vm0, %v15826_v28 }
 0x110   : > { %v2300_v42 = vmax.f32 %v2165_v37, %v1676_v21  ;;  %v1683_v43 = vrot.slane %v1414_v38, 1 }
 0x111   : > { %v1678_v45 = vsel %vm1653_vm1, %v1675_v14, %v1677_v39  ;;  %v1679_v46 = vrot.slane %v1412_v40, 1  ;;  %v13678_v47 = vpop.f32.mrb[16].mxu0 }
 0x112   : > { %2426 = vst [vmem:[#allocation6 + $0x40] sm:$0xff] %v2300_v42  ;;  %v2301_v48 = vmax.f32 %v2166_v36, %v1678_v45  ;;  %v961_v49 = vadd.f32 %v13678_v47, %v16541_v5  ;;  %v952_v50 = vpop.f32.mrb[17].mxu0  ;;  %v1684_v51 = vsel %vm1653_vm1, %v1681_v41, %v1683_v43 }
 0x113   : > { %v2597_v53 = vld [vmem:[#allocation6 + $0x20] ss:$2 sm:$0xff]  ;;  %v1680_v54 = vsel %vm1653_vm1, %v1677_v39, %v1679_v46  ;;  %v1682_v55 = vsel %vm1653_vm1, %v1679_v46, %v1681_v41  ;;  %v953_v56 = vadd.f32 %v952_v50, %v16541_v5  ;;  %v13679_v57 = vpop.f32.mrb[18].mxu0 }
 0x114   : > { %v2778_v58 = vld [vmem:[#allocation2 + $0x9] sm:$0xff]  ;;  %v2043_v59 = vmax.f32 %v1411_v34, %v1680_v54  ;;  %v2044_v60 = vmax.f32 %v1412_v40, %v1682_v55  ;;  %2427 = vst [vmem:[#allocation6 + $0x48] sm:$0xff] %v2301_v48  ;;  %v1417_v61 = vmax.f32 %v961_v49, 0.0  ;;  %v964_v63 = vadd.f32 %v13679_v57, %v16541_v5  ;;  %v955_v0 = vpop.f32.mrb[19].mxu0  ;;  %2598 = vst [vmem:[#allocation2 + $0x15] sm:$0xff] %v2597_v53 }
 0x115   : > { %v1415_v1 = vmax.f32 %v953_v56, 0.0  ;;  %v956_v2 = vadd.f32 %v955_v0, %v16541_v5  ;;  %v2825_v3 = vpack.c.bf16 %v2778_v58, %v2777_v44  ;;  %v16604_v30 = vld [vmem:[#allocation2 + $0xa] sm:$0xff] }
 0x116   : > { %v2170_v4 = vmax.f32 %v2044_v60, %v1414_v38  ;;  %v2169_v6 = vmax.f32 %v2043_v59, %v1413_v31  ;;  %v1418_v7 = vmax.f32 %v964_v63, 0.0  ;;  %13785 = vmatmul.mubr.msk.bf16.gmra.mrb[124].mxu0 %vm661_vm0, %v15827_v52  ;;  %v1689_v10 = vrot.slane %v1417_v61, 1 }
 0x117   : > { %v1685_v8 = vrot.slane %v1415_v1, 1  ;;  %v1416_v9 = vmax.f32 %v956_v2, 0.0  ;;  %13804 = vmatprep.mubr.bf16.mxu1 %v2825_v3 }
 0x118   : > { %v2304_v11 = vmax.f32 %v2169_v6, %v1684_v51  ;;  %v1691_v12 = vrot.slane %v1418_v7, 1 }
 0x119   : > { %v1686_v13 = vsel %vm1653_vm1, %v1683_v43, %v1685_v8  ;;  %v1687_v14 = vrot.slane %v1416_v9, 1  ;;  %v13682_v15 = vpop.f32.mrb[20].mxu0 }
 0x11a   : > { %2430 = vst [vmem:[#allocation6 + $0x60] sm:$0xff] %v2304_v11  ;;  %v2305_v16 = vmax.f32 %v2170_v4, %v1686_v13  ;;  %v977_v17 = vadd.f32 %v13682_v15, %v16541_v5  ;;  %v968_v18 = vpop.f32.mrb[21].mxu0  ;;  %v1692_v19 = vsel %vm1653_vm1, %v1689_v10, %v1691_v12 }
 0x11b   : > { %v1688_v20 = vsel %vm1653_vm1, %v1685_v8, %v1687_v14  ;;  %v1690_v21 = vsel %vm1653_vm1, %v1687_v14, %v1689_v10  ;;  %v969_v22 = vadd.f32 %v968_v18, %v16541_v5  ;;  %v13683_v23 = vpop.f32.mrb[22].mxu0  ;;  %v2600_v24 = vld [vmem:[#allocation6 + $0x40] ss:$2 sm:$0xff] }
 0x11c   : > { %v2047_v25 = vmax.f32 %v1415_v1, %v1688_v20  ;;  %v2048_v26 = vmax.f32 %v1416_v9, %v1690_v21  ;;  %2431 = vst [vmem:[#allocation6 + $0x68] sm:$0xff] %v2305_v16  ;;  %v1421_v27 = vmax.f32 %v977_v17, 0.0  ;;  %v980_v28 = vadd.f32 %v13683_v23, %v16541_v5  ;;  %v971_v29 = vpop.f32.mrb[23].mxu0  ;;  %2601 = vst [vmem:[#allocation2 + $0x1f] sm:$0xff] %v2600_v24  ;;  %v16606_v31 = vld [vmem:[#allocation2 + $0x12] sm:$0xff] }
 0x11d   : > { %v1419_v32 = vmax.f32 %v969_v22, 0.0  ;;  %v972_v33 = vadd.f32 %v971_v29, %v16541_v5  ;;  %v2779_v63 = vld [vmem:[#allocation2 + $0x11] sm:$0xff] }
 0x11e   : > { %v2174_v35 = vmax.f32 %v2048_v26, %v1418_v7  ;;  %v2173_v36 = vmax.f32 %v2047_v25, %v1417_v61  ;;  %v1422_v37 = vmax.f32 %v980_v28, 0.0  ;;  %v1697_v40 = vrot.slane %v1421_v27, 1  ;;  %v16621_v9 = vld [vmem:[#allocation2 + $0x14] sm:$0xff] }
 0x11f   : > { %v1693_v38 = vrot.slane %v1419_v32, 1  ;;  %v1420_v39 = vmax.f32 %v972_v33, 0.0  ;;  %19528 = vst [vmem:[#allocation12_spill] sm:$0xff] %v16621_v9 }
 0x120   : > { %v2308_v41 = vmax.f32 %v2173_v36, %v1692_v19  ;;  %v1699_v42 = vrot.slane %v1422_v37, 1 }
 0x121   : > { %v1694_v43 = vsel %vm1653_vm1, %v1691_v12, %v1693_v38  ;;  %v1695_v44 = vrot.slane %v1420_v39, 1  ;;  %v13686_v45 = vpop.f32.mrb[24].mxu0 }
 0x122   : > { %2434 = vst [vmem:[#allocation6 + $0x80] sm:$0xff] %v2308_v41  ;;  %v2309_v46 = vmax.f32 %v2174_v35, %v1694_v43  ;;  %v993_v47 = vadd.f32 %v13686_v45, %v16541_v5  ;;  %v984_v48 = vpop.f32.mrb[25].mxu0  ;;  %v1700_v49 = vsel %vm1653_vm1, %v1697_v40, %v1699_v42 }
 0x123   : > { %v1696_v50 = vsel %vm1653_vm1, %v1693_v38, %v1695_v44  ;;  %v1698_v51 = vsel %vm1653_vm1, %v1695_v44, %v1697_v40  ;;  %v985_v52 = vadd.f32 %v984_v48, %v16541_v5  ;;  %v13687_v53 = vpop.f32.mrb[26].mxu0  ;;  %v2780_v54 = vld [vmem:[#allocation2 + $0x19] sm:$0xff]  ;;  %v2781_v56 = vld [vmem:[#allocation2 + $0x21] sm:$0xff] }
 0x124   : > { %v2603_v55 = vld [vmem:[#allocation6 + $0x60] ss:$2 sm:$0xff]  ;;  %v2051_v57 = vmax.f32 %v1419_v32, %v1696_v50  ;;  %v2052_v58 = vmax.f32 %v1420_v39, %v1698_v51  ;;  %2435 = vst [vmem:[#allocation6 + $0x88] sm:$0xff] %v2309_v46  ;;  %v1425_v59 = vmax.f32 %v993_v47, 0.0  ;;  %v996_v60 = vadd.f32 %v13687_v53, %v16541_v5  ;;  %v987_v61 = vpop.f32.mrb[27].mxu0 }
 0x125   : > { %2604 = vst [vmem:[#allocation2 + $0x29] sm:$0xff] %v2603_v55  ;;  %v1423_v0 = vmax.f32 %v985_v52, 0.0  ;;  %v988_v1 = vadd.f32 %v987_v61, %v16541_v5  ;;  %v2826_v2 = vpack.c.bf16 %v2780_v54, %v2779_v63  ;;  %v2827_v3 = vpack.c.bf16 %v2603_v55, %v2781_v56  ;;  %v16619_v4 = vld [vmem:[#allocation2 + $0x1c] sm:$0xff] }
 0x126   : > { %19527 = vst [vmem:[#allocation11_spill] sm:$0xff] %v16619_v4  ;;  %v2178_v6 = vmax.f32 %v2052_v58, %v1422_v37  ;;  %v2177_v7 = vmax.f32 %v2051_v57, %v1421_v27  ;;  %v1426_v8 = vmax.f32 %v996_v60, 0.0  ;;  %v1705_v12 = vrot.slane %v1425_v59, 1 }
 0x127   : > { %v1701_v10 = vrot.slane %v1423_v0, 1  ;;  %v1424_v11 = vmax.f32 %v988_v1, 0.0  ;;  %13805 = vmatmul.mubr.bf16.vlgmr.msra.gmra.mrb[0].mxu1 %v2826_v2 }
 0x128   : > { %v2312_v13 = vmax.f32 %v2177_v7, %v1700_v49  ;;  %v1707_v14 = vrot.slane %v1426_v8, 1  ;;  %13808 = vmatprep.mubr.bf16.mxu1 %v2827_v3 }
 0x129   : > { %v1702_v16 = vsel %vm1653_vm1, %v1699_v42, %v1701_v10  ;;  %v1703_v17 = vrot.slane %v1424_v11, 1  ;;  %v13690_v18 = vpop.f32.mrb[28].mxu0  ;;  %v16635_v42 = vld [vmem:[#allocation2 + $0x1a] sm:$0xff] }
 0x12a   : > { %2438 = vst [vmem:[#allocation6 + $0xa0] sm:$0xff] %v2312_v13  ;;  %v2313_v19 = vmax.f32 %v2178_v6, %v1702_v16  ;;  %v1009_v20 = vadd.f32 %v13690_v18, %v16541_v5  ;;  %v1000_v21 = vpop.f32.mrb[29].mxu0  ;;  %v1708_v22 = vsel %vm1653_vm1, %v1705_v12, %v1707_v14 }
 0x12b   : > { %v1704_v23 = vsel %vm1653_vm1, %v1701_v10, %v1703_v17  ;;  %v1706_v24 = vsel %vm1653_vm1, %v1703_v17, %v1705_v12  ;;  %v1001_v25 = vadd.f32 %v1000_v21, %v16541_v5  ;;  %v13691_v26 = vpop.f32.mrb[30].mxu0  ;;  %v2606_v27 = vld [vmem:[#allocation6 + $0x80] ss:$2 sm:$0xff] }
 0x12c   : > { %v2055_v28 = vmax.f32 %v1423_v0, %v1704_v23  ;;  %v2056_v29 = vmax.f32 %v1424_v11, %v1706_v24  ;;  %2439 = vst [vmem:[#allocation6 + $0xa8] sm:$0xff] %v2313_v19  ;;  %v1429_v32 = vmax.f32 %v1009_v20, 0.0  ;;  %v1012_v33 = vadd.f32 %v13691_v26, %v16541_v5  ;;  %v1003_v35 = vpop.f32.mrb[31].mxu0  ;;  %2607 = vst [vmem:[#allocation2 + $0x33] sm:$0xff] %v2606_v27  ;;  %v16632_v36 = vld [vmem:[#allocation2 + $0x22] sm:$0xff]  ;;  %v16646_v3 = vld [vmem:[#allocation2 + $0x2a] sm:$0xff] }
 0x12d   : > { %v1427_v37 = vmax.f32 %v1001_v25, 0.0  ;;  %v1004_v38 = vadd.f32 %v1003_v35, %v16541_v5  ;;  %v16655_v16 = vld [vmem:[#allocation2 + $0x24] sm:$0xff] }
 0x12e   : > { %v2182_v39 = vmax.f32 %v2056_v29, %v1426_v8  ;;  %v2181_v40 = vmax.f32 %v2055_v28, %v1425_v59  ;;  %v1430_v41 = vmax.f32 %v1012_v33, 0.0  ;;  %v1713_v46 = vrot.slane %v1429_v32, 1  ;;  %19530 = vst [vmem:[#allocation14_spill] sm:$0xff] %v16655_v16  ;;  %v15832_v26 = vld [vmem:[%s19477_s2] sm:$0xff]  }
 0x12f   : > { %v1709_v43 = vrot.slane %v1427_v37, 1  ;;  %v1428_v44 = vmax.f32 %v1004_v38, 0.0  ;;  %13852 = vmatprep.subr.bf16.mxu1 %v15832_v26 }
 0x130   : > { %v2316_v47 = vmax.f32 %v2181_v40, %v1708_v22  ;;  %v1715_v48 = vrot.slane %v1430_v41, 1  ;;  %13853 = vmatpush3.bf16.msra.mxu1 %v15832_v26 }
 0x131   : > { %v1710_v49 = vsel %vm1653_vm1, %v1707_v14, %v1709_v43  ;;  %v1711_v50 = vrot.slane %v1428_v44, 1  ;;  %v13694_v51 = vpop.f32.mrb[32].mxu0 }
 0x132   : > { %2442 = vst [vmem:[#allocation6 + $0xc0] sm:$0xff] %v2316_v47  ;;  %v2317_v52 = vmax.f32 %v2182_v39, %v1710_v49  ;;  %v1025_v53 = vadd.f32 %v13694_v51, %v16541_v5  ;;  %v1016_v54 = vpop.f32.mrb[33].mxu0  ;;  %v1716_v55 = vsel %vm1653_vm1, %v1713_v46, %v1715_v48 }
 0x133   : > { %v1712_v56 = vsel %vm1653_vm1, %v1709_v43, %v1711_v50  ;;  %v1714_v57 = vsel %vm1653_vm1, %v1711_v50, %v1713_v46  ;;  %v1017_v58 = vadd.f32 %v1016_v54, %v16541_v5  ;;  %v13695_v59 = vpop.f32.mrb[34].mxu0  ;;  %v2609_v60 = vld [vmem:[#allocation6 + $0xa0] ss:$2 sm:$0xff] }
 0x134   : > { %v2059_v61 = vmax.f32 %v1427_v37, %v1712_v56  ;;  %v2060_v63 = vmax.f32 %v1428_v44, %v1714_v57  ;;  %2443 = vst [vmem:[#allocation6 + $0xc8] sm:$0xff] %v2317_v52  ;;  %v1433_v0 = vmax.f32 %v1025_v53, 0.0  ;;  %v1028_v1 = vadd.f32 %v13695_v59, %v16541_v5  ;;  %v1019_v2 = vpop.f32.mrb[35].mxu0  ;;  %2610 = vst [vmem:[#allocation2 + $0x3d] sm:$0xff] %v2609_v60  ;;  %v16648_v6 = vld [vmem:[#allocation2 + $0x32] sm:$0xff] }
 0x135   : > { %v16650_v7 = vld [vmem:[#allocation2 + $0x2c] sm:$0xff]  ;;  %v1431_v8 = vmax.f32 %v1017_v58, 0.0  ;;  %v1020_v10 = vadd.f32 %v1019_v2, %v16541_v5  ;;  %v16675_v56 = vld [vmem:[#allocation2 + $0x34] sm:$0xff] }
 0x136   : > { %19529 = vst [vmem:[#allocation13_spill] sm:$0xff] %v16650_v7  ;;  %v2186_v12 = vmax.f32 %v2060_v63, %v1430_v41  ;;  %v2185_v13 = vmax.f32 %v2059_v61, %v1429_v32  ;;  %v1434_v14 = vmax.f32 %v1028_v1, 0.0  ;;  %v1721_v20 = vrot.slane %v1433_v0, 1  ;;  %19532 = vst [vmem:[#allocation16_spill] sm:$0xff] %v16675_v56 }
 0x137   : > { %v1717_v17 = vrot.slane %v1431_v8, 1  ;;  %v1432_v18 = vmax.f32 %v1020_v10, 0.0 }
 0x138   : > { %v2320_v21 = vmax.f32 %v2185_v13, %v1716_v55  ;;  %v1723_v22 = vrot.slane %v1434_v14, 1 }
 0x139   : > { %v1718_v23 = vsel %vm1653_vm1, %v1715_v48, %v1717_v17  ;;  %v1719_v24 = vrot.slane %v1432_v18, 1  ;;  %v13698_v25 = vpop.f32.mrb[36].mxu0  ;;  %v2783_v48 = vld [vmem:[#allocation2 + $0x31] sm:$0xff] }
 0x13a   : > { %2446 = vst [vmem:[#allocation6 + $0xe0] sm:$0xff] %v2320_v21  ;;  %v2321_v27 = vmax.f32 %v2186_v12, %v1718_v23  ;;  %v16664_v28 = vadd.f32 %v13698_v25, %v16541_v5  ;;  %v1032_v29 = vpop.f32.mrb[37].mxu0  ;;  %v1724_v32 = vsel %vm1653_vm1, %v1721_v20, %v1723_v22 }
 0x13b   : > { %v1720_v33 = vsel %vm1653_vm1, %v1717_v17, %v1719_v24  ;;  %v1722_v35 = vsel %vm1653_vm1, %v1719_v24, %v1721_v20  ;;  %v1033_v37 = vadd.f32 %v1032_v29, %v16541_v5  ;;  %v13699_v38 = vpop.f32.mrb[38].mxu0  ;;  %v2784_v39 = vld [vmem:[#allocation2 + $0x39] sm:$0xff] }
 0x13c   : > { %v2612_v40 = vld [vmem:[#allocation6 + $0xc0] ss:$2 sm:$0xff]  ;;  %v2063_v41 = vmax.f32 %v1431_v8, %v1720_v33  ;;  %v2064_v43 = vmax.f32 %v1432_v18, %v1722_v35  ;;  %2447 = vst [vmem:[#allocation6 + $0xe8] sm:$0xff] %v2321_v27  ;;  %v1437_v44 = vmax.f32 %v16664_v28, 0.0  ;;  %v1044_v46 = vadd.f32 %v13699_v38, %v16541_v5  ;;  %v1035_v47 = vpop.f32.mrb[39].mxu0 }
 0x13d   : > { %2613 = vst [vmem:[#allocation2 + $0x47] sm:$0xff] %v2612_v40  ;;  %v16672_v49 = vld [vmem:[#allocation2 + $0x3c] sm:$0xff]  ;;  %v1435_v50 = vmax.f32 %v1033_v37, 0.0  ;;  %v1036_v51 = vadd.f32 %v1035_v47, %v16541_v5  ;;  %v2828_v52 = vpack.c.bf16 %v2784_v39, %v2783_v48 }
 0x13e   : > { %19531 = vst [vmem:[#allocation15_spill] sm:$0xff] %v16672_v49  ;;  %v2190_v53 = vmax.f32 %v2064_v43, %v1434_v14  ;;  %v2189_v54 = vmax.f32 %v2063_v41, %v1433_v0  ;;  %v1438_v55 = vmax.f32 %v1044_v46, 0.0  ;;  %v1729_v60 = vrot.slane %v1437_v44, 1  ;;  %v15833_v0 = vld [vmem:[%s19477_s2 + $0x8] sm:$0xff]   ;;  %v2788_v17 = vld [vmem:[#allocation2 + $0x59] sm:$0xff] }
 0x13f   : > { %v1725_v57 = vrot.slane %v1435_v50, 1  ;;  %v1436_v58 = vmax.f32 %v1036_v51, 0.0  ;;  %13809 = vmatmul.mubr.bf16.gmra.mrb[4].mxu1 %v2828_v52  ;;  %13854 = vmatprep.subr.bf16.mxu1 %v15833_v0  ;;  %v16695_v46 = vld [vmem:[#allocation2 + $0x3a] sm:$0xff] }
 0x140   : > { %v2324_v61 = vmax.f32 %v2189_v54, %v1724_v32  ;;  %v1731_v63 = vrot.slane %v1438_v55, 1  ;;  %13855 = vmatpush3.bf16.msra.mxu1 %v15833_v0 }
 0x141   : > { %v1726_v1 = vsel %vm1653_vm1, %v1723_v22, %v1725_v57  ;;  %v1727_v2 = vrot.slane %v1436_v58, 1  ;;  %v13702_v8 = vpop.f32.mrb[40].mxu0 }
 0x142   : > { %2450 = vst [vmem:[#allocation6 + $0x100] sm:$0xff] %v2324_v61  ;;  %v2325_v10 = vmax.f32 %v2190_v53, %v1726_v1  ;;  %v16684_v12 = vadd.f32 %v13702_v8, %v16541_v5  ;;  %v1048_v13 = vpop.f32.mrb[41].mxu0  ;;  %v1732_v14 = vsel %vm1653_vm1, %v1729_v60, %v1731_v63 }
 0x143   : > { %v1728_v18 = vsel %vm1653_vm1, %v1725_v57, %v1727_v2  ;;  %v1730_v20 = vsel %vm1653_vm1, %v1727_v2, %v1729_v60  ;;  %v1049_v21 = vadd.f32 %v1048_v13, %v16541_v5  ;;  %v13703_v22 = vpop.f32.mrb[42].mxu0  ;;  %v2615_v25 = vld [vmem:[#allocation6 + $0xe0] ss:$2 sm:$0xff] }
 0x144   : > { %v2785_v23 = vld [vmem:[#allocation2 + $0x41] sm:$0xff]  ;;  %v2786_v24 = vld [vmem:[#allocation2 + $0x49] sm:$0xff]  ;;  %v2067_v26 = vmax.f32 %v1435_v50, %v1728_v18  ;;  %v2068_v27 = vmax.f32 %v1436_v58, %v1730_v20  ;;  %2451 = vst [vmem:[#allocation6 + $0x108] sm:$0xff] %v2325_v10  ;;  %v1441_v28 = vmax.f32 %v16684_v12, 0.0  ;;  %v1060_v29 = vadd.f32 %v13703_v22, %v16541_v5  ;;  %v1051_v32 = vpop.f32.mrb[43].mxu0  ;;  %2616 = vst [vmem:[#allocation2 + $0x51] sm:$0xff] %v2615_v25 }
 0x145   : > { %v16692_v33 = vld [vmem:[#allocation2 + $0x42] sm:$0xff]  ;;  %v1439_v35 = vmax.f32 %v1049_v21, 0.0  ;;  %v1052_v37 = vadd.f32 %v1051_v32, %v16541_v5  ;;  %v2829_v38 = vpack.c.bf16 %v2786_v24, %v2785_v23  ;;  %v2830_v39 = vpack.c.bf16 %v2788_v17, %v2615_v25 }
 0x146   : > { %v2194_v40 = vmax.f32 %v2068_v27, %v1438_v55  ;;  %v2193_v41 = vmax.f32 %v2067_v26, %v1437_v44  ;;  %v1442_v43 = vmax.f32 %v1060_v29, 0.0  ;;  %v1737_v51 = vrot.slane %v1441_v28, 1 }
 0x147   : > { %v1733_v47 = vrot.slane %v1439_v35, 1  ;;  %v1440_v48 = vmax.f32 %v1052_v37, 0.0  ;;  %13812 = vmatprep.mubr.bf16.mxu1 %v2829_v38 }
 0x148   : > { %v2328_v52 = vmax.f32 %v2193_v41, %v1732_v14  ;;  %v1739_v53 = vrot.slane %v1442_v43, 1  ;;  %13813 = vmatmul.mubr.bf16.gmra.mrb[8].mxu1 %v2830_v39  ;;  %v15834_v39 = vld [vmem:[%s19477_s2 + $0x10] sm:$0xff]  }
 0x149   : > { %v1734_v54 = vsel %vm1653_vm1, %v1731_v63, %v1733_v47  ;;  %v1735_v57 = vrot.slane %v1440_v48, 1  ;;  %v13706_v58 = vpop.f32.mrb[44].mxu0  ;;  %13856 = vmatprep.subr.bf16.mxu1 %v15834_v39 }
 0x14a   : > { %2454 = vst [vmem:[#allocation6 + $0x120] sm:$0xff] %v2328_v52  ;;  %v2329_v55 = vmax.f32 %v2194_v40, %v1734_v54  ;;  %v16701_v44 = vadd.f32 %v13706_v58, %v16541_v5  ;;  %v1064_v60 = vpop.f32.mrb[45].mxu0  ;;  %v1740_v61 = vsel %vm1653_vm1, %v1737_v51, %v1739_v53  ;;  %v16721_v40 = vld [vmem:[#allocation2 + $0x44] sm:$0xff]  ;;  %13857 = vmatpush3.bf16.msra.mxu1 %v15834_v39 }
 0x14b   : > { %v1736_v1 = vsel %vm1653_vm1, %v1733_v47, %v1735_v57  ;;  %v1738_v2 = vsel %vm1653_vm1, %v1735_v57, %v1737_v51  ;;  %v1065_v8 = vadd.f32 %v1064_v60, %v16541_v5  ;;  %v13707_v0 = vpop.f32.mrb[46].mxu0  ;;  %v2618_v10 = vld [vmem:[#allocation6 + $0x100] ss:$2 sm:$0xff]  ;;  %19534 = vst [vmem:[#allocation18_spill] sm:$0xff] %v16721_v40  ;;  %v2789_v57 = vld [vmem:[#allocation2 + $0x61] sm:$0xff] }
 0x14c   : > { %v2071_v12 = vmax.f32 %v1439_v35, %v1736_v1  ;;  %v2072_v63 = vmax.f32 %v1440_v48, %v1738_v2  ;;  %2455 = vst [vmem:[#allocation6 + $0x128] sm:$0xff] %v2329_v55  ;;  %v1445_v13 = vmax.f32 %v16701_v44, 0.0  ;;  %v1076_v14 = vadd.f32 %v13707_v0, %v16541_v5  ;;  %v1067_v17 = vpop.f32.mrb[47].mxu0  ;;  %2619 = vst [vmem:[#allocation2 + $0x6f] sm:$0xff] %v2618_v10  ;;  %v16709_v18 = vld [vmem:[#allocation2 + $0x4a] sm:$0xff]  ;;  %v16711_v20 = vld [vmem:[#allocation2 + $0x52] sm:$0xff] }
 0x14d   : > { %v1443_v21 = vmax.f32 %v1065_v8, 0.0  ;;  %v1068_v22 = vadd.f32 %v1067_v17, %v16541_v5  ;;  %v16714_v26 = vld [vmem:[#allocation2 + $0x4c] sm:$0xff] }
 0x14e   : > { %v2198_v23 = vmax.f32 %v2072_v63, %v1442_v43  ;;  %v2197_v24 = vmax.f32 %v2071_v12, %v1441_v28  ;;  %v1446_v25 = vmax.f32 %v1076_v14, 0.0  ;;  %19533 = vst [vmem:[#allocation17_spill] sm:$0xff] %v16714_v26  ;;  %v1745_v35 = vrot.slane %v1445_v13, 1 }
 0x14f   : > { %v1741_v27 = vrot.slane %v1443_v21, 1  ;;  %v1444_v29 = vmax.f32 %v1068_v22, 0.0 }
 0x150   : > { %v2332_v37 = vmax.f32 %v2197_v24, %v1740_v61  ;;  %v1747_v38 = vrot.slane %v1446_v25, 1 }
 0x151   : > { %v1742_v41 = vsel %vm1653_vm1, %v1739_v53, %v1741_v27  ;;  %v1743_v28 = vrot.slane %v1444_v29, 1  ;;  %v13710_v43 = vpop.f32.mrb[48].mxu0 }
 0x152   : > { %2458 = vst [vmem:[#allocation6 + $0x140] sm:$0xff] %v2332_v37  ;;  %v2333_v48 = vmax.f32 %v2198_v23, %v1742_v41  ;;  %v1089_v51 = vadd.f32 %v13710_v43, %v16541_v5  ;;  %v1080_v52 = vpop.f32.mrb[49].mxu0  ;;  %v1748_v54 = vsel %vm1653_vm1, %v1745_v35, %v1747_v38 }
 0x153   : > { %v1744_v58 = vsel %vm1653_vm1, %v1741_v27, %v1743_v28  ;;  %v1746_v55 = vsel %vm1653_vm1, %v1743_v28, %v1745_v35  ;;  %v1081_v53 = vadd.f32 %v1080_v52, %v16541_v5  ;;  %v13711_v44 = vpop.f32.mrb[50].mxu0  ;;  %v2790_v60 = vld [vmem:[#allocation2 + $0x69] sm:$0xff]  ;;  %v2791_v1 = vld [vmem:[#allocation2 + $0x71] sm:$0xff] }
 0x154   : > { %v2621_v61 = vld [vmem:[#allocation6 + $0x120] ss:$2 sm:$0xff]  ;;  %v2075_v2 = vmax.f32 %v1443_v21, %v1744_v58  ;;  %v2076_v8 = vmax.f32 %v1444_v29, %v1746_v55  ;;  %2459 = vst [vmem:[#allocation6 + $0x148] sm:$0xff] %v2333_v48  ;;  %v1449_v0 = vmax.f32 %v1089_v51, 0.0  ;;  %v1092_v10 = vadd.f32 %v13711_v44, %v16541_v5  ;;  %v1083_v12 = vpop.f32.mrb[51].mxu0 }
 0x155   : > { %2622 = vst [vmem:[#allocation2 + $0x79] sm:$0xff] %v2621_v61  ;;  %v1447_v63 = vmax.f32 %v1081_v53, 0.0  ;;  %v1084_v14 = vadd.f32 %v1083_v12, %v16541_v5  ;;  %v2831_v17 = vpack.c.bf16 %v2790_v60, %v2789_v57  ;;  %v2832_v22 = vpack.c.bf16 %v2621_v61, %v2791_v1  ;;  %v15835_v48 = vld [vmem:[%s19477_s2 + $0x18] sm:$0xff]  }
 0x156   : > { %v2202_v23 = vmax.f32 %v2076_v8, %v1446_v25  ;;  %v2201_v24 = vmax.f32 %v2075_v2, %v1445_v13  ;;  %v1450_v27 = vmax.f32 %v1092_v10, 0.0  ;;  %v1753_v39 = vrot.slane %v1449_v0, 1  ;;  %13858 = vmatprep.subr.bf16.mxu1 %v15835_v48 }
 0x157   : > { %v1749_v35 = vrot.slane %v1447_v63, 1  ;;  %v1448_v37 = vmax.f32 %v1084_v14, 0.0  ;;  %13816 = vmatprep.mubr.bf16.mxu1 %v2831_v17  ;;  %13859 = vmatpush3.bf16.msra.mxu1 %v15835_v48 }
 0x158   : > { %v2336_v21 = vmax.f32 %v2201_v24, %v1748_v54  ;;  %v1755_v29 = vrot.slane %v1450_v27, 1  ;;  %13817 = vmatmul.mubr.bf16.gmra.mrb[12].mxu1 %v2832_v22 }
 0x159   : > { %v1750_v41 = vsel %vm1653_vm1, %v1747_v38, %v1749_v35  ;;  %v1751_v28 = vrot.slane %v1448_v37, 1  ;;  %v13714_v43 = vpop.f32.mrb[52].mxu0 }
 0x15a   : > { %2462 = vst [vmem:[#allocation6 + $0x160] sm:$0xff] %v2336_v21  ;;  %v2337_v51 = vmax.f32 %v2202_v23, %v1750_v41  ;;  %v1105_v13 = vadd.f32 %v13714_v43, %v16541_v5  ;;  %v1096_v25 = vpop.f32.mrb[53].mxu0  ;;  %v1756_v52 = vsel %vm1653_vm1, %v1753_v39, %v1755_v29  ;;  %v16746_v23 = vld [vmem:[#allocation2 + $0x6a] sm:$0xff] }
 0x15b   : > { %v1752_v57 = vsel %vm1653_vm1, %v1749_v35, %v1751_v28  ;;  %v1754_v54 = vsel %vm1653_vm1, %v1751_v28, %v1753_v39  ;;  %v1097_v58 = vadd.f32 %v1096_v25, %v16541_v5  ;;  %v13715_v38 = vpop.f32.mrb[54].mxu0  ;;  %v2624_v55 = vld [vmem:[#allocation6 + $0x140] ss:$2 sm:$0xff] }
 0x15c   : > { %v2079_v53 = vmax.f32 %v1447_v63, %v1752_v57  ;;  %v2080_v44 = vmax.f32 %v1448_v37, %v1754_v54  ;;  %2463 = vst [vmem:[#allocation6 + $0x168] sm:$0xff] %v2337_v51  ;;  %v1099_v60 = vpop.f32.mrb[55].mxu0  ;;  %2625 = vst [vmem:[#allocation2 + $0x83] sm:$0xff] %v2624_v55  ;;  %v1453_v61 = vmax.f32 %v1105_v13, 0.0  ;;  %v1108_v2 = vadd.f32 %v13715_v38, %v16541_v5  ;;  %v16744_v10 = vld [vmem:[#allocation2 + $0x72] sm:$0xff] }
 0x15d   : > { %v1451_v1 = vmax.f32 %v1097_v58, 0.0  ;;  %v1100_v8 = vadd.f32 %v1099_v60, %v16541_v5 }
 0x15e   : > { %v2206_v12 = vmax.f32 %v2080_v44, %v1450_v27  ;;  %v2205_v14 = vmax.f32 %v2079_v53, %v1449_v0  ;;  %v1454_v22 = vmax.f32 %v1108_v2, 0.0  ;;  %v1761_v37 = vrot.slane %v1453_v61, 1 }
 0x15f   : > { %v1757_v17 = vrot.slane %v1451_v1, 1  ;;  %v1452_v24 = vmax.f32 %v1100_v8, 0.0 }
 0x160   : > { %v2340_v63 = vmax.f32 %v2205_v14, %v1756_v52  ;;  %v1763_v39 = vrot.slane %v1454_v22, 1  ;;  %v16760_v14 = vld [vmem:[#allocation2 + $0x7a] sm:$0xff] }
 0x161   : > { %v1758_v21 = vsel %vm1653_vm1, %v1755_v29, %v1757_v17  ;;  %v13718_v41 = vpop.f32.mrb[56].mxu0  ;;  %v1759_v28 = vrot.slane %v1452_v24, 1 }
 0x162   : > { %2466 = vst [vmem:[#allocation6 + $0x180] sm:$0xff] %v2340_v63  ;;  %v2341_v43 = vmax.f32 %v2206_v12, %v1758_v21  ;;  %v1121_v27 = vadd.f32 %v13718_v41, %v16541_v5  ;;  %v1112_v0 = vpop.f32.mrb[57].mxu0  ;;  %v1764_v51 = vsel %vm1653_vm1, %v1761_v37, %v1763_v39 }
 0x163   : > { %v1113_v48 = vadd.f32 %v1112_v0, %v16541_v5  ;;  %v13719_v13 = vpop.f32.mrb[58].mxu0  ;;  %v2627_v25 = vld [vmem:[#allocation6 + $0x160] ss:$2 sm:$0xff]  ;;  %v1760_v52 = vsel %vm1653_vm1, %v1757_v17, %v1759_v28  ;;  %v1762_v57 = vsel %vm1653_vm1, %v1759_v28, %v1761_v37  ;;  %v16756_v53 = vld [vmem:[#allocation2 + $0x82] sm:$0xff] }
 0x164   : > { %2467 = vst [vmem:[#allocation6 + $0x188] sm:$0xff] %v2341_v43  ;;  %v1457_v54 = vmax.f32 %v1121_v27, 0.0  ;;  %v1115_v29 = vpop.f32.mrb[59].mxu0  ;;  %2628 = vst [vmem:[#allocation2 + $0x8d] sm:$0xff] %v2627_v25  ;;  %v2083_v58 = vmax.f32 %v1451_v1, %v1760_v52  ;;  %v2084_v38 = vmax.f32 %v1452_v24, %v1762_v57  ;;  %v1124_v44 = vadd.f32 %v13719_v13, %v16541_v5  ;;  %v16764_v37 = vld [vmem:[#allocation2 + $0x7c] sm:$0xff] }
 0x165   : > { %v1455_v55 = vmax.f32 %v1113_v48, 0.0  ;;  %v1116_v12 = vadd.f32 %v1115_v29, %v16541_v5  ;;  %19535 = vst [vmem:[#allocation19_spill] sm:$0xff] %v16764_v37  ;;  %v15836_v0 = vld [vmem:[%s19477_s2 + $0x20] sm:$0xff]   ;;  %v16773_v48 = vld [vmem:[#allocation2 + $0x74] sm:$0xff] }
 0x166   : > { %v2210_v60 = vmax.f32 %v2084_v38, %v1454_v22  ;;  %v2209_v8 = vmax.f32 %v2083_v58, %v1453_v61  ;;  %v1458_v17 = vmax.f32 %v1124_v44, 0.0  ;;  %v1769_v1 = vrot.slane %v1457_v54, 1  ;;  %19536 = vst [vmem:[#allocation20_spill] sm:$0xff] %v16773_v48  ;;  %13860 = vmatprep.subr.bf16.mxu1 %v15836_v0 }
 0x167   : > { %v1765_v2 = vrot.slane %v1455_v55, 1  ;;  %v1456_v21 = vmax.f32 %v1116_v12, 0.0  ;;  %13861 = vmatpush3.bf16.msra.mxu1 %v15836_v0 }
 0x168   : > { %v2344_v24 = vmax.f32 %v2209_v8, %v1764_v51  ;;  %v1771_v43 = vrot.slane %v1458_v17, 1 }
 0x169   : > { %v1766_v41 = vsel %vm1653_vm1, %v1763_v39, %v1765_v2  ;;  %v13722_v28 = vpop.f32.mrb[60].mxu0  ;;  %v1767_v13 = vrot.slane %v1456_v21, 1 }
 0x16a   : > { %v2345_v22 = vmax.f32 %v2210_v60, %v1766_v41  ;;  %v16768_v61 = vadd.f32 %v13722_v28, %v16541_v5  ;;  %v1128_v27 = vpop.f32.mrb[61].mxu0  ;;  %2470 = vst [vmem:[#allocation6 + $0x1a0] sm:$0xff] %v2344_v24  ;;  %v1772_v29 = vsel %vm1653_vm1, %v1769_v1, %v1771_v43 }
 0x16b   : > { %v1129_v51 = vadd.f32 %v1128_v27, %v16541_v5  ;;  %v13723_v25 = vpop.f32.mrb[62].mxu0  ;;  %v2630_v52 = vld [vmem:[#allocation6 + $0x180] ss:$2 sm:$0xff]  ;;  %v1768_v44 = vsel %vm1653_vm1, %v1765_v2, %v1767_v13  ;;  %v1770_v60 = vsel %vm1653_vm1, %v1767_v13, %v1769_v1  ;;  %v2793_v27 = vld [vmem:[#allocation2 + $0x81] sm:$0xff] }
 0x16c   : > { %2471 = vst [vmem:[#allocation6 + $0x1a8] sm:$0xff] %v2345_v22  ;;  %v1461_v57 = vmax.f32 %v16768_v61, 0.0  ;;  %v1140_v58 = vadd.f32 %v13723_v25, %v16541_v5  ;;  %v1131_v38 = vpop.f32.mrb[63].mxu0  ;;  %2631 = vst [vmem:[#allocation2 + $0x97] sm:$0xff] %v2630_v52  ;;  %v2794_v12 = vld [vmem:[#allocation2 + $0x89] sm:$0xff]  ;;  %v2087_v24 = vmax.f32 %v1455_v55, %v1768_v44  ;;  %v2088_v41 = vmax.f32 %v1456_v21, %v1770_v60 }
 0x16d   : > { %v1459_v8 = vmax.f32 %v1129_v51, 0.0  ;;  %v1132_v59 = vadd.f32 %v1131_v38, %v16541_v5  ;;  %v2833_v25 = vpack.c.bf16 %v2794_v12, %v2793_v27  ;;  %v15837_v52 = vld [vmem:[%s19477_s2 + $0x28] sm:$0xff]  }
 0x16e   : > { %v1462_v22 = vmax.f32 %v1140_v58, 0.0  ;;  %v2214_v39 = vmax.f32 %v2088_v41, %v1458_v17  ;;  %v2213_v47 = vmax.f32 %v2087_v24, %v1457_v54  ;;  %v16787_v2 = vld [vmem:[#allocation2 + $0x8c] sm:$0xff]  ;;  %v1777_v1 = vrot.slane %v1461_v57, 1  ;;  %13862 = vmatprep.subr.bf16.mxu1 %v15837_v52  ;;  %v16792_v58 = vld [vmem:[#allocation2 + $0x84] sm:$0xff] }
 0x16f   : > { %v1773_v28 = vrot.slane %v1459_v8, 1  ;;  %19537 = vst [vmem:[#allocation21_spill] sm:$0xff] %v16787_v2  ;;  %v1460_v51 = vmax.f32 %v1132_v59, 0.0  ;;  %13820 = vmatprep.mubr.bf16.mxu1 %v2833_v25  ;;  %19538 = vst [vmem:[#allocation22_spill] sm:$0xff] %v16792_v58  ;;  %13863 = vmatpush3.bf16.msra.mxu1 %v15837_v52  ;;  %v16811_v35 = vld [vmem:[#allocation2 + $0x8a] sm:$0xff] }
 0x170   : > { %v1779_v0 = vrot.slane %v1462_v22, 1  ;;  %v2348_v13 = vmax.f32 %v2213_v47, %v1772_v29 }
 0x171   : > { %v1774_v55 = vsel %vm1653_vm1, %v1771_v43, %v1773_v28  ;;  %v13726_v21 = vpop.f32.mrb[64].mxu0  ;;  %v1775_v47 = vrot.slane %v1460_v51, 1 }
 0x172   : > { %v2349_v17 = vmax.f32 %v2214_v39, %v1774_v55  ;;  %v1144_v54 = vpop.f32.mrb[65].mxu0  ;;  %v16795_v38 = vadd.f32 %v13726_v21, %v16541_v5  ;;  %v1780_v60 = vsel %vm1653_vm1, %v1777_v1, %v1779_v0  ;;  %2474 = vst [vmem:[#allocation6 + $0x1c0] sm:$0xff] %v2348_v13 }
 0x173   : > { %v1145_v44 = vadd.f32 %v1144_v54, %v16541_v5  ;;  %v13727_v12 = vpop.f32.mrb[66].mxu0  ;;  %v2795_v24 = vld [vmem:[#allocation2 + $0x91] sm:$0xff]  ;;  %v2796_v41 = vld [vmem:[#allocation2 + $0x99] sm:$0xff]  ;;  %v1776_v54 = vsel %vm1653_vm1, %v1773_v28, %v1775_v47  ;;  %v1778_v52 = vsel %vm1653_vm1, %v1775_v47, %v1777_v1 }
 0x174   : > { %v16799_v43 = vld [vmem:[#allocation6 + $0x1a0] ss:$2 sm:$0xff]  ;;  %2475 = vst [vmem:[#allocation6 + $0x1c8] sm:$0xff] %v2349_v17  ;;  %v1156_v39 = vadd.f32 %v13727_v12, %v16541_v5  ;;  %v1147_v29 = vpop.f32.mrb[67].mxu0  ;;  %v1465_v27 = vmax.f32 %v16795_v38, 0.0  ;;  %v2834_v21 = vpack.c.bf16 %v2796_v41, %v2795_v24  ;;  %v2091_v13 = vmax.f32 %v1459_v8, %v1776_v54 }
 0x175   : > { %2634 = vst [vmem:[#allocation2 + $0xa1] sm:$0xff] %v16799_v43  ;;  %v1463_v25 = vmax.f32 %v1145_v44, 0.0  ;;  %v1148_v55 = vadd.f32 %v1147_v29, %v16541_v5  ;;  %v16809_v59 = vld [vmem:[#allocation2 + $0x92] sm:$0xff]  ;;  %v2092_v17 = vmax.f32 %v1460_v51, %v1778_v52 }
 0x176   : > { %v1466_v19 = vmax.f32 %v1156_v39, 0.0  ;;  %13821 = vmatmul.mubr.bf16.gmra.mrb[16].mxu1 %v2834_v21  ;;  %v1785_v12 = vrot.slane %v1465_v27, 1  ;;  %v2217_v44 = vmax.f32 %v2091_v13, %v1461_v57 }
 0x177   : > { %v1781_v15 = vrot.slane %v1463_v25, 1  ;;  %v2218_v38 = vmax.f32 %v2092_v17, %v1462_v22  ;;  %v1464_v24 = vmax.f32 %v1148_v55, 0.0 }
 0x178   : > { %v1787_v63 = vrot.slane %v1466_v19, 1  ;;  %v2352_v39 = vmax.f32 %v2217_v44, %v1780_v60  ;;  %v15839_v44 = vld [vmem:[%s19477_s2 + $0x38] sm:$0xff]  }
 0x179   : > { %v13730_v41 = vpop.f32.mrb[68].mxu0  ;;  %v1782_v1 = vsel %vm1653_vm1, %v1779_v0, %v1781_v15  ;;  %v1783_v29 = vrot.slane %v1464_v24, 1 }
 0x17a   : > { %v1169_v8 = vadd.f32 %v13730_v41, %v16541_v5  ;;  %v1160_v51 = vpop.f32.mrb[69].mxu0  ;;  %v1788_v47 = vsel %vm1653_vm1, %v1785_v12, %v1787_v63  ;;  %v2353_v21 = vmax.f32 %v2218_v38, %v1782_v1  ;;  %2478 = vst [vmem:[#allocation6 + $0x1e0] sm:$0xff] %v2352_v39  ;;  %v15838_v38 = vld [vmem:[%s19477_s2 + $0x30] sm:$0xff]  }
 0x17b   : > { %v13731_v54 = vpop.f32.mrb[70].mxu0  ;;  %v2636_v22 = vld [vmem:[#allocation6 + $0x1c0] ss:$2 sm:$0xff]  ;;  %v1161_v61 = vadd.f32 %v1160_v51, %v16541_v5  ;;  %v1784_v0 = vsel %vm1653_vm1, %v1781_v15, %v1783_v29  ;;  %v1786_v17 = vsel %vm1653_vm1, %v1783_v29, %v1785_v12  ;;  %13864 = vmatprep.subr.bf16.mxu1 %v15838_v38 }
 0x17c   : > { %v1469_v52 = vmax.f32 %v1169_v8, 0.0  ;;  %v1172_v57 = vadd.f32 %v13731_v54, %v16541_v5  ;;  %v1163_v55 = vpop.f32.mrb[71].mxu0  ;;  %2637 = vst [vmem:[#allocation2 + $0xab] sm:$0xff] %v2636_v22  ;;  %v16822_v13 = vld [vmem:[#allocation2 + $0x9a] sm:$0xff]  ;;  %2479 = vst [vmem:[#allocation6 + $0x1e8] sm:$0xff] %v2353_v21  ;;  %v16833_v41 = vld [vmem:[#allocation2 + $0xa2] sm:$0xff]  ;;  %v2095_v1 = vmax.f32 %v1463_v25, %v1784_v0  ;;  %v2096_v8 = vmax.f32 %v1464_v24, %v1786_v17 }
 0x17d   : > { %v1164_v60 = vadd.f32 %v1163_v55, %v16541_v5  ;;  %v1467_v51 = vmax.f32 %v1161_v61, 0.0  ;;  %13865 = vmatpush3.bf16.msra.mxu1 %v15838_v38 }
 0x17e   : > { %v1470_v39 = vmax.f32 %v1172_v57, 0.0  ;;  %v2222_v12 = vmax.f32 %v2096_v8, %v1466_v19  ;;  %v1793_v29 = vrot.slane %v1469_v52, 1  ;;  %v2221_v21 = vmax.f32 %v2095_v1, %v1465_v27  ;;  %13866 = vmatprep.subr.bf16.mxu1 %v15839_v44 }
 0x17f   : > { %v1468_v15 = vmax.f32 %v1164_v60, 0.0  ;;  %v1789_v22 = vrot.slane %v1467_v51, 1 }
 0x180   : > { %v1795_v55 = vrot.slane %v1470_v39, 1  ;;  %v2356_v50 = vmax.f32 %v2221_v21, %v1788_v47 }
 0x181   : > { %v1791_v28 = vrot.slane %v1468_v15, 1  ;;  %v13734_v32 = vpop.f32.mrb[72].mxu0  ;;  %v1790_v61 = vsel %vm1653_vm1, %v1787_v63, %v1789_v22  ;;  %13867 = vmatpush3.bf16.msra.mxu1 %v15839_v44 }
 0x182   : > { %v16838_v25 = vadd.f32 %v13734_v32, %v16541_v5  ;;  %v1176_v24 = vpop.f32.mrb[73].mxu0  ;;  %2482 = vst [vmem:[#allocation6 + $0x200] sm:$0xff] %v2356_v50  ;;  %v2357_v38 = vmax.f32 %v2222_v12, %v1790_v61  ;;  %v1796_v32 = vsel %vm1653_vm1, %v1793_v29, %v1795_v55 }
 0x183   : > { %v1792_v19 = vsel %vm1653_vm1, %v1789_v22, %v1791_v28  ;;  %v1794_v27 = vsel %vm1653_vm1, %v1791_v28, %v1793_v29  ;;  %v1177_v57 = vadd.f32 %v1176_v24, %v16541_v5  ;;  %v13735_v0 = vpop.f32.mrb[74].mxu0  ;;  %v2639_v8 = vld [vmem:[#allocation6 + $0x1e0] ss:$2 sm:$0xff] }
 0x184   : > { %v2099_v17 = vmax.f32 %v1467_v51, %v1792_v19  ;;  %v2100_v60 = vmax.f32 %v1468_v15, %v1794_v27  ;;  %v1179_v1 = vpop.f32.mrb[75].mxu0  ;;  %v2798_v21 = vld [vmem:[#allocation2 + $0xa9] sm:$0xff]  ;;  %2640 = vst [vmem:[#allocation2 + $0xb5] sm:$0xff] %v2639_v8  ;;  %2483 = vst [vmem:[#allocation6 + $0x208] sm:$0xff] %v2357_v38  ;;  %v1473_v28 = vmax.f32 %v16838_v25, 0.0  ;;  %v1188_v24 = vadd.f32 %v13735_v0, %v16541_v5  ;;  %v15840_v51 = vld [vmem:[%s19477_s2 + $0x80] sm:$0xff]  }
 0x185   : > { %v1471_v47 = vmax.f32 %v1177_v57, 0.0  ;;  %v1180_v50 = vadd.f32 %v1179_v1, %v16541_v5  ;;  %v2835_v15 = vpack.c.bf16 %v2798_v21, %v16799_v43  ;;  %13916 = vmatprep.subr.bf16.mxu1 %v15840_v51  ;;  %v16859_v38 = vld [vmem:[#allocation2 + $0x94] sm:$0xff]  ;;  %v2802_v21 = vld [vmem:[#allocation2 + $0xc9] sm:$0xff] }
 0x186   : > { %v2226_v63 = vmax.f32 %v2100_v60, %v1470_v39  ;;  %v2225_v22 = vmax.f32 %v2099_v17, %v1469_v52  ;;  %v1474_v12 = vmax.f32 %v1188_v24, 0.0  ;;  %v16853_v52 = vld [vmem:[#allocation2 + $0x9c] sm:$0xff]  ;;  %v1801_v57 = vrot.slane %v1473_v28, 1  ;;  %19540 = vst [vmem:[#allocation24_spill] sm:$0xff] %v16859_v38 }
 0x187   : > { %v1797_v54 = vrot.slane %v1471_v47, 1  ;;  %v1472_v29 = vmax.f32 %v1180_v50, 0.0  ;;  %19539 = vst [vmem:[#allocation23_spill] sm:$0xff] %v16853_v52  ;;  %13824 = vmatprep.mubr.bf16.mxu1 %v2835_v15 }
 0x188   : > { %v2360_v44 = vmax.f32 %v2225_v22, %v1796_v32  ;;  %v1803_v0 = vrot.slane %v1474_v12, 1  ;;  %v2801_v32 = vld [vmem:[#allocation2 + $0xc1] sm:$0xff] }
 0x189   : > { %v1798_v39 = vsel %vm1653_vm1, %v1795_v55, %v1797_v54  ;;  %v13738_v61 = vpop.f32.mrb[76].mxu0  ;;  %v1799_v17 = vrot.slane %v1472_v29, 1 }
 0x18a   : > { %2486 = vst [vmem:[#allocation6 + $0x220] sm:$0xff] %v2360_v44  ;;  %v2361_v25 = vmax.f32 %v2226_v63, %v1798_v39  ;;  %v16856_v19 = vadd.f32 %v13738_v61, %v16541_v5  ;;  %v1192_v27 = vpop.f32.mrb[77].mxu0  ;;  %v1804_v51 = vsel %vm1653_vm1, %v1801_v57, %v1803_v0 }
 0x18b   : > { %v1193_v43 = vadd.f32 %v1192_v27, %v16541_v5  ;;  %v13739_v60 = vpop.f32.mrb[78].mxu0  ;;  %v1800_v22 = vsel %vm1653_vm1, %v1797_v54, %v1799_v17  ;;  %v1802_v24 = vsel %vm1653_vm1, %v1799_v17, %v1801_v57  ;;  %v2799_v44 = vld [vmem:[#allocation2 + $0xb1] sm:$0xff]  ;;  %v2800_v15 = vld [vmem:[#allocation2 + $0xb9] sm:$0xff] }
 0x18c   : > { %2487 = vst [vmem:[#allocation6 + $0x228] sm:$0xff] %v2361_v25  ;;  %v1477_v55 = vmax.f32 %v16856_v19, 0.0  ;;  %v1204_v1 = vadd.f32 %v13739_v60, %v16541_v5  ;;  %v1195_v8 = vpop.f32.mrb[79].mxu0  ;;  %v2642_v39 = vld [vmem:[#allocation6 + $0x200] ss:$2 sm:$0xff]  ;;  %v2103_v61 = vmax.f32 %v1471_v47, %v1800_v22  ;;  %v2104_v25 = vmax.f32 %v1472_v29, %v1802_v24 }
 0x18d   : > { %v1475_v50 = vmax.f32 %v1193_v43, 0.0  ;;  %2643 = vst [vmem:[#allocation2 + $0xd3] sm:$0xff] %v2642_v39  ;;  %v2837_v60 = vpack.c.bf16 %v2802_v21, %v2801_v32  ;;  %v1196_v63 = vadd.f32 %v1195_v8, %v16541_v5  ;;  %v2836_v34 = vpack.c.bf16 %v2800_v15, %v2799_v44  ;;  %v16870_v29 = vld [vmem:[#allocation2 + $0xb2] sm:$0xff] }
 0x18e   : > { %v1478_v27 = vmax.f32 %v1204_v1, 0.0  ;;  %v2230_v11 = vmax.f32 %v2104_v25, %v1474_v12  ;;  %v2229_v45 = vmax.f32 %v2103_v61, %v1473_v28  ;;  %v1809_v54 = vrot.slane %v1477_v55, 1 }
 0x18f   : > { %v1805_v19 = vrot.slane %v1475_v50, 1  ;;  %v1476_v38 = vmax.f32 %v1196_v63, 0.0  ;;  %13825 = vmatmul.mubr.bf16.gmra.mrb[20].mxu1 %v2836_v34  ;;  %v16876_v34 = vld [vmem:[#allocation2 + $0xaa] sm:$0xff] }
 0x190   : > { %v1811_v62 = vrot.slane %v1478_v27, 1  ;;  %v2364_v57 = vmax.f32 %v2229_v45, %v1804_v51  ;;  %13828 = vmatprep.mubr.bf16.mxu1 %v2837_v60 }
 0x191   : > { %v1806_v17 = vsel %vm1653_vm1, %v1803_v0, %v1805_v19  ;;  %v13742_v43 = vpop.f32.mrb[80].mxu0  ;;  %v1807_v21 = vrot.slane %v1476_v38, 1 }
 0x192   : > { %v2365_v52 = vmax.f32 %v2230_v11, %v1806_v17  ;;  %v1208_v47 = vpop.f32.mrb[81].mxu0  ;;  %v1217_v1 = vadd.f32 %v13742_v43, %v16541_v5  ;;  %v1812_v28 = vsel %vm1653_vm1, %v1809_v54, %v1811_v62  ;;  %2490 = vst [vmem:[#allocation6 + $0x240] sm:$0xff] %v2364_v57 }
 0x193   : > { %v1209_v12 = vadd.f32 %v1208_v47, %v16541_v5  ;;  %v13743_v8 = vpop.f32.mrb[82].mxu0  ;;  %v2645_v32 = vld [vmem:[#allocation6 + $0x220] ss:$2 sm:$0xff]  ;;  %v1808_v51 = vsel %vm1653_vm1, %v1805_v19, %v1807_v21  ;;  %v1810_v44 = vsel %vm1653_vm1, %v1807_v21, %v1809_v54 }
 0x194   : > { %2491 = vst [vmem:[#allocation6 + $0x248] sm:$0xff] %v2365_v52  ;;  %v1220_v45 = vadd.f32 %v13743_v8, %v16541_v5  ;;  %v1211_v0 = vpop.f32.mrb[83].mxu0  ;;  %2646 = vst [vmem:[#allocation2 + $0xdd] sm:$0xff] %v2645_v32  ;;  %v1481_v11 = vmax.f32 %v1217_v1, 0.0  ;;  %v2107_v39 = vmax.f32 %v1475_v50, %v1808_v51  ;;  %v2108_v52 = vmax.f32 %v1476_v38, %v1810_v44 }
 0x195   : > { %v1479_v63 = vmax.f32 %v1209_v12, 0.0  ;;  %v1212_v22 = vadd.f32 %v1211_v0, %v16541_v5 }
 0x196   : > { %v1482_v15 = vmax.f32 %v1220_v45, 0.0  ;;  %v1817_v61 = vrot.slane %v1481_v11, 1  ;;  %v2234_v17 = vmax.f32 %v2108_v52, %v1478_v27  ;;  %v2233_v43 = vmax.f32 %v2107_v39, %v1477_v55 }
 0x197   : > { %v1813_v25 = vrot.slane %v1479_v63, 1  ;;  %v1480_v57 = vmax.f32 %v1212_v22, 0.0 }
 0x198   : > { %v1819_v60 = vrot.slane %v1482_v15, 1  ;;  %v2368_v19 = vmax.f32 %v2233_v43, %v1812_v28 }
 0x199   : > { %v13746_v47 = vpop.f32.mrb[84].mxu0  ;;  %v1814_v1 = vsel %vm1653_vm1, %v1811_v62, %v1813_v25  ;;  %v1815_v0 = vrot.slane %v1480_v57, 1 }
 0x19a   : > { %v1233_v12 = vadd.f32 %v13746_v47, %v16541_v5  ;;  %v1224_v8 = vpop.f32.mrb[85].mxu0  ;;  %v1820_v32 = vsel %vm1653_vm1, %v1817_v61, %v1819_v60  ;;  %v2369_v54 = vmax.f32 %v2234_v17, %v1814_v1  ;;  %2494 = vst [vmem:[#allocation6 + $0x260] sm:$0xff] %v2368_v19  ;;  %v2803_v47 = vld [vmem:[#allocation2 + $0xd1] sm:$0xff] }
 0x19b   : > { %v13747_v21 = vpop.f32.mrb[86].mxu0  ;;  %v2648_v50 = vld [vmem:[#allocation6 + $0x240] ss:$2 sm:$0xff]  ;;  %v1225_v45 = vadd.f32 %v1224_v8, %v16541_v5  ;;  %v1816_v62 = vsel %vm1653_vm1, %v1813_v25, %v1815_v0  ;;  %v1818_v22 = vsel %vm1653_vm1, %v1815_v0, %v1817_v61 }
 0x19c   : > { %v1485_v38 = vmax.f32 %v1233_v12, 0.0  ;;  %v1236_v27 = vadd.f32 %v13747_v21, %v16541_v5  ;;  %v1227_v55 = vpop.f32.mrb[87].mxu0  ;;  %2649 = vst [vmem:[#allocation2 + $0xe7] sm:$0xff] %v2648_v50  ;;  %2495 = vst [vmem:[#allocation6 + $0x268] sm:$0xff] %v2369_v54  ;;  %v2804_v28 = vld [vmem:[#allocation2 + $0xd9] sm:$0xff]  ;;  %v2111_v44 = vmax.f32 %v1479_v63, %v1816_v62  ;;  %v2112_v39 = vmax.f32 %v1480_v57, %v1818_v22 }
 0x19d   : > { %v1228_v51 = vadd.f32 %v1227_v55, %v16541_v5  ;;  %v1483_v52 = vmax.f32 %v1225_v45, 0.0  ;;  %v2838_v21 = vpack.c.bf16 %v2804_v28, %v2803_v47 }
 0x19e   : > { %v1486_v17 = vmax.f32 %v1236_v27, 0.0  ;;  %v2238_v1 = vmax.f32 %v2112_v39, %v1482_v15  ;;  %v1825_v12 = vrot.slane %v1485_v38, 1  ;;  %v2237_v8 = vmax.f32 %v2111_v44, %v1481_v11 }
 0x19f   : > { %v1484_v43 = vmax.f32 %v1228_v51, 0.0  ;;  %v1821_v50 = vrot.slane %v1483_v52, 1  ;;  %13829 = vmatmul.mubr.bf16.gmra.mrb[24].mxu1 %v2838_v21 }
 0x1a0   : > { %v1827_v19 = vrot.slane %v1486_v17, 1  ;;  %v2372_v58 = vmax.f32 %v2237_v8, %v1820_v32 }
 0x1a1   : > { %v1823_v24 = vrot.slane %v1484_v43, 1  ;;  %v13750_v25 = vpop.f32.mrb[88].mxu0  ;;  %v1822_v63 = vsel %vm1653_vm1, %v1819_v60, %v1821_v50 }
 0x1a2   : > { %v16892_v61 = vadd.f32 %v13750_v25, %v16541_v5  ;;  %v1240_v0 = vpop.f32.mrb[89].mxu0  ;;  %2498 = vst [vmem:[#allocation6 + $0x280] sm:$0xff] %v2372_v58  ;;  %v2373_v55 = vmax.f32 %v2238_v1, %v1822_v63  ;;  %v1828_v51 = vsel %vm1653_vm1, %v1825_v12, %v1827_v19 }
 0x1a3   : > { %v1824_v57 = vsel %vm1653_vm1, %v1821_v50, %v1823_v24  ;;  %v1826_v54 = vsel %vm1653_vm1, %v1823_v24, %v1825_v12  ;;  %v1241_v15 = vadd.f32 %v1240_v0, %v16541_v5  ;;  %v13751_v11 = vpop.f32.mrb[90].mxu0  ;;  %v16898_v32 = vld [vmem:[#allocation6 + $0x260] ss:$2 sm:$0xff]  ;;  %v2805_v28 = vld [vmem:[#allocation2 + $0xe1] sm:$0xff] }
 0x1a4   : > { %v2115_v45 = vmax.f32 %v1483_v52, %v1824_v57  ;;  %v2116_v27 = vmax.f32 %v1484_v43, %v1826_v54  ;;  %v1243_v62 = vpop.f32.mrb[91].mxu0  ;;  %v2806_v44 = vld [vmem:[#allocation2 + $0xe9] sm:$0xff]  ;;  %2652 = vst [vmem:[#allocation2 + $0xf1] sm:$0xff] %v16898_v32  ;;  %2499 = vst [vmem:[#allocation6 + $0x288] sm:$0xff] %v2373_v55  ;;  %v1489_v39 = vmax.f32 %v16892_v61, 0.0  ;;  %v1252_v58 = vadd.f32 %v13751_v11, %v16541_v5  ;;  %v16908_v0 = vld [vmem:[#allocation2 + $0xda] sm:$0xff] }
 0x1a5   : > { %v1487_v22 = vmax.f32 %v1241_v15, 0.0  ;;  %v1244_v52 = vadd.f32 %v1243_v62, %v16541_v5  ;;  %v16905_v43 = vld [vmem:[#allocation2 + $0xe2] sm:$0xff]  ;;  %v2839_v8 = vpack.c.bf16 %v2806_v44, %v2805_v28 }
 0x1a6   : > { %v2242_v60 = vmax.f32 %v2116_v27, %v1486_v17  ;;  %v2241_v24 = vmax.f32 %v2115_v45, %v1485_v38  ;;  %v1490_v21 = vmax.f32 %v1252_v58, 0.0  ;;  %v1833_v57 = vrot.slane %v1489_v39, 1 }
 0x1a7   : > { %v1829_v47 = vrot.slane %v1487_v22, 1  ;;  %v1488_v12 = vmax.f32 %v1244_v52, 0.0  ;;  %13832 = vmatprep.mubr.bf16.mxu1 %v2839_v8 }
 0x1a8   : > { %v2376_v1 = vmax.f32 %v2241_v24, %v1828_v51  ;;  %v1835_v54 = vrot.slane %v1490_v21, 1 }
 0x1a9   : > { %v1830_v50 = vsel %vm1653_vm1, %v1827_v19, %v1829_v47  ;;  %v13754_v25 = vpop.f32.mrb[92].mxu0  ;;  %v1831_v15 = vrot.slane %v1488_v12, 1 }
 0x1aa   : > { %2502 = vst [vmem:[#allocation6 + $0x2a0] sm:$0xff] %v2376_v1  ;;  %v2377_v38 = vmax.f32 %v2242_v60, %v1830_v50  ;;  %v16911_v17 = vadd.f32 %v13754_v25, %v16541_v5  ;;  %v1256_v61 = vpop.f32.mrb[93].mxu0  ;;  %v1836_v44 = vsel %vm1653_vm1, %v1833_v57, %v1835_v54 }
 0x1ab   : > { %v1257_v11 = vadd.f32 %v1256_v61, %v16541_v5  ;;  %v13755_v45 = vpop.f32.mrb[94].mxu0  ;;  %v1832_v62 = vsel %vm1653_vm1, %v1829_v47, %v1831_v15  ;;  %v1834_v51 = vsel %vm1653_vm1, %v1831_v15, %v1833_v57  ;;  %v2654_v60 = vld [vmem:[#allocation6 + $0x280] ss:$2 sm:$0xff] }
 0x1ac   : > { %2503 = vst [vmem:[#allocation6 + $0x2a8] sm:$0xff] %v2377_v38  ;;  %v1493_v19 = vmax.f32 %v16911_v17, 0.0  ;;  %v1268_v27 = vadd.f32 %v13755_v45, %v16541_v5  ;;  %v1259_v55 = vpop.f32.mrb[95].mxu0  ;;  %v2119_v24 = vmax.f32 %v1487_v22, %v1832_v62  ;;  %v2120_v58 = vmax.f32 %v1488_v12, %v1834_v51  ;;  %2655 = vst [vmem:[#allocation2 + $0xfb] sm:$0xff] %v2654_v60  ;;  %v16921_v52 = vld [vmem:[#allocation2 + $0xea] sm:$0xff]  ;;  %v16923_v1 = vld [vmem:[#allocation2 + $0xf2] sm:$0xff] }
 0x1ad   : > { %v1491_v28 = vmax.f32 %v1257_v11, 0.0  ;;  %v1260_v47 = vadd.f32 %v1259_v55, %v16541_v5 }
 0x1ae   : > { %v1494_v50 = vmax.f32 %v1268_v27, 0.0  ;;  %v2246_v25 = vmax.f32 %v2120_v58, %v1490_v21  ;;  %v1841_v38 = vrot.slane %v1493_v19, 1  ;;  %v2245_v17 = vmax.f32 %v2119_v24, %v1489_v39 }
 0x1af   : > { %v1837_v8 = vrot.slane %v1491_v28, 1  ;;  %v1492_v57 = vmax.f32 %v1260_v47, 0.0 }
 0x1b0   : > { %v1843_v61 = vrot.slane %v1494_v50, 1  ;;  %v2380_v12 = vmax.f32 %v2245_v17, %v1836_v44 }
 0x1b1   : > { %v1838_v15 = vsel %vm1653_vm1, %v1835_v54, %v1837_v8  ;;  %v13758_v11 = vpop.f32.mrb[96].mxu0  ;;  %v1839_v55 = vrot.slane %v1492_v57, 1 }
 0x1b2   : > { %v2381_v45 = vmax.f32 %v2246_v25, %v1838_v15  ;;  %v1272_v62 = vpop.f32.mrb[97].mxu0  ;;  %v1281_v51 = vadd.f32 %v13758_v11, %v16541_v5  ;;  %v1844_v21 = vsel %vm1653_vm1, %v1841_v38, %v1843_v61  ;;  %2506 = vst [vmem:[#allocation6 + $0x2c0] sm:$0xff] %v2380_v12 }
 0x1b3   : > { %v1273_v27 = vadd.f32 %v1272_v62, %v16541_v5  ;;  %v13759_v39 = vpop.f32.mrb[98].mxu0  ;;  %v2657_v60 = vld [vmem:[#allocation6 + $0x2a0] ss:$2 sm:$0xff]  ;;  %v1840_v47 = vsel %vm1653_vm1, %v1837_v8, %v1839_v55  ;;  %v1842_v15 = vsel %vm1653_vm1, %v1839_v55, %v1841_v38 }
 0x1b4   : > { %2507 = vst [vmem:[#allocation6 + $0x2c8] sm:$0xff] %v2381_v45  ;;  %v1284_v54 = vadd.f32 %v13759_v39, %v16541_v5  ;;  %v1275_v24 = vpop.f32.mrb[99].mxu0  ;;  %2658 = vst [vmem:[#allocation2 + $0x105] sm:$0xff] %v2657_v60  ;;  %v1497_v58 = vmax.f32 %v1281_v51, 0.0  ;;  %v2808_v17 = vld [vmem:[#allocation2 + $0xf9] sm:$0xff]  ;;  %v2123_v22 = vmax.f32 %v1491_v28, %v1840_v47  ;;  %v2124_v12 = vmax.f32 %v1492_v57, %v1842_v15 }
 0x1b5   : > { %v1495_v44 = vmax.f32 %v1273_v27, 0.0  ;;  %v1276_v25 = vadd.f32 %v1275_v24, %v16541_v5  ;;  %v2840_v62 = vpack.c.bf16 %v2808_v17, %v16898_v32 }
 0x1b6   : > { %v1498_v11 = vmax.f32 %v1284_v54, 0.0  ;;  %v1849_v63 = vrot.slane %v1497_v58, 1  ;;  %v2250_v39 = vmax.f32 %v2124_v12, %v1494_v50  ;;  %v2249_v60 = vmax.f32 %v2123_v22, %v1493_v19 }
 0x1b7   : > { %v1845_v45 = vrot.slane %v1495_v44, 1  ;;  %13833 = vmatmul.mubr.bf16.gmra.mrb[28].mxu1 %v2840_v62  ;;  %v1496_v51 = vmax.f32 %v1276_v25, 0.0 }
 0x1b8   : > { %v1851_v2 = vrot.slane %v1498_v11, 1  ;;  %v2384_v55 = vmax.f32 %v2249_v60, %v1844_v21  ;;  %v16947_v60 = vld [vmem:[#allocation2 + $0xfa] sm:$0xff] }
 0x1b9   : > { %v13762_v27 = vpop.f32.mrb[100].mxu0  ;;  %v1846_v24 = vsel %vm1653_vm1, %v1843_v61, %v1845_v45  ;;  %v1847_v54 = vrot.slane %v1496_v51, 1 }
 0x1ba   : > { %v1297_v48 = vadd.f32 %v13762_v27, %v16541_v5  ;;  %v1288_v8 = vpop.f32.mrb[101].mxu0  ;;  %v1852_v38 = vsel %vm1653_vm1, %v1849_v63, %v1851_v2  ;;  %v2385_v32 = vmax.f32 %v2250_v39, %v1846_v24  ;;  %2510 = vst [vmem:[#allocation6 + $0x2e0] sm:$0xff] %v2384_v55 }
 0x1bb   : > { %v13763_v28 = vpop.f32.mrb[102].mxu0  ;;  %v2660_v57 = vld [vmem:[#allocation6 + $0x2c0] ss:$2 sm:$0xff]  ;;  %v1289_v47 = vadd.f32 %v1288_v8, %v16541_v5  ;;  %v1848_v61 = vsel %vm1653_vm1, %v1845_v45, %v1847_v54  ;;  %v1850_v22 = vsel %vm1653_vm1, %v1847_v54, %v1849_v63  ;;  %v16945_v21 = vld [vmem:[#allocation2 + $0x102] sm:$0xff] }
 0x1bc   : > { %v1501_v17 = vmax.f32 %v1297_v48, 0.0  ;;  %v1300_v50 = vadd.f32 %v13763_v28, %v16541_v5  ;;  %v1291_v19 = vpop.f32.mrb[103].mxu0  ;;  %2661 = vst [vmem:[#allocation2 + $0x10f] sm:$0xff] %v2660_v57  ;;  %2511 = vst [vmem:[#allocation6 + $0x2e8] sm:$0xff] %v2385_v32  ;;  %v2127_v15 = vmax.f32 %v1495_v44, %v1848_v61  ;;  %v2128_v62 = vmax.f32 %v1496_v51, %v1850_v22  ;;  %v2813_v51 = vld [vmem:[#allocation2 + $0x121] sm:$0xff] }
 0x1bd   : > { %v1292_v25 = vadd.f32 %v1291_v19, %v16541_v5  ;;  %v1499_v12 = vmax.f32 %v1289_v47, 0.0  ;;  %v2814_v47 = vld [vmem:[#allocation2 + $0x129] sm:$0xff] }
 0x1be   : > { %v1502_v48 = vmax.f32 %v1300_v50, 0.0  ;;  %v2254_v27 = vmax.f32 %v2128_v62, %v1498_v11  ;;  %v1857_v24 = vrot.slane %v1501_v17, 1  ;;  %v2253_v8 = vmax.f32 %v2127_v15, %v1497_v58 }
 0x1bf   : > { %v1500_v39 = vmax.f32 %v1292_v25, 0.0  ;;  %v1853_v55 = vrot.slane %v1499_v12, 1  ;;  %v2843_v37 = vpack.c.bf16 %v2814_v47, %v2813_v51 }
 0x1c0   : > { %v1859_v63 = vrot.slane %v1502_v48, 1  ;;  %v2388_v28 = vmax.f32 %v2253_v8, %v1852_v38 }
 0x1c1   : > { %v1855_v54 = vrot.slane %v1500_v39, 1  ;;  %v13766_v32 = vpop.f32.mrb[104].mxu0  ;;  %v1854_v50 = vsel %vm1653_vm1, %v1851_v2, %v1853_v55 }
 0x1c2   : > { %v16952_v57 = vadd.f32 %v13766_v32, %v16541_v5  ;;  %v1304_v44 = vpop.f32.mrb[105].mxu0  ;;  %2514 = vst [vmem:[#allocation6 + $0x300] sm:$0xff] %v2388_v28  ;;  %v2389_v15 = vmax.f32 %v2254_v27, %v1854_v50  ;;  %v1860_v32 = vsel %vm1653_vm1, %v1857_v24, %v1859_v63 }
 0x1c3   : > { %v1856_v11 = vsel %vm1653_vm1, %v1853_v55, %v1855_v54  ;;  %v1858_v58 = vsel %vm1653_vm1, %v1855_v54, %v1857_v24  ;;  %v1305_v19 = vadd.f32 %v1304_v44, %v16541_v5  ;;  %v13767_v61 = vpop.f32.mrb[106].mxu0  ;;  %v2663_v62 = vld [vmem:[#allocation6 + $0x2e0] ss:$2 sm:$0xff] }
 0x1c4   : > { %v2131_v22 = vmax.f32 %v1499_v12, %v1856_v11  ;;  %v2132_v25 = vmax.f32 %v1500_v39, %v1858_v58  ;;  %v1307_v38 = vpop.f32.mrb[107].mxu0  ;;  %v2810_v45 = vld [vmem:[#allocation2 + $0x109] sm:$0xff]  ;;  %2664 = vst [vmem:[#allocation2 + $0x119] sm:$0xff] %v2663_v62  ;;  %2515 = vst [vmem:[#allocation6 + $0x308] sm:$0xff] %v2389_v15  ;;  %v2811_v40 = vld [vmem:[#allocation2 + $0x111] sm:$0xff]  ;;  %v1505_v54 = vmax.f32 %v16952_v57, 0.0  ;;  %v1316_v28 = vadd.f32 %v13767_v61, %v16541_v5 }
 0x1c5   : > { %v1503_v8 = vmax.f32 %v1305_v19, 0.0  ;;  %v1308_v12 = vadd.f32 %v1307_v38, %v16541_v5  ;;  %v2809_v39 = vld [vmem:[#allocation2 + $0x101] sm:$0xff]  ;;  %v2842_v51 = vpack.c.bf16 %v2663_v62, %v2811_v40 }
 0x1c6   : > { %v2258_v2 = vmax.f32 %v2132_v25, %v1502_v48  ;;  %v2257_v55 = vmax.f32 %v2131_v22, %v1501_v17  ;;  %v2841_v50 = vpack.c.bf16 %v2810_v45, %v2809_v39  ;;  %v1506_v11 = vmax.f32 %v1316_v28, 0.0 }
 0x1c7   : > { %v1861_v44 = vrot.slane %v1503_v8, 1  ;;  %v1504_v58 = vmax.f32 %v1308_v12, 0.0  ;;  %v1865_v47 = vrot.slane %v1505_v54, 1 }
 0x1c8   : > { %v2392_v27 = vmax.f32 %v2257_v55, %v1860_v32  ;;  %13836 = vmatprep.mubr.bf16.mxu1 %v2841_v50  ;;  %v1867_v61 = vrot.slane %v1506_v11, 1 }
 0x1c9   : > { %v1862_v24 = vsel %vm1653_vm1, %v1859_v63, %v1861_v44  ;;  %v13770_v19 = vpop.f32.mrb[108].mxu0  ;;  %v1863_v22 = vrot.slane %v1504_v58, 1  ;;  %13837 = vmatmul.mubr.bf16.gmra.mrb[32].mxu1 %v2842_v51 }
 0x1ca   : > { %2518 = vst [vmem:[#allocation6 + $0x320] sm:$0xff] %v2392_v27  ;;  %v2393_v48 = vmax.f32 %v2258_v2, %v1862_v24  ;;  %v16964_v17 = vadd.f32 %v13770_v19, %v16541_v5  ;;  %v1320_v57 = vpop.f32.mrb[109].mxu0  ;;  %13840 = vmatprep.mubr.bf16.mxu1 %v2843_v37  ;;  %v1868_v2 = vsel %vm1653_vm1, %v1865_v47, %v1867_v61 }
 0x1cb   : > { %v1321_v25 = vadd.f32 %v1320_v57, %v16541_v5  ;;  %v13771_v15 = vpop.f32.mrb[110].mxu0  ;;  %v1864_v38 = vsel %vm1653_vm1, %v1861_v44, %v1863_v22  ;;  %v1866_v62 = vsel %vm1653_vm1, %v1863_v22, %v1865_v47  ;;  %v2666_v55 = vld [vmem:[#allocation6 + $0x300] ss:$2 sm:$0xff] }
 0x1cc   : > { %2519 = vst [vmem:[#allocation6 + $0x328] sm:$0xff] %v2393_v48  ;;  %v1509_v45 = vmax.f32 %v16964_v17, 0.0  ;;  %v1332_v63 = vadd.f32 %v13771_v15, %v16541_v5  ;;  %v1323_v40 = vpop.f32.mrb[111].mxu0  ;;  %v2135_v28 = vmax.f32 %v1503_v8, %v1864_v38  ;;  %v2136_v12 = vmax.f32 %v1504_v58, %v1866_v62  ;;  %2667 = vst [vmem:[#allocation2 + $0x137] sm:$0xff] %v2666_v55  ;;  %v16974_v47 = vld [vmem:[#allocation2 + $0x112] sm:$0xff]  ;;  %v16983_v38 = vld [vmem:[#allocation2 + $0x10a] sm:$0xff] }
 0x1cd   : > { %v1507_v32 = vmax.f32 %v1321_v25, 0.0  ;;  %v1324_v19 = vadd.f32 %v1323_v40, %v16541_v5 }
 0x1ce   : > { %v1510_v27 = vmax.f32 %v1332_v63, 0.0  ;;  %v2262_v50 = vmax.f32 %v2136_v12, %v1506_v11  ;;  %v2261_v24 = vmax.f32 %v2135_v28, %v1505_v54  ;;  %v1873_v51 = vrot.slane %v1509_v45, 1 }
 0x1cf   : > { %v1869_v39 = vrot.slane %v1507_v32, 1  ;;  %v1508_v57 = vmax.f32 %v1324_v19, 0.0 }
 0x1d0   : > { %v1875_v48 = vrot.slane %v1510_v27, 1  ;;  %v2396_v17 = vmax.f32 %v2261_v24, %v1868_v2 }
 0x1d1   : > { %v1870_v37 = vsel %vm1653_vm1, %v1867_v61, %v1869_v39  ;;  %v13774_v44 = vpop.f32.mrb[112].mxu0  ;;  %v1871_v63 = vrot.slane %v1508_v57, 1 }
 0x1d2   : > { %v2397_v22 = vmax.f32 %v2262_v50, %v1870_v37  ;;  %v1336_v25 = vpop.f32.mrb[113].mxu0  ;;  %v1345_v8 = vadd.f32 %v13774_v44, %v16541_v5  ;;  %v1876_v11 = vsel %vm1653_vm1, %v1873_v51, %v1875_v48  ;;  %2522 = vst [vmem:[#allocation6 + $0x340] sm:$0xff] %v2396_v17 }
 0x1d3   : > { %v1337_v58 = vadd.f32 %v1336_v25, %v16541_v5  ;;  %v13775_v54 = vpop.f32.mrb[114].mxu0  ;;  %v16979_v15 = vld [vmem:[#allocation6 + $0x320] ss:$2 sm:$0xff]  ;;  %v1872_v24 = vsel %vm1653_vm1, %v1869_v39, %v1871_v63  ;;  %v1874_v19 = vsel %vm1653_vm1, %v1871_v63, %v1873_v51 }
 0x1d4   : > { %2523 = vst [vmem:[#allocation6 + $0x348] sm:$0xff] %v2397_v22  ;;  %v1348_v61 = vadd.f32 %v13775_v54, %v16541_v5  ;;  %v1339_v40 = vpop.f32.mrb[115].mxu0  ;;  %2670 = vst [vmem:[#allocation2 + $0x141] sm:$0xff] %v16979_v15  ;;  %v1513_v62 = vmax.f32 %v1345_v8, 0.0  ;;  %v2815_v28 = vld [vmem:[#allocation2 + $0x131] sm:$0xff]  ;;  %v2816_v12 = vld [vmem:[#allocation2 + $0x139] sm:$0xff]  ;;  %v2139_v17 = vmax.f32 %v1507_v32, %v1872_v24  ;;  %v2140_v22 = vmax.f32 %v1508_v57, %v1874_v19 }
 0x1d5   : > { %v1511_v2 = vmax.f32 %v1337_v58, 0.0  ;;  %v1340_v55 = vadd.f32 %v1339_v40, %v16541_v5  ;;  %v2844_v44 = vpack.c.bf16 %v2816_v12, %v2815_v28 }
 0x1d6   : > { %v1514_v37 = vmax.f32 %v1348_v61, 0.0  ;;  %v1881_v25 = vrot.slane %v1513_v62, 1  ;;  %v2266_v8 = vmax.f32 %v2140_v22, %v1510_v27  ;;  %v2265_v58 = vmax.f32 %v2139_v17, %v1509_v45 }
 0x1d7   : > { %v1877_v54 = vrot.slane %v1511_v2, 1  ;;  %13841 = vmatmul.mubr.bf16.gmra.mrb[36].mxu1 %v2844_v44  ;;  %v1512_v40 = vmax.f32 %v1340_v55, 0.0 }
 0x1d8   : > { %v1883_v26 = vrot.slane %v1514_v37, 1  ;;  %v2400_v51 = vmax.f32 %v2265_v58, %v1876_v11 }
 0x1d9   : > { %v13778_v56 = vpop.f32.mrb[116].mxu0  ;;  %v1878_v49 = vsel %vm1653_vm1, %v1875_v48, %v1877_v54  ;;  %v1879_v63 = vrot.slane %v1512_v40, 1 }
 0x1da   : > { %v1361_v50 = vadd.f32 %v13778_v56, %v16541_v5  ;;  %v1352_v16 = vpop.f32.mrb[117].mxu0  ;;  %v1884_v39 = vsel %vm1653_vm1, %v1881_v25, %v1883_v26  ;;  %v2401_v61 = vmax.f32 %v2266_v8, %v1878_v49  ;;  %2526 = vst [vmem:[#allocation6 + $0x360] sm:$0xff] %v2400_v51 }
 0x1db   : > { %v13779_v32 = vpop.f32.mrb[118].mxu0  ;;  %v2672_v57 = vld [vmem:[#allocation6 + $0x340] ss:$2 sm:$0xff]  ;;  %v1353_v12 = vadd.f32 %v1352_v16, %v16541_v5  ;;  %v1880_v48 = vsel %vm1653_vm1, %v1877_v54, %v1879_v63  ;;  %v1882_v56 = vsel %vm1653_vm1, %v1879_v63, %v1881_v25  ;;  %v17000_v16 = vld [vmem:[#allocation2 + $0x142] sm:$0xff] }
 0x1dc   : > { %v1517_v28 = vmax.f32 %v1361_v50, 0.0  ;;  %v1364_v27 = vadd.f32 %v13779_v32, %v16541_v5  ;;  %v1355_v45 = vpop.f32.mrb[119].mxu0  ;;  %2673 = vst [vmem:[#allocation2 + $0x14b] sm:$0xff] %v2672_v57  ;;  %2527 = vst [vmem:[#allocation6 + $0x368] sm:$0xff] %v2401_v61  ;;  %v2143_v11 = vmax.f32 %v1511_v2, %v1880_v48  ;;  %v2144_v24 = vmax.f32 %v1512_v40, %v1882_v56  ;;  %v16998_v50 = vld [vmem:[#allocation2 + $0x13a] sm:$0xff] }
 0x1dd   : > { %v1356_v55 = vadd.f32 %v1355_v45, %v16541_v5  ;;  %v1515_v49 = vmax.f32 %v1353_v12, 0.0 }
 0x1de   : > { %v1518_v19 = vmax.f32 %v1364_v27, 0.0  ;;  %v2270_v17 = vmax.f32 %v2144_v24, %v1514_v37  ;;  %v1889_v22 = vrot.slane %v1517_v28, 1  ;;  %v2269_v8 = vmax.f32 %v2143_v11, %v1513_v62 }
 0x1df   : > { %v1516_v44 = vmax.f32 %v1356_v55, 0.0  ;;  %v1885_v58 = vrot.slane %v1515_v49, 1 }
 0x1e0   : > { %v1891_v51 = vrot.slane %v1518_v19, 1  ;;  %v2404_v25 = vmax.f32 %v2269_v8, %v1884_v39 }
 0x1e1   : > { %v1887_v54 = vrot.slane %v1516_v44, 1  ;;  %v13782_v32 = vpop.f32.mrb[120].mxu0  ;;  %v1886_v40 = vsel %vm1653_vm1, %v1883_v26, %v1885_v58 }
 0x1e2   : > { %v1377_v63 = vadd.f32 %v13782_v32, %v16541_v5  ;;  %v1368_v61 = vpop.f32.mrb[121].mxu0  ;;  %2530 = vst [vmem:[#allocation6 + $0x380] sm:$0xff] %v2404_v25  ;;  %v2405_v48 = vmax.f32 %v2270_v17, %v1886_v40  ;;  %v1892_v11 = vsel %vm1653_vm1, %v1889_v22, %v1891_v51 }
 0x1e3   : > { %v1888_v57 = vsel %vm1653_vm1, %v1885_v58, %v1887_v54  ;;  %v1890_v12 = vsel %vm1653_vm1, %v1887_v54, %v1889_v22  ;;  %v1369_v37 = vadd.f32 %v1368_v61, %v16541_v5  ;;  %v13783_v62 = vpop.f32.mrb[122].mxu0  ;;  %v2675_v56 = vld [vmem:[#allocation6 + $0x360] ss:$2 sm:$0xff] }
 0x1e4   : > { %v2147_v27 = vmax.f32 %v1515_v49, %v1888_v57  ;;  %v2148_v45 = vmax.f32 %v1516_v44, %v1890_v12  ;;  %v1371_v39 = vpop.f32.mrb[123].mxu0  ;;  %v2818_v24 = vld [vmem:[#allocation2 + $0x149] sm:$0xff]  ;;  %2676 = vst [vmem:[#allocation2 + $0x155] sm:$0xff] %v2675_v56  ;;  %2531 = vst [vmem:[#allocation6 + $0x388] sm:$0xff] %v2405_v48  ;;  %v1521_v58 = vmax.f32 %v1377_v63, 0.0  ;;  %v1380_v54 = vadd.f32 %v13783_v62, %v16541_v5 }
 0x1e5   : > { %v1519_v55 = vmax.f32 %v1369_v37, 0.0  ;;  %v1372_v61 = vadd.f32 %v1371_v39, %v16541_v5  ;;  %v2845_v49 = vpack.c.bf16 %v2818_v24, %v16979_v15 }
 0x1e6   : > { %v2274_v8 = vmax.f32 %v2148_v45, %v1518_v19  ;;  %v2273_v26 = vmax.f32 %v2147_v27, %v1517_v28  ;;  %v1522_v44 = vmax.f32 %v1380_v54, 0.0  ;;  %v1897_v63 = vrot.slane %v1521_v58, 1 }
 0x1e7   : > { %v1893_v32 = vrot.slane %v1519_v55, 1  ;;  %v1520_v17 = vmax.f32 %v1372_v61, 0.0  ;;  %13844 = vmatprep.mubr.bf16.mxu1 %v2845_v49  ;;  %v17025_v49 = vld [vmem:[#allocation2 + $0x14a] sm:$0xff] }
 0x1e8   : > { %v2408_v25 = vmax.f32 %v2273_v26, %v1892_v11  ;;  %v1899_v12 = vrot.slane %v1522_v44, 1 }
 0x1e9   : > { %v1894_v40 = vsel %vm1653_vm1, %v1891_v51, %v1893_v32  ;;  %v13786_v57 = vpop.f32.mrb[124].mxu0  ;;  %v1895_v37 = vrot.slane %v1520_v17, 1 }
 0x1ea   : > { %2534 = vst [vmem:[#allocation6 + $0x3a0] sm:$0xff] %v2408_v25  ;;  %v2409_v22 = vmax.f32 %v2274_v8, %v1894_v40  ;;  %v17015_v19 = vadd.f32 %v13786_v57, %v16541_v5  ;;  %v1384_v28 = vpop.f32.mrb[125].mxu0  ;;  %v1900_v11 = vsel %vm1653_vm1, %v1897_v63, %v1899_v12 }
 0x1eb   : > { %v1385_v62 = vadd.f32 %v1384_v28, %v16541_v5  ;;  %v13787_v27 = vpop.f32.mrb[126].mxu0  ;;  %v1896_v48 = vsel %vm1653_vm1, %v1893_v32, %v1895_v37  ;;  %v1898_v39 = vsel %vm1653_vm1, %v1895_v37, %v1897_v63  ;;  %v2678_v24 = vld [vmem:[#allocation6 + $0x380] ss:$2 sm:$0xff]  ;;  %v17059_v32 = vld [vmem:[#allocation2 + $0xe4] sm:$0xff] }
 0x1ec   : > { %2535 = vst [vmem:[#allocation6 + $0x3a8] sm:$0xff] %v2409_v22  ;;  %v1525_v15 = vmax.f32 %v17015_v19, 0.0  ;;  %v1396_v45 = vadd.f32 %v13787_v27, %v16541_v5  ;;  %v1387_v51 = vpop.f32.mrb[127].mxu0  ;;  %v17023_v8 = vld [vmem:[#allocation2 + $0x152] sm:$0xff]  ;;  %v2151_v26 = vmax.f32 %v1519_v55, %v1896_v48  ;;  %v2152_v54 = vmax.f32 %v1520_v17, %v1898_v39  ;;  %2679 = vst [vmem:[#allocation2 + $0x15f] sm:$0xff] %v2678_v24  ;;  %v17037_v24 = vld [vmem:[#allocation2 + $0xc4] sm:$0xff] }
 0x1ed   : > { %v1523_v56 = vmax.f32 %v1385_v62, 0.0  ;;  %v1388_v22 = vadd.f32 %v1387_v51, %v16541_v5  ;;  %v17034_v5 = vld [vmem:[#allocation2 + $0xdc] sm:$0xff] }
 0x1ee   : > { %v1526_v25 = vmax.f32 %v1396_v45, 0.0  ;;  %v2278_v40 = vmax.f32 %v2152_v54, %v1522_v44  ;;  %v2277_v57 = vmax.f32 %v2151_v26, %v1521_v58  ;;  %v2285_v19 = vrot.slane %v1525_v15, 1  ;;  %v17032_v58 = vld [vmem:[#allocation2 + $0xcc] sm:$0xff]  ;;  %v17039_v26 = vld [vmem:[#allocation2 + $0xd4] sm:$0xff] }
 0x1ef   : > { %v1901_v61 = vrot.slane %v1523_v56, 1  ;;  %v1524_v62 = vmax.f32 %v1388_v22, 0.0  ;;  %v2819_v44 = vld [vmem:[#allocation2 + $0x151] sm:$0xff] }
 0x1f0   : > { %v2287_v28 = vrot.slane %v1526_v25, 1  ;;  %v2412_v37 = vmax.f32 %v2277_v57, %v1900_v11  ;;  %v17041_v54 = vld [vmem:[#allocation2 + $0xec] sm:$0xff]  ;;  %v17045_v57 = vld [vmem:[#allocation2 + $0xfc] sm:$0xff] }
 0x1f1   : > { %v1902_v63 = vsel %vm1653_vm1, %v1899_v12, %v1901_v61  ;;  %v1903_v45 = vrot.slane %v1524_v62, 1 }
 0x1f2   : > { %v2413_v55 = vmax.f32 %v2278_v40, %v1902_v63  ;;  %v2288_v17 = vsel %vm1653_vm1, %v2285_v19, %v2287_v28  ;;  %2538 = vst [vmem:[#allocation6 + $0x3c0] sm:$0xff] %v2412_v37  ;;  %v17043_v40 = vld [vmem:[#allocation2 + $0xf4] sm:$0xff]  ;;  %v17047_v63 = vld [vmem:[#allocation2 + $0x10c] sm:$0xff] }
 0x1f3   : > { %v2681_v27 = vld [vmem:[#allocation6 + $0x3a0] ss:$2 sm:$0xff]  ;;  %v2821_v48 = vld [vmem:[#allocation2 + $0x161] sm:$0xff]  ;;  %v1904_v39 = vsel %vm1653_vm1, %v1901_v61, %v1903_v45  ;;  %v2156_v12 = vmax.f32 %v1524_v62, %v1903_v45  ;;  %19541 = vst [vmem:[#allocation25_spill] sm:$0xff] %v17047_v63 }
 0x1f4   : > { %2539 = vst [vmem:[#allocation6 + $0x3c8] sm:$0xff] %v2413_v55  ;;  %2682 = vst [vmem:[#allocation2 + $0x169] sm:$0xff] %v2681_v27  ;;  %v2820_v51 = vld [vmem:[#allocation2 + $0x159] sm:$0xff]  ;;  %v2155_v22 = vmax.f32 %v1523_v56, %v1904_v39  ;;  %v2847_v19 = vpack.c.bf16 %v2681_v27, %v2821_v48  ;;  %v17055_v45 = vld [vmem:[#allocation2 + $0x144] sm:$0xff] }
 0x1f5   : > { %v2846_v11 = vpack.c.bf16 %v2820_v51, %v2819_v44  ;;  %v17049_v37 = vld [vmem:[#allocation2 + $0x114] sm:$0xff]  ;;  %v17051_v55 = vld [vmem:[#allocation2 + $0x11c] sm:$0xff]  ;;  %v2282_v61 = vmax.f32 %v2156_v12, %v1526_v25  ;;  %19545 = vst [vmem:[#allocation29_spill] sm:$0xff] %v17055_v45  ;;  %v17057_v44 = vld [vmem:[#allocation2 + $0x14c] sm:$0xff] }
 0x1f6   : > { %19542 = vst [vmem:[#allocation26_spill] sm:$0xff] %v17049_v37  ;;  %19543 = vst [vmem:[#allocation27_spill] sm:$0xff] %v17051_v55  ;;  %v17053_v62 = vld [vmem:[#allocation2 + $0x13c] sm:$0xff]  ;;  %v2281_v51 = vmax.f32 %v2155_v22, %v1525_v15  ;;  %v17061_v56 = vld [vmem:[#allocation2 + $0x104] sm:$0xff] }
 0x1f7   : > { %13845 = vmatmul.mubr.bf16.gmra.mrb[40].mxu1 %v2846_v11  ;;  %19544 = vst [vmem:[#allocation28_spill] sm:$0xff] %v17053_v62  ;;  %19546 = vst [vmem:[#allocation30_spill] sm:$0xff] %v17057_v44  ;;  %v17063_v27 = vld [vmem:[#allocation2 + $0x15c] sm:$0xff]  ;;  %v2417_v39 = vmax.f32 %v2282_v61, %v2287_v28  ;;  %v17069_v12 = vld [vmem:[#allocation2 + $0x134] sm:$0xff] }
 0x1f8   : > { %13848 = vmatprep.mubr.bf16.mxu1 %v2847_v19  ;;  %19547 = vst [vmem:[#allocation31_spill] sm:$0xff] %v17061_v56  ;;  %19548 = vst [vmem:[#allocation32_spill] sm:$0xff] %v17063_v27  ;;  %v17071_v11 = vld [vmem:[#allocation2 + $0x154] sm:$0xff]  ;;  %v2416_v2 = vmax.f32 %v2281_v51, %v2288_v17  ;;  %v2690_v51 = vld [vmem:[#allocation2 + $0x8] sm:$0xff] }
 0x1f9   : > { %19549 = vst [vmem:[#allocation33_spill] sm:$0xff] %v17069_v12  ;;  %19550 = vst [vmem:[#allocation34_spill] sm:$0xff] %v17071_v11  ;;  %v17079_v48 = vld [vmem:[#allocation2 + $0x15a] sm:$0xff]  ;;  %v2691_v27 = vld [vmem:[#allocation2 + $0x10] sm:$0xff] }
 0x1fa   : > { %2543 = vst [vmem:[#allocation6 + $0x3e8] sm:$0x7f] %v2417_v39  ;;  %2542 = vst [vmem:[#allocation6 + $0x3e0] sm:$0xff] %v2416_v2  ;;  %v17097_v61 = vld [vmem:[#allocation2] sm:$0xff]  ;;  %v2699_v2 = vld [vmem:[#allocation2 + $0x50] sm:$0xff] }
 0x1fb   : > { %v2684_v7 = vld [vmem:[#allocation6 + $0x3c0] ss:$2 sm:$0xff]  ;;  %v17081_v9 = vld [vmem:[#allocation2 + $0x162] sm:$0xff]  ;;  %v2737_v39 = vpack.c.bf16 %v2690_v51, %v17097_v61 }
 0x1fc   : > { %2685 = vst [vmem:[#allocation2 + $0x173] sm:$0xff] %v2684_v7  ;;  %v17093_v28 = vld [vmem:[#allocation2 + $0x16a] sm:$0xff]  ;;  %v2693_v44 = vld [vmem:[#allocation2 + $0x20] sm:$0xff]  ;;  %v2724_v63 = vld [vmem:[#allocation2 + $0x118] sm:$0xff] }
 0x1fd   : > { %v17102_v19 = vld [vmem:[#allocation2 + $0x164] sm:$0xff]  ;;  %v2715_v12 = vld [vmem:[#allocation2 + $0xd0] sm:$0xff] }
 0x1fe   : > { %19551 = vst [vmem:[#allocation35_spill] sm:$0xff] %v17102_v19  ;;  %v15841_v51 = vld [vmem:[%s19477_s2 + $0x88] sm:$0xff]  }
 0x1ff   : > { %v2718_v19 = vld [vmem:[#allocation2 + $0xe8] sm:$0xff] }
 0x201   : > { %v2687_v15 = vld [vmem:[#allocation6 + $0x3e0] ss:$2 sm:$0xff] }
 0x202   : > { %2688 = vst [vmem:[#allocation2 + $0x17d] sm:$0xff] %v2687_v15  ;;  %v15842_v15 = vld [vmem:[%s19477_s2 + $0x90] sm:$0xff]  }
 0x203   : > { %v2823_v22 = vld [vmem:[#allocation2 + $0x171] sm:$0xff]  ;;  %v2824_v25 = vld [vmem:[#allocation2 + $0x179] sm:$0x3] }
 0x204   : > { %v2848_v4 = vpack.c.bf16 %v2824_v25, %v2823_v22  ;;  %v17095_v55 = vld [vmem:[#allocation2 + $0x172] sm:$0xff]  ;;  %v2694_v22 = vld [vmem:[#allocation2 + $0x28] sm:$0xff] }
 0x205   : > { %v17104_v17 = vld [vmem:[#allocation2 + $0x16c] sm:$0xff]  ;;  %v2692_v25 = vld [vmem:[#allocation2 + $0x18] sm:$0xff]  ;;  %v2739_v7 = vpack.c.bf16 %v2694_v22, %v2693_v44 }
 0x206   : > { %19552 = vst [vmem:[#allocation36_spill] sm:$0xff] %v17104_v17  ;;  %13849 = vmatmul.mubr.bf16.gmra.mrb[44].mxu1 %v2848_v4  ;;  %v2738_v11 = vpack.c.bf16 %v2692_v25, %v2691_v27  ;;  %v17111_v45 = vld [vmem:[#allocation2 + $0x174] sm:$0xff]  ;;  %v16113_v4 = vld [vmem:[%s19477_s2 + $0x80] sm:$0xff]  }
 0x207   : > { %13868 = vmatprep.mubr.bf16.mxu1 %v2737_v39  ;;  %19553 = vst [vmem:[#allocation37_spill] sm:$0xff] %v17111_v45  ;;  %v2696_v44 = vld [vmem:[#allocation2 + $0x38] sm:$0xff]  ;;  %v2698_v39 = vld [vmem:[#allocation2 + $0x48] sm:$0xff]  ;;  %v2695_v25 = vld [vmem:[#allocation2 + $0x30] sm:$0xff] }
 0x208   : > { %v2740_v22 = vpack.c.bf16 %v2696_v44, %v2695_v25  ;;  %v15844_v27 = vld [vmem:[%s19477_s2 + $0xa0] sm:$0xff]   ;;  %v2702_v45 = vld [vmem:[#allocation2 + $0x68] sm:$0xff] }
 0x209   : > { %v17113_v62 = vld [vmem:[#allocation2 + $0x17c] sm:$0xff]  ;;  %v15845_v44 = vld [vmem:[%s19477_s2 + $0xa8] sm:$0xff]  }
 0x20a   : > { %19554 = vst [vmem:[#allocation38_spill] sm:$0xff] %v17113_v62  ;;  %v2700_v62 = vld [vmem:[#allocation2 + $0x58] sm:$0xff]  ;;  %v2706_v25 = vld [vmem:[#allocation2 + $0x88] sm:$0xff]  ;;  %v2717_v17 = vld [vmem:[#allocation2 + $0xe0] sm:$0xff] }
 0x20e   : > { %13869 = vmatmul.mubr.bf16.vlgmr.msra.gmra.mrb[0].mxu1 %v2738_v11  ;;  %v2697_v11 = vld [vmem:[#allocation2 + $0x40] sm:$0xff] }
 0x20f   : > { %13917 = vmatpush3.bf16.msra.mxu1 %v16113_v4  ;;  %13872 = vmatprep.mubr.bf16.mxu1 %v2739_v7  ;;  %v15843_v4 = vld [vmem:[%s19477_s2 + $0x98] sm:$0xff]   ;;  %v2741_v7 = vpack.c.bf16 %v2698_v39, %v2697_v11  ;;  %v2743_v11 = vpack.c.bf16 %v2702_v45, %v17097_v61 }
 0x210   : > { %13918 = vmatprep.subr.bf16.mxu1 %v15841_v51  ;;  %v2704_v39 = vld [vmem:[#allocation2 + $0x78] sm:$0xff] }
 0x213   : > { %13919 = vmatpush3.bf16.msra.mxu1 %v15841_v51  ;;  %v2742_v51 = vpack.c.bf16 %v2700_v62, %v2699_v2  ;;  %v2705_v2 = vld [vmem:[#allocation2 + $0x80] sm:$0xff] }
 0x214   : > { %13920 = vmatprep.subr.bf16.mxu1 %v15842_v15  ;;  %v2745_v45 = vpack.c.bf16 %v2706_v25, %v2705_v2  ;;  %v2711_v25 = vld [vmem:[#allocation2 + $0xb0] sm:$0xff] }
 0x216   : > { %13873 = vmatmul.mubr.bf16.gmra.mrb[4].mxu1 %v2740_v22  ;;  %v2703_v22 = vld [vmem:[#allocation2 + $0x70] sm:$0xff] }
 0x217   : > { %13876 = vmatprep.mubr.bf16.mxu1 %v2741_v7  ;;  %13921 = vmatpush3.bf16.msra.mxu1 %v15842_v15  ;;  %v15846_v15 = vld [vmem:[%s19477_s2 + $0xb0] sm:$0xff]   ;;  %v2744_v62 = vpack.c.bf16 %v2704_v39, %v2703_v22  ;;  %v2709_v39 = vld [vmem:[#allocation2 + $0xa0] sm:$0xff] }
 0x218   : > { %13922 = vmatprep.subr.bf16.mxu1 %v15843_v4  ;;  %v2707_v7 = vld [vmem:[#allocation2 + $0x90] sm:$0xff] }
 0x21b   : > { %13923 = vmatpush3.bf16.msra.mxu1 %v15843_v4  ;;  %v15847_v4 = vld [vmem:[%s19477_s2 + $0xb8] sm:$0xff]  }
 0x21c   : > { %13924 = vmatprep.subr.bf16.mxu1 %v15844_v27 }
 0x21e   : > { %13877 = vmatmul.mubr.bf16.gmra.mrb[8].mxu1 %v2742_v51  ;;  %v2708_v51 = vld [vmem:[#allocation2 + $0x98] sm:$0xff] }
 0x21f   : > { %13880 = vmatprep.mubr.bf16.mxu1 %v2743_v11  ;;  %13925 = vmatpush3.bf16.msra.mxu1 %v15844_v27  ;;  %v17142_v27 = vld [vmem:[%s19477_s2 + $0xc0] sm:$0xff]   ;;  %v2746_v11 = vpack.c.bf16 %v2708_v51, %v2707_v7  ;;  %v2751_v7 = vpack.c.bf16 %v2718_v19, %v2717_v17  ;;  %v2720_v51 = vld [vmem:[#allocation2 + $0xf8] sm:$0xff]  ;;  %v2730_v17 = vld [vmem:[#allocation2 + $0x148] sm:$0xff] }
 0x220   : > { %13926 = vmatprep.subr.bf16.mxu1 %v15845_v44  ;;  %v2728_v19 = vld [vmem:[#allocation2 + $0x138] sm:$0xff] }
 0x223   : > { %13927 = vmatpush3.bf16.msra.mxu1 %v15845_v44  ;;  %v2710_v44 = vld [vmem:[#allocation2 + $0xa8] sm:$0xff] }
 0x224   : > { %13928 = vmatprep.subr.bf16.mxu1 %v15846_v15  ;;  %v2747_v22 = vpack.c.bf16 %v2710_v44, %v2709_v39  ;;  %v2722_v44 = vld [vmem:[#allocation2 + $0x108] sm:$0xff] }
 0x226   : > { %13881 = vmatmul.mubr.bf16.gmra.mrb[12].mxu1 %v2744_v62  ;;  %v2712_v62 = vld [vmem:[#allocation2 + $0xb8] sm:$0xff] }
 0x227   : > { %13884 = vmatprep.mubr.bf16.mxu1 %v2745_v45  ;;  %13929 = vmatpush3.bf16.msra.mxu1 %v15846_v15  ;;  %v2749_v15 = vpack.c.bf16 %v17097_v61, %v17097_v61  ;;  %v2748_v2 = vpack.c.bf16 %v2712_v62, %v2711_v25  ;;  %v2716_v45 = vld [vmem:[#allocation2 + $0xd8] sm:$0xff]  ;;  %v2725_v25 = vld [vmem:[#allocation2 + $0x120] sm:$0xff]  ;;  %v2723_v62 = vld [vmem:[#allocation2 + $0x110] sm:$0xff] }
 0x228   : > { %13930 = vmatprep.subr.bf16.mxu1 %v15847_v4 }
 0x22b   : > { %13931 = vmatpush3.bf16.msra.mxu1 %v15847_v4  ;;  %v2750_v4 = vpack.c.bf16 %v2716_v45, %v2715_v12  ;;  %v2727_v12 = vld [vmem:[#allocation2 + $0x130] sm:$0xff] }
 0x22c   : > { %13980 = vmatprep.subr.bf16.mxu1 %v17142_v27  ;;  %v2756_v45 = vpack.c.bf16 %v2728_v19, %v2727_v12  ;;  %v16115_v12 = vld [vmem:[#allocation2 + $0x12] sm:$0xff]  ;;  %v16116_v19 = vld [vmem:[#allocation2 + $0x1a] sm:$0xff] }
 0x22e   : > { %13885 = vmatmul.mubr.bf16.gmra.mrb[16].mxu1 %v2746_v11  ;;  %v2719_v11 = vld [vmem:[#allocation2 + $0xf0] sm:$0xff] }
 0x22f   : > { %13888 = vmatprep.mubr.bf16.mxu1 %v2747_v22  ;;  %v2752_v39 = vpack.c.bf16 %v2720_v51, %v2719_v11  ;;  %v2721_v22 = vld [vmem:[#allocation2 + $0x100] sm:$0xff]  ;;  %v2732_v51 = vld [vmem:[#allocation2 + $0x158] sm:$0xff]  ;;  %v2731_v11 = vld [vmem:[#allocation2 + $0x150] sm:$0xff] }
 0x230   : > { %v2753_v37 = vpack.c.bf16 %v2722_v44, %v2721_v22  ;;  %v2734_v44 = vld [vmem:[#allocation2 + $0x168] sm:$0xff] }
 0x236   : > { %13889 = vmatmul.mubr.bf16.gmra.mrb[20].mxu1 %v2748_v2  ;;  %v2755_v2 = vpack.c.bf16 %v17097_v61, %v2725_v25  ;;  %v2736_v61 = vld [vmem:[#allocation2 + $0x178] sm:$0x3]  ;;  %v3412_v25 = vld [vmem:[#allocation2 + $0x2] sm:$0xff] }
 0x237   : > { %13892 = vmatprep.mubr.bf16.mxu1 %v2749_v15  ;;  %v2754_v15 = vpack.c.bf16 %v2724_v63, %v2723_v62  ;;  %v2735_v63 = vld [vmem:[#allocation2 + $0x170] sm:$0xff] }
 0x238   : > { %v2760_v62 = vpack.c.bf16 %v2736_v61, %v2735_v63  ;;  %v16121_v63 = vld [vmem:[#allocation2 + $0x42] sm:$0xff]  ;;  %v16122_v61 = vld [vmem:[#allocation2 + $0x4a] sm:$0xff] }
 0x23e   : > { %13893 = vmatmul.mubr.bf16.gmra.mrb[24].mxu1 %v2750_v4  ;;  %v2729_v4 = vld [vmem:[#allocation2 + $0x140] sm:$0xff] }
 0x23f   : > { %13896 = vmatprep.mubr.bf16.mxu1 %v2751_v7  ;;  %v2757_v7 = vpack.c.bf16 %v2730_v17, %v2729_v4  ;;  %v3461_v17 = vpack.c.bf16 %v16116_v19, %v16115_v12  ;;  %v16117_v4 = vld [vmem:[#allocation2 + $0x22] sm:$0xff] }
 0x240   : > { %v15853_v19 = vld [vmem:[%s19477_s2 + $0xe8] sm:$0xff]  }
 0x246   : > { %13897 = vmatmul.mubr.bf16.gmra.mrb[28].mxu1 %v2752_v39  ;;  %v2733_v39 = vld [vmem:[#allocation2 + $0x160] sm:$0xff] }
 0x247   : > { %13900 = vmatprep.mubr.bf16.mxu1 %v2753_v37  ;;  %v2758_v37 = vpack.c.bf16 %v2732_v51, %v2731_v11  ;;  %v2759_v22 = vpack.c.bf16 %v2734_v44, %v2733_v39  ;;  %v15850_v44 = vld [vmem:[%s19477_s2 + $0xd0] sm:$0xff]  }
 0x248   : > { %v16119_v11 = vld [vmem:[#allocation2 + $0x32] sm:$0xff] }
 0x24e   : > { %13901 = vmatmul.mubr.bf16.gmra.mrb[32].mxu1 %v2754_v15  ;;  %v16114_v15 = vld [vmem:[#allocation2 + $0xa] sm:$0xff] }
 0x24f   : > { %13904 = vmatprep.mubr.bf16.mxu1 %v2755_v2  ;;  %v3460_v2 = vpack.c.bf16 %v16114_v15, %v3412_v25  ;;  %v3464_v25 = vpack.c.bf16 %v16122_v61, %v16121_v63  ;;  %v17163_v15 = vld [vmem:[#allocation2 + $0x62] sm:$0xff]  ;;  %v16129_v61 = vld [vmem:[#allocation2 + $0x92] sm:$0xff] }
 0x250   : > { %v15856_v63 = vld [vmem:[%s19477_s2 + $0x100] sm:$0xff]  }
 0x256   : > { %13905 = vmatmul.mubr.bf16.gmra.mrb[36].mxu1 %v2756_v45  ;;  %v15849_v45 = vld [vmem:[%s19477_s2 + $0xc8] sm:$0xff]  }
 0x257   : > { %13908 = vmatprep.mubr.bf16.mxu1 %v2757_v7  ;;  %v16118_v7 = vld [vmem:[#allocation2 + $0x2a] sm:$0xff] }
 0x258   : > { %v3462_v51 = vpack.c.bf16 %v16118_v7, %v16117_v4  ;;  %v15854_v4 = vld [vmem:[%s19477_s2 + $0xf0] sm:$0xff]  }
 0x259   : > { %v16125_v7 = vld [vmem:[#allocation2 + $0x72] sm:$0xff] }
 0x25e   : > { %13909 = vmatmul.mubr.bf16.gmra.mrb[40].mxu1 %v2758_v37  ;;  %v16120_v37 = vld [vmem:[#allocation2 + $0x3a] sm:$0xff] }
 0x25f   : > { %13912 = vmatprep.mubr.bf16.mxu1 %v2759_v22  ;;  %v3463_v39 = vpack.c.bf16 %v16120_v37, %v16119_v11  ;;  %v15851_v22 = vld [vmem:[%s19477_s2 + $0xd8] sm:$0xff]   ;;  %v16127_v37 = vld [vmem:[#allocation2 + $0x82] sm:$0xff] }
 0x260   : > { %v15855_v11 = vld [vmem:[%s19477_s2 + $0xf8] sm:$0xff]  }
 0x266   : > { %13913 = vmatmul.mubr.bf16.gmra.mrb[44].mxu1 %v2760_v62  ;;  %v17161_v62 = vld [vmem:[#allocation2 + $0x5a] sm:$0xff] }
 0x267   : > { %13932 = vmatprep.mubr.bf16.mxu1 %v3460_v2  ;;  %v16123_v2 = vld [vmem:[#allocation2 + $0x52] sm:$0xff] }
 0x268   : > { %v3465_v12 = vpack.c.bf16 %v17161_v62, %v16123_v2  ;;  %v16131_v2 = vld [vmem:[#allocation2 + $0xa2] sm:$0xff] }
 0x26e   : > { %13933 = vmatmul.mubr.bf16.vlgmr.msra.gmra.mrb[0].mxu1 %v3461_v17  ;;  %v16124_v17 = vld [vmem:[#allocation2 + $0x6a] sm:$0xff] }
 0x26f   : > { %13981 = vmatpush3.bf16.msra.mxu1 %v17142_v27  ;;  %13936 = vmatprep.mubr.bf16.mxu1 %v3462_v51  ;;  %v15852_v27 = vld [vmem:[%s19477_s2 + $0xe0] sm:$0xff]  }
 0x270   : > { %13982 = vmatprep.subr.bf16.mxu1 %v15849_v45  ;;  %v16126_v51 = vld [vmem:[#allocation2 + $0x7a] sm:$0xff] }
 0x273   : > { %13983 = vmatpush3.bf16.msra.mxu1 %v15849_v45  ;;  %v3466_v45 = vpack.c.bf16 %v16124_v17, %v17163_v15  ;;  %v17179_v17 = vld [vmem:[#allocation2 + $0xba] sm:$0xff] }
 0x274   : > { %13984 = vmatprep.subr.bf16.mxu1 %v15850_v44 }
 0x276   : > { %13937 = vmatmul.mubr.bf16.gmra.mrb[4].mxu1 %v3463_v39  ;;  %v16128_v39 = vld [vmem:[#allocation2 + $0x8a] sm:$0xff] }
 0x277   : > { %13940 = vmatprep.mubr.bf16.mxu1 %v3464_v25  ;;  %13985 = vmatpush3.bf16.msra.mxu1 %v15850_v44  ;;  %v3467_v44 = vpack.c.bf16 %v16126_v51, %v16125_v7  ;;  %v16130_v25 = vld [vmem:[#allocation2 + $0x9a] sm:$0xff]  ;;  %v16133_v51 = vld [vmem:[#allocation2 + $0xb2] sm:$0xff] }
 0x278   : > { %13986 = vmatprep.subr.bf16.mxu1 %v15851_v22 }
 0x27b   : > { %13987 = vmatpush3.bf16.msra.mxu1 %v15851_v22  ;;  %v3468_v22 = vpack.c.bf16 %v16128_v39, %v16127_v37  ;;  %v16134_v37 = vld [vmem:[#allocation2 + $0xda] sm:$0xff] }
 0x27c   : > { %13988 = vmatprep.subr.bf16.mxu1 %v15852_v27 }
 0x27e   : > { %13941 = vmatmul.mubr.bf16.gmra.mrb[8].mxu1 %v3465_v12  ;;  %v16132_v12 = vld [vmem:[#allocation2 + $0xaa] sm:$0xff] }
 0x27f   : > { %13944 = vmatprep.mubr.bf16.mxu1 %v3466_v45  ;;  %13989 = vmatpush3.bf16.msra.mxu1 %v15852_v27  ;;  %v3469_v27 = vpack.c.bf16 %v16130_v25, %v16129_v61  ;;  %v17181_v45 = vld [vmem:[#allocation2 + $0xc2] sm:$0xff]  ;;  %v16136_v61 = vld [vmem:[#allocation2 + $0xea] sm:$0xff] }
 0x280   : > { %13990 = vmatprep.subr.bf16.mxu1 %v15853_v19 }
 0x283   : > { %13991 = vmatpush3.bf16.msra.mxu1 %v15853_v19  ;;  %v3470_v19 = vpack.c.bf16 %v16132_v12, %v16131_v2  ;;  %v16138_v2 = vld [vmem:[#allocation2 + $0xfa] sm:$0xff] }
 0x284   : > { %13992 = vmatprep.subr.bf16.mxu1 %v15854_v4 }
 0x286   : > { %13945 = vmatmul.mubr.bf16.gmra.mrb[12].mxu1 %v3467_v44  ;;  %v3471_v44 = vpack.c.bf16 %v17179_v17, %v16133_v51  ;;  %v17192_v51 = vld [vmem:[#allocation2 + $0x11a] sm:$0xff] }
 0x287   : > { %13948 = vmatprep.mubr.bf16.mxu1 %v3468_v22  ;;  %13993 = vmatpush3.bf16.msra.mxu1 %v15854_v4  ;;  %v17183_v4 = vld [vmem:[#allocation2 + $0xca] sm:$0xff]  ;;  %v16135_v22 = vld [vmem:[#allocation2 + $0xe2] sm:$0xff] }
 0x288   : > { %13994 = vmatprep.subr.bf16.mxu1 %v15855_v11  ;;  %v3472_v7 = vpack.c.bf16 %v17183_v4, %v17181_v45  ;;  %v3474_v25 = vpack.c.bf16 %v16136_v61, %v16135_v22  ;;  %v3450_v22 = vld [vmem:[#allocation2 + $0x132] sm:$0xff] }
 0x289   : > { %v3479_v61 = vpack.c.bf16 %v16998_v50, %v3450_v22 }
 0x28b   : > { %13995 = vmatpush3.bf16.msra.mxu1 %v15855_v11  ;;  %v17188_v11 = vld [vmem:[#allocation2 + $0xd2] sm:$0xff] }
 0x28c   : > { %14044 = vmatprep.subr.bf16.mxu1 %v15856_v63  ;;  %v3473_v39 = vpack.c.bf16 %v16134_v37, %v17188_v11 }
 0x28e   : > { %13949 = vmatmul.mubr.bf16.gmra.mrb[16].mxu1 %v3469_v27  ;;  %v16137_v27 = vld [vmem:[#allocation2 + $0xf2] sm:$0xff] }
 0x28f   : > { %13952 = vmatprep.mubr.bf16.mxu1 %v3470_v19  ;;  %v3475_v12 = vpack.c.bf16 %v16138_v2, %v16137_v27  ;;  %v16139_v19 = vld [vmem:[#allocation2 + $0x102] sm:$0xff]  ;;  %v3482_v27 = vpack.c.bf16 %v17093_v28, %v17081_v9  ;;  %v3459_v2 = vld [vmem:[#allocation2 + $0x17a] sm:$0x3] }
 0x290   : > { %v3476_v56 = vpack.c.bf16 %v16983_v38, %v16139_v19  ;;  %v19555_v19 = vpack.c.bf16 %v16606_v31, %v16604_v30  ;;  %v15859_v30 = vld [vmem:[%s19477_s2 + $0x118] sm:$0xff]   ;;  %v19558_v31 = vpack.c.bf16 %v16692_v33, %v16695_v46  ;;  %v19560_v33 = vpack.c.bf16 %v16744_v10, %v16746_v23  ;;  %v15862_v46 = vld [vmem:[%s19477_s2 + $0x130] sm:$0xff]   ;;  %v15864_v23 = vld [vmem:[%s19477_s2 + $0x140] sm:$0xff]  }
 0x291   : > { %v19562_v10 = vpack.c.bf16 %v16809_v59, %v16811_v35  ;;  %v3881_v35 = vpack.c.bf16 %v17181_v45, %v17179_v17  ;;  %v19565_v59 = vpack.c.bf16 %v16905_v43, %v16908_v0  ;;  %v19569_v43 = vpack.c.bf16 %v17000_v16, %v16998_v50  ;;  %v4235_v50 = vld [vmem:[#allocation2 + $0x23] sm:$0xff]  ;;  %v4236_v45 = vld [vmem:[#allocation2 + $0x2b] sm:$0xff] }
 0x292   : > { %v19570_v0 = vpack.c.bf16 %v17023_v8, %v17025_v49 }
 0x296   : > { %13953 = vmatmul.mubr.bf16.gmra.mrb[20].mxu1 %v3471_v44  ;;  %v17196_v44 = vld [vmem:[#allocation2 + $0x12a] sm:$0xff] }
 0x297   : > { %13956 = vmatprep.mubr.bf16.mxu1 %v3472_v7  ;;  %v17194_v7 = vld [vmem:[#allocation2 + $0x122] sm:$0xff] }
 0x298   : > { %v3478_v37 = vpack.c.bf16 %v17196_v44, %v17194_v7 }
 0x29e   : > { %13957 = vmatmul.mubr.bf16.gmra.mrb[24].mxu1 %v3473_v39  ;;  %v3477_v39 = vpack.c.bf16 %v17192_v51, %v16974_v47 }
 0x29f   : > { %13960 = vmatprep.mubr.bf16.mxu1 %v3474_v25  ;;  %v3481_v25 = vpack.c.bf16 %v17079_v48, %v17023_v8  ;;  %v4234_v8 = vld [vmem:[#allocation2 + $0x1b] sm:$0xff] }
 0x2a6   : > { %13961 = vmatmul.mubr.bf16.gmra.mrb[28].mxu1 %v3475_v12  ;;  %v3483_v12 = vpack.c.bf16 %v3459_v2, %v17095_v55  ;;  %v15868_v2 = vld [vmem:[%s19477_s2 + $0x160] sm:$0xff]  }
 0x2a7   : > { %13964 = vmatprep.mubr.bf16.mxu1 %v3476_v56  ;;  %v3480_v56 = vpack.c.bf16 %v17025_v49, %v17000_v16  ;;  %v4237_v16 = vld [vmem:[#allocation2 + $0x33] sm:$0xff]  ;;  %v4281_v49 = vpack.c.bf16 %v4235_v50, %v4234_v8  ;;  %v4266_v50 = vld [vmem:[#allocation2 + $0x11b] sm:$0xff]  ;;  %v4268_v8 = vld [vmem:[#allocation2 + $0x12b] sm:$0xff] }
 0x2ae   : > { %13965 = vmatmul.mubr.bf16.gmra.mrb[32].mxu1 %v3477_v39  ;;  %v19556_v39 = vpack.c.bf16 %v16632_v36, %v16635_v42  ;;  %v19559_v36 = vpack.c.bf16 %v16711_v20, %v16709_v18  ;;  %v15860_v42 = vld [vmem:[%s19477_s2 + $0x120] sm:$0xff]   ;;  %v15863_v18 = vld [vmem:[%s19477_s2 + $0x138] sm:$0xff]   ;;  %v19561_v20 = vpack.c.bf16 %v16756_v53, %v16760_v14  ;;  %v19564_v53 = vpack.c.bf16 %v16870_v29, %v16876_v34 }
 0x2af   : > { %13968 = vmatprep.mubr.bf16.mxu1 %v3478_v37  ;;  %v15857_v37 = vld [vmem:[%s19477_s2 + $0x108] sm:$0xff]   ;;  %v3882_v14 = vpack.c.bf16 %v17188_v11, %v17183_v4  ;;  %v19568_v29 = vpack.c.bf16 %v16974_v47, %v16983_v38  ;;  %v3887_v34 = vpack.c.bf16 %v17194_v7, %v17192_v51  ;;  %v4233_v47 = vld [vmem:[#allocation2 + $0x13] sm:$0xff]  ;;  %v4238_v51 = vld [vmem:[#allocation2 + $0x3b] sm:$0xff] }
 0x2b0   : > { %v4240_v4 = vld [vmem:[#allocation2 + $0x4b] sm:$0xff]  ;;  %v4241_v11 = vld [vmem:[#allocation2 + $0x53] sm:$0xff] }
 0x2b6   : > { %13969 = vmatmul.mubr.bf16.gmra.mrb[36].mxu1 %v3479_v61  ;;  %v19557_v61 = vpack.c.bf16 %v16648_v6, %v16646_v3  ;;  %v3875_v3 = vpack.c.bf16 %v17163_v15, %v17161_v62  ;;  %v15861_v6 = vld [vmem:[%s19477_s2 + $0x128] sm:$0xff]   ;;  %v19563_v62 = vpack.c.bf16 %v16833_v41, %v16822_v13  ;;  %v19566_v13 = vpack.c.bf16 %v16923_v1, %v16921_v52 }
 0x2b7   : > { %13972 = vmatprep.mubr.bf16.mxu1 %v3480_v56  ;;  %v15858_v56 = vld [vmem:[%s19477_s2 + $0x110] sm:$0xff]   ;;  %v19567_v41 = vpack.c.bf16 %v16945_v21, %v16947_v60  ;;  %v3888_v15 = vpack.c.bf16 %v3450_v22, %v17196_v44  ;;  %v19571_v52 = vpack.c.bf16 %v17081_v9, %v17079_v48  ;;  %v19572_v1 = vpack.c.bf16 %v17095_v55, %v17093_v28  ;;  %v3868_v21 = vld [vmem:[#allocation2 + $0x17a] sm:$0xff]  ;;  %v3869_v60 = vld [vmem:[#allocation2 + $0x182] sm:$0x3] }
 0x2b8   : > { %v3893_v38 = vpack.c.bf16 %v3869_v60, %v3868_v21  ;;  %v15865_v9 = vld [vmem:[%s19477_s2 + $0x148] sm:$0xff]   ;;  %v4282_v48 = vpack.c.bf16 %v4237_v16, %v4236_v45  ;;  %v15866_v55 = vld [vmem:[%s19477_s2 + $0x150] sm:$0xff]   ;;  %v15867_v44 = vld [vmem:[%s19477_s2 + $0x158] sm:$0xff]   ;;  %v4284_v22 = vpack.c.bf16 %v4241_v11, %v4240_v4 }
 0x2b9   : > { %v4239_v28 = vld [vmem:[#allocation2 + $0x43] sm:$0xff]  ;;  %v4265_v60 = vld [vmem:[#allocation2 + $0x113] sm:$0xff]  ;;  %v4272_v11 = vld [vmem:[#allocation2 + $0x14b] sm:$0xff] }
 0x2ba   : > { %v4283_v7 = vpack.c.bf16 %v4239_v28, %v4238_v51  ;;  %v4263_v21 = vld [vmem:[#allocation2 + $0x103] sm:$0xff]  ;;  %v4273_v28 = vld [vmem:[#allocation2 + $0x153] sm:$0xff] }
 0x2bb   : > { %v4267_v16 = vld [vmem:[#allocation2 + $0x123] sm:$0xff]  ;;  %v4300_v51 = vpack.c.bf16 %v4273_v28, %v4272_v11  ;;  %v4702_v28 = vpack.c.bf16 %v17039_v26, %v17032_v58  ;;  %v4704_v11 = vpack.c.bf16 %v17043_v40, %v17041_v54 }
 0x2bc   : > { %v4297_v45 = vpack.c.bf16 %v4267_v16, %v4266_v50  ;;  %v17361_v50 = vld [vmem:[#allocation2 + $0xa4] sm:$0xff]  ;;  %v17363_v16 = vld [vmem:[#allocation2 + $0xb4] sm:$0xff] }
 0x2be   : > { %13973 = vmatmul.mubr.bf16.gmra.mrb[40].mxu1 %v3481_v25  ;;  %v4242_v25 = vld [vmem:[#allocation2 + $0x5b] sm:$0xff] }
 0x2bf   : > { %13976 = vmatprep.mubr.bf16.mxu1 %v3482_v27  ;;  %v4243_v27 = vld [vmem:[#allocation2 + $0x63] sm:$0xff] }
 0x2c6   : > { %13977 = vmatmul.mubr.bf16.gmra.mrb[44].mxu1 %v3483_v12  ;;  %v4285_v12 = vpack.c.bf16 %v4243_v27, %v4242_v25  ;;  %v4276_v27 = vld [vmem:[#allocation2 + $0x16b] sm:$0xff] }
 0x2c7   : > { %13996 = vmatprep.mubr.bf16.mxu1 %v19555_v19  ;;  %v4245_v19 = vld [vmem:[#allocation2 + $0x73] sm:$0xff] }
 0x2ce   : > { %13997 = vmatmul.mubr.bf16.vlgmr.msra.gmra.mrb[0].mxu1 %v19556_v39  ;;  %v15869_v39 = vld [vmem:[%s19477_s2 + $0x168] sm:$0xff]  }
 0x2cf   : > { %14045 = vmatpush3.bf16.msra.mxu1 %v15856_v63  ;;  %14000 = vmatprep.mubr.bf16.mxu1 %v19557_v61  ;;  %v4232_v63 = vld [vmem:[#allocation2 + $0xb] sm:$0xff] }
 0x2d0   : > { %14046 = vmatprep.subr.bf16.mxu1 %v15857_v37  ;;  %v4280_v17 = vpack.c.bf16 %v4233_v47, %v4232_v63  ;;  %v4262_v47 = vld [vmem:[#allocation2 + $0xfb] sm:$0xff]  ;;  %v4264_v63 = vld [vmem:[#allocation2 + $0x10b] sm:$0xff] }
 0x2d3   : > { %14047 = vmatpush3.bf16.msra.mxu1 %v15857_v37  ;;  %v4244_v37 = vld [vmem:[#allocation2 + $0x6b] sm:$0xff] }
 0x2d4   : > { %14048 = vmatprep.subr.bf16.mxu1 %v15858_v56  ;;  %v4286_v61 = vpack.c.bf16 %v4245_v19, %v4244_v37  ;;  %v4279_v19 = vld [vmem:[#allocation2 + $0x183] sm:$0x3] }
 0x2d6   : > { %14001 = vmatmul.mubr.bf16.gmra.mrb[4].mxu1 %v19558_v31  ;;  %v4249_v31 = vld [vmem:[#allocation2 + $0x93] sm:$0xff] }
 0x2d7   : > { %14004 = vmatprep.mubr.bf16.mxu1 %v19559_v36  ;;  %14049 = vmatpush3.bf16.msra.mxu1 %v15858_v56  ;;  %v15870_v56 = vld [vmem:[%s19477_s2 + $0x170] sm:$0xff]   ;;  %v4246_v36 = vld [vmem:[#allocation2 + $0x7b] sm:$0xff] }
 0x2d8   : > { %14050 = vmatprep.subr.bf16.mxu1 %v15859_v30 }
 0x2db   : > { %14051 = vmatpush3.bf16.msra.mxu1 %v15859_v30  ;;  %v4247_v30 = vld [vmem:[#allocation2 + $0x83] sm:$0xff] }
 0x2dc   : > { %14052 = vmatprep.subr.bf16.mxu1 %v15860_v42 }
 0x2de   : > { %14005 = vmatmul.mubr.bf16.gmra.mrb[8].mxu1 %v3875_v3  ;;  %v4248_v3 = vld [vmem:[#allocation2 + $0x8b] sm:$0xff] }
 0x2df   : > { %14008 = vmatprep.mubr.bf16.mxu1 %v19560_v33  ;;  %14053 = vmatpush3.bf16.msra.mxu1 %v15860_v42  ;;  %v4287_v42 = vpack.c.bf16 %v4247_v30, %v4246_v36  ;;  %v4288_v33 = vpack.c.bf16 %v4249_v31, %v4248_v3  ;;  %v16141_v30 = vld [vmem:[#allocation2 + $0x1c] sm:$0xff]  ;;  %v16142_v31 = vld [vmem:[#allocation2 + $0x24] sm:$0xff]  ;;  %v16143_v3 = vld [vmem:[#allocation2 + $0x2c] sm:$0xff] }
 0x2e0   : > { %14054 = vmatprep.subr.bf16.mxu1 %v15861_v6  ;;  %v4691_v36 = vpack.c.bf16 %v16142_v31, %v16141_v30  ;;  %v19580_v31 = vld [vmem:[#allocation30_spill] sm:$0xff] }
 0x2e3   : > { %14055 = vmatpush3.bf16.msra.mxu1 %v15861_v6  ;;  %v15871_v6 = vld [vmem:[%s19477_s2 + $0x178] sm:$0xff]  }
 0x2e4   : > { %14056 = vmatprep.subr.bf16.mxu1 %v15862_v46 }
 0x2e6   : > { %14009 = vmatmul.mubr.bf16.gmra.mrb[12].mxu1 %v19561_v20  ;;  %v4251_v20 = vld [vmem:[#allocation2 + $0xa3] sm:$0xff] }
 0x2e7   : > { %14012 = vmatprep.mubr.bf16.mxu1 %v19562_v10  ;;  %14057 = vmatpush3.bf16.msra.mxu1 %v15862_v46  ;;  %v17321_v46 = vld [vmem:[%s19477_s2 + $0x180] sm:$0xff]   ;;  %v4253_v10 = vld [vmem:[#allocation2 + $0xb3] sm:$0xff] }
 0x2e8   : > { %14058 = vmatprep.subr.bf16.mxu1 %v15863_v18 }
 0x2eb   : > { %14059 = vmatpush3.bf16.msra.mxu1 %v15863_v18  ;;  %v4250_v18 = vld [vmem:[#allocation2 + $0x9b] sm:$0xff] }
 0x2ec   : > { %14108 = vmatprep.subr.bf16.mxu1 %v15864_v23 }
 0x2ee   : > { %14013 = vmatmul.mubr.bf16.gmra.mrb[16].mxu1 %v19563_v62  ;;  %v4252_v62 = vld [vmem:[#allocation2 + $0xab] sm:$0xff] }
 0x2ef   : > { %14016 = vmatprep.mubr.bf16.mxu1 %v19564_v53  ;;  %v4290_v53 = vpack.c.bf16 %v4253_v10, %v4252_v62  ;;  %v16145_v10 = vld [vmem:[#allocation2 + $0x3c] sm:$0xff] }
 0x2f6   : > { %14017 = vmatmul.mubr.bf16.gmra.mrb[20].mxu1 %v3881_v35  ;;  %v4254_v35 = vld [vmem:[#allocation2 + $0xbb] sm:$0xff] }
 0x2f7   : > { %14020 = vmatprep.mubr.bf16.mxu1 %v3882_v14  ;;  %v4255_v14 = vld [vmem:[#allocation2 + $0xc3] sm:$0xff] }
 0x2fe   : > { %14021 = vmatmul.mubr.bf16.gmra.mrb[24].mxu1 %v19565_v59  ;;  %v4256_v59 = vld [vmem:[#allocation2 + $0xcb] sm:$0xff] }
 0x2ff   : > { %14024 = vmatprep.mubr.bf16.mxu1 %v19566_v13  ;;  %v4257_v13 = vld [vmem:[#allocation2 + $0xd3] sm:$0xff] }
 0x306   : > { %14025 = vmatmul.mubr.bf16.gmra.mrb[28].mxu1 %v19567_v41  ;;  %v4291_v41 = vpack.c.bf16 %v4255_v14, %v4254_v35  ;;  %v16147_v35 = vld [vmem:[#allocation2 + $0x4c] sm:$0xff]  ;;  %v15876_v14 = vld [vmem:[%s19477_s2 + $0x1a0] sm:$0xff]  }
 0x307   : > { %14028 = vmatprep.mubr.bf16.mxu1 %v19568_v29  ;;  %v4292_v29 = vpack.c.bf16 %v4257_v13, %v4256_v59  ;;  %v17340_v59 = vld [vmem:[#allocation2 + $0x5c] sm:$0xff]  ;;  %v17342_v13 = vld [vmem:[#allocation2 + $0x64] sm:$0xff] }
 0x30e   : > { %14029 = vmatmul.mubr.bf16.gmra.mrb[32].mxu1 %v3887_v34  ;;  %v4259_v34 = vld [vmem:[#allocation2 + $0xe3] sm:$0xff] }
 0x30f   : > { %14032 = vmatprep.mubr.bf16.mxu1 %v3888_v15  ;;  %v4260_v15 = vld [vmem:[#allocation2 + $0xeb] sm:$0xff] }
 0x316   : > { %14033 = vmatmul.mubr.bf16.gmra.mrb[36].mxu1 %v19569_v43  ;;  %v4261_v43 = vld [vmem:[#allocation2 + $0xf3] sm:$0xff] }
 0x317   : > { %14036 = vmatprep.mubr.bf16.mxu1 %v19570_v0  ;;  %v4258_v0 = vld [vmem:[#allocation2 + $0xdb] sm:$0xff] }
 0x31e   : > { %14037 = vmatmul.mubr.bf16.gmra.mrb[40].mxu1 %v19571_v52  ;;  %v4293_v52 = vpack.c.bf16 %v4259_v34, %v4258_v0  ;;  %v15877_v34 = vld [vmem:[%s19477_s2 + $0x1a8] sm:$0xff]   ;;  %v15878_v0 = vld [vmem:[%s19477_s2 + $0x1b0] sm:$0xff]  }
 0x31f   : > { %14040 = vmatprep.mubr.bf16.mxu1 %v19572_v1  ;;  %v4294_v1 = vpack.c.bf16 %v4261_v43, %v4260_v15  ;;  %v16148_v15 = vld [vmem:[#allocation2 + $0x74] sm:$0xff] }
 0x326   : > { %14041 = vmatmul.mubr.bf16.gmra.mrb[44].mxu1 %v3893_v38  ;;  %v4295_v38 = vpack.c.bf16 %v4263_v21, %v4262_v47  ;;  %v16151_v47 = vld [vmem:[#allocation2 + $0x8c] sm:$0xff] }
 0x327   : > { %14060 = vmatprep.mubr.bf16.mxu1 %v4280_v17  ;;  %v4296_v17 = vpack.c.bf16 %v4265_v60, %v4264_v63  ;;  %v15879_v60 = vld [vmem:[%s19477_s2 + $0x1b8] sm:$0xff]  }
 0x32e   : > { %14061 = vmatmul.mubr.bf16.vlgmr.msra.gmra.mrb[0].mxu1 %v4281_v49  ;;  %v4269_v49 = vld [vmem:[#allocation2 + $0x133] sm:$0xff] }
 0x32f   : > { %14109 = vmatpush3.bf16.msra.mxu1 %v15864_v23  ;;  %14064 = vmatprep.mubr.bf16.mxu1 %v4282_v48  ;;  %v4289_v23 = vpack.c.bf16 %v4251_v20, %v4250_v18  ;;  %v4270_v48 = vld [vmem:[#allocation2 + $0x13b] sm:$0xff]  ;;  %v15874_v18 = vld [vmem:[%s19477_s2 + $0x190] sm:$0xff]  }
 0x330   : > { %14110 = vmatprep.subr.bf16.mxu1 %v15865_v9  ;;  %v17331_v20 = vld [vmem:[#allocation2 + $0x54] sm:$0xff] }
 0x333   : > { %14111 = vmatpush3.bf16.msra.mxu1 %v15865_v9  ;;  %v4298_v9 = vpack.c.bf16 %v4269_v49, %v4268_v8  ;;  %v16153_v8 = vld [vmem:[#allocation2 + $0x9c] sm:$0xff] }
 0x334   : > { %14112 = vmatprep.subr.bf16.mxu1 %v15866_v55  ;;  %v4699_v49 = vpack.c.bf16 %v17361_v50, %v16153_v8 }
 0x336   : > { %14065 = vmatmul.mubr.bf16.gmra.mrb[4].mxu1 %v4283_v7  ;;  %v4275_v7 = vld [vmem:[#allocation2 + $0x163] sm:$0xff] }
 0x337   : > { %14068 = vmatprep.mubr.bf16.mxu1 %v4284_v22  ;;  %14113 = vmatpush3.bf16.msra.mxu1 %v15866_v55  ;;  %v4271_v55 = vld [vmem:[#allocation2 + $0x143] sm:$0xff]  ;;  %v4274_v22 = vld [vmem:[#allocation2 + $0x15b] sm:$0xff] }
 0x338   : > { %14114 = vmatprep.subr.bf16.mxu1 %v15867_v44  ;;  %v4299_v4 = vpack.c.bf16 %v4271_v55, %v4270_v48  ;;  %v4301_v25 = vpack.c.bf16 %v4275_v7, %v4274_v22  ;;  %v17370_v48 = vld [vmem:[#allocation2 + $0xbc] sm:$0xff]  ;;  %v19575_v22 = vld [vmem:[#allocation26_spill] sm:$0xff] }
 0x339   : > { %v4701_v55 = vpack.c.bf16 %v17037_v24, %v17370_v48 }
 0x33b   : > { %14115 = vmatpush3.bf16.msra.mxu1 %v15867_v44  ;;  %v4277_v44 = vld [vmem:[#allocation2 + $0x173] sm:$0xff] }
 0x33c   : > { %14116 = vmatprep.subr.bf16.mxu1 %v15868_v2 }
 0x33e   : > { %14069 = vmatmul.mubr.bf16.gmra.mrb[8].mxu1 %v4285_v12  ;;  %v4278_v12 = vld [vmem:[#allocation2 + $0x17b] sm:$0xff] }
 0x33f   : > { %14072 = vmatprep.mubr.bf16.mxu1 %v4286_v61  ;;  %14117 = vmatpush3.bf16.msra.mxu1 %v15868_v2  ;;  %v4302_v2 = vpack.c.bf16 %v4277_v44, %v4276_v27  ;;  %v4303_v37 = vpack.c.bf16 %v4279_v19, %v4278_v12  ;;  %v16140_v61 = vld [vmem:[#allocation2 + $0x14] sm:$0xff]  ;;  %v19574_v44 = vld [vmem:[#allocation25_spill] sm:$0xff] }
 0x340   : > { %14118 = vmatprep.subr.bf16.mxu1 %v15869_v39  ;;  %v17384_v27 = vld [vmem:[#allocation2 + $0x124] sm:$0xff]  ;;  %v19576_v12 = vld [vmem:[#allocation27_spill] sm:$0xff] }
 0x341   : > { %v4707_v19 = vpack.c.bf16 %v17384_v27, %v19576_v12 }
 0x343   : > { %14119 = vmatpush3.bf16.msra.mxu1 %v15869_v39  ;;  %v4642_v39 = vld [vmem:[#allocation2 + $0xc] sm:$0xff] }
 0x344   : > { %14120 = vmatprep.subr.bf16.mxu1 %v15870_v56 }
 0x346   : > { %14073 = vmatmul.mubr.bf16.gmra.mrb[12].mxu1 %v4287_v42  ;;  %v15873_v42 = vld [vmem:[%s19477_s2 + $0x188] sm:$0xff]  }
 0x347   : > { %14076 = vmatprep.mubr.bf16.mxu1 %v4288_v33  ;;  %14121 = vmatpush3.bf16.msra.mxu1 %v15870_v56  ;;  %v4690_v56 = vpack.c.bf16 %v16140_v61, %v4642_v39  ;;  %v19578_v61 = vld [vmem:[#allocation28_spill] sm:$0xff] }
 0x348   : > { %14122 = vmatprep.subr.bf16.mxu1 %v15871_v6 }
 0x34b   : > { %14123 = vmatpush3.bf16.msra.mxu1 %v15871_v6  ;;  %v16144_v6 = vld [vmem:[#allocation2 + $0x34] sm:$0xff] }
 0x34c   : > { %14172 = vmatprep.subr.bf16.mxu1 %v17321_v46  ;;  %v4692_v33 = vpack.c.bf16 %v16144_v6, %v16143_v3  ;;  %v19582_v3 = vld [vmem:[#allocation32_spill] sm:$0xff]  ;;  %v19583_v6 = vld [vmem:[#allocation35_spill] sm:$0xff] }
 0x34e   : > { %14077 = vmatmul.mubr.bf16.gmra.mrb[16].mxu1 %v4289_v23  ;;  %v16146_v23 = vld [vmem:[#allocation2 + $0x44] sm:$0xff] }
 0x34f   : > { %14080 = vmatprep.mubr.bf16.mxu1 %v4290_v53  ;;  %v4693_v62 = vpack.c.bf16 %v16146_v23, %v16145_v10  ;;  %v15875_v53 = vld [vmem:[%s19477_s2 + $0x198] sm:$0xff]   ;;  %v19585_v10 = vld [vmem:[#allocation37_spill] sm:$0xff] }
 0x356   : > { %14081 = vmatmul.mubr.bf16.gmra.mrb[20].mxu1 %v4291_v41  ;;  %v4695_v41 = vpack.c.bf16 %v17342_v13, %v17340_v59 }
 0x357   : > { %14084 = vmatprep.mubr.bf16.mxu1 %v4292_v29  ;;  %v17346_v29 = vld [vmem:[#allocation2 + $0x6c] sm:$0xff] }
 0x358   : > { %v4696_v43 = vpack.c.bf16 %v16148_v15, %v17346_v29  ;;  %v19590_v15 = vld [vmem:[#allocation13_spill] sm:$0xff] }
 0x35e   : > { %14085 = vmatmul.mubr.bf16.gmra.mrb[24].mxu1 %v4293_v52  ;;  %v16149_v52 = vld [vmem:[#allocation2 + $0x7c] sm:$0xff] }
 0x35f   : > { %14088 = vmatprep.mubr.bf16.mxu1 %v4294_v1  ;;  %v16150_v1 = vld [vmem:[#allocation2 + $0x84] sm:$0xff] }
 0x360   : > { %v4697_v21 = vpack.c.bf16 %v16150_v1, %v16149_v52  ;;  %v19593_v52 = vld [vmem:[#allocation15_spill] sm:$0xff]  ;;  %v19594_v1 = vld [vmem:[#allocation16_spill] sm:$0xff] }
 0x366   : > { %14089 = vmatmul.mubr.bf16.gmra.mrb[28].mxu1 %v4295_v38  ;;  %v16152_v38 = vld [vmem:[#allocation2 + $0x94] sm:$0xff] }
 0x367   : > { %14092 = vmatprep.mubr.bf16.mxu1 %v4296_v17  ;;  %v4698_v63 = vpack.c.bf16 %v16152_v38, %v16151_v47  ;;  %v15880_v17 = vld [vmem:[%s19477_s2 + $0x1c0] sm:$0xff]   ;;  %v15883_v47 = vld [vmem:[%s19477_s2 + $0x1d8] sm:$0xff]   ;;  %v5104_v38 = vpack.c.bf16 %v17340_v59, %v17331_v20 }
 0x368   : > { %v19599_v59 = vld [vmem:[#allocation19_spill] sm:$0xff] }
 0x36e   : > { %14093 = vmatmul.mubr.bf16.gmra.mrb[32].mxu1 %v4297_v45  ;;  %v17366_v45 = vld [vmem:[#allocation2 + $0xac] sm:$0xff] }
 0x36f   : > { %14096 = vmatprep.mubr.bf16.mxu1 %v4298_v9  ;;  %v4700_v9 = vpack.c.bf16 %v17363_v16, %v17366_v45 }
 0x376   : > { %14097 = vmatmul.mubr.bf16.gmra.mrb[36].mxu1 %v4299_v4  ;;  %v4703_v4 = vpack.c.bf16 %v17059_v32, %v17034_v5 }
 0x377   : > { %14100 = vmatprep.mubr.bf16.mxu1 %v4300_v51  ;;  %v19573_v51 = vld [vmem:[#allocation31_spill] sm:$0xff] }
 0x378   : > { %v4705_v7 = vpack.c.bf16 %v19573_v51, %v17045_v57 }
 0x37e   : > { %14101 = vmatmul.mubr.bf16.gmra.mrb[40].mxu1 %v4301_v25  ;;  %v4706_v25 = vpack.c.bf16 %v19575_v22, %v19574_v44 }
 0x37f   : > { %14104 = vmatprep.mubr.bf16.mxu1 %v4302_v2  ;;  %v4678_v2 = vld [vmem:[#allocation2 + $0x12c] sm:$0xff] }
 0x386   : > { %14105 = vmatmul.mubr.bf16.gmra.mrb[44].mxu1 %v4303_v37  ;;  %v19577_v37 = vld [vmem:[#allocation33_spill] sm:$0xff] }
 0x387   : > { %14124 = vmatprep.mubr.bf16.mxu1 %v4690_v56  ;;  %v4708_v39 = vpack.c.bf16 %v19577_v37, %v4678_v2  ;;  %v19579_v56 = vld [vmem:[#allocation29_spill] sm:$0xff] }
 0x388   : > { %v4709_v30 = vpack.c.bf16 %v19579_v56, %v19578_v61 }
 0x38e   : > { %14125 = vmatmul.mubr.bf16.vlgmr.msra.gmra.mrb[0].mxu1 %v4691_v36  ;;  %v19581_v36 = vld [vmem:[#allocation34_spill] sm:$0xff] }
 0x38f   : > { %14173 = vmatpush3.bf16.msra.mxu1 %v17321_v46  ;;  %14128 = vmatprep.mubr.bf16.mxu1 %v4692_v33  ;;  %v4694_v46 = vpack.c.bf16 %v17331_v20, %v16147_v35  ;;  %v4711_v33 = vpack.c.bf16 %v19583_v6, %v19582_v3  ;;  %v15885_v20 = vld [vmem:[%s19477_s2 + $0x1e8] sm:$0xff]  }
 0x390   : > { %14174 = vmatprep.subr.bf16.mxu1 %v15873_v42 }
 0x393   : > { %14175 = vmatpush3.bf16.msra.mxu1 %v15873_v42  ;;  %v4710_v42 = vpack.c.bf16 %v19581_v36, %v19580_v31 }
 0x394   : > { %14176 = vmatprep.subr.bf16.mxu1 %v15874_v18 }
 0x396   : > { %14129 = vmatmul.mubr.bf16.gmra.mrb[4].mxu1 %v4693_v62  ;;  %v4689_v62 = vld [vmem:[#allocation2 + $0x184] sm:$0x3] }
 0x397   : > { %14132 = vmatprep.mubr.bf16.mxu1 %v4694_v46  ;;  %14177 = vmatpush3.bf16.msra.mxu1 %v15874_v18  ;;  %v19584_v18 = vld [vmem:[#allocation36_spill] sm:$0xff]  ;;  %v19587_v46 = vld [vmem:[#allocation11_spill] sm:$0xff] }
 0x398   : > { %14178 = vmatprep.subr.bf16.mxu1 %v15875_v53  ;;  %v4712_v23 = vpack.c.bf16 %v19585_v10, %v19584_v18 }
 0x39b   : > { %14179 = vmatpush3.bf16.msra.mxu1 %v15875_v53  ;;  %v19586_v53 = vld [vmem:[#allocation38_spill] sm:$0xff] }
 0x39c   : > { %14180 = vmatprep.subr.bf16.mxu1 %v15876_v14  ;;  %v4713_v35 = vpack.c.bf16 %v4689_v62, %v19586_v53  ;;  %v19609_v62 = vpack.c.bf16 %v17034_v5, %v17039_v26  ;;  %v19614_v5 = vpack.c.bf16 %v19578_v61, %v19577_v37  ;;  %v19616_v26 = vpack.c.bf16 %v19582_v3, %v19581_v36  ;;  %v5467_v37 = vld [vmem:[#allocation2 + $0x3d] sm:$0xff]  ;;  %v5464_v61 = vld [vmem:[#allocation2 + $0x25] sm:$0xff] }
 0x39d   : > { %v15889_v36 = vld [vmem:[%s19477_s2 + $0x208] sm:$0xff]  }
 0x39e   : > { %14133 = vmatmul.mubr.bf16.gmra.mrb[8].mxu1 %v4695_v41 }
 0x39f   : > { %14136 = vmatprep.mubr.bf16.mxu1 %v4696_v43  ;;  %14181 = vmatpush3.bf16.msra.mxu1 %v15876_v14  ;;  %v19588_v14 = vld [vmem:[#allocation12_spill] sm:$0xff]  ;;  %v19591_v43 = vld [vmem:[#allocation14_spill] sm:$0xff] }
 0x3a0   : > { %14182 = vmatprep.subr.bf16.mxu1 %v15877_v34  ;;  %v19589_v41 = vpack.c.bf16 %v19587_v46, %v19588_v14  ;;  %v5468_v46 = vld [vmem:[#allocation2 + $0x45] sm:$0xff] }
 0x3a3   : > { %14183 = vmatpush3.bf16.msra.mxu1 %v15877_v34  ;;  %v15881_v34 = vld [vmem:[%s19477_s2 + $0x1c8] sm:$0xff]  }
 0x3a4   : > { %14184 = vmatprep.subr.bf16.mxu1 %v15878_v0 }
 0x3a6   : > { %14137 = vmatmul.mubr.bf16.gmra.mrb[12].mxu1 %v4697_v21  ;;  %v19595_v21 = vpack.c.bf16 %v19593_v52, %v19594_v1  ;;  %v5475_v52 = vld [vmem:[#allocation2 + $0x7d] sm:$0xff] }
 0x3a7   : > { %14140 = vmatprep.mubr.bf16.mxu1 %v4698_v63  ;;  %14185 = vmatpush3.bf16.msra.mxu1 %v15878_v0  ;;  %v19592_v0 = vpack.c.bf16 %v19590_v15, %v19591_v43  ;;  %v19596_v63 = vld [vmem:[#allocation17_spill] sm:$0xff]  ;;  %v15892_v15 = vld [vmem:[%s19477_s2 + $0x220] sm:$0xff]  }
 0x3a8   : > { %14186 = vmatprep.subr.bf16.mxu1 %v15879_v60  ;;  %v5472_v43 = vld [vmem:[#allocation2 + $0x65] sm:$0xff] }
 0x3ab   : > { %14187 = vmatpush3.bf16.msra.mxu1 %v15879_v60  ;;  %v15882_v60 = vld [vmem:[%s19477_s2 + $0x1d0] sm:$0xff]  }
 0x3ac   : > { %14236 = vmatprep.subr.bf16.mxu1 %v15880_v17 }
 0x3ae   : > { %14141 = vmatmul.mubr.bf16.gmra.mrb[16].mxu1 %v4699_v49  ;;  %v15884_v49 = vld [vmem:[%s19477_s2 + $0x1e0] sm:$0xff]  }
 0x3af   : > { %14144 = vmatprep.mubr.bf16.mxu1 %v4700_v9  ;;  %v5105_v9 = vpack.c.bf16 %v17346_v29, %v17342_v13  ;;  %v15887_v13 = vld [vmem:[%s19477_s2 + $0x1f8] sm:$0xff]   ;;  %v19602_v29 = vld [vmem:[#allocation21_spill] sm:$0xff] }
 0x3b6   : > { %14145 = vmatmul.mubr.bf16.gmra.mrb[20].mxu1 %v4701_v55  ;;  %v19600_v55 = vld [vmem:[#allocation20_spill] sm:$0xff] }
 0x3b7   : > { %14148 = vmatprep.mubr.bf16.mxu1 %v4702_v28  ;;  %v19601_v28 = vpack.c.bf16 %v19599_v59, %v19600_v55  ;;  %v15895_v59 = vld [vmem:[%s19477_s2 + $0x238] sm:$0xff]  }
 0x3be   : > { %14149 = vmatmul.mubr.bf16.gmra.mrb[24].mxu1 %v4703_v4  ;;  %v15886_v4 = vld [vmem:[%s19477_s2 + $0x1f0] sm:$0xff]  }
 0x3bf   : > { %14152 = vmatprep.mubr.bf16.mxu1 %v4704_v11  ;;  %v19603_v11 = vld [vmem:[#allocation22_spill] sm:$0xff] }
 0x3c6   : > { %14153 = vmatmul.mubr.bf16.gmra.mrb[28].mxu1 %v4705_v7  ;;  %v19604_v7 = vpack.c.bf16 %v19602_v29, %v19603_v11  ;;  %v5483_v29 = vld [vmem:[#allocation2 + $0xbd] sm:$0xff] }
 0x3c7   : > { %14156 = vmatprep.mubr.bf16.mxu1 %v4706_v25  ;;  %v19605_v25 = vld [vmem:[#allocation23_spill] sm:$0xff] }
 0x3ce   : > { %14157 = vmatmul.mubr.bf16.gmra.mrb[32].mxu1 %v4707_v19  ;;  %v19606_v19 = vld [vmem:[#allocation24_spill] sm:$0xff] }
 0x3cf   : > { %14160 = vmatprep.mubr.bf16.mxu1 %v4708_v39  ;;  %v19607_v39 = vpack.c.bf16 %v19605_v25, %v19606_v19  ;;  %v5484_v25 = vld [vmem:[#allocation2 + $0xc5] sm:$0xff]  ;;  %v5485_v19 = vld [vmem:[#allocation2 + $0xcd] sm:$0xff] }
 0x3d6   : > { %14161 = vmatmul.mubr.bf16.gmra.mrb[36].mxu1 %v4709_v30  ;;  %v15888_v30 = vld [vmem:[%s19477_s2 + $0x200] sm:$0xff]  }
 0x3d7   : > { %14164 = vmatprep.mubr.bf16.mxu1 %v4710_v42  ;;  %v5109_v42 = vpack.c.bf16 %v17366_v45, %v17361_v50  ;;  %v19611_v50 = vpack.c.bf16 %v17045_v57, %v17043_v40  ;;  %v19618_v40 = vpack.c.bf16 %v19586_v53, %v19585_v10  ;;  %v15896_v57 = vld [vmem:[%s19477_s2 + $0x280] sm:$0xff]   ;;  %v5470_v10 = vld [vmem:[#allocation2 + $0x55] sm:$0xff] }
 0x3d8   : > { %v5098_v45 = vld [vmem:[#allocation2 + $0x184] sm:$0xff]  ;;  %14365 = vmatpush3.bf16.msra.mxu0 %v15896_v57 }
 0x3d9   : > { %v5471_v53 = vld [vmem:[#allocation2 + $0x5d] sm:$0xff] }
 0x3de   : > { %14165 = vmatmul.mubr.bf16.gmra.mrb[40].mxu1 %v4711_v33  ;;  %v5110_v33 = vpack.c.bf16 %v17370_v48, %v17363_v16  ;;  %v19612_v16 = vpack.c.bf16 %v19574_v44, %v19573_v51  ;;  %v5099_v48 = vld [vmem:[#allocation2 + $0x18c] sm:$0x3]  ;;  %v5463_v51 = vld [vmem:[#allocation2 + $0x1d] sm:$0xff] }
 0x3df   : > { %14168 = vmatprep.mubr.bf16.mxu1 %v4712_v23  ;;  %v19608_v23 = vpack.c.bf16 %v17032_v58, %v17037_v24  ;;  %v19613_v58 = vpack.c.bf16 %v19576_v12, %v19575_v22  ;;  %v5117_v24 = vpack.c.bf16 %v4678_v2, %v17384_v27  ;;  %v17488_v44 = vld [vmem:[#allocation2] sm:$0xff]  ;;  %v5123_v22 = vpack.c.bf16 %v5099_v48, %v5098_v45  ;;  %v5462_v27 = vld [vmem:[#allocation2 + $0x15] sm:$0xff]  ;;  %v5465_v12 = vld [vmem:[#allocation2 + $0x2d] sm:$0xff] }
 0x3e0   : > { %14366 = vmatprep.subr.bf16.mxu0 %v17488_v44  ;;  %v5510_v2 = vpack.c.bf16 %v5463_v51, %v5462_v27  ;;  %v15899_v45 = vld [vmem:[%s19477_s2 + $0x298] sm:$0xff]   ;;  %v5496_v48 = vld [vmem:[#allocation2 + $0x125] sm:$0xff]  ;;  %v5497_v51 = vld [vmem:[#allocation2 + $0x12d] sm:$0xff]  ;;  %14380 = vmatprep.mubr.msk.bf16.mxu0 %vm16227_vm2, %v17488_v44 }
 0x3e1   : > { %v5527_v27 = vpack.c.bf16 %v5497_v51, %v5496_v48  ;;  %v5901_v48 = vld [vmem:[#allocation2 + $0xfe] sm:$0xff]  ;;  %v5898_v51 = vld [vmem:[#allocation2 + $0xe6] sm:$0xff] }
 0x3e6   : > { %14169 = vmatmul.mubr.bf16.gmra.mrb[44].mxu1 %v4713_v35  ;;  %v19610_v35 = vpack.c.bf16 %v17041_v54, %v17059_v32  ;;  %v19615_v32 = vpack.c.bf16 %v19580_v31, %v19579_v56  ;;  %v19617_v54 = vpack.c.bf16 %v19584_v18, %v19583_v6  ;;  %v5511_v56 = vpack.c.bf16 %v5465_v12, %v5464_v61  ;;  %v5466_v31 = vld [vmem:[#allocation2 + $0x35] sm:$0xff]  ;;  %v5469_v18 = vld [vmem:[#allocation2 + $0x4d] sm:$0xff] }
 0x3e7   : > { %14188 = vmatprep.mubr.bf16.mxu1 %v19589_v41  ;;  %v5512_v3 = vpack.c.bf16 %v5467_v37, %v5466_v31  ;;  %v15890_v6 = vld [vmem:[%s19477_s2 + $0x210] sm:$0xff]   ;;  %v5513_v14 = vpack.c.bf16 %v5469_v18, %v5468_v46  ;;  %v15891_v41 = vld [vmem:[%s19477_s2 + $0x218] sm:$0xff]   ;;  %v15901_v37 = vld [vmem:[%s19477_s2 + $0x2a8] sm:$0xff]  }
 0x3e8   : > { %v5498_v12 = vld [vmem:[#allocation2 + $0x135] sm:$0xff]  ;;  %v5501_v31 = vld [vmem:[#allocation2 + $0x14d] sm:$0xff]  ;;  %v5504_v46 = vld [vmem:[#allocation2 + $0x165] sm:$0xff] }
 0x3ee   : > { %14189 = vmatmul.mubr.bf16.vlgmr.msra.gmra.mrb[0].mxu1 %v19592_v0  ;;  %v5473_v0 = vld [vmem:[#allocation2 + $0x6d] sm:$0xff] }
 0x3ef   : > { %14237 = vmatpush3.bf16.msra.mxu1 %v15880_v17  ;;  %14192 = vmatprep.mubr.bf16.mxu1 %v19595_v21  ;;  %v19597_v17 = vld [vmem:[#allocation18_spill] sm:$0xff]  ;;  %v5515_v1 = vpack.c.bf16 %v5473_v0, %v5472_v43  ;;  %v5509_v43 = vld [vmem:[#allocation2 + $0x18d] sm:$0x3] }
 0x3f0   : > { %14238 = vmatprep.subr.bf16.mxu1 %v15881_v34  ;;  %v19598_v8 = vpack.c.bf16 %v19596_v63, %v19597_v17  ;;  %v5474_v21 = vld [vmem:[#allocation2 + $0x75] sm:$0xff]  ;;  %v5477_v17 = vld [vmem:[#allocation2 + $0x8d] sm:$0xff] }
 0x3f1   : > { %v15894_v63 = vld [vmem:[%s19477_s2 + $0x230] sm:$0xff]  }
 0x3f3   : > { %14239 = vmatpush3.bf16.msra.mxu1 %v15881_v34  ;;  %v5514_v34 = vpack.c.bf16 %v5471_v53, %v5470_v10  ;;  %v5505_v10 = vld [vmem:[#allocation2 + $0x16d] sm:$0xff]  ;;  %v5507_v53 = vld [vmem:[#allocation2 + $0x17d] sm:$0xff] }
 0x3f4   : > { %14240 = vmatprep.subr.bf16.mxu1 %v15882_v60 }
 0x3f6   : > { %14193 = vmatmul.mubr.bf16.gmra.mrb[4].mxu1 %v19598_v8  ;;  %v5479_v8 = vld [vmem:[#allocation2 + $0x9d] sm:$0xff] }
 0x3f7   : > { %14196 = vmatprep.mubr.bf16.mxu1 %v5104_v38  ;;  %14241 = vmatpush3.bf16.msra.mxu1 %v15882_v60  ;;  %v15893_v60 = vld [vmem:[%s19477_s2 + $0x228] sm:$0xff]  }
 0x3f8   : > { %14242 = vmatprep.subr.bf16.mxu1 %v15883_v47  ;;  %v15897_v38 = vld [vmem:[%s19477_s2 + $0x288] sm:$0xff]  }
 0x3f9   : > { %14367 = vmatpush3.bf16.msra.mxu0 %v15897_v38  ;;  %v5877_v38 = vld [vmem:[#allocation2 + $0x3e] sm:$0xff] }
 0x3fa   : > { %14368 = vmatprep.subr.bf16.mxu0 %v17488_v44 }
 0x3fb   : > { %14243 = vmatpush3.bf16.msra.mxu1 %v15883_v47  ;;  %v5516_v47 = vpack.c.bf16 %v5475_v52, %v5474_v21  ;;  %v5873_v52 = vld [vmem:[#allocation2 + $0x1e] sm:$0xff] }
 0x3fc   : > { %14244 = vmatprep.subr.bf16.mxu1 %v15884_v49 }
 0x3fe   : > { %14197 = vmatmul.mubr.bf16.gmra.mrb[8].mxu1 %v5105_v9 }
 0x3ff   : > { %14200 = vmatprep.mubr.bf16.mxu1 %v19601_v28  ;;  %14245 = vmatpush3.bf16.msra.mxu1 %v15884_v49  ;;  %v5476_v49 = vld [vmem:[#allocation2 + $0x85] sm:$0xff] }
 0x400   : > { %14246 = vmatprep.subr.bf16.mxu1 %v15885_v20  ;;  %v5517_v9 = vpack.c.bf16 %v5477_v17, %v5476_v49  ;;  %v5480_v28 = vld [vmem:[#allocation2 + $0xa5] sm:$0xff]  ;;  %v5879_v49 = vld [vmem:[#allocation2 + $0x4e] sm:$0xff] }
 0x403   : > { %14247 = vmatpush3.bf16.msra.mxu1 %v15885_v20  ;;  %v5478_v20 = vld [vmem:[#allocation2 + $0x95] sm:$0xff] }
 0x404   : > { %14248 = vmatprep.subr.bf16.mxu1 %v15886_v4  ;;  %v5518_v55 = vpack.c.bf16 %v5479_v8, %v5478_v20  ;;  %v5881_v20 = vld [vmem:[#allocation2 + $0x5e] sm:$0xff] }
 0x406   : > { %14201 = vmatmul.mubr.bf16.gmra.mrb[12].mxu1 %v19604_v7 }
 0x407   : > { %14204 = vmatprep.mubr.bf16.mxu1 %v19607_v39  ;;  %14249 = vmatpush3.bf16.msra.mxu1 %v15886_v4  ;;  %v5481_v4 = vld [vmem:[#allocation2 + $0xad] sm:$0xff]  ;;  %v5487_v39 = vld [vmem:[#allocation2 + $0xdd] sm:$0xff] }
 0x408   : > { %14250 = vmatprep.subr.bf16.mxu1 %v15887_v13  ;;  %v5519_v11 = vpack.c.bf16 %v5481_v4, %v5480_v28  ;;  %v5882_v4 = vld [vmem:[#allocation2 + $0x66] sm:$0xff] }
 0x40b   : > { %14251 = vmatpush3.bf16.msra.mxu1 %v15887_v13  ;;  %v5482_v13 = vld [vmem:[#allocation2 + $0xb5] sm:$0xff] }
 0x40c   : > { %14300 = vmatprep.subr.bf16.mxu1 %v15888_v30  ;;  %v5520_v7 = vpack.c.bf16 %v5483_v29, %v5482_v13  ;;  %v5883_v13 = vld [vmem:[#allocation2 + $0x6e] sm:$0xff]  ;;  %v5885_v29 = vld [vmem:[#allocation2 + $0x7e] sm:$0xff] }
 0x40e   : > { %14205 = vmatmul.mubr.bf16.gmra.mrb[16].mxu1 %v5109_v42  ;;  %v5486_v42 = vld [vmem:[#allocation2 + $0xd5] sm:$0xff] }
 0x40f   : > { %14208 = vmatprep.mubr.bf16.mxu1 %v5110_v33  ;;  %v5522_v33 = vpack.c.bf16 %v5487_v39, %v5486_v42  ;;  %v5887_v39 = vld [vmem:[#allocation2 + $0x8e] sm:$0xff] }
 0x416   : > { %14209 = vmatmul.mubr.bf16.gmra.mrb[20].mxu1 %v19608_v23  ;;  %v5489_v23 = vld [vmem:[#allocation2 + $0xed] sm:$0xff] }
 0x417   : > { %14212 = vmatprep.mubr.bf16.mxu1 %v19609_v62  ;;  %v5490_v62 = vld [vmem:[#allocation2 + $0xf5] sm:$0xff] }
 0x41e   : > { %14213 = vmatmul.mubr.bf16.gmra.mrb[24].mxu1 %v19610_v35  ;;  %v5491_v35 = vld [vmem:[#allocation2 + $0xfd] sm:$0xff] }
 0x41f   : > { %14216 = vmatprep.mubr.bf16.mxu1 %v19611_v50  ;;  %v5488_v50 = vld [vmem:[#allocation2 + $0xe5] sm:$0xff] }
 0x426   : > { %14217 = vmatmul.mubr.bf16.gmra.mrb[28].mxu1 %v19612_v16  ;;  %v5523_v16 = vpack.c.bf16 %v5489_v23, %v5488_v50  ;;  %v5893_v50 = vld [vmem:[#allocation2 + $0xbe] sm:$0xff] }
 0x427   : > { %14220 = vmatprep.mubr.bf16.mxu1 %v19613_v58  ;;  %v5524_v58 = vpack.c.bf16 %v5491_v35, %v5490_v62  ;;  %v5891_v62 = vld [vmem:[#allocation2 + $0xae] sm:$0xff]  ;;  %v5892_v35 = vld [vmem:[#allocation2 + $0xb6] sm:$0xff] }
 0x42e   : > { %14221 = vmatmul.mubr.bf16.gmra.mrb[32].mxu1 %v5117_v24  ;;  %v15898_v24 = vld [vmem:[%s19477_s2 + $0x290] sm:$0xff]  }
 0x42f   : > { %14224 = vmatprep.mubr.bf16.mxu1 %v19614_v5  ;;  %v5493_v5 = vld [vmem:[#allocation2 + $0x10d] sm:$0xff]  ;;  %14369 = vmatpush3.bf16.msra.mxu0 %v15898_v24  ;;  %v5930_v24 = vpack.c.bf16 %v5893_v50, %v5892_v35 }
 0x430   : > { %14370 = vmatprep.subr.bf16.mxu0 %v17488_v44 }
 0x433   : > { %14371 = vmatpush3.bf16.msra.mxu0 %v15899_v45  ;;  %v5899_v45 = vld [vmem:[#allocation2 + $0xee] sm:$0xff] }
 0x434   : > { %14372 = vmatprep.subr.bf16.mxu0 %v17488_v44 }
 0x436   : > { %14225 = vmatmul.mubr.bf16.gmra.mrb[36].mxu1 %v19615_v32  ;;  %v5494_v32 = vld [vmem:[#allocation2 + $0x115] sm:$0xff] }
 0x437   : > { %14228 = vmatprep.mubr.bf16.mxu1 %v19616_v26  ;;  %v5495_v26 = vld [vmem:[#allocation2 + $0x11d] sm:$0xff] }
 0x438   : > { %v5526_v57 = vpack.c.bf16 %v5495_v26, %v5494_v32  ;;  %v5895_v32 = vld [vmem:[#allocation2 + $0xce] sm:$0xff]  ;;  %v5896_v26 = vld [vmem:[#allocation2 + $0xd6] sm:$0xff] }
 0x43e   : > { %14229 = vmatmul.mubr.bf16.gmra.mrb[40].mxu1 %v19617_v54  ;;  %v5492_v54 = vld [vmem:[#allocation2 + $0x105] sm:$0xff] }
 0x43f   : > { %14232 = vmatprep.mubr.bf16.mxu1 %v19618_v40  ;;  %v5525_v40 = vpack.c.bf16 %v5493_v5, %v5492_v54  ;;  %v5894_v5 = vld [vmem:[#allocation2 + $0xc6] sm:$0xff]  ;;  %v5897_v54 = vld [vmem:[#allocation2 + $0xde] sm:$0xff] }
 0x446   : > { %14233 = vmatmul.mubr.bf16.gmra.mrb[44].mxu1 %v5123_v22  ;;  %v15900_v22 = vld [vmem:[%s19477_s2 + $0x2a0] sm:$0xff]  }
 0x447   : > { %14252 = vmatprep.mubr.bf16.mxu1 %v5510_v2  ;;  %v5499_v2 = vld [vmem:[#allocation2 + $0x13d] sm:$0xff]  ;;  %14373 = vmatpush3.bf16.msra.mxu0 %v15900_v22  ;;  %v5933_v22 = vpack.c.bf16 %v5899_v45, %v5898_v51 }
 0x448   : > { %v5528_v61 = vpack.c.bf16 %v5499_v2, %v5498_v12  ;;  %14374 = vmatprep.subr.bf16.mxu0 %v17488_v44  ;;  %v5903_v12 = vld [vmem:[#allocation2 + $0x10e] sm:$0xff] }
 0x44b   : > { %14375 = vmatpush3.bf16.msra.mxu0 %v15901_v37  ;;  %v5904_v37 = vld [vmem:[#allocation2 + $0x116] sm:$0xff] }
 0x44c   : > { %14376 = vmatprep.subr.bf16.mxu0 %v17488_v44 }
 0x44e   : > { %14253 = vmatmul.mubr.bf16.vlgmr.msra.gmra.mrb[0].mxu1 %v5511_v56  ;;  %v5500_v56 = vld [vmem:[#allocation2 + $0x145] sm:$0xff] }
 0x44f   : > { %14301 = vmatpush3.bf16.msra.mxu1 %v15888_v30  ;;  %14256 = vmatprep.mubr.bf16.mxu1 %v5512_v3  ;;  %v5521_v30 = vpack.c.bf16 %v5485_v19, %v5484_v25  ;;  %v5529_v3 = vpack.c.bf16 %v5501_v31, %v5500_v56  ;;  %v5886_v19 = vld [vmem:[#allocation2 + $0x86] sm:$0xff] }
 0x450   : > { %14302 = vmatprep.subr.bf16.mxu1 %v15889_v36  ;;  %v5927_v42 = vpack.c.bf16 %v5887_v39, %v5886_v19  ;;  %v5902_v56 = vld [vmem:[#allocation2 + $0x106] sm:$0xff] }
 0x451   : > { %v5935_v31 = vpack.c.bf16 %v5903_v12, %v5902_v56 }
 0x453   : > { %14303 = vmatpush3.bf16.msra.mxu1 %v15889_v36  ;;  %v5503_v36 = vld [vmem:[#allocation2 + $0x15d] sm:$0xff] }
 0x454   : > { %14304 = vmatprep.subr.bf16.mxu1 %v15890_v6 }
 0x456   : > { %14257 = vmatmul.mubr.bf16.gmra.mrb[4].mxu1 %v5513_v14  ;;  %v5531_v14 = vpack.c.bf16 %v5505_v10, %v5504_v46  ;;  %v5909_v10 = vld [vmem:[#allocation2 + $0x13e] sm:$0xff] }
 0x457   : > { %14260 = vmatprep.mubr.bf16.mxu1 %v5514_v34  ;;  %14305 = vmatpush3.bf16.msra.mxu1 %v15890_v6  ;;  %v5502_v6 = vld [vmem:[#allocation2 + $0x155] sm:$0xff] }
 0x458   : > { %14306 = vmatprep.subr.bf16.mxu1 %v15891_v41  ;;  %v5530_v18 = vpack.c.bf16 %v5503_v36, %v5502_v6  ;;  %v5907_v6 = vld [vmem:[#allocation2 + $0x12e] sm:$0xff] }
 0x45b   : > { %14307 = vmatpush3.bf16.msra.mxu1 %v15891_v41  ;;  %v5506_v41 = vld [vmem:[#allocation2 + $0x175] sm:$0xff] }
 0x45c   : > { %14308 = vmatprep.subr.bf16.mxu1 %v15892_v15  ;;  %v5532_v34 = vpack.c.bf16 %v5507_v53, %v5506_v41  ;;  %v5908_v53 = vld [vmem:[#allocation2 + $0x136] sm:$0xff]  ;;  %v5913_v41 = vld [vmem:[#allocation2 + $0x15e] sm:$0xff] }
 0x45d   : > { %v5938_v46 = vpack.c.bf16 %v5909_v10, %v5908_v53 }
 0x45e   : > { %14261 = vmatmul.mubr.bf16.gmra.mrb[8].mxu1 %v5515_v1  ;;  %v5872_v1 = vld [vmem:[#allocation2 + $0x16] sm:$0xff] }
 0x45f   : > { %14264 = vmatprep.mubr.bf16.mxu1 %v5516_v47  ;;  %14309 = vmatpush3.bf16.msra.mxu1 %v15892_v15  ;;  %v5508_v15 = vld [vmem:[#allocation2 + $0x185] sm:$0xff]  ;;  %v5920_v21 = vpack.c.bf16 %v5873_v52, %v5872_v1  ;;  %v5876_v47 = vld [vmem:[#allocation2 + $0x36] sm:$0xff]  ;;  %v5915_v52 = vld [vmem:[#allocation2 + $0x16e] sm:$0xff] }
 0x460   : > { %14310 = vmatprep.subr.bf16.mxu1 %v15893_v60  ;;  %v5533_v0 = vpack.c.bf16 %v5509_v43, %v5508_v15  ;;  %v5922_v8 = vpack.c.bf16 %v5877_v38, %v5876_v47  ;;  %v5912_v43 = vld [vmem:[#allocation2 + $0x156] sm:$0xff] }
 0x461   : > { %v5916_v1 = vld [vmem:[#allocation2 + $0x176] sm:$0xff] }
 0x463   : > { %14311 = vmatpush3.bf16.msra.mxu1 %v15893_v60  ;;  %v5875_v60 = vld [vmem:[#allocation2 + $0x2e] sm:$0xff] }
 0x464   : > { %14312 = vmatprep.subr.bf16.mxu1 %v15894_v63 }
 0x466   : > { %14265 = vmatmul.mubr.bf16.gmra.mrb[12].mxu1 %v5517_v9  ;;  %v5880_v9 = vld [vmem:[#allocation2 + $0x56] sm:$0xff] }
 0x467   : > { %14268 = vmatprep.mubr.bf16.mxu1 %v5518_v55  ;;  %14313 = vmatpush3.bf16.msra.mxu1 %v15894_v63  ;;  %v5874_v63 = vld [vmem:[#allocation2 + $0x26] sm:$0xff]  ;;  %v5924_v28 = vpack.c.bf16 %v5881_v20, %v5880_v9  ;;  %v15903_v9 = vld [vmem:[%s19477_s2 + $0x2b8] sm:$0xff]   ;;  %v19619_v20 = vld [vmem:[#allocation10_spill] sm:$0xff] }
 0x468   : > { %14314 = vmatprep.subr.bf16.mxu1 %v15895_v59  ;;  %v5921_v17 = vpack.c.bf16 %v5875_v60, %v5874_v63  ;;  %v5914_v60 = vld [vmem:[#allocation2 + $0x166] sm:$0xff] }
 0x469   : > { %v5941_v47 = vpack.c.bf16 %v5915_v52, %v5914_v60  ;;  %v5918_v63 = vld [vmem:[#allocation2 + $0x186] sm:$0xff] }
 0x46b   : > { %14315 = vmatpush3.bf16.msra.mxu1 %v15895_v59  ;;  %v5878_v59 = vld [vmem:[#allocation2 + $0x46] sm:$0xff] }
 0x46c   : > { %v5923_v55 = vpack.c.bf16 %v5879_v49, %v5878_v59  ;;  %v15902_v49 = vld [vmem:[%s19477_s2 + $0x2b0] sm:$0xff]   ;;  %v6284_v59 = vsub.s32 1, %v19619_v20 }
 0x46d   : > { %14377 = vmatpush3.bf16.msra.mxu0 %v15902_v49 }
 0x46e   : > { %14269 = vmatmul.mubr.bf16.gmra.mrb[16].mxu1 %v5519_v11  ;;  %v5925_v11 = vpack.c.bf16 %v5883_v13, %v5882_v4  ;;  %14378 = vmatprep.subr.bf16.mxu0 %v17488_v44 }
 0x46f   : > { %14272 = vmatprep.mubr.bf16.mxu1 %v5520_v7  ;;  %v5884_v7 = vld [vmem:[#allocation2 + $0x76] sm:$0xff] }
 0x470   : > { %v5926_v25 = vpack.c.bf16 %v5885_v29, %v5884_v7 }
 0x471   : > { %14379 = vmatpush3.bf16.msra.mxu0 %v15903_v9 }
 0x472   : > { %14416 = vmatprep.subr.bf16.mxu0 %v17488_v44 }
 0x476   : > { %14273 = vmatmul.mubr.bf16.gmra.mrb[20].mxu1 %v5521_v30  ;;  %v5889_v30 = vld [vmem:[#allocation2 + $0x9e] sm:$0xff] }
 0x477   : > { %14276 = vmatprep.mubr.bf16.mxu1 %v5522_v33  ;;  %v5888_v33 = vld [vmem:[#allocation2 + $0x96] sm:$0xff] }
 0x478   : > { %v5928_v23 = vpack.c.bf16 %v5889_v30, %v5888_v33 }
 0x47e   : > { %14277 = vmatmul.mubr.bf16.gmra.mrb[24].mxu1 %v5523_v16  ;;  %v5890_v16 = vld [vmem:[#allocation2 + $0xa6] sm:$0xff] }
 0x47f   : > { %14280 = vmatprep.mubr.bf16.mxu1 %v5524_v58  ;;  %v5929_v58 = vpack.c.bf16 %v5891_v62, %v5890_v16 }
 0x486   : > { %14281 = vmatmul.mubr.bf16.gmra.mrb[28].mxu1 %v5525_v40  ;;  %v5931_v40 = vpack.c.bf16 %v5895_v32, %v5894_v5 }
 0x487   : > { %14284 = vmatprep.mubr.bf16.mxu1 %v5526_v57  ;;  %v5932_v57 = vpack.c.bf16 %v5897_v54, %v5896_v26 }
 0x48e   : > { %14285 = vmatmul.mubr.bf16.gmra.mrb[32].mxu1 %v5527_v27  ;;  %v5900_v27 = vld [vmem:[#allocation2 + $0xf6] sm:$0xff] }
 0x48f   : > { %14288 = vmatprep.mubr.bf16.mxu1 %v5528_v61  ;;  %v5934_v2 = vpack.c.bf16 %v5901_v48, %v5900_v27  ;;  %v5905_v61 = vld [vmem:[#allocation2 + $0x11e] sm:$0xff] }
 0x490   : > { %v5936_v36 = vpack.c.bf16 %v5905_v61, %v5904_v37 }
 0x496   : > { %14289 = vmatmul.mubr.bf16.gmra.mrb[36].mxu1 %v5529_v3  ;;  %v5906_v3 = vld [vmem:[#allocation2 + $0x126] sm:$0xff] }
 0x497   : > { %14292 = vmatprep.mubr.bf16.mxu1 %v5530_v18  ;;  %v5937_v18 = vpack.c.bf16 %v5907_v6, %v5906_v3 }
 0x49e   : > { %14293 = vmatmul.mubr.bf16.gmra.mrb[40].mxu1 %v5531_v14  ;;  %v5911_v14 = vld [vmem:[#allocation2 + $0x14e] sm:$0xff] }
 0x49f   : > { %14296 = vmatprep.mubr.bf16.mxu1 %v5532_v34  ;;  %v5910_v34 = vld [vmem:[#allocation2 + $0x146] sm:$0xff] }
 0x4a0   : > { %v5939_v15 = vpack.c.bf16 %v5911_v14, %v5910_v34 }
 0x4a6   : > { %14297 = vmatmul.mubr.bf16.gmra.mrb[44].mxu1 %v5533_v0  ;;  %v5940_v0 = vpack.c.bf16 %v5913_v41, %v5912_v43 }
 0x4a7   : > { %14316 = vmatprep.mubr.bf16.mxu1 %v5920_v21  ;;  %v5917_v21 = vld [vmem:[#allocation2 + $0x17e] sm:$0xff] }
 0x4a8   : > { %v5942_v38 = vpack.c.bf16 %v5917_v21, %v5916_v1 }
 0x4ae   : > { %14317 = vmatmul.mubr.bf16.vlgmr.msra.gmra.mrb[0].mxu1 %v5921_v17  ;;  %v5919_v17 = vld [vmem:[#allocation2 + $0x18e] sm:$0x3] }
 0x4af   : > { %14320 = vmatprep.mubr.bf16.mxu1 %v5922_v8  ;;  %v5943_v8 = vpack.c.bf16 %v5919_v17, %v5918_v63 }
 0x4b6   : > { %14321 = vmatmul.mubr.bf16.gmra.mrb[4].mxu1 %v5923_v55  ;;  %v16155_v55 = vld [vmem:[%s19478_s3] sm:$0x1f] }
 0x4b7   : > { %14324 = vmatprep.mubr.bf16.mxu1 %v5924_v28  ;;  %v17546_v28 = vrot.slane %v16155_v55, %v6284_v59 }
 0x4be   : > { %14325 = vmatmul.mubr.bf16.gmra.mrb[8].mxu1 %v5925_v11 }
 0x4bf   : > { %14328 = vmatprep.mubr.bf16.mxu1 %v5926_v25 }
 0x4c6   : > { %14329 = vmatmul.mubr.bf16.gmra.mrb[12].mxu1 %v5927_v42 }
 0x4c7   : > { %14332 = vmatprep.mubr.bf16.mxu1 %v5928_v23 }
 0x4ce   : > { %14333 = vmatmul.mubr.bf16.gmra.mrb[16].mxu1 %v5929_v58 }
 0x4cf   : > { %14336 = vmatprep.mubr.bf16.mxu1 %v5930_v24 }
 0x4d6   : > { %14337 = vmatmul.mubr.bf16.gmra.mrb[20].mxu1 %v5931_v40 }
 0x4d7   : > { %14340 = vmatprep.mubr.bf16.mxu1 %v5932_v57 }
 0x4de   : > { %14341 = vmatmul.mubr.bf16.gmra.mrb[24].mxu1 %v5933_v22 }
 0x4df   : > { %14344 = vmatprep.mubr.bf16.mxu1 %v5934_v2 }
 0x4e6   : > { %14345 = vmatmul.mubr.bf16.gmra.mrb[28].mxu1 %v5935_v31 }
 0x4e7   : > { %14348 = vmatprep.mubr.bf16.mxu1 %v5936_v36 }
 0x4ee   : > { %14349 = vmatmul.mubr.bf16.gmra.mrb[32].mxu1 %v5937_v18 }
 0x4ef   : > { %14352 = vmatprep.mubr.bf16.mxu1 %v5938_v46 }
 0x4f6   : > { %14353 = vmatmul.mubr.bf16.gmra.mrb[36].mxu1 %v5939_v15 }
 0x4f7   : > { %14356 = vmatprep.mubr.bf16.mxu1 %v5940_v0 }
 0x4fe   : > { %14357 = vmatmul.mubr.bf16.gmra.mrb[40].mxu1 %v5941_v47 }
 0x4ff   : > { %14360 = vmatprep.mubr.bf16.mxu1 %v5942_v38 }
 0x506   : > { %14361 = vmatmul.mubr.bf16.gmra.mrb[44].mxu1 %v5943_v8 }
 0x581   : > { %v14318_v4 = vpop.f32.mrb[0].mxu1 }
 0x582   : > { %v6288_v13 = vadd.f32 %v14318_v4, %v17546_v28  ;;  %v6043_v29 = vpop.f32.mrb[1].mxu1 }
 0x583   : > { %v6286_v11 = vadd.f32 %v17546_v28, %v6043_v29  ;;  %v14319_v7 = vpop.f32.mrb[2].mxu1 }
 0x584   : > { %v6336_v25 = vmax.f32 %v6288_v13, 0.0  ;;  %v6289_v19 = vadd.f32 %v14319_v7, %v17546_v28  ;;  %v6046_v39 = vpop.f32.mrb[3].mxu1 }
 0x585   : > { %v6334_v30 = vmax.f32 %v6286_v11, 0.0  ;;  %v6287_v42 = vadd.f32 %v17546_v28, %v6046_v39 }
 0x586   : > { %v17552_v33 = vmax.f32 %v6289_v19, 0.0  ;;  %v6431_v62 = vrot.slane %v6336_v25, 1  ;;  %v6615_v35 = vrot.slane %v6336_v25, 2  ;;  %v6801_v50 = vrot.slane %v6336_v25, 3 }
 0x587   : > { %v6335_v23 = vmax.f32 %v6287_v42, 0.0  ;;  %v6428_v58 = vrot.slane %v6334_v30, 1 }
 0x588   : > { %v6433_v16 = vrot.slane %v17552_v33, 1  ;;  %v6617_v3 = vrot.slane %v17552_v33, 2  ;;  %v6803_v53 = vrot.slane %v17552_v33, 3 }
 0x589   : > { %v6429_v24 = vrot.slane %v6335_v23, 1  ;;  %v6614_v5 = vrot.slane %v6335_v23, 2  ;;  %v6800_v32 = vrot.slane %v6335_v23, 3  ;;  %v14322_v26 = vpop.f32.mrb[4].mxu1 }
 0x58a   : > { %v6434_v54 = vsel %vm1653_vm1, %v6431_v62, %v6433_v16  ;;  %v6292_v40 = vadd.f32 %v14322_v26, %v17546_v28  ;;  %v6059_v57 = vpop.f32.mrb[5].mxu1 }
 0x58b   : > { %v6567_v45 = vmax.f32 %v6336_v25, %v6434_v54  ;;  %v6430_v48 = vsel %vm1653_vm1, %v6428_v58, %v6429_v24  ;;  %v6616_v51 = vsel %vm6613_vm4, %v6614_v5, %v6615_v35  ;;  %v6802_v22 = vsel %vm6799_vm3, %v6800_v32, %v6801_v50  ;;  %v14323_v27 = vpop.f32.mrb[6].mxu1 }
 0x58c   : > { %v6565_v2 = vmax.f32 %v6334_v30, %v6430_v48  ;;  %v6340_v12 = vmax.f32 %v6292_v40, 0.0  ;;  %v6290_v37 = vadd.f32 %v17546_v28, %v6059_v57  ;;  %v6293_v61 = vadd.f32 %v14323_v27, %v17546_v28  ;;  %v6062_v56 = vpop.f32.mrb[7].mxu1 }
 0x58d   : > { %v6291_v31 = vadd.f32 %v17546_v28, %v6062_v56 }
 0x58e   : > { %v6753_v36 = vmax.f32 %v6565_v2, %v6616_v51  ;;  %v6338_v6 = vmax.f32 %v6290_v37, 0.0  ;;  %v17564_v18 = vmax.f32 %v6293_v61, 0.0  ;;  %v6439_v14 = vrot.slane %v6340_v12, 1 }
 0x58f   : > { %v6339_v10 = vmax.f32 %v6291_v31, 0.0  ;;  %v6623_v41 = vrot.slane %v6340_v12, 2  ;;  %v6809_v34 = vrot.slane %v6340_v12, 3 }
 0x590   : > { %v6939_v46 = vmax.f32 %v6753_v36, %v6802_v22  ;;  %v6435_v15 = vrot.slane %v6338_v6, 1  ;;  %v6619_v43 = vrot.slane %v6338_v6, 2  ;;  %v6805_v0 = vrot.slane %v6338_v6, 3 }
 0x591   : > { %v14326_v52 = vpop.f32.mrb[8].mxu1  ;;  %v6625_v1 = vrot.slane %v17564_v18, 2  ;;  %v6811_v21 = vrot.slane %v17564_v18, 3  ;;  %v6437_v60 = vrot.slane %v6339_v10, 1  ;;  %v6621_v47 = vrot.slane %v6339_v10, 2 }
 0x592   : > { %6985 = vst [vmem:[#allocation6] sm:$0xff] %v6939_v46  ;;  %v6075_v38 = vpop.f32.mrb[9].mxu1  ;;  %v6436_v63 = vsel %vm1653_vm1, %v6433_v16, %v6435_v15  ;;  %v6620_v17 = vsel %vm6613_vm4, %v6617_v3, %v6619_v43  ;;  %v6806_v8 = vsel %vm6799_vm3, %v6803_v53, %v6805_v0  ;;  %v6807_v49 = vrot.slane %v6339_v10, 3 }
 0x593   : > { %v14327_v9 = vpop.f32.mrb[10].mxu1  ;;  %v6568_v59 = vmax.f32 %v17552_v33, %v6436_v63  ;;  %v6755_v55 = vmax.f32 %v6567_v45, %v6620_v17  ;;  %v6812_v4 = vsel %vm6799_vm3, %v6809_v34, %v6811_v21  ;;  %v6440_v13 = vsel %vm1653_vm1, %v6437_v60, %v6439_v14 }
 0x594   : > { %v6078_v29 = vpop.f32.mrb[11].mxu1  ;;  %v6570_v11 = vmax.f32 %v6339_v10, %v6440_v13  ;;  %v6622_v7 = vsel %vm6613_vm4, %v6619_v43, %v6621_v47  ;;  %v6626_v25 = vsel %vm6613_vm4, %v6623_v41, %v6625_v1  ;;  %v6808_v19 = vsel %vm6799_vm3, %v6805_v0, %v6807_v49 }
 0x595   : > { %v6941_v39 = vmax.f32 %v6755_v55, %v6806_v8  ;;  %v6756_v30 = vmax.f32 %v6568_v59, %v6622_v7  ;;  %v6296_v42 = vadd.f32 %v14326_v52, %v17546_v28  ;;  %v6294_v23 = vadd.f32 %v17546_v28, %v6075_v38 }
 0x596   : > { %v6758_v33 = vmax.f32 %v6570_v11, %v6626_v25  ;;  %v6295_v62 = vadd.f32 %v17546_v28, %v6078_v29  ;;  %v6441_v58 = vrot.slane %v17564_v18, 1 }
 0x597   : > { %6987 = vst [vmem:[#allocation6 + $0x10] sm:$0xff] %v6941_v39  ;;  %v6942_v35 = vmax.f32 %v6756_v30, %v6808_v19  ;;  %v6344_v50 = vmax.f32 %v6296_v42, 0.0  ;;  %v6342_v16 = vmax.f32 %v6294_v23, 0.0 }
 0x598   : > { %v6944_v24 = vmax.f32 %v6758_v33, %v6812_v4  ;;  %v6343_v5 = vmax.f32 %v6295_v62, 0.0 }
 0x599   : > { %v14330_v32 = vpop.f32.mrb[12].mxu1  ;;  %v7049_v26 = vld [vmem:[#allocation6] ss:$2 sm:$0xf]  ;;  %6988 = vst [vmem:[#allocation6 + $0x18] sm:$0xff] %v6942_v35  ;;  %v6631_v54 = vrot.slane %v6344_v50, 2 }
 0x59a   : > { %v6817_v40 = vrot.slane %v6344_v50, 3  ;;  %v6443_v57 = vrot.slane %v6342_v16, 1  ;;  %v6627_v45 = vrot.slane %v6342_v16, 2  ;;  %v6091_v48 = vpop.f32.mrb[13].mxu1  ;;  %7050 = vst [vmem:[#allocation3 + $0x7] sm:$0xf] %v7049_v26  ;;  %v6300_v61 = vadd.f32 %v14330_v32, %v17546_v28 }
 0x59b   : > { %6990 = vst [vmem:[#allocation6 + $0x28] sm:$0xff] %v6944_v24  ;;  %v6813_v51 = vrot.slane %v6342_v16, 3  ;;  %v6445_v22 = vrot.slane %v6343_v5, 1  ;;  %v6629_v27 = vrot.slane %v6343_v5, 2  ;;  %v6815_v2 = vrot.slane %v6343_v5, 3  ;;  %v14331_v12 = vpop.f32.mrb[14].mxu1 }
 0x59c   : > { %v6444_v37 = vsel %vm1653_vm1, %v6441_v58, %v6443_v57  ;;  %v6298_v56 = vadd.f32 %v17546_v28, %v6091_v48  ;;  %v6301_v31 = vadd.f32 %v14331_v12, %v17546_v28  ;;  %v6094_v36 = vpop.f32.mrb[15].mxu1  ;;  %v6348_v34 = vmax.f32 %v6300_v61, 0.0 }
 0x59d   : > { %v6572_v3 = vmax.f32 %v17564_v18, %v6444_v37  ;;  %v6446_v6 = vsel %vm1653_vm1, %v6443_v57, %v6445_v22  ;;  %v6630_v10 = vsel %vm6613_vm4, %v6627_v45, %v6629_v27  ;;  %v6632_v53 = vsel %vm6613_vm4, %v6629_v27, %v6631_v54 }
 0x59e   : > { %v6573_v46 = vmax.f32 %v6342_v16, %v6446_v6  ;;  %v6816_v14 = vsel %vm6799_vm3, %v6813_v51, %v6815_v2  ;;  %v6818_v41 = vsel %vm6799_vm3, %v6815_v2, %v6817_v40  ;;  %v6346_v43 = vmax.f32 %v6298_v56, 0.0 }
 0x59f   : > { %v6760_v15 = vmax.f32 %v6572_v3, %v6630_v10  ;;  %v17592_v0 = vmax.f32 %v6301_v31, 0.0  ;;  %v6299_v52 = vadd.f32 %v17546_v28, %v6094_v36  ;;  %v6639_v60 = vrot.slane %v6348_v34, 2 }
 0x5a0   : > { %v6761_v1 = vmax.f32 %v6573_v46, %v6632_v53  ;;  %v7052_v18 = vld [vmem:[#allocation6 + $0x14] ss:$2 sm:$0xf]  ;;  %v6825_v63 = vrot.slane %v6348_v34, 3  ;;  %v6455_v9 = vrot.slane %v6348_v34, 1  ;;  %v6451_v59 = vrot.slane %v6346_v43, 1 }
 0x5a1   : > { %v6946_v21 = vmax.f32 %v6760_v15, %v6816_v14  ;;  %v6641_v47 = vrot.slane %v17592_v0, 2  ;;  %7053 = vst [vmem:[#allocation3 + $0xd] sm:$0xf] %v7052_v18  ;;  %v6827_v17 = vrot.slane %v17592_v0, 3  ;;  %v6347_v8 = vmax.f32 %v6299_v52, 0.0  ;;  %v14334_v49 = vpop.f32.mrb[16].mxu1 }
 0x5a2   : > { %v6947_v38 = vmax.f32 %v6761_v1, %v6818_v41  ;;  %v6304_v4 = vadd.f32 %v14334_v49, %v17546_v28  ;;  %v6107_v13 = vpop.f32.mrb[17].mxu1  ;;  %v7055_v29 = vld [vmem:[#allocation6 + $0x28] ss:$2 sm:$0xf]  ;;  %v6457_v58 = vrot.slane %v17592_v0, 1 }
 0x5a3   : > { %6992 = vst [vmem:[#allocation6 + $0x38] sm:$0xff] %v6946_v21  ;;  %v6642_v55 = vsel %vm6613_vm4, %v6639_v60, %v6641_v47  ;;  %v6828_v11 = vsel %vm6799_vm3, %v6825_v63, %v6827_v17  ;;  %v6453_v7 = vrot.slane %v6347_v8, 1  ;;  %v6637_v25 = vrot.slane %v6347_v8, 2  ;;  %v14335_v39 = vpop.f32.mrb[18].mxu1  ;;  %7056 = vst [vmem:[#allocation3 + $0x13] sm:$0xf] %v7055_v29 }
 0x5a4   : > { %6993 = vst [vmem:[#allocation6 + $0x40] sm:$0xff] %v6947_v38  ;;  %v6823_v19 = vrot.slane %v6347_v8, 3  ;;  %v17600_v30 = vmax.f32 %v6304_v4, 0.0  ;;  %v6302_v42 = vadd.f32 %v17546_v28, %v6107_v13  ;;  %v6305_v23 = vadd.f32 %v14335_v39, %v17546_v28  ;;  %v6110_v33 = vpop.f32.mrb[19].mxu1 }
 0x5a5   : > { %v6454_v62 = vsel %vm1653_vm1, %v6451_v59, %v6453_v7  ;;  %v6456_v35 = vsel %vm1653_vm1, %v6453_v7, %v6455_v9  ;;  %v6640_v50 = vsel %vm6613_vm4, %v6637_v25, %v6639_v60  ;;  %v6303_v40 = vadd.f32 %v17546_v28, %v6110_v33 }
 0x5a6   : > { %v6826_v16 = vsel %vm6799_vm3, %v6823_v19, %v6825_v63  ;;  %v6577_v24 = vmax.f32 %v6346_v43, %v6454_v62  ;;  %v6578_v5 = vmax.f32 %v6347_v8, %v6456_v35  ;;  %v6463_v32 = vrot.slane %v17600_v30, 1  ;;  %v7137_v63 = vld [vmem:[#allocation3 + $0x1] sm:$0xff]  ;;  %v15905_v62 = vld [vmem:[%s19477_s2 + $0x248] sm:$0xff]  }
 0x5a7   : > { %v6350_v26 = vmax.f32 %v6302_v42, 0.0  ;;  %v17610_v54 = vmax.f32 %v6305_v23, 0.0  ;;  %v6647_v48 = vrot.slane %v17600_v30, 2  ;;  %v6833_v51 = vrot.slane %v17600_v30, 3 }
 0x5a8   : > { %v6765_v57 = vmax.f32 %v6577_v24, %v6640_v50  ;;  %v6766_v45 = vmax.f32 %v6578_v5, %v6642_v55  ;;  %v6351_v14 = vmax.f32 %v6303_v40, 0.0  ;;  %v7138_v34 = vld [vmem:[#allocation3 + $0x9] sm:$0xff] }
 0x5a9   : > { %v14338_v22 = vpop.f32.mrb[20].mxu1  ;;  %v6459_v27 = vrot.slane %v6350_v26, 1  ;;  %v6643_v2 = vrot.slane %v6350_v26, 2  ;;  %v6829_v12 = vrot.slane %v6350_v26, 3  ;;  %v6465_v37 = vrot.slane %v17610_v54, 1 }
 0x5aa   : > { %v6123_v61 = vpop.f32.mrb[21].mxu1  ;;  %v6951_v56 = vmax.f32 %v6765_v57, %v6826_v16  ;;  %v6952_v31 = vmax.f32 %v6766_v45, %v6828_v11  ;;  %v6649_v36 = vrot.slane %v17610_v54, 2  ;;  %v6835_v3 = vrot.slane %v17610_v54, 3 }
 0x5ab   : > { %v14339_v6 = vpop.f32.mrb[22].mxu1  ;;  %v7058_v10 = vld [vmem:[#allocation6 + $0x3c] ss:$2 sm:$0xf]  ;;  %v6460_v53 = vsel %vm1653_vm1, %v6457_v58, %v6459_v27  ;;  %v17620_v46 = vsel %vm1653_vm1, %v6463_v32, %v6465_v37  ;;  %v6308_v41 = vadd.f32 %v14338_v22, %v17546_v28  ;;  %v6461_v21 = vrot.slane %v6351_v14, 1 }
 0x5ac   : > { %v6126_v15 = vpop.f32.mrb[23].mxu1  ;;  %7059 = vst [vmem:[#allocation3 + $0x19] sm:$0xf] %v7058_v10  ;;  %6997 = vst [vmem:[#allocation6 + $0x60] sm:$0xff] %v6951_v56  ;;  %v6580_v43 = vmax.f32 %v17592_v0, %v6460_v53  ;;  %v6583_v52 = vmax.f32 %v17600_v30, %v17620_v46  ;;  %v6836_v1 = vsel %vm6799_vm3, %v6833_v51, %v6835_v3  ;;  %v6645_v60 = vrot.slane %v6351_v14, 2  ;;  %v15904_v0 = vld [vmem:[%s19477_s2 + $0x240] sm:$0xff]  }
 0x5ad   : > { %6998 = vst [vmem:[#allocation6 + $0x68] sm:$0xff] %v6952_v31  ;;  %v6650_v18 = vsel %vm6613_vm4, %v6647_v48, %v6649_v36  ;;  %v6831_v47 = vrot.slane %v6351_v14, 3  ;;  %v17632_v38 = vmax.f32 %v6308_v41, 0.0  ;;  %v6306_v17 = vadd.f32 %v17546_v28, %v6123_v61  ;;  %v15906_v61 = vld [vmem:[%s19477_s2 + $0x250] sm:$0xff]  }
 0x5ae   : > { %v7154_v8 = vpack.c.bf16 %v7138_v34, %v7137_v63  ;;  %v6309_v49 = vadd.f32 %v14339_v6, %v17546_v28  ;;  %v6307_v9 = vadd.f32 %v17546_v28, %v6126_v15  ;;  %v6462_v59 = vsel %vm1653_vm1, %v6459_v27, %v6461_v21 }
 0x5af   : > { %v6464_v55 = vsel %vm1653_vm1, %v6461_v21, %v6463_v32  ;;  %v6646_v4 = vsel %vm6613_vm4, %v6643_v2, %v6645_v60  ;;  %v6648_v13 = vsel %vm6613_vm4, %v6645_v60, %v6647_v48  ;;  %v6581_v29 = vmax.f32 %v6350_v26, %v6462_v59 }
 0x5b0   : > { %v6582_v11 = vmax.f32 %v6351_v14, %v6464_v55  ;;  %v6768_v7 = vmax.f32 %v6580_v43, %v6646_v4  ;;  %v6832_v25 = vsel %vm6799_vm3, %v6829_v12, %v6831_v47  ;;  %14381 = vmatmul.mubr.bf16.vlgmr.msra.gmra.mrb[128].mxu0 %v7154_v8  ;;  %v6834_v39 = vsel %vm6799_vm3, %v6831_v47, %v6833_v51 }
 0x5b1   : > { %v14342_v19 = vpop.f32.mrb[24].mxu1  ;;  %v6471_v30 = vrot.slane %v17632_v38, 1  ;;  %v6655_v42 = vrot.slane %v17632_v38, 2  ;;  %v6841_v23 = vrot.slane %v17632_v38, 3  ;;  %14384 = vmatprep.mubr.msk.bf16.mxu0 %vm16227_vm2, %v17488_v44  ;;  %14417 = vmatpush3.bf16.msra.mxu0 %v15904_v0  ;;  %v6769_v35 = vmax.f32 %v6581_v29, %v6648_v13 }
 0x5b2   : > { %v6139_v33 = vpop.f32.mrb[25].mxu1  ;;  %v6770_v50 = vmax.f32 %v6582_v11, %v6650_v18  ;;  %v6954_v16 = vmax.f32 %v6768_v7, %v6832_v25  ;;  %v6354_v58 = vmax.f32 %v6306_v17, 0.0  ;;  %14418 = vmatprep.subr.bf16.mxu0 %v17488_v44  ;;  %v6357_v5 = vmax.f32 %v6309_v49, 0.0  ;;  %v7139_v7 = vld [vmem:[#allocation3 + $0x11] sm:$0xff] }
 0x5b3   : > { %v14343_v24 = vpop.f32.mrb[26].mxu1  ;;  %v6355_v32 = vmax.f32 %v6307_v9, 0.0  ;;  %v6312_v26 = vadd.f32 %v14342_v19, %v17546_v28  ;;  %v17657_v40 = vadd.f32 %v17546_v28, %v6139_v33  ;;  %v6955_v48 = vmax.f32 %v6769_v35, %v6834_v39  ;;  %v7140_v9 = vld [vmem:[#allocation3 + $0x19] sm:$0xff]  ;;  %v17686_v25 = vld [vmem:[#allocation2] sm:$0xff] }
 0x5b4   : > { %v6142_v57 = vpop.f32.mrb[27].mxu1  ;;  %v7061_v45 = vld [vmem:[#allocation6 + $0x64] ss:$2 sm:$0xf]  ;;  %v6956_v51 = vmax.f32 %v6770_v50, %v6836_v1  ;;  %7000 = vst [vmem:[#allocation6 + $0x78] sm:$0xff] %v6954_v16  ;;  %v6467_v22 = vrot.slane %v6354_v58, 1  ;;  %v6313_v8 = vadd.f32 %v14343_v24, %v17546_v28 }
 0x5b5   : > { %v6651_v27 = vrot.slane %v6354_v58, 2  ;;  %7062 = vst [vmem:[#allocation3 + $0x2b] sm:$0xf] %v7061_v45  ;;  %v6837_v2 = vrot.slane %v6354_v58, 3  ;;  %v6657_v12 = vrot.slane %v6357_v5, 2  ;;  %v6843_v37 = vrot.slane %v6357_v5, 3  ;;  %14419 = vmatpush3.bf16.msra.mxu0 %v15905_v62 }
 0x5b6   : > { %7001 = vst [vmem:[#allocation6 + $0x80] sm:$0xff] %v6955_v48  ;;  %7002 = vst [vmem:[#allocation6 + $0x88] sm:$0xff] %v6956_v51  ;;  %v6469_v31 = vrot.slane %v6355_v32, 1  ;;  %v6653_v6 = vrot.slane %v6355_v32, 2  ;;  %14420 = vmatprep.subr.bf16.mxu0 %v17488_v44  ;;  %v6839_v18 = vrot.slane %v6355_v32, 3  ;;  %v6360_v38 = vmax.f32 %v6312_v26, 0.0 }
 0x5b7   : > { %v6652_v56 = vsel %vm6613_vm4, %v6649_v36, %v6651_v27  ;;  %v6838_v53 = vsel %vm6799_vm3, %v6835_v3, %v6837_v2  ;;  %v6844_v46 = vsel %vm6799_vm3, %v6841_v23, %v6843_v37  ;;  %v6658_v3 = vsel %vm6613_vm4, %v6655_v42, %v6657_v12  ;;  %v15908_v19 = vld [vmem:[%s19477_s2 + $0x260] sm:$0xff]   ;;  %v15909_v26 = vld [vmem:[%s19477_s2 + $0x268] sm:$0xff]  }
 0x5b8   : > { %v6771_v10 = vmax.f32 %v6583_v52, %v6652_v56  ;;  %v6470_v14 = vsel %vm1653_vm1, %v6467_v22, %v6469_v31  ;;  %v6472_v41 = vsel %vm1653_vm1, %v6469_v31, %v6471_v30  ;;  %v15907_v52 = vld [vmem:[%s19477_s2 + $0x258] sm:$0xff]   ;;  %v6656_v54 = vsel %vm6613_vm4, %v6653_v6, %v6655_v42 }
 0x5b9   : > { %v14346_v34 = vpop.f32.mrb[28].mxu1  ;;  %v6585_v43 = vmax.f32 %v6354_v58, %v6470_v14  ;;  %v6586_v1 = vmax.f32 %v6355_v32, %v6472_v41  ;;  %14421 = vmatpush3.bf16.msra.mxu0 %v15906_v61  ;;  %v6358_v63 = vmax.f32 %v17657_v40, 0.0  ;;  %v6842_v17 = vsel %vm6799_vm3, %v6839_v18, %v6841_v23  ;;  %v7141_v61 = vld [vmem:[#allocation3 + $0x21] sm:$0xff] }
 0x5ba   : > { %v6957_v15 = vmax.f32 %v6771_v10, %v6838_v53  ;;  %v6155_v36 = vpop.f32.mrb[29].mxu1  ;;  %14422 = vmatprep.subr.bf16.mxu0 %v17488_v44  ;;  %v6311_v49 = vadd.f32 %v17546_v28, %v6142_v57  ;;  %v6479_v13 = vrot.slane %v6360_v38, 1  ;;  %v6663_v44 = vrot.slane %v6360_v38, 2  ;;  %v15910_v53 = vld [vmem:[%s19477_s2 + $0x270] sm:$0xff]  }
 0x5bb   : > { %v17677_v21 = vpop.f32.mrb[30].mxu1  ;;  %v6773_v60 = vmax.f32 %v6585_v43, %v6656_v54  ;;  %v6774_v47 = vmax.f32 %v6586_v1, %v6658_v3  ;;  %v7064_v59 = vld [vmem:[#allocation6 + $0x78] ss:$2 sm:$0xf]  ;;  %v6849_v29 = vrot.slane %v6360_v38, 3  ;;  %v6475_v11 = vrot.slane %v6358_v63, 1 }
 0x5bc   : > { %7003 = vst [vmem:[#allocation6 + $0x90] sm:$0xff] %v6957_v15  ;;  %v17681_v0 = vpop.f32.mrb[31].mxu1  ;;  %7065 = vst [vmem:[#allocation3 + $0x31] sm:$0xf] %v7064_v59  ;;  %v17692_v39 = vmax.f32 %v6313_v8, 0.0  ;;  %v6359_v30 = vmax.f32 %v6311_v49, 0.0  ;;  %v7155_v42 = vpack.c.bf16 %v7140_v9, %v7139_v7  ;;  %v6316_v23 = vadd.f32 %v14346_v34, %v17546_v28 }
 0x5bd   : > { %v6959_v55 = vmax.f32 %v6773_v60, %v6842_v17  ;;  %v6960_v4 = vmax.f32 %v6774_v47, %v6844_v46  ;;  %14423 = vmatpush3.bf16.msra.mxu0 %v15907_v52  ;;  %v6314_v33 = vadd.f32 %v17546_v28, %v6155_v36  ;;  %v7142_v6 = vld [vmem:[#allocation3 + $0x29] sm:$0xff]  ;;  %v6317_v1 = vadd.f32 %v17677_v21, %v17546_v28 }
 0x5be   : > { %14424 = vmatprep.subr.bf16.mxu0 %v17686_v25  ;;  %v6481_v35 = vrot.slane %v17692_v39, 1  ;;  %14385 = vmatmul.mubr.bf16.gmra.mrb[132].mxu0 %v7155_v42  ;;  %v6665_v16 = vrot.slane %v17692_v39, 2  ;;  %v6851_v58 = vrot.slane %v17692_v39, 3  ;;  %v6477_v24 = vrot.slane %v6359_v30, 1  ;;  %v15911_v21 = vld [vmem:[%s19477_s2 + $0x278] sm:$0xff]  }
 0x5bf   : > { %7005 = vst [vmem:[#allocation6 + $0xa0] sm:$0xff] %v6959_v55  ;;  %7006 = vst [vmem:[#allocation6 + $0xa8] sm:$0xff] %v6960_v4  ;;  %v6661_v5 = vrot.slane %v6359_v30, 2  ;;  %14388 = vmatprep.mubr.msk.bf16.mxu0 %vm16227_vm2, %v17686_v25  ;;  %v6847_v40 = vrot.slane %v6359_v30, 3  ;;  %v17704_v57 = vmax.f32 %v6316_v23, 0.0  ;;  %v6362_v43 = vmax.f32 %v6314_v33, 0.0 }
 0x5c0   : > { %v6852_v51 = vsel %vm6799_vm3, %v6849_v29, %v6851_v58  ;;  %v6478_v22 = vsel %vm1653_vm1, %v6475_v11, %v6477_v24  ;;  %v6480_v27 = vsel %vm1653_vm1, %v6477_v24, %v6479_v13  ;;  %v6666_v56 = vsel %vm6613_vm4, %v6663_v44, %v6665_v16 }
 0x5c1   : > { %v14350_v62 = vpop.f32.mrb[32].mxu1  ;;  %14425 = vmatpush3.bf16.msra.mxu0 %v15908_v19  ;;  %v6589_v2 = vmax.f32 %v6358_v63, %v6478_v22  ;;  %v6590_v12 = vmax.f32 %v6359_v30, %v6480_v27  ;;  %v6664_v37 = vsel %vm6613_vm4, %v6661_v5, %v6663_v44  ;;  %v6850_v31 = vsel %vm6799_vm3, %v6847_v40, %v6849_v29 }
 0x5c2   : > { %v6171_v50 = vpop.f32.mrb[33].mxu1  ;;  %14426 = vmatprep.subr.bf16.mxu0 %v17686_v25  ;;  %v6487_v41 = vrot.slane %v17704_v57, 1  ;;  %v6671_v34 = vrot.slane %v17704_v57, 2  ;;  %v6857_v15 = vrot.slane %v17704_v57, 3  ;;  %v6315_v3 = vadd.f32 %v17546_v28, %v17681_v0 }
 0x5c3   : > { %v14351_v32 = vpop.f32.mrb[34].mxu1  ;;  %v7067_v48 = vld [vmem:[#allocation6 + $0x8c] ss:$2 sm:$0xf]  ;;  %v6777_v46 = vmax.f32 %v6589_v2, %v6664_v37  ;;  %v6778_v14 = vmax.f32 %v6590_v12, %v6666_v56  ;;  %v7156_v18 = vpack.c.bf16 %v7142_v6, %v7141_v61  ;;  %v6483_v47 = vrot.slane %v6362_v43, 1 }
 0x5c4   : > { %v17706_v45 = vpop.f32.mrb[35].mxu1  ;;  %7068 = vst [vmem:[#allocation3 + $0x37] sm:$0xf] %v7067_v48  ;;  %v6667_v38 = vrot.slane %v6362_v43, 2  ;;  %v6853_v63 = vrot.slane %v6362_v43, 3  ;;  %v17730_v17 = vmax.f32 %v6317_v1, 0.0  ;;  %v6320_v0 = vadd.f32 %v14350_v62, %v17546_v28 }
 0x5c5   : > { %14427 = vmatpush3.bf16.msra.mxu0 %v15909_v26  ;;  %v6963_v52 = vmax.f32 %v6777_v46, %v6850_v31  ;;  %v6964_v54 = vmax.f32 %v6778_v14, %v6852_v51  ;;  %v6363_v49 = vmax.f32 %v6315_v3, 0.0  ;;  %v6318_v9 = vadd.f32 %v17546_v28, %v6171_v50 }
 0x5c6   : > { %v7069_v10 = vld [vmem:[#allocation6 + $0xa0] ss:$2 sm:$0xf]  ;;  %14428 = vmatprep.subr.bf16.mxu0 %v17686_v25  ;;  %14389 = vmatmul.mubr.bf16.gmra.mrb[136].mxu0 %v7156_v18  ;;  %v6321_v59 = vadd.f32 %v14351_v32, %v17546_v28  ;;  %v6484_v4 = vsel %vm1653_vm1, %v6481_v35, %v6483_v47  ;;  %v6489_v13 = vrot.slane %v17730_v17, 1  ;;  %v6673_v29 = vrot.slane %v17730_v17, 2 }
 0x5c7   : > { %7070 = vst [vmem:[#allocation3 + $0x3d] sm:$0xf] %v7069_v10  ;;  %7009 = vst [vmem:[#allocation6 + $0xc0] sm:$0xff] %v6963_v52  ;;  %14392 = vmatprep.mubr.msk.bf16.mxu0 %vm16227_vm2, %v17686_v25  ;;  %v6592_v44 = vmax.f32 %v17692_v39, %v6484_v4  ;;  %v6859_v11 = vrot.slane %v17730_v17, 3  ;;  %v6485_v19 = vrot.slane %v6363_v49, 1  ;;  %v6669_v30 = vrot.slane %v6363_v49, 2 }
 0x5c8   : > { %7010 = vst [vmem:[#allocation6 + $0xc8] sm:$0xff] %v6964_v54  ;;  %v6490_v7 = vsel %vm1653_vm1, %v6487_v41, %v6489_v13  ;;  %v6855_v42 = vrot.slane %v6363_v49, 3  ;;  %v6674_v62 = vsel %vm6613_vm4, %v6671_v34, %v6673_v29  ;;  %v6368_v48 = vmax.f32 %v6320_v0, 0.0 }
 0x5c9   : > { %v17724_v36 = vpop.f32.mrb[36].mxu1  ;;  %14429 = vmatpush3.bf16.msra.mxu0 %v15910_v53  ;;  %v6595_v23 = vmax.f32 %v17704_v57, %v6490_v7  ;;  %v6860_v33 = vsel %vm6799_vm3, %v6857_v15, %v6859_v11  ;;  %v6486_v39 = vsel %vm1653_vm1, %v6483_v47, %v6485_v19  ;;  %v6488_v35 = vsel %vm1653_vm1, %v6485_v19, %v6487_v41 }
 0x5ca   : > { %v17728_v60 = vpop.f32.mrb[37].mxu1  ;;  %14430 = vmatprep.subr.bf16.mxu0 %v17686_v25  ;;  %v6670_v50 = vsel %vm6613_vm4, %v6667_v38, %v6669_v30  ;;  %v6672_v16 = vsel %vm6613_vm4, %v6669_v30, %v6671_v34  ;;  %v6593_v24 = vmax.f32 %v6362_v43, %v6486_v39  ;;  %v6594_v5 = vmax.f32 %v6363_v49, %v6488_v35 }
 0x5cb   : > { %v17732_v8 = vpop.f32.mrb[38].mxu1  ;;  %v6780_v32 = vmax.f32 %v6592_v44, %v6670_v50  ;;  %v6856_v26 = vsel %vm6799_vm3, %v6853_v63, %v6855_v42  ;;  %v6858_v57 = vsel %vm6799_vm3, %v6855_v42, %v6857_v15  ;;  %v6366_v51 = vmax.f32 %v6318_v9, 0.0 }
 0x5cc   : > { %v17740_v55 = vpop.f32.mrb[39].mxu1  ;;  %v6369_v22 = vmax.f32 %v6321_v59, 0.0  ;;  %v6781_v2 = vmax.f32 %v6593_v24, %v6672_v16  ;;  %v6782_v12 = vmax.f32 %v6594_v5, %v6674_v62  ;;  %v6319_v61 = vadd.f32 %v17546_v28, %v17706_v45 }
 0x5cd   : > { %14431 = vmatpush3.bf16.msra.mxu0 %v15911_v21  ;;  %v6966_v37 = vmax.f32 %v6780_v32, %v6856_v26  ;;  %v6495_v6 = vrot.slane %v6368_v48, 1  ;;  %v6679_v10 = vrot.slane %v6368_v48, 2  ;;  %v6865_v53 = vrot.slane %v6368_v48, 3 }
 0x5ce   : > { %14468 = vmatprep.subr.bf16.mxu0 %v17686_v25  ;;  %v6491_v46 = vrot.slane %v6366_v51, 1  ;;  %v6967_v14 = vmax.f32 %v6781_v2, %v6858_v57  ;;  %v6968_v41 = vmax.f32 %v6782_v12, %v6860_v33  ;;  %v6675_v34 = vrot.slane %v6366_v51, 2 }
 0x5cf   : > { %v7072_v31 = vld [vmem:[#allocation6 + $0xc8] ss:$2 sm:$0xf]  ;;  %7012 = vst [vmem:[#allocation6 + $0xd8] sm:$0xff] %v6966_v37  ;;  %v6861_v15 = vrot.slane %v6366_v51, 3  ;;  %v6681_v43 = vrot.slane %v6369_v22, 2  ;;  %v6324_v9 = vadd.f32 %v17724_v36, %v17546_v28  ;;  %v6322_v59 = vadd.f32 %v17546_v28, %v17728_v60 }
 0x5d0   : > { %7073 = vst [vmem:[#allocation3 + $0x4f] sm:$0xf] %v7072_v31  ;;  %v6867_v1 = vrot.slane %v6369_v22, 3  ;;  %7013 = vst [vmem:[#allocation6 + $0xe0] sm:$0xff] %v6967_v14  ;;  %v6676_v52 = vsel %vm6613_vm4, %v6673_v29, %v6675_v34  ;;  %v6367_v54 = vmax.f32 %v6319_v61, 0.0  ;;  %v6325_v4 = vadd.f32 %v17732_v8, %v17546_v28 }
 0x5d1   : > { %v17759_v58 = vpop.f32.mrb[40].mxu1  ;;  %7014 = vst [vmem:[#allocation6 + $0xe8] sm:$0xff] %v6968_v41  ;;  %v6862_v45 = vsel %vm6799_vm3, %v6859_v11, %v6861_v15  ;;  %v6783_v3 = vmax.f32 %v6595_v23, %v6676_v52  ;;  %v6682_v47 = vsel %vm6613_vm4, %v6679_v10, %v6681_v43  ;;  %v17793_v42 = vmax.f32 %v6324_v9, 0.0 }
 0x5d2   : > { %v17762_v40 = vpop.f32.mrb[41].mxu1  ;;  %v6868_v18 = vsel %vm6799_vm3, %v6865_v53, %v6867_v1  ;;  %v6493_v63 = vrot.slane %v6367_v54, 1  ;;  %v6677_v17 = vrot.slane %v6367_v54, 2  ;;  %v6863_v21 = vrot.slane %v6367_v54, 3 }
 0x5d3   : > { %v17765_v27 = vpop.f32.mrb[42].mxu1  ;;  %v6969_v0 = vmax.f32 %v6783_v3, %v6862_v45  ;;  %v6370_v60 = vmax.f32 %v6322_v59, 0.0  ;;  %v17795_v23 = vmax.f32 %v6325_v4, 0.0  ;;  %v6323_v62 = vadd.f32 %v17546_v28, %v17740_v55 }
 0x5d4   : > { %v17769_v56 = vpop.f32.mrb[43].mxu1  ;;  %v6494_v44 = vsel %vm1653_vm1, %v6491_v46, %v6493_v63  ;;  %v6496_v29 = vsel %vm1653_vm1, %v6493_v63, %v6495_v6  ;;  %v6680_v11 = vsel %vm6613_vm4, %v6677_v17, %v6679_v10  ;;  %v6866_v36 = vsel %vm6799_vm3, %v6863_v21, %v6865_v53  ;;  %v7143_v53 = vld [vmem:[#allocation3 + $0x31] sm:$0xff]  ;;  %v7145_v63 = vld [vmem:[#allocation3 + $0x41] sm:$0xff] }
 0x5d5   : > { %7015 = vst [vmem:[#allocation6 + $0xf0] sm:$0xff] %v6969_v0  ;;  %v6597_v19 = vmax.f32 %v6366_v51, %v6494_v44  ;;  %v6598_v30 = vmax.f32 %v6367_v54, %v6496_v29  ;;  %v6503_v35 = vrot.slane %v17793_v42, 1  ;;  %v6687_v50 = vrot.slane %v17793_v42, 2  ;;  %v7144_v51 = vld [vmem:[#allocation3 + $0x39] sm:$0xff] }
 0x5d6   : > { %v6873_v16 = vrot.slane %v17793_v42, 3  ;;  %v6499_v24 = vrot.slane %v6370_v60, 1  ;;  %v6505_v26 = vrot.slane %v17795_v23, 1  ;;  %v6689_v57 = vrot.slane %v17795_v23, 2 }
 0x5d7   : > { %v6785_v8 = vmax.f32 %v6597_v19, %v6680_v11  ;;  %v6786_v33 = vmax.f32 %v6598_v30, %v6682_v47  ;;  %v7075_v39 = vld [vmem:[#allocation6 + $0xdc] ss:$2 sm:$0xf]  ;;  %v6875_v48 = vrot.slane %v17795_v23, 3  ;;  %v6371_v55 = vmax.f32 %v6323_v62, 0.0  ;;  %v7146_v17 = vld [vmem:[#allocation3 + $0x49] sm:$0xff] }
 0x5d8   : > { %7076 = vst [vmem:[#allocation3 + $0x55] sm:$0xf] %v7075_v39  ;;  %v6506_v22 = vsel %vm1653_vm1, %v6503_v35, %v6505_v26  ;;  %v6690_v12 = vsel %vm6613_vm4, %v6687_v50, %v6689_v57  ;;  %v7157_v46 = vpack.c.bf16 %v7144_v51, %v7143_v53  ;;  %v6328_v14 = vadd.f32 %v17759_v58, %v17546_v28 }
 0x5d9   : > { %v17775_v38 = vpop.f32.mrb[44].mxu1  ;;  %v6971_v5 = vmax.f32 %v6785_v8, %v6866_v36  ;;  %v6972_v32 = vmax.f32 %v6786_v33, %v6868_v18  ;;  %v6876_v2 = vsel %vm6799_vm3, %v6873_v16, %v6875_v48  ;;  %v6603_v61 = vmax.f32 %v17793_v42, %v6506_v22 }
 0x5da   : > { %v17777_v49 = vpop.f32.mrb[45].mxu1  ;;  %v6501_v31 = vrot.slane %v6371_v55, 1  ;;  %v6685_v6 = vrot.slane %v6371_v55, 2  ;;  %v6871_v10 = vrot.slane %v6371_v55, 3  ;;  %v6326_v41 = vadd.f32 %v17546_v28, %v17762_v40  ;;  %14393 = vmatmul.mubr.bf16.gmra.mrb[140].mxu0 %v7157_v46 }
 0x5db   : > { %v17785_v13 = vpop.f32.mrb[46].mxu1  ;;  %7017 = vst [vmem:[#allocation6 + $0x100] sm:$0xff] %v6971_v5  ;;  %7018 = vst [vmem:[#allocation6 + $0x108] sm:$0xff] %v6972_v32  ;;  %v17817_v54 = vmax.f32 %v6328_v14, 0.0  ;;  %v6329_v58 = vadd.f32 %v17765_v27, %v17546_v28  ;;  %14396 = vmatprep.mubr.msk.bf16.mxu0 %vm16227_vm2, %v17686_v25  ;;  %v6327_v47 = vadd.f32 %v17546_v28, %v17769_v56 }
 0x5dc   : > { %v17790_v7 = vpop.f32.mrb[47].mxu1  ;;  %v7078_v37 = vld [vmem:[#allocation6 + $0xf0] ss:$2 sm:$0xf]  ;;  %v6502_v34 = vsel %vm1653_vm1, %v6499_v24, %v6501_v31  ;;  %v6504_v15 = vsel %vm1653_vm1, %v6501_v31, %v6503_v35  ;;  %v6688_v43 = vsel %vm6613_vm4, %v6685_v6, %v6687_v50  ;;  %v6874_v45 = vsel %vm6799_vm3, %v6871_v10, %v6873_v16 }
 0x5dd   : > { %7079 = vst [vmem:[#allocation3 + $0x5b] sm:$0xf] %v7078_v37  ;;  %v6601_v1 = vmax.f32 %v6370_v60, %v6502_v34  ;;  %v6602_v52 = vmax.f32 %v6371_v55, %v6504_v15  ;;  %v6374_v3 = vmax.f32 %v6326_v41, 0.0  ;;  %v6511_v0 = vrot.slane %v17817_v54, 1  ;;  %v7150_v41 = vld [vmem:[#allocation3 + $0x69] sm:$0xff] }
 0x5de   : > { %v6695_v9 = vrot.slane %v17817_v54, 2  ;;  %v17827_v11 = vmax.f32 %v6329_v58, 0.0  ;;  %v6375_v19 = vmax.f32 %v6327_v47, 0.0  ;;  %v7158_v30 = vpack.c.bf16 %v7146_v17, %v7145_v63 }
 0x5df   : > { %v6789_v40 = vmax.f32 %v6601_v1, %v6688_v43  ;;  %v6790_v18 = vmax.f32 %v6602_v52, %v6690_v12  ;;  %v6507_v59 = vrot.slane %v6374_v3, 1  ;;  %v6691_v27 = vrot.slane %v6374_v3, 2  ;;  %v7147_v6 = vld [vmem:[#allocation3 + $0x51] sm:$0xff] }
 0x5e0   : > { %v6877_v29 = vrot.slane %v6374_v3, 3  ;;  %v6881_v56 = vrot.slane %v17817_v54, 3  ;;  %v6513_v23 = vrot.slane %v17827_v11, 1  ;;  %v6697_v8 = vrot.slane %v17827_v11, 2 }
 0x5e1   : > { %v6975_v4 = vmax.f32 %v6789_v40, %v6874_v45  ;;  %v6976_v44 = vmax.f32 %v6790_v18, %v6876_v2  ;;  %v6692_v36 = vsel %vm6613_vm4, %v6689_v57, %v6691_v27  ;;  %v6883_v33 = vrot.slane %v17827_v11, 3 }
 0x5e2   : > { %v7081_v21 = vld [vmem:[#allocation6 + $0x104] ss:$2 sm:$0xf]  ;;  %v6878_v42 = vsel %vm6799_vm3, %v6875_v48, %v6877_v29  ;;  %v6791_v60 = vmax.f32 %v6603_v61, %v6692_v36  ;;  %v6509_v62 = vrot.slane %v6375_v19, 1  ;;  %v6693_v39 = vrot.slane %v6375_v19, 2  ;;  %14397 = vmatmul.mubr.bf16.gmra.mrb[144].mxu0 %v7158_v30 }
 0x5e3   : > { %7082 = vst [vmem:[#allocation3 + $0x61] sm:$0xf] %v7081_v21  ;;  %7021 = vst [vmem:[#allocation6 + $0x120] sm:$0xff] %v6975_v4  ;;  %v6879_v35 = vrot.slane %v6375_v19, 3  ;;  %v6332_v50 = vadd.f32 %v17775_v38, %v17546_v28  ;;  %v6514_v24 = vsel %vm1653_vm1, %v6511_v0, %v6513_v23  ;;  %v6884_v5 = vsel %vm6799_vm3, %v6881_v56, %v6883_v33 }
 0x5e4   : > { %7022 = vst [vmem:[#allocation6 + $0x128] sm:$0xff] %v6976_v44  ;;  %v6977_v16 = vmax.f32 %v6791_v60, %v6878_v42  ;;  %v6698_v32 = vsel %vm6613_vm4, %v6695_v9, %v6697_v8  ;;  %14400 = vmatprep.mubr.msk.bf16.mxu0 %vm16227_vm2, %v17686_v25  ;;  %v6607_v26 = vmax.f32 %v17817_v54, %v6514_v24  ;;  %v7148_v22 = vld [vmem:[#allocation3 + $0x59] sm:$0xff] }
 0x5e5   : > { %v6510_v57 = vsel %vm1653_vm1, %v6507_v59, %v6509_v62  ;;  %v6512_v48 = vsel %vm1653_vm1, %v6509_v62, %v6511_v0  ;;  %v6696_v38 = vsel %vm6613_vm4, %v6693_v39, %v6695_v9  ;;  %v6882_v2 = vsel %vm6799_vm3, %v6879_v35, %v6881_v56  ;;  %v17868_v35 = vld [vmem:[#allocation3 + $0x10] sm:$0xff]  ;;  %v17872_v24 = vld [vmem:[#allocation3 + $0x38] sm:$0xff] }
 0x5e6   : > { %7023 = vst [vmem:[#allocation6 + $0x130] sm:$0xff] %v6977_v16  ;;  %v6605_v55 = vmax.f32 %v6374_v3, %v6510_v57  ;;  %v6606_v51 = vmax.f32 %v6375_v19, %v6512_v48  ;;  %v6380_v12 = vmax.f32 %v6332_v50, 0.0  ;;  %v6330_v31 = vadd.f32 %v17546_v28, %v17777_v49  ;;  %v17870_v50 = vld [vmem:[#allocation3 + $0x30] sm:$0xff] }
 0x5e7   : > { %v6333_v10 = vadd.f32 %v17785_v13, %v17546_v28  ;;  %v6331_v53 = vadd.f32 %v17546_v28, %v17790_v7  ;;  %v7159_v46 = vpack.c.bf16 %v7148_v22, %v7147_v6  ;;  %v17886_v22 = vld [vmem:[#allocation3 + $0x50] sm:$0xff] }
 0x5e8   : > { %v6793_v37 = vmax.f32 %v6605_v55, %v6696_v38  ;;  %v6794_v61 = vmax.f32 %v6606_v51, %v6698_v32  ;;  %v6378_v43 = vmax.f32 %v6330_v31, 0.0  ;;  %v6703_v1 = vrot.slane %v6380_v12, 2  ;;  %v17876_v32 = vld [vmem:[#allocation3 + $0x8] sm:$0xff] }
 0x5e9   : > { %v6889_v52 = vrot.slane %v6380_v12, 3  ;;  %v6381_v45 = vmax.f32 %v6333_v10, 0.0  ;;  %v6379_v54 = vmax.f32 %v6331_v53, 0.0  ;;  %v8137_v57 = vpack.c.bf16 %v17868_v35, %v17876_v32  ;;  %v17896_v10 = vld [vmem:[#allocation3 + $0x58] sm:$0xff] }
 0x5ea   : > { %v7149_v14 = vld [vmem:[#allocation3 + $0x61] sm:$0xff]  ;;  %v6979_v34 = vmax.f32 %v6793_v37, %v6882_v2  ;;  %v6980_v15 = vmax.f32 %v6794_v61, %v6884_v5  ;;  %14401 = vmatmul.mubr.bf16.gmra.mrb[148].mxu0 %v7159_v46  ;;  %v6515_v49 = vrot.slane %v6378_v43, 1  ;;  %v6699_v3 = vrot.slane %v6378_v43, 2 }
 0x5eb   : > { %v6885_v58 = vrot.slane %v6378_v43, 3  ;;  %14404 = vmatprep.mubr.msk.bf16.mxu0 %vm16227_vm2, %v17686_v25  ;;  %v7160_v28 = vpack.c.bf16 %v7150_v41, %v7149_v14  ;;  %v6705_v13 = vrot.slane %v6381_v45, 2  ;;  %v6891_v7 = vrot.slane %v6381_v45, 3  ;;  %v17874_v5 = vld [vmem:[#allocation3 + $0x40] sm:$0xff]  ;;  %v17888_v2 = vld [vmem:[#allocation3 + $0x48] sm:$0xff] }
 0x5ec   : > { %7025 = vst [vmem:[#allocation6 + $0x140] sm:$0xff] %v6979_v34  ;;  %7026 = vst [vmem:[#allocation6 + $0x148] sm:$0xff] %v6980_v15  ;;  %v6517_v40 = vrot.slane %v6379_v54, 1  ;;  %v6701_v18 = vrot.slane %v6379_v54, 2  ;;  %v6516_v47 = vsel %vm1653_vm1, %v6513_v23, %v6515_v49  ;;  %v6700_v63 = vsel %vm6613_vm4, %v6697_v8, %v6699_v3  ;;  %v17892_v6 = vld [vmem:[#allocation3 + $0x60] sm:$0xff]  ;;  %v15912_v34 = vld [vmem:[%s19477_s2 + $0x2c0] sm:$0xff]  }
 0x5ed   : > { %v6886_v17 = vsel %vm6799_vm3, %v6883_v33, %v6885_v58  ;;  %v6887_v21 = vrot.slane %v6379_v54, 3  ;;  %v7084_v0 = vld [vmem:[#allocation6 + $0x12c] ss:$2 sm:$0xf]  ;;  %v6608_v9 = vmax.f32 %v17827_v11, %v6516_v47  ;;  %v6795_v59 = vmax.f32 %v6607_v26, %v6700_v63  ;;  %v7094_v41 = vld [vmem:[#allocation3] sm:$0xff] }
 0x5ee   : > { %v6706_v4 = vsel %vm6613_vm4, %v6703_v1, %v6705_v13  ;;  %v6892_v44 = vsel %vm6799_vm3, %v6889_v52, %v6891_v7  ;;  %7085 = vst [vmem:[#allocation3 + $0x73] sm:$0xf] %v7084_v0  ;;  %v6518_v27 = vsel %vm1653_vm1, %v6515_v49, %v6517_v40  ;;  %v6610_v29 = vmax.f32 %v6379_v54, %v6517_v40  ;;  %v17878_v26 = vld [vmem:[#allocation3 + $0x28] sm:$0xff]  ;;  %v15916_v49 = vld [vmem:[%s19477_s2 + $0x2e0] sm:$0xff]  }
 0x5ef   : > { %v6702_v19 = vsel %vm6613_vm4, %v6699_v3, %v6701_v18  ;;  %v6704_v30 = vsel %vm6613_vm4, %v6701_v18, %v6703_v1  ;;  %v6981_v56 = vmax.f32 %v6795_v59, %v6886_v17  ;;  %v6609_v36 = vmax.f32 %v6378_v43, %v6518_v27  ;;  %v15913_v43 = vld [vmem:[%s19477_s2 + $0x2c8] sm:$0xff]   ;;  %v15915_v54 = vld [vmem:[%s19477_s2 + $0x2d8] sm:$0xff]  }
 0x5f0   : > { %v6796_v42 = vmax.f32 %v6608_v9, %v6702_v19  ;;  %v6888_v60 = vsel %vm6799_vm3, %v6885_v58, %v6887_v21  ;;  %v6798_v23 = vmax.f32 %v6610_v29, %v6706_v4  ;;  %v6890_v11 = vsel %vm6799_vm3, %v6887_v21, %v6889_v52  ;;  %v17912_v1 = vld [vmem:[#allocation3 + $0x18] sm:$0xff]  ;;  %v15914_v52 = vld [vmem:[%s19477_s2 + $0x2d0] sm:$0xff]   ;;  %v15919_v7 = vld [vmem:[%s19477_s2 + $0x2f8] sm:$0xff]  }
 0x5f1   : > { %7027 = vst [vmem:[#allocation6 + $0x150] sm:$0xff] %v6981_v56  ;;  %v6797_v8 = vmax.f32 %v6609_v36, %v6704_v30  ;;  %v8139_v48 = vpack.c.bf16 %v17870_v50, %v17878_v26  ;;  %v8140_v55 = vpack.c.bf16 %v17874_v5, %v17872_v24  ;;  %v8141_v12 = vpack.c.bf16 %v17886_v22, %v17888_v2  ;;  %v15917_v58 = vld [vmem:[%s19477_s2 + $0x2e8] sm:$0xff]   ;;  %v7485_v59 = vld [vmem:[#allocation3 + $0xa] sm:$0xff]  ;;  %v7484_v4 = vld [vmem:[#allocation3 + $0x2] sm:$0xff] }
 0x5f2   : > { %v6982_v33 = vmax.f32 %v6796_v42, %v6888_v60  ;;  %14405 = vmatmul.mubr.bf16.gmra.mrb[152].mxu0 %v7160_v28  ;;  %v6984_v39 = vmax.f32 %v6798_v23, %v6892_v44  ;;  %v8142_v53 = vpack.c.bf16 %v17892_v6, %v17896_v10  ;;  %v7111_v15 = vpack.c.bf16 %v17876_v32, %v7094_v41  ;;  %v15918_v28 = vld [vmem:[%s19477_s2 + $0x2f0] sm:$0xff]   ;;  %v15920_v44 = vld [vmem:[%s19477_s2 + $0x300] sm:$0xff]   ;;  %v15921_v29 = vld [vmem:[%s19477_s2 + $0x308] sm:$0xff]  }
 0x5f3   : > { %v7086_v62 = vld [vmem:[#allocation6 + $0x140] ss:$2 sm:$0xf]  ;;  %14408 = vmatprep.mubr.msk.bf16.mxu0 %vm16227_vm2, %v17686_v25  ;;  %v6983_v16 = vmax.f32 %v6797_v8, %v6890_v11  ;;  %v7112_v45 = vpack.c.bf16 %v17912_v1, %v17868_v35  ;;  %v7113_v3 = vpack.c.bf16 %v17878_v26, %v17686_v25  ;;  %v7114_v13 = vpack.c.bf16 %v17872_v24, %v17870_v50  ;;  %v7486_v19 = vld [vmem:[#allocation3 + $0x12] sm:$0xff]  ;;  %v15923_v42 = vld [vmem:[%s19477_s2 + $0x318] sm:$0xff]  }
 0x5f4   : > { %7087 = vst [vmem:[#allocation3 + $0x79] sm:$0xf] %v7086_v62  ;;  %7028 = vst [vmem:[#allocation6 + $0x158] sm:$0xff] %v6982_v33  ;;  %v7115_v40 = vpack.c.bf16 %v17888_v2, %v17874_v5  ;;  %v7116_v18 = vpack.c.bf16 %v17896_v10, %v17886_v22  ;;  %v7117_v47 = vpack.c.bf16 %v17686_v25, %v17892_v6  ;;  %v7487_v30 = vld [vmem:[#allocation3 + $0x1a] sm:$0xff]  ;;  %v7488_v60 = vld [vmem:[#allocation3 + $0x22] sm:$0xff] }
 0x5f5   : > { %7030 = vst [vmem:[#allocation6 + $0x168] sm:$0x7f] %v6984_v39  ;;  %7029 = vst [vmem:[#allocation6 + $0x160] sm:$0xff] %v6983_v16  ;;  %v7151_v37 = vld [vmem:[#allocation3 + $0x71] sm:$0xff]  ;;  %v7501_v27 = vpack.c.bf16 %v7485_v59, %v7484_v4  ;;  %v15922_v56 = vld [vmem:[%s19477_s2 + $0x310] sm:$0xff]   ;;  %v7502_v36 = vpack.c.bf16 %v7487_v30, %v7486_v19 }
 0x5f6   : > { %v17965_v17 = vld [vmem:[#allocation3 + $0x70] sm:$0xff]  ;;  %v15925_v33 = vld [vmem:[%s19477_s2 + $0x328] sm:$0xff]   ;;  %v15926_v16 = vld [vmem:[%s19477_s2 + $0x330] sm:$0xff]  }
 0x5f7   : > { %v7489_v23 = vld [vmem:[#allocation3 + $0x2a] sm:$0xff]  ;;  %v7491_v62 = vld [vmem:[#allocation3 + $0x3a] sm:$0xff]  ;;  %v7490_v39 = vld [vmem:[#allocation3 + $0x32] sm:$0xff] }
 0x5f8   : > { %v15924_v11 = vld [vmem:[%s19477_s2 + $0x320] sm:$0xff]   ;;  %v7503_v8 = vpack.c.bf16 %v7489_v23, %v7488_v60  ;;  %v15946_v35 = vld [vmem:[%s19477_s2 + $0x3d0] sm:$0xff]  }
 0x5f9   : > { %v18036_v30 = vld [vmem:[#allocation2] sm:$0xff]  ;;  %v15950_v50 = vld [vmem:[%s19477_s2 + $0x3f0] sm:$0xff]  }
 0x5fb   : > { %v7089_v51 = vld [vmem:[#allocation6 + $0x154] ss:$2 sm:$0xf] }
 0x5fc   : > { %v7092_v38 = vld [vmem:[#allocation6 + $0x168] ss:$2 sm:$0xf]  ;;  %7090 = vst [vmem:[#allocation3 + $0x7f] sm:$0xf] %v7089_v51  ;;  %v7504_v51 = vpack.c.bf16 %v7491_v62, %v7490_v39 }
 0x5fd   : > { %7093 = vst [vmem:[#allocation3 + $0x85] sm:$0xf] %v7092_v38  ;;  %v7701_v39 = vld [vmem:[#allocation3 + $0x2e] sm:$0xff] }
 0x603   : > { %v7152_v61 = vld [vmem:[#allocation3 + $0x79] sm:$0xff]  ;;  %v7153_v46 = vld [vmem:[#allocation3 + $0x81] sm:$0x3] }
 0x604   : > { %v7161_v31 = vpack.c.bf16 %v7152_v61, %v7151_v37  ;;  %v7162_v14 = vpack.c.bf16 %v7153_v46, %v7153_v46  ;;  %v17963_v63 = vld [vmem:[#allocation3 + $0x78] sm:$0xff]  ;;  %v7110_v0 = vld [vmem:[#allocation3 + $0x80] sm:$0x3]  ;;  %v15927_v61 = vld [vmem:[%s19477_s2 + $0x338] sm:$0xff]  }
 0x605   : > { %v7118_v21 = vpack.c.bf16 %v17963_v63, %v17965_v17  ;;  %v7119_v9 = vpack.c.bf16 %v7110_v0, %v7110_v0  ;;  %v7492_v46 = vld [vmem:[#allocation3 + $0x42] sm:$0xff] }
 0x606   : > { %14409 = vmatmul.mubr.bf16.gmra.mrb[156].mxu0 %v7161_v31  ;;  %v7500_v59 = vld [vmem:[#allocation3 + $0x82] sm:$0x3] }
 0x607   : > { %14412 = vmatprep.mubr.msk.bf16.mxu0 %vm16227_vm2, %v17686_v25  ;;  %v7509_v4 = vpack.c.bf16 %v7500_v59, %v7500_v59  ;;  %v8135_v10 = vld [vmem:[#allocation3 + $0x80] sm:$0xff] }
 0x60e   : > { %14413 = vmatmul.mubr.bf16.gmra.mrb[160].mxu0 %v7162_v14  ;;  %v7493_v14 = vld [vmem:[#allocation3 + $0x4a] sm:$0xff] }
 0x60f   : > { %14432 = vmatprep.mubr.msk.bf16.mxu0 %vm16227_vm2, %v17686_v25 }
 0x616   : > { %14433 = vmatmul.mubr.bf16.vlgmr.msra.gmra.mrb[164].mxu0 %v7111_v15  ;;  %v7495_v15 = vld [vmem:[#allocation3 + $0x5a] sm:$0xff] }
 0x617   : > { %14469 = vmatpush3.bf16.msra.mxu0 %v15912_v34  ;;  %14436 = vmatprep.mubr.msk.bf16.mxu0 %vm16227_vm2, %v17686_v25  ;;  %v7505_v34 = vpack.c.bf16 %v7493_v14, %v7492_v46 }
 0x618   : > { %14470 = vmatprep.subr.bf16.mxu0 %v17686_v25 }
 0x61b   : > { %14471 = vmatpush3.bf16.msra.mxu0 %v15913_v43  ;;  %v7494_v43 = vld [vmem:[#allocation3 + $0x52] sm:$0xff] }
 0x61c   : > { %14472 = vmatprep.subr.bf16.mxu0 %v17686_v25 }
 0x61e   : > { %14437 = vmatmul.mubr.bf16.gmra.mrb[168].mxu0 %v7112_v45 }
 0x61f   : > { %14440 = vmatprep.mubr.msk.bf16.mxu0 %vm16227_vm2, %v17686_v25  ;;  %14473 = vmatpush3.bf16.msra.mxu0 %v15914_v52  ;;  %v7506_v52 = vpack.c.bf16 %v7495_v15, %v7494_v43  ;;  %v7702_v15 = vld [vmem:[#allocation3 + $0x36] sm:$0xff]  ;;  %v7703_v43 = vld [vmem:[#allocation3 + $0x3e] sm:$0xff] }
 0x620   : > { %14474 = vmatprep.subr.bf16.mxu0 %v17686_v25 }
 0x623   : > { %14475 = vmatpush3.bf16.msra.mxu0 %v15915_v54 }
 0x624   : > { %14476 = vmatprep.subr.bf16.mxu0 %v17686_v25 }
 0x626   : > { %14441 = vmatmul.mubr.bf16.gmra.mrb[172].mxu0 %v7113_v3  ;;  %v7497_v3 = vld [vmem:[#allocation3 + $0x6a] sm:$0xff] }
 0x627   : > { %14444 = vmatprep.mubr.msk.bf16.mxu0 %vm16227_vm2, %v17686_v25  ;;  %14477 = vmatpush3.bf16.msra.mxu0 %v15916_v49  ;;  %v7496_v49 = vld [vmem:[#allocation3 + $0x62] sm:$0xff] }
 0x628   : > { %14478 = vmatprep.subr.bf16.mxu0 %v17686_v25 }
 0x62b   : > { %14479 = vmatpush3.bf16.msra.mxu0 %v15917_v58 }
 0x62c   : > { %14480 = vmatprep.subr.bf16.mxu0 %v17686_v25 }
 0x62e   : > { %14445 = vmatmul.mubr.bf16.gmra.mrb[176].mxu0 %v7114_v13  ;;  %v7507_v13 = vpack.c.bf16 %v7497_v3, %v7496_v49 }
 0x62f   : > { %14448 = vmatprep.mubr.msk.bf16.mxu0 %vm16227_vm2, %v17686_v25  ;;  %14481 = vmatpush3.bf16.msra.mxu0 %v15918_v28 }
 0x630   : > { %14482 = vmatprep.subr.bf16.mxu0 %v17686_v25 }
 0x633   : > { %14483 = vmatpush3.bf16.msra.mxu0 %v15919_v7  ;;  %v7499_v7 = vld [vmem:[#allocation3 + $0x7a] sm:$0xff] }
 0x634   : > { %14520 = vmatprep.subr.bf16.mxu0 %v17686_v25 }
 0x636   : > { %14449 = vmatmul.mubr.bf16.gmra.mrb[180].mxu0 %v7115_v40 }
 0x637   : > { %14452 = vmatprep.mubr.msk.bf16.mxu0 %vm16227_vm2, %v17686_v25 }
 0x63e   : > { %14453 = vmatmul.mubr.bf16.gmra.mrb[184].mxu0 %v7116_v18 }
 0x63f   : > { %14456 = vmatprep.mubr.msk.bf16.mxu0 %vm16227_vm2, %v17686_v25 }
 0x646   : > { %14457 = vmatmul.mubr.bf16.gmra.mrb[188].mxu0 %v7117_v47  ;;  %v7498_v47 = vld [vmem:[#allocation3 + $0x72] sm:$0xff] }
 0x647   : > { %14460 = vmatprep.mubr.msk.bf16.mxu0 %vm16227_vm2, %v17686_v25  ;;  %v7508_v0 = vpack.c.bf16 %v7499_v7, %v7498_v47  ;;  %v7704_v7 = vld [vmem:[#allocation3 + $0x46] sm:$0xff] }
 0x64e   : > { %14461 = vmatmul.mubr.bf16.gmra.mrb[192].mxu0 %v7118_v21 }
 0x64f   : > { %14464 = vmatprep.mubr.msk.bf16.mxu0 %vm16227_vm2, %v17686_v25 }
 0x656   : > { %14465 = vmatmul.mubr.bf16.gmra.mrb[196].mxu0 %v7119_v9 }
 0x657   : > { %14484 = vmatprep.mubr.msk.bf16.mxu0 %vm16227_vm2, %v17686_v25 }
 0x65e   : > { %14485 = vmatmul.mubr.bf16.vlgmr.msra.gmra.mrb[200].mxu0 %v7501_v27  ;;  %v7696_v27 = vld [vmem:[#allocation3 + $0x6] sm:$0xff] }
 0x65f   : > { %14521 = vmatpush3.bf16.msra.mxu0 %v15920_v44  ;;  %14488 = vmatprep.mubr.msk.bf16.mxu0 %vm16227_vm2, %v17686_v25  ;;  %v7697_v44 = vld [vmem:[#allocation3 + $0xe] sm:$0xff] }
 0x660   : > { %14522 = vmatprep.subr.bf16.mxu0 %v17686_v25  ;;  %v7713_v19 = vpack.c.bf16 %v7697_v44, %v7696_v27  ;;  %v7707_v44 = vld [vmem:[#allocation3 + $0x5e] sm:$0xff]  ;;  %v7706_v27 = vld [vmem:[#allocation3 + $0x56] sm:$0xff] }
 0x663   : > { %14523 = vmatpush3.bf16.msra.mxu0 %v15921_v29  ;;  %v15928_v29 = vld [vmem:[%s19477_s2 + $0x340] sm:$0xff]  }
 0x664   : > { %14524 = vmatprep.subr.bf16.mxu0 %v17686_v25 }
 0x666   : > { %14489 = vmatmul.mubr.bf16.gmra.mrb[204].mxu0 %v7502_v36  ;;  %v7699_v36 = vld [vmem:[#allocation3 + $0x1e] sm:$0xff] }
 0x667   : > { %14492 = vmatprep.mubr.msk.bf16.mxu0 %vm16227_vm2, %v17686_v25  ;;  %14525 = vmatpush3.bf16.msra.mxu0 %v15922_v56  ;;  %v15929_v56 = vld [vmem:[%s19477_s2 + $0x348] sm:$0xff]  }
 0x668   : > { %14526 = vmatprep.subr.bf16.mxu0 %v17686_v25 }
 0x66b   : > { %14527 = vmatpush3.bf16.msra.mxu0 %v15923_v42  ;;  %v15930_v42 = vld [vmem:[%s19477_s2 + $0x350] sm:$0xff]  }
 0x66c   : > { %14528 = vmatprep.subr.bf16.mxu0 %v17686_v25 }
 0x66e   : > { %14493 = vmatmul.mubr.bf16.gmra.mrb[208].mxu0 %v7503_v8 }
 0x66f   : > { %14496 = vmatprep.mubr.msk.bf16.mxu0 %vm16227_vm2, %v17686_v25  ;;  %14529 = vmatpush3.bf16.msra.mxu0 %v15924_v11 }
 0x670   : > { %14530 = vmatprep.subr.bf16.mxu0 %v17686_v25 }
 0x673   : > { %14531 = vmatpush3.bf16.msra.mxu0 %v15925_v33  ;;  %v15931_v33 = vld [vmem:[%s19477_s2 + $0x358] sm:$0xff]  }
 0x674   : > { %14532 = vmatprep.subr.bf16.mxu0 %v17686_v25 }
 0x676   : > { %14497 = vmatmul.mubr.bf16.gmra.mrb[212].mxu0 %v7504_v51  ;;  %v15932_v51 = vld [vmem:[%s19477_s2 + $0x360] sm:$0xff]  }
 0x677   : > { %14500 = vmatprep.mubr.msk.bf16.mxu0 %vm16227_vm2, %v17686_v25  ;;  %14533 = vmatpush3.bf16.msra.mxu0 %v15926_v16  ;;  %v7700_v16 = vld [vmem:[#allocation3 + $0x26] sm:$0xff] }
 0x678   : > { %14534 = vmatprep.subr.bf16.mxu0 %v17686_v25 }
 0x67b   : > { %14535 = vmatpush3.bf16.msra.mxu0 %v15927_v61 }
 0x67c   : > { %14572 = vmatprep.subr.bf16.mxu0 %v17686_v25 }
 0x67e   : > { %14501 = vmatmul.mubr.bf16.gmra.mrb[216].mxu0 %v7505_v34 }
 0x67f   : > { %14504 = vmatprep.mubr.msk.bf16.mxu0 %vm16227_vm2, %v17686_v25 }
 0x683   : > { %v18006_v38 = vpop.f32.mrb[128].mxu0 }
 0x684   : > { %v14382_v37 = vpop.f32.mrb[129].mxu0 }
 0x685   : > { %v18013_v31 = vpop.f32.mrb[130].mxu0  ;;  %v7715_v37 = vpack.c.bf16 %v7701_v39, %v7700_v16 }
 0x686   : > { %v14383_v41 = vpop.f32.mrb[131].mxu0  ;;  %14505 = vmatmul.mubr.bf16.gmra.mrb[220].mxu0 %v7506_v52  ;;  %v15934_v52 = vld [vmem:[%s19477_s2 + $0x370] sm:$0xff]  }
 0x687   : > { %14508 = vmatprep.mubr.msk.bf16.mxu0 %vm16227_vm2, %v17686_v25  ;;  %v15933_v41 = vld [vmem:[%s19477_s2 + $0x368] sm:$0xff]  }
 0x68e   : > { %14509 = vmatmul.mubr.bf16.gmra.mrb[224].mxu0 %v7507_v13 }
 0x68f   : > { %14512 = vmatprep.mubr.msk.bf16.mxu0 %vm16227_vm2, %v17686_v25 }
 0x691   : > { %v18021_v45 = vpop.f32.mrb[132].mxu0 }
 0x692   : > { %v14386_v54 = vpop.f32.mrb[133].mxu0 }
 0x693   : > { %v7273_v58 = vpop.f32.mrb[134].mxu0  ;;  %v7716_v54 = vpack.c.bf16 %v7703_v43, %v7702_v15  ;;  %v7909_v43 = vld [vmem:[#allocation3 + $0xf] sm:$0xff] }
 0x694   : > { %v14387_v28 = vpop.f32.mrb[135].mxu0 }
 0x695   : > { %v15935_v28 = vld [vmem:[%s19477_s2 + $0x378] sm:$0xff]  }
 0x696   : > { %14513 = vmatmul.mubr.bf16.gmra.mrb[228].mxu0 %v7508_v0 }
 0x697   : > { %14516 = vmatprep.mubr.msk.bf16.mxu0 %vm16227_vm2, %v17686_v25 }
 0x699   : > { %v18025_v40 = vpop.f32.mrb[136].mxu0 }
 0x69a   : > { %v14390_v18 = vpop.f32.mrb[137].mxu0 }
 0x69b   : > { %v18027_v21 = vpop.f32.mrb[138].mxu0  ;;  %v7705_v18 = vld [vmem:[#allocation3 + $0x4e] sm:$0xff] }
 0x69c   : > { %v14391_v9 = vpop.f32.mrb[139].mxu0  ;;  %v7717_v47 = vpack.c.bf16 %v7705_v18, %v7704_v7 }
 0x69e   : > { %14517 = vmatmul.mubr.bf16.gmra.mrb[232].mxu0 %v7509_v4 }
 0x69f   : > { %14536 = vmatprep.mubr.msk.bf16.mxu0 %vm16227_vm2, %v17686_v25  ;;  %v7698_v25 = vld [vmem:[#allocation3 + $0x16] sm:$0xff] }
 0x6a0   : > { %v7714_v60 = vpack.c.bf16 %v7699_v36, %v7698_v25 }
 0x6a6   : > { %14537 = vmatmul.mubr.bf16.vlgmr.msra.gmra.mrb[236].mxu0 %v7713_v19  ;;  %v7708_v19 = vld [vmem:[#allocation3 + $0x66] sm:$0xff] }
 0x6a7   : > { %14573 = vmatpush3.bf16.msra.mxu0 %v15928_v29  ;;  %14540 = vmatprep.mubr.msk.bf16.mxu0 %vm16227_vm2, %v18036_v30  ;;  %v7718_v29 = vpack.c.bf16 %v7707_v44, %v7706_v27  ;;  %v7911_v44 = vld [vmem:[#allocation3 + $0x1f] sm:$0xff] }
 0x6a8   : > { %14574 = vmatprep.subr.bf16.mxu0 %v18036_v30 }
 0x6ab   : > { %14575 = vmatpush3.bf16.msra.mxu0 %v15929_v56  ;;  %v7709_v56 = vld [vmem:[#allocation3 + $0x6e] sm:$0xff] }
 0x6ac   : > { %14576 = vmatprep.subr.bf16.mxu0 %v18036_v30  ;;  %v7719_v25 = vpack.c.bf16 %v7709_v56, %v7708_v19  ;;  %v15938_v19 = vld [vmem:[%s19477_s2 + $0x390] sm:$0xff]  }
 0x6ad   : > { %v18048_v23 = vpop.f32.mrb[140].mxu0 }
 0x6ae   : > { %v14394_v11 = vpop.f32.mrb[141].mxu0  ;;  %14541 = vmatmul.mubr.bf16.gmra.mrb[240].mxu0 %v7714_v60 }
 0x6af   : > { %v18050_v8 = vpop.f32.mrb[142].mxu0  ;;  %14544 = vmatprep.mubr.msk.bf16.mxu0 %vm16227_vm2, %v18036_v30  ;;  %14577 = vmatpush3.bf16.msra.mxu0 %v15930_v42  ;;  %v7711_v42 = vld [vmem:[#allocation3 + $0x7e] sm:$0xff] }
 0x6b0   : > { %v14395_v62 = vpop.f32.mrb[143].mxu0  ;;  %14578 = vmatprep.subr.bf16.mxu0 %v18036_v30 }
 0x6b3   : > { %14579 = vmatpush3.bf16.msra.mxu0 %v15931_v33  ;;  %v7710_v33 = vld [vmem:[#allocation3 + $0x76] sm:$0xff] }
 0x6b4   : > { %14580 = vmatprep.subr.bf16.mxu0 %v18036_v30  ;;  %v7720_v39 = vpack.c.bf16 %v7711_v42, %v7710_v33 }
 0x6b5   : > { %v18062_v61 = vpop.f32.mrb[144].mxu0 }
 0x6b6   : > { %v14398_v46 = vpop.f32.mrb[145].mxu0  ;;  %14545 = vmatmul.mubr.bf16.gmra.mrb[244].mxu0 %v7715_v37 }
 0x6b7   : > { %v18064_v14 = vpop.f32.mrb[146].mxu0  ;;  %14548 = vmatprep.mubr.msk.bf16.mxu0 %vm16227_vm2, %v18036_v30  ;;  %14581 = vmatpush3.bf16.msra.mxu0 %v15932_v51  ;;  %v7712_v51 = vld [vmem:[#allocation3 + $0x86] sm:$0x3] }
 0x6b8   : > { %v14399_v34 = vpop.f32.mrb[147].mxu0  ;;  %14582 = vmatprep.subr.bf16.mxu0 %v18036_v30 }
 0x6b9   : > { %v7721_v34 = vpack.c.bf16 %v7712_v51, %v7712_v51  ;;  %v7912_v51 = vld [vmem:[#allocation3 + $0x27] sm:$0xff] }
 0x6bb   : > { %14583 = vmatpush3.bf16.msra.mxu0 %v15933_v41 }
 0x6bc   : > { %14584 = vmatprep.subr.bf16.mxu0 %v18036_v30 }
 0x6bd   : > { %v18076_v49 = vpop.f32.mrb[148].mxu0 }
 0x6be   : > { %14549 = vmatmul.mubr.bf16.gmra.mrb[248].mxu0 %v7716_v54  ;;  %v14402_v3 = vpop.f32.mrb[149].mxu0 }
 0x6bf   : > { %v18078_v58 = vpop.f32.mrb[150].mxu0  ;;  %14552 = vmatprep.mubr.msk.bf16.mxu0 %vm16227_vm2, %v18036_v30  ;;  %14585 = vmatpush3.bf16.msra.mxu0 %v15934_v52 }
 0x6c0   : > { %v14403_v13 = vpop.f32.mrb[151].mxu0  ;;  %14586 = vmatprep.subr.bf16.mxu0 %v18036_v30 }
 0x6c1   : > { %v15936_v13 = vld [vmem:[%s19477_s2 + $0x380] sm:$0xff]  }
 0x6c3   : > { %14587 = vmatpush3.bf16.msra.mxu0 %v15935_v28  ;;  %v7908_v28 = vld [vmem:[#allocation3 + $0x7] sm:$0xff] }
 0x6c4   : > { %14624 = vmatprep.subr.bf16.mxu0 %v18036_v30 }
 0x6c5   : > { %v18087_v0 = vpop.f32.mrb[152].mxu0 }
 0x6c6   : > { %14553 = vmatmul.mubr.bf16.gmra.mrb[252].mxu0 %v7717_v47  ;;  %v14406_v9 = vpop.f32.mrb[153].mxu0  ;;  %v7925_v47 = vpack.c.bf16 %v7909_v43, %v7908_v28  ;;  %v7914_v43 = vld [vmem:[#allocation3 + $0x37] sm:$0xff] }
 0x6c7   : > { %v18089_v59 = vpop.f32.mrb[154].mxu0  ;;  %14556 = vmatprep.mubr.msk.bf16.mxu0 %vm16227_vm2, %v18036_v30 }
 0x6c8   : > { %v14407_v4 = vpop.f32.mrb[155].mxu0 }
 0x6c9   : > { %v7910_v4 = vld [vmem:[#allocation3 + $0x17] sm:$0xff] }
 0x6ce   : > { %14557 = vmatmul.mubr.bf16.gmra.mrb[0].mxu0 %v7718_v29 }
 0x6cf   : > { %14560 = vmatprep.mubr.msk.bf16.mxu0 %vm16227_vm2, %v18036_v30 }
 0x6d6   : > { %14561 = vmatmul.mubr.bf16.gmra.mrb[4].mxu0 %v7719_v25  ;;  %v7926_v25 = vpack.c.bf16 %v7911_v44, %v7910_v4  ;;  %v7916_v4 = vld [vmem:[#allocation3 + $0x47] sm:$0xff]  ;;  %v7917_v44 = vld [vmem:[#allocation3 + $0x4f] sm:$0xff] }
 0x6d7   : > { %14564 = vmatprep.mubr.msk.bf16.mxu0 %vm16227_vm2, %v18036_v30 }
 0x6d9   : > { %v18097_v36 = vpop.f32.mrb[156].mxu0 }
 0x6da   : > { %v14410_v60 = vpop.f32.mrb[157].mxu0 }
 0x6db   : > { %v18099_v11 = vpop.f32.mrb[158].mxu0  ;;  %v7913_v60 = vld [vmem:[#allocation3 + $0x2f] sm:$0xff] }
 0x6dc   : > { %v14411_v62 = vpop.f32.mrb[159].mxu0 }
 0x6de   : > { %14565 = vmatmul.mubr.bf16.gmra.mrb[8].mxu0 %v7720_v39 }
 0x6df   : > { %14568 = vmatprep.mubr.msk.bf16.mxu0 %vm16227_vm2, %v18036_v30 }
 0x6e1   : > { %v18103_v16 = vpop.f32.mrb[160].mxu0 }
 0x6e2   : > { %v14414_v37 = vpop.f32.mrb[161].mxu0 }
 0x6e3   : > { %v7329_v46 = vpop.f32.mrb[162].mxu0  ;;  %v15940_v37 = vld [vmem:[%s19477_s2 + $0x3a0] sm:$0xff]  }
 0x6e4   : > { %v14415_v41 = vpop.f32.mrb[163].mxu0 }
 0x6e6   : > { %14569 = vmatmul.mubr.bf16.gmra.mrb[12].mxu0 %v7721_v34  ;;  %v7927_v34 = vpack.c.bf16 %v7913_v60, %v7912_v51 }
 0x6e7   : > { %14588 = vmatprep.mubr.msk.bf16.mxu0 %vm16227_vm2, %v18036_v30 }
 0x6e9   : > { %v7414_v15 = vpop.f32.mrb[164].mxu0 }
 0x6ea   : > { %v18108_v52 = vadd.f32 %v7414_v15, %v18006_v38  ;;  %v14434_v54 = vpop.f32.mrb[165].mxu0  ;;  %v15937_v38 = vld [vmem:[%s19477_s2 + $0x388] sm:$0xff]  }
 0x6eb   : > { %v7417_v3 = vpop.f32.mrb[166].mxu0  ;;  %v7915_v54 = vld [vmem:[#allocation3 + $0x3f] sm:$0xff] }
 0x6ec   : > { %v18114_v7 = vadd.f32 %v7417_v3, %v18013_v31  ;;  %v14435_v18 = vpop.f32.mrb[167].mxu0 }
 0x6ee   : > { %14589 = vmatmul.mubr.bf16.vlgmr.msra.gmra.mrb[16].mxu0 %v7925_v47 }
 0x6ef   : > { %14625 = vmatpush3.bf16.msra.mxu0 %v15936_v13  ;;  %14592 = vmatprep.mubr.msk.bf16.mxu0 %vm16227_vm2, %v18036_v30  ;;  %v15942_v13 = vld [vmem:[%s19477_s2 + $0x3b0] sm:$0xff]  }
 0x6f0   : > { %14626 = vmatprep.subr.bf16.mxu0 %v18036_v30 }
 0x6f1   : > { %v7422_v9 = vpop.f32.mrb[168].mxu0 }
 0x6f2   : > { %v18123_v27 = vadd.f32 %v7422_v9, %v18021_v45  ;;  %v14438_v31 = vpop.f32.mrb[169].mxu0  ;;  %v15939_v45 = vld [vmem:[%s19477_s2 + $0x398] sm:$0xff]  }
 0x6f3   : > { %v7425_v29 = vpop.f32.mrb[170].mxu0  ;;  %14627 = vmatpush3.bf16.msra.mxu0 %v15937_v38  ;;  %v7928_v38 = vpack.c.bf16 %v7915_v54, %v7914_v43 }
 0x6f4   : > { %v14439_v56 = vpop.f32.mrb[171].mxu0  ;;  %14628 = vmatprep.subr.bf16.mxu0 %v18036_v30 }
 0x6f6   : > { %14593 = vmatmul.mubr.bf16.gmra.mrb[20].mxu0 %v7926_v25  ;;  %v7929_v25 = vpack.c.bf16 %v7917_v44, %v7916_v4 }
 0x6f7   : > { %14596 = vmatprep.mubr.msk.bf16.mxu0 %vm16227_vm2, %v18036_v30  ;;  %14629 = vmatpush3.bf16.msra.mxu0 %v15938_v19 }
 0x6f8   : > { %14630 = vmatprep.subr.bf16.mxu0 %v18036_v30 }
 0x6f9   : > { %v7430_v42 = vpop.f32.mrb[172].mxu0 }
 0x6fa   : > { %v18136_v33 = vadd.f32 %v7430_v42, %v18025_v40  ;;  %v14442_v62 = vpop.f32.mrb[173].mxu0  ;;  %v15941_v40 = vld [vmem:[%s19477_s2 + $0x3a8] sm:$0xff]  }
 0x6fb   : > { %v7433_v39 = vpop.f32.mrb[174].mxu0  ;;  %14631 = vmatpush3.bf16.msra.mxu0 %v15939_v45  ;;  %v7919_v42 = vld [vmem:[#allocation3 + $0x5f] sm:$0xff] }
 0x6fc   : > { %v18142_v46 = vadd.f32 %v7433_v39, %v18027_v21  ;;  %v14443_v41 = vpop.f32.mrb[175].mxu0  ;;  %14632 = vmatprep.subr.bf16.mxu0 %v18036_v30  ;;  %v7918_v39 = vld [vmem:[#allocation3 + $0x57] sm:$0xff] }
 0x6fe   : > { %14597 = vmatmul.mubr.bf16.gmra.mrb[24].mxu0 %v7927_v34  ;;  %v7920_v34 = vld [vmem:[#allocation3 + $0x67] sm:$0xff] }
 0x6ff   : > { %14600 = vmatprep.mubr.msk.bf16.mxu0 %vm16227_vm2, %v18036_v30  ;;  %14633 = vmatpush3.bf16.msra.mxu0 %v15940_v37  ;;  %v7930_v37 = vpack.c.bf16 %v7919_v42, %v7918_v39  ;;  %v15944_v39 = vld [vmem:[%s19477_s2 + $0x3c0] sm:$0xff]  }
 0x700   : > { %14634 = vmatprep.subr.bf16.mxu0 %v18036_v30 }
 0x701   : > { %v7438_v15 = vpop.f32.mrb[176].mxu0 }
 0x702   : > { %v18152_v21 = vadd.f32 %v7438_v15, %v18048_v23  ;;  %v14446_v3 = vpop.f32.mrb[177].mxu0  ;;  %v15943_v23 = vld [vmem:[%s19477_s2 + $0x3b8] sm:$0xff]  }
 0x703   : > { %v7441_v28 = vpop.f32.mrb[178].mxu0  ;;  %14635 = vmatpush3.bf16.msra.mxu0 %v15941_v40  ;;  %v7921_v40 = vld [vmem:[#allocation3 + $0x6f] sm:$0xff] }
 0x704   : > { %v18158_v18 = vadd.f32 %v7441_v28, %v18050_v8  ;;  %v14447_v47 = vpop.f32.mrb[179].mxu0  ;;  %14636 = vmatprep.subr.bf16.mxu0 %v18036_v30 }
 0x706   : > { %14601 = vmatmul.mubr.bf16.gmra.mrb[28].mxu0 %v7928_v38 }
 0x707   : > { %14604 = vmatprep.mubr.msk.bf16.mxu0 %vm16227_vm2, %v18036_v30  ;;  %14637 = vmatpush3.bf16.msra.mxu0 %v15942_v13  ;;  %v7923_v13 = vld [vmem:[#allocation3 + $0x7f] sm:$0xff] }
 0x708   : > { %14638 = vmatprep.subr.bf16.mxu0 %v18036_v30 }
 0x709   : > { %v7446_v9 = vpop.f32.mrb[180].mxu0 }
 0x70a   : > { %v18168_v8 = vadd.f32 %v7446_v9, %v18062_v61  ;;  %v14450_v31 = vpop.f32.mrb[181].mxu0 }
 0x70b   : > { %v7449_v29 = vpop.f32.mrb[182].mxu0  ;;  %14639 = vmatpush3.bf16.msra.mxu0 %v15943_v23  ;;  %v7924_v31 = vld [vmem:[#allocation3 + $0x87] sm:$0x3] }
 0x70c   : > { %v18171_v19 = vadd.f32 %v7449_v29, %v18064_v14  ;;  %v14451_v56 = vpop.f32.mrb[183].mxu0  ;;  %14676 = vmatprep.subr.bf16.mxu0 %v18036_v30 }
 0x70e   : > { %14605 = vmatmul.mubr.bf16.gmra.mrb[32].mxu0 %v7929_v25 }
 0x70f   : > { %14608 = vmatprep.mubr.msk.bf16.mxu0 %vm16227_vm2, %v18036_v30 }
 0x711   : > { %v7454_v45 = vpop.f32.mrb[184].mxu0 }
 0x712   : > { %v18177_v60 = vadd.f32 %v7454_v45, %v18076_v49  ;;  %v14454_v61 = vpop.f32.mrb[185].mxu0  ;;  %v7933_v45 = vpack.c.bf16 %v7924_v31, %v7924_v31 }
 0x713   : > { %v7457_v62 = vpop.f32.mrb[186].mxu0 }
 0x714   : > { %v18180_v51 = vadd.f32 %v7457_v62, %v18078_v58  ;;  %v14455_v14 = vpop.f32.mrb[187].mxu0  ;;  %v7931_v58 = vpack.c.bf16 %v7921_v40, %v7920_v34 }
 0x716   : > { %14609 = vmatmul.mubr.bf16.gmra.mrb[36].mxu0 %v7930_v37 }
 0x717   : > { %14612 = vmatprep.mubr.msk.bf16.mxu0 %vm16227_vm2, %v18036_v30 }
 0x719   : > { %v7462_v41 = vpop.f32.mrb[188].mxu0 }
 0x71a   : > { %v18185_v15 = vadd.f32 %v7462_v41, %v18087_v0  ;;  %v14458_v49 = vpop.f32.mrb[189].mxu0  ;;  %v7922_v0 = vld [vmem:[#allocation3 + $0x77] sm:$0xff] }
 0x71b   : > { %v7465_v43 = vpop.f32.mrb[190].mxu0 }
 0x71c   : > { %v18188_v54 = vadd.f32 %v7465_v43, %v18089_v59  ;;  %v14459_v3 = vpop.f32.mrb[191].mxu0  ;;  %v7932_v59 = vpack.c.bf16 %v7923_v13, %v7922_v0 }
 0x71e   : > { %14613 = vmatmul.mubr.bf16.gmra.mrb[40].mxu0 %v7931_v58 }
 0x71f   : > { %14616 = vmatprep.mubr.msk.bf16.mxu0 %vm16227_vm2, %v18036_v30 }
 0x721   : > { %v7470_v28 = vpop.f32.mrb[192].mxu0 }
 0x722   : > { %v18193_v47 = vadd.f32 %v7470_v28, %v18097_v36  ;;  %v14462_v38 = vpop.f32.mrb[193].mxu0 }
 0x723   : > { %v7473_v23 = vpop.f32.mrb[194].mxu0 }
 0x724   : > { %v18196_v9 = vadd.f32 %v7473_v23, %v18099_v11  ;;  %v14463_v4 = vpop.f32.mrb[195].mxu0 }
 0x726   : > { %14617 = vmatmul.mubr.bf16.gmra.mrb[44].mxu0 %v7932_v59 }
 0x727   : > { %14620 = vmatprep.mubr.msk.bf16.mxu0 %vm16227_vm2, %v18036_v30 }
 0x729   : > { %v7478_v44 = vpop.f32.mrb[196].mxu0 }
 0x72a   : > { %v18201_v29 = vadd.f32 %v7478_v44, %v18103_v16  ;;  %v14466_v56 = vpop.f32.mrb[197].mxu0 }
 0x72b   : > { %v7481_v36 = vpop.f32.mrb[198].mxu0 }
 0x72c   : > { %v14467_v25 = vpop.f32.mrb[199].mxu0 }
 0x72e   : > { %14621 = vmatmul.mubr.bf16.gmra.mrb[48].mxu0 %v7933_v45 }
 0x72f   : > { %14640 = vmatprep.mubr.msk.bf16.mxu0 %vm16227_vm2, %v18036_v30 }
 0x731   : > { %v7609_v11 = vpop.f32.mrb[200].mxu0 }
 0x732   : > { %v18206_v42 = vadd.f32 %v7609_v11, %v18108_v52  ;;  %v14486_v61 = vpop.f32.mrb[201].mxu0  ;;  %v15945_v52 = vld [vmem:[%s19477_s2 + $0x3c8] sm:$0xff]  }
 0x733   : > { %v7612_v62 = vpop.f32.mrb[202].mxu0  ;;  %v8144_v61 = vpack.c.bf16 %v8135_v10, %v17963_v63 }
 0x734   : > { %v18212_v16 = vadd.f32 %v7612_v62, %v18114_v7  ;;  %v14487_v14 = vpop.f32.mrb[203].mxu0  ;;  %v8136_v62 = vld [vmem:[#allocation3 + $0x88] sm:$0x3] }
 0x736   : > { %14641 = vmatmul.mubr.bf16.vlgmr.msra.gmra.mrb[52].mxu0 %v8137_v57  ;;  %v8138_v57 = vpack.c.bf16 %v18036_v30, %v17912_v1  ;;  %v15948_v1 = vld [vmem:[%s19477_s2 + $0x3e0] sm:$0xff]  }
 0x737   : > { %14677 = vmatpush3.bf16.msra.mxu0 %v15944_v39  ;;  %14644 = vmatprep.mubr.msk.bf16.mxu0 %vm16227_vm2, %v18036_v30 }
 0x738   : > { %14678 = vmatprep.subr.bf16.mxu0 %v18036_v30 }
 0x739   : > { %v7617_v37 = vpop.f32.mrb[204].mxu0 }
 0x73a   : > { %v18224_v41 = vadd.f32 %v7617_v37, %v18123_v27  ;;  %v14490_v7 = vpop.f32.mrb[205].mxu0  ;;  %v15947_v27 = vld [vmem:[%s19477_s2 + $0x3d8] sm:$0xff]   ;;  %v8145_v37 = vpack.c.bf16 %v8136_v62, %v8136_v62 }
 0x73b   : > { %v7620_v34 = vpop.f32.mrb[206].mxu0  ;;  %14679 = vmatpush3.bf16.msra.mxu0 %v15945_v52  ;;  %v8333_v7 = vld [vmem:[#allocation3 + $0x14] sm:$0xff]  ;;  %v8340_v62 = vld [vmem:[#allocation3 + $0x4c] sm:$0xff] }
 0x73c   : > { %v14491_v32 = vpop.f32.mrb[207].mxu0  ;;  %14680 = vmatprep.subr.bf16.mxu0 %v18036_v30 }
 0x73d   : > { %v8332_v32 = vld [vmem:[#allocation3 + $0xc] sm:$0xff] }
 0x73e   : > { %14645 = vmatmul.mubr.bf16.gmra.mrb[56].mxu0 %v8138_v57 }
 0x73f   : > { %14648 = vmatprep.mubr.msk.bf16.mxu0 %vm16227_vm2, %v18036_v30  ;;  %14681 = vmatpush3.bf16.msra.mxu0 %v15946_v35 }
 0x740   : > { %14682 = vmatprep.subr.bf16.mxu0 %v18036_v30 }
 0x741   : > { %v7625_v40 = vpop.f32.mrb[208].mxu0 }
 0x742   : > { %v18239_v49 = vadd.f32 %v7625_v40, %v18136_v33  ;;  %v14494_v43 = vpop.f32.mrb[209].mxu0  ;;  %v15949_v33 = vld [vmem:[%s19477_s2 + $0x3e8] sm:$0xff]   ;;  %v8349_v40 = vpack.c.bf16 %v8333_v7, %v8332_v32  ;;  %v8343_v7 = vld [vmem:[#allocation3 + $0x64] sm:$0xff] }
 0x743   : > { %v7628_v3 = vpop.f32.mrb[210].mxu0  ;;  %14683 = vmatpush3.bf16.msra.mxu0 %v15947_v27 }
 0x744   : > { %v18245_v58 = vadd.f32 %v7628_v3, %v18142_v46  ;;  %v14495_v28 = vpop.f32.mrb[211].mxu0  ;;  %14684 = vmatprep.subr.bf16.mxu0 %v18036_v30  ;;  %v8335_v3 = vld [vmem:[#allocation3 + $0x24] sm:$0xff] }
 0x746   : > { %14649 = vmatmul.mubr.bf16.gmra.mrb[60].mxu0 %v8139_v48 }
 0x747   : > { %14652 = vmatprep.mubr.msk.bf16.mxu0 %vm16227_vm2, %v18036_v30  ;;  %14685 = vmatpush3.bf16.msra.mxu0 %v15948_v1 }
 0x748   : > { %14686 = vmatprep.subr.bf16.mxu0 %v18036_v30 }
 0x749   : > { %v7633_v13 = vpop.f32.mrb[212].mxu0 }
 0x74a   : > { %v18258_v46 = vadd.f32 %v7633_v13, %v18152_v21  ;;  %v14498_v38 = vpop.f32.mrb[213].mxu0  ;;  %v15951_v21 = vld [vmem:[%s19477_s2 + $0x3f8] sm:$0xff]   ;;  %v15954_v13 = vld [vmem:[%s19477_s2 + $0x410] sm:$0xff]  }
 0x74b   : > { %v7636_v23 = vpop.f32.mrb[214].mxu0  ;;  %14687 = vmatpush3.bf16.msra.mxu0 %v15949_v33  ;;  %v8334_v33 = vld [vmem:[#allocation3 + $0x1c] sm:$0xff] }
 0x74c   : > { %v18264_v26 = vadd.f32 %v7636_v23, %v18158_v18  ;;  %v14499_v48 = vpop.f32.mrb[215].mxu0  ;;  %14688 = vmatprep.subr.bf16.mxu0 %v18036_v30  ;;  %v8350_v23 = vpack.c.bf16 %v8335_v3, %v8334_v33 }
 0x74d   : > { %v8337_v48 = vld [vmem:[#allocation3 + $0x34] sm:$0xff] }
 0x74e   : > { %14653 = vmatmul.mubr.bf16.gmra.mrb[64].mxu0 %v8140_v55 }
 0x74f   : > { %14656 = vmatprep.mubr.msk.bf16.mxu0 %vm16227_vm2, %v18036_v30  ;;  %14689 = vmatpush3.bf16.msra.mxu0 %v15950_v50 }
 0x750   : > { %14690 = vmatprep.subr.bf16.mxu0 %v18036_v30 }
 0x751   : > { %v7641_v0 = vpop.f32.mrb[216].mxu0 }
 0x752   : > { %v18277_v18 = vadd.f32 %v7641_v0, %v18168_v8  ;;  %v14502_v4 = vpop.f32.mrb[217].mxu0 }
 0x753   : > { %v7644_v59 = vpop.f32.mrb[218].mxu0  ;;  %14691 = vmatpush3.bf16.msra.mxu0 %v15951_v21 }
 0x754   : > { %v18280_v24 = vadd.f32 %v7644_v59, %v18171_v19  ;;  %v14503_v5 = vpop.f32.mrb[219].mxu0  ;;  %14728 = vmatprep.subr.bf16.mxu0 %v18036_v30  ;;  %v8336_v59 = vld [vmem:[#allocation3 + $0x2c] sm:$0xff] }
 0x755   : > { %v15956_v5 = vld [vmem:[%s19477_s2 + $0x420] sm:$0xff]  }
 0x756   : > { %14657 = vmatmul.mubr.bf16.gmra.mrb[68].mxu0 %v8141_v12 }
 0x757   : > { %14660 = vmatprep.mubr.msk.bf16.mxu0 %vm16227_vm2, %v18036_v30 }
 0x759   : > { %v7649_v55 = vpop.f32.mrb[220].mxu0 }
 0x75a   : > { %v18289_v8 = vadd.f32 %v7649_v55, %v18177_v60  ;;  %v14506_v44 = vpop.f32.mrb[221].mxu0 }
 0x75b   : > { %v7652_v31 = vpop.f32.mrb[222].mxu0 }
 0x75c   : > { %v18292_v56 = vadd.f32 %v7652_v31, %v18180_v51  ;;  %v14507_v19 = vpop.f32.mrb[223].mxu0  ;;  %v8143_v51 = vpack.c.bf16 %v17965_v17, %v18036_v30  ;;  %v8351_v31 = vpack.c.bf16 %v8337_v48, %v8336_v59 }
 0x75e   : > { %14661 = vmatmul.mubr.bf16.gmra.mrb[72].mxu0 %v8142_v53 }
 0x75f   : > { %14664 = vmatprep.mubr.msk.bf16.mxu0 %vm16227_vm2, %v18036_v30 }
 0x761   : > { %v7657_v22 = vpop.f32.mrb[224].mxu0 }
 0x762   : > { %v18300_v2 = vadd.f32 %v7657_v22, %v18185_v15  ;;  %v14510_v12 = vpop.f32.mrb[225].mxu0  ;;  %v8338_v22 = vld [vmem:[#allocation3 + $0x3c] sm:$0xff] }
 0x763   : > { %v7660_v60 = vpop.f32.mrb[226].mxu0  ;;  %v8339_v12 = vld [vmem:[#allocation3 + $0x44] sm:$0xff] }
 0x764   : > { %v18303_v36 = vadd.f32 %v7660_v60, %v18188_v54  ;;  %v14511_v25 = vpop.f32.mrb[227].mxu0 }
 0x766   : > { %14665 = vmatmul.mubr.bf16.gmra.mrb[76].mxu0 %v8143_v51  ;;  %v15958_v51 = vld [vmem:[%s19477_s2 + $0x430] sm:$0xff]  }
 0x767   : > { %14668 = vmatprep.mubr.msk.bf16.mxu0 %vm16227_vm2, %v18036_v30 }
 0x769   : > { %v7665_v6 = vpop.f32.mrb[228].mxu0 }
 0x76a   : > { %v18310_v53 = vadd.f32 %v7665_v6, %v18193_v47  ;;  %v14514_v15 = vpop.f32.mrb[229].mxu0 }
 0x76b   : > { %v7668_v45 = vpop.f32.mrb[230].mxu0  ;;  %v8352_v15 = vpack.c.bf16 %v8339_v12, %v8338_v22 }
 0x76c   : > { %v18313_v11 = vadd.f32 %v7668_v45, %v18196_v9  ;;  %v14515_v54 = vpop.f32.mrb[231].mxu0 }
 0x76d   : > { %v8341_v54 = vld [vmem:[#allocation3 + $0x54] sm:$0xff] }
 0x76e   : > { %14669 = vmatmul.mubr.bf16.gmra.mrb[80].mxu0 %v8144_v61 }
 0x76f   : > { %14672 = vmatprep.mubr.msk.bf16.mxu0 %vm16227_vm2, %v18036_v30 }
 0x771   : > { %v7673_v17 = vpop.f32.mrb[232].mxu0 }
 0x772   : > { %v18319_v39 = vadd.f32 %v7673_v17, %v18201_v29  ;;  %v14518_v14 = vpop.f32.mrb[233].mxu0  ;;  %v15952_v29 = vld [vmem:[%s19477_s2 + $0x400] sm:$0xff]  }
 0x773   : > { %v7676_v47 = vpop.f32.mrb[234].mxu0 }
 0x774   : > { %v14519_v52 = vpop.f32.mrb[235].mxu0 }
 0x775   : > { %v8353_v52 = vpack.c.bf16 %v8341_v54, %v8340_v62 }
 0x776   : > { %14673 = vmatmul.mubr.bf16.gmra.mrb[84].mxu0 %v8145_v37 }
 0x777   : > { %14692 = vmatprep.mubr.msk.bf16.mxu0 %vm16227_vm2, %v18036_v30 }
 0x779   : > { %v7821_v9 = vpop.f32.mrb[236].mxu0 }
 0x77a   : > { %v18324_v63 = vadd.f32 %v7821_v9, %v18206_v42  ;;  %v14538_v34 = vpop.f32.mrb[237].mxu0  ;;  %v15953_v42 = vld [vmem:[%s19477_s2 + $0x408] sm:$0xff]  }
 0x77b   : > { %v7824_v35 = vpop.f32.mrb[238].mxu0  ;;  %v8342_v9 = vld [vmem:[#allocation3 + $0x5c] sm:$0xff] }
 0x77c   : > { %v18330_v57 = vadd.f32 %v7824_v35, %v18212_v16  ;;  %v14539_v27 = vpop.f32.mrb[239].mxu0 }
 0x77e   : > { %14693 = vmatmul.mubr.bf16.vlgmr.msra.gmra.mrb[88].mxu0 %v8349_v40  ;;  %v8345_v40 = vld [vmem:[#allocation3 + $0x74] sm:$0xff] }
 0x77f   : > { %14729 = vmatpush3.bf16.msra.mxu0 %v15952_v29  ;;  %14696 = vmatprep.mubr.msk.bf16.mxu0 %vm16227_vm2, %v18036_v30  ;;  %v8354_v29 = vpack.c.bf16 %v8343_v7, %v8342_v9 }
 0x780   : > { %14730 = vmatprep.subr.bf16.mxu0 %v18036_v30 }
 0x781   : > { %v7829_v43 = vpop.f32.mrb[240].mxu0 }
 0x782   : > { %v18339_v1 = vadd.f32 %v7829_v43, %v18224_v41  ;;  %v14542_v16 = vpop.f32.mrb[241].mxu0  ;;  %v15955_v41 = vld [vmem:[%s19477_s2 + $0x418] sm:$0xff]  }
 0x783   : > { %v7832_v28 = vpop.f32.mrb[242].mxu0  ;;  %14731 = vmatpush3.bf16.msra.mxu0 %v15953_v42 }
 0x784   : > { %v14543_v38 = vpop.f32.mrb[243].mxu0  ;;  %14732 = vmatprep.subr.bf16.mxu0 %v18036_v30 }
 0x785   : > { %v8347_v38 = vld [vmem:[#allocation3 + $0x84] sm:$0xff] }
 0x786   : > { %14697 = vmatmul.mubr.bf16.gmra.mrb[92].mxu0 %v8350_v23 }
 0x787   : > { %14700 = vmatprep.mubr.msk.bf16.mxu0 %vm16227_vm2, %v18036_v30  ;;  %14733 = vmatpush3.bf16.msra.mxu0 %v15954_v13  ;;  %v8346_v13 = vld [vmem:[#allocation3 + $0x7c] sm:$0xff] }
 0x788   : > { %14734 = vmatprep.subr.bf16.mxu0 %v18036_v30 }
 0x789   : > { %v7837_v50 = vpop.f32.mrb[244].mxu0 }
 0x78a   : > { %v18352_v21 = vadd.f32 %v7837_v50, %v18239_v49  ;;  %v14546_v0 = vpop.f32.mrb[245].mxu0  ;;  %v15957_v49 = vld [vmem:[%s19477_s2 + $0x428] sm:$0xff]  }
 0x78b   : > { %v7840_v4 = vpop.f32.mrb[246].mxu0  ;;  %14735 = vmatpush3.bf16.msra.mxu0 %v15955_v41  ;;  %v8348_v0 = vld [vmem:[#allocation3 + $0x8c] sm:$0x3] }
 0x78c   : > { %v18358_v55 = vadd.f32 %v7840_v4, %v18245_v58  ;;  %v14547_v44 = vpop.f32.mrb[247].mxu0  ;;  %14736 = vmatprep.subr.bf16.mxu0 %v18036_v30 }
 0x78e   : > { %14701 = vmatmul.mubr.bf16.gmra.mrb[96].mxu0 %v8351_v31 }
 0x78f   : > { %14704 = vmatprep.mubr.msk.bf16.mxu0 %vm16227_vm2, %v18036_v30  ;;  %14737 = vmatpush3.bf16.msra.mxu0 %v15956_v5  ;;  %v8357_v5 = vpack.c.bf16 %v8348_v0, %v8348_v0 }
 0x790   : > { %14738 = vmatprep.subr.bf16.mxu0 %v18036_v30 }
 0x791   : > { %v7845_v19 = vpop.f32.mrb[248].mxu0 }
 0x792   : > { %v18368_v58 = vadd.f32 %v7845_v19, %v18258_v46  ;;  %v14550_v60 = vpop.f32.mrb[249].mxu0  ;;  %v15959_v46 = vld [vmem:[%s19477_s2 + $0x438] sm:$0xff]  }
 0x793   : > { %v7848_v25 = vpop.f32.mrb[250].mxu0  ;;  %14739 = vmatpush3.bf16.msra.mxu0 %v15957_v49  ;;  %v8545_v49 = vld [vmem:[#allocation3 + $0x15] sm:$0xff]  ;;  %v8544_v60 = vld [vmem:[#allocation3 + $0xd] sm:$0xff] }
 0x794   : > { %v18374_v6 = vadd.f32 %v7848_v25, %v18264_v26  ;;  %v14551_v10 = vpop.f32.mrb[251].mxu0  ;;  %14740 = vmatprep.subr.bf16.mxu0 %v18036_v30  ;;  %v15960_v25 = vld [vmem:[%s19477_s2 + $0x440] sm:$0xff]  }
 0x796   : > { %14705 = vmatmul.mubr.bf16.gmra.mrb[100].mxu0 %v8352_v15 }
 0x797   : > { %14708 = vmatprep.mubr.msk.bf16.mxu0 %vm16227_vm2, %v18036_v30  ;;  %14741 = vmatpush3.bf16.msra.mxu0 %v15958_v51  ;;  %v8561_v51 = vpack.c.bf16 %v8545_v49, %v8544_v60  ;;  %v8555_v49 = vld [vmem:[#allocation3 + $0x65] sm:$0xff] }
 0x798   : > { %14742 = vmatprep.subr.bf16.mxu0 %v18036_v30 }
 0x799   : > { %v7853_v45 = vpop.f32.mrb[252].mxu0 }
 0x79a   : > { %v18384_v26 = vadd.f32 %v7853_v45, %v18277_v18  ;;  %v14554_v61 = vpop.f32.mrb[253].mxu0  ;;  %v8547_v45 = vld [vmem:[#allocation3 + $0x25] sm:$0xff] }
 0x79b   : > { %v7856_v17 = vpop.f32.mrb[254].mxu0  ;;  %14743 = vmatpush3.bf16.msra.mxu0 %v15959_v46  ;;  %v8546_v46 = vld [vmem:[#allocation3 + $0x1d] sm:$0xff] }
 0x79c   : > { %v18387_v14 = vadd.f32 %v7856_v17, %v18280_v24  ;;  %v14555_v47 = vpop.f32.mrb[255].mxu0  ;;  %14780 = vmatprep.subr.bf16.mxu0 %v18036_v30  ;;  %v15962_v17 = vld [vmem:[%s19477_s2 + $0x450] sm:$0xff]  }
 0x79d   : > { %v8562_v47 = vpack.c.bf16 %v8547_v45, %v8546_v46  ;;  %v8556_v46 = vld [vmem:[#allocation3 + $0x6d] sm:$0xff] }
 0x79e   : > { %14709 = vmatmul.mubr.bf16.gmra.mrb[104].mxu0 %v8353_v52 }
 0x79f   : > { %14712 = vmatprep.mubr.msk.bf16.mxu0 %vm16227_vm2, %v18036_v30 }
 0x7a1   : > { %v7861_v37 = vpop.f32.mrb[0].mxu0 }
 0x7a2   : > { %v18393_v18 = vadd.f32 %v7861_v37, %v18289_v8  ;;  %v14558_v34 = vpop.f32.mrb[1].mxu0  ;;  %v8344_v8 = vld [vmem:[#allocation3 + $0x6c] sm:$0xff]  ;;  %v8549_v37 = vld [vmem:[#allocation3 + $0x35] sm:$0xff] }
 0x7a3   : > { %v7864_v35 = vpop.f32.mrb[2].mxu0 }
 0x7a4   : > { %v18396_v32 = vadd.f32 %v7864_v35, %v18292_v56  ;;  %v14559_v24 = vpop.f32.mrb[3].mxu0  ;;  %v8355_v56 = vpack.c.bf16 %v8345_v40, %v8344_v8  ;;  %v8548_v35 = vld [vmem:[#allocation3 + $0x2d] sm:$0xff]  ;;  %v8551_v8 = vld [vmem:[#allocation3 + $0x45] sm:$0xff] }
 0x7a5   : > { %v15964_v24 = vld [vmem:[%s19477_s2 + $0x460] sm:$0xff]  }
 0x7a6   : > { %14713 = vmatmul.mubr.bf16.gmra.mrb[108].mxu0 %v8354_v29 }
 0x7a7   : > { %14716 = vmatprep.mubr.msk.bf16.mxu0 %vm16227_vm2, %v18036_v30 }
 0x7a9   : > { %v7869_v27 = vpop.f32.mrb[4].mxu0 }
 0x7aa   : > { %v18401_v42 = vadd.f32 %v7869_v27, %v18300_v2  ;;  %v14562_v43 = vpop.f32.mrb[5].mxu0  ;;  %v8563_v27 = vpack.c.bf16 %v8549_v37, %v8548_v35 }
 0x7ab   : > { %v7872_v3 = vpop.f32.mrb[6].mxu0 }
 0x7ac   : > { %v18404_v16 = vadd.f32 %v7872_v3, %v18303_v36  ;;  %v14563_v28 = vpop.f32.mrb[7].mxu0  ;;  %v8356_v36 = vpack.c.bf16 %v8347_v38, %v8346_v13  ;;  %v8550_v3 = vld [vmem:[#allocation3 + $0x3d] sm:$0xff] }
 0x7ad   : > { %v8564_v38 = vpack.c.bf16 %v8551_v8, %v8550_v3 }
 0x7ae   : > { %14717 = vmatmul.mubr.bf16.gmra.mrb[112].mxu0 %v8355_v56 }
 0x7af   : > { %14720 = vmatprep.mubr.msk.bf16.mxu0 %vm16227_vm2, %v18036_v30 }
 0x7b1   : > { %v7877_v33 = vpop.f32.mrb[8].mxu0 }
 0x7b2   : > { %v18409_v23 = vadd.f32 %v7877_v33, %v18310_v53  ;;  %v14566_v2 = vpop.f32.mrb[9].mxu0  ;;  %v15966_v33 = vld [vmem:[%s19477_s2 + $0x470] sm:$0xff]  }
 0x7b3   : > { %v7880_v41 = vpop.f32.mrb[10].mxu0 }
 0x7b4   : > { %v18412_v50 = vadd.f32 %v7880_v41, %v18313_v11  ;;  %v14567_v48 = vpop.f32.mrb[11].mxu0 }
 0x7b5   : > { %v8553_v48 = vld [vmem:[#allocation3 + $0x55] sm:$0xff] }
 0x7b6   : > { %14721 = vmatmul.mubr.bf16.gmra.mrb[116].mxu0 %v8356_v36 }
 0x7b7   : > { %14724 = vmatprep.mubr.msk.bf16.mxu0 %vm16227_vm2, %v18036_v30 }
 0x7b9   : > { %v7885_v4 = vpop.f32.mrb[12].mxu0 }
 0x7ba   : > { %v14570_v59 = vpop.f32.mrb[13].mxu0  ;;  %v18417_v44 = vadd.f32 %v7885_v4, %v18319_v39 }
 0x7bb   : > { %v7888_v53 = vpop.f32.mrb[14].mxu0 }
 0x7bc   : > { %v14571_v31 = vpop.f32.mrb[15].mxu0 }
 0x7be   : > { %14725 = vmatmul.mubr.bf16.gmra.mrb[120].mxu0 %v8357_v5 }
 0x7bf   : > { %14744 = vmatprep.mubr.msk.bf16.mxu0 %vm16227_vm2, %v18036_v30 }
 0x7c1   : > { %v8033_v11 = vpop.f32.mrb[16].mxu0 }
 0x7c2   : > { %v14590_v19 = vpop.f32.mrb[17].mxu0  ;;  %v18422_v22 = vadd.f32 %v8033_v11, %v18324_v63  ;;  %v15961_v63 = vld [vmem:[%s19477_s2 + $0x448] sm:$0xff]  }
 0x7c3   : > { %v8036_v12 = vpop.f32.mrb[18].mxu0  ;;  %v8554_v11 = vld [vmem:[#allocation3 + $0x5d] sm:$0xff] }
 0x7c4   : > { %v14591_v39 = vpop.f32.mrb[19].mxu0  ;;  %v18428_v10 = vadd.f32 %v8036_v12, %v18330_v57 }
 0x7c6   : > { %14745 = vmatmul.mubr.bf16.vlgmr.msra.gmra.mrb[124].mxu0 %v8561_v51  ;;  %v8557_v51 = vld [vmem:[#allocation3 + $0x75] sm:$0xff] }
 0x7c7   : > { %14781 = vmatpush3.bf16.msra.mxu0 %v15960_v25  ;;  %14748 = vmatprep.mubr.msk.bf16.mxu0 %vm16227_vm2, %v18036_v30  ;;  %v8566_v25 = vpack.c.bf16 %v8555_v49, %v8554_v11  ;;  %v8760_v11 = vld [vmem:[#allocation3 + $0x2e] sm:$0xff] }
 0x7c8   : > { %14782 = vmatprep.subr.bf16.mxu0 %v18036_v30 }
 0x7c9   : > { %v8041_v15 = vpop.f32.mrb[20].mxu0 }
 0x7ca   : > { %v14594_v54 = vpop.f32.mrb[21].mxu0  ;;  %v18437_v61 = vadd.f32 %v8041_v15, %v18339_v1  ;;  %v15963_v1 = vld [vmem:[%s19477_s2 + $0x458] sm:$0xff]  }
 0x7cb   : > { %v8044_v57 = vpop.f32.mrb[22].mxu0  ;;  %14783 = vmatpush3.bf16.msra.mxu0 %v15961_v63  ;;  %v8567_v54 = vpack.c.bf16 %v8557_v51, %v8556_v46 }
 0x7cc   : > { %v14595_v62 = vpop.f32.mrb[23].mxu0  ;;  %14784 = vmatprep.subr.bf16.mxu0 %v18036_v30 }
 0x7cd   : > { %v8559_v62 = vld [vmem:[#allocation3 + $0x85] sm:$0xff] }
 0x7ce   : > { %14749 = vmatmul.mubr.bf16.gmra.mrb[128].mxu0 %v8562_v47 }
 0x7cf   : > { %14752 = vmatprep.mubr.msk.bf16.mxu0 %vm16227_vm2, %v18036_v30  ;;  %14785 = vmatpush3.bf16.msra.mxu0 %v15962_v17  ;;  %v8558_v17 = vld [vmem:[#allocation3 + $0x7d] sm:$0xff] }
 0x7d0   : > { %14786 = vmatprep.subr.bf16.mxu0 %v18036_v30  ;;  %v8568_v37 = vpack.c.bf16 %v8559_v62, %v8558_v17 }
 0x7d1   : > { %v8049_v52 = vpop.f32.mrb[24].mxu0 }
 0x7d2   : > { %v14598_v9 = vpop.f32.mrb[25].mxu0  ;;  %v18450_v7 = vadd.f32 %v8049_v52, %v18352_v21  ;;  %v15965_v21 = vld [vmem:[%s19477_s2 + $0x468] sm:$0xff]  }
 0x7d3   : > { %v8052_v34 = vpop.f32.mrb[26].mxu0  ;;  %14787 = vmatpush3.bf16.msra.mxu0 %v15963_v1 }
 0x7d4   : > { %v14599_v29 = vpop.f32.mrb[27].mxu0  ;;  %14788 = vmatprep.subr.bf16.mxu0 %v18036_v30  ;;  %v18457_v40 = vadd.f32 %v8052_v34, %v18358_v55 }
 0x7d6   : > { %14753 = vmatmul.mubr.bf16.gmra.mrb[132].mxu0 %v8563_v27 }
 0x7d7   : > { %14756 = vmatprep.mubr.msk.bf16.mxu0 %vm16227_vm2, %v18036_v30  ;;  %14789 = vmatpush3.bf16.msra.mxu0 %v15964_v24 }
 0x7d8   : > { %14790 = vmatprep.subr.bf16.mxu0 %v18036_v30 }
 0x7d9   : > { %v8057_v43 = vpop.f32.mrb[28].mxu0 }
 0x7da   : > { %v14602_v28 = vpop.f32.mrb[29].mxu0  ;;  %v18466_v56 = vadd.f32 %v8057_v43, %v18368_v58  ;;  %v15967_v58 = vld [vmem:[%s19477_s2 + $0x478] sm:$0xff]  }
 0x7db   : > { %v8060_v55 = vpop.f32.mrb[30].mxu0  ;;  %14791 = vmatpush3.bf16.msra.mxu0 %v15965_v21  ;;  %v8756_v28 = vld [vmem:[#allocation3 + $0xe] sm:$0xff] }
 0x7dc   : > { %v14603_v13 = vpop.f32.mrb[31].mxu0  ;;  %14792 = vmatprep.subr.bf16.mxu0 %v18036_v30  ;;  %v18473_v2 = vadd.f32 %v8060_v55, %v18374_v6  ;;  %v8552_v6 = vld [vmem:[#allocation3 + $0x4d] sm:$0xff] }
 0x7dd   : > { %v8565_v5 = vpack.c.bf16 %v8553_v48, %v8552_v6  ;;  %v8761_v6 = vld [vmem:[#allocation3 + $0x36] sm:$0xff] }
 0x7de   : > { %14757 = vmatmul.mubr.bf16.gmra.mrb[136].mxu0 %v8564_v38  ;;  %v8758_v38 = vld [vmem:[#allocation3 + $0x1e] sm:$0xff] }
 0x7df   : > { %14760 = vmatprep.mubr.msk.bf16.mxu0 %vm16227_vm2, %v18036_v30  ;;  %14793 = vmatpush3.bf16.msra.mxu0 %v15966_v33 }
 0x7e0   : > { %14794 = vmatprep.subr.bf16.mxu0 %v18036_v30 }
 0x7e1   : > { %v8065_v41 = vpop.f32.mrb[32].mxu0 }
 0x7e2   : > { %v14606_v36 = vpop.f32.mrb[33].mxu0  ;;  %v18482_v0 = vadd.f32 %v8065_v41, %v18384_v26 }
 0x7e3   : > { %v8068_v4 = vpop.f32.mrb[34].mxu0  ;;  %14795 = vmatpush3.bf16.msra.mxu0 %v15967_v58  ;;  %v8759_v58 = vld [vmem:[#allocation3 + $0x26] sm:$0xff] }
 0x7e4   : > { %v14607_v59 = vpop.f32.mrb[35].mxu0  ;;  %v18485_v53 = vadd.f32 %v8068_v4, %v18387_v14  ;;  %15048 = vmatprep.subr.bf16.mxu0 %v18036_v30  ;;  %v18496_v14 = vld [vmem:[#allocation2] sm:$0xff]  ;;  %v8774_v4 = vpack.c.bf16 %v8759_v58, %v8758_v38 }
 0x7e5   : > { %v15968_v58 = vld [vmem:[%s19477_s2 + $0x4c0] sm:$0xff]  }
 0x7e6   : > { %14761 = vmatmul.mubr.bf16.gmra.mrb[140].mxu0 %v8565_v5  ;;  %14832 = vmatprep.subr.bf16.mxu1 %v15968_v58 }
 0x7e7   : > { %14764 = vmatprep.mubr.msk.bf16.mxu0 %vm16227_vm2, %v18036_v30  ;;  %14833 = vmatpush3.bf16.msra.mxu1 %v15968_v58 }
 0x7e9   : > { %v8073_v31 = vpop.f32.mrb[36].mxu0 }
 0x7ea   : > { %v14610_v19 = vpop.f32.mrb[37].mxu0  ;;  %v18491_v26 = vadd.f32 %v8073_v31, %v18393_v18 }
 0x7eb   : > { %v8076_v12 = vpop.f32.mrb[38].mxu0  ;;  %v8775_v19 = vpack.c.bf16 %v8761_v6, %v8760_v11 }
 0x7ec   : > { %v14611_v60 = vpop.f32.mrb[39].mxu0  ;;  %v18494_v39 = vadd.f32 %v8076_v12, %v18396_v32 }
 0x7ed   : > { %v8762_v60 = vld [vmem:[#allocation3 + $0x3e] sm:$0xff] }
 0x7ee   : > { %14765 = vmatmul.mubr.bf16.gmra.mrb[144].mxu0 %v8566_v25  ;;  %v8763_v25 = vld [vmem:[#allocation3 + $0x46] sm:$0xff] }
 0x7ef   : > { %14768 = vmatprep.mubr.msk.bf16.mxu0 %vm16227_vm2, %v18496_v14 }
 0x7f1   : > { %v8081_v30 = vpop.f32.mrb[40].mxu0 }
 0x7f2   : > { %v14614_v63 = vpop.f32.mrb[41].mxu0  ;;  %v18501_v15 = vadd.f32 %v8081_v30, %v18401_v42 }
 0x7f3   : > { %v8084_v18 = vpop.f32.mrb[42].mxu0 }
 0x7f4   : > { %v14615_v45 = vpop.f32.mrb[43].mxu0  ;;  %v18504_v57 = vadd.f32 %v8084_v18, %v18404_v16  ;;  %v8560_v16 = vld [vmem:[#allocation3 + $0x8d] sm:$0x3] }
 0x7f5   : > { %v8569_v29 = vpack.c.bf16 %v8560_v16, %v8560_v16  ;;  %v8765_v45 = vld [vmem:[#allocation3 + $0x56] sm:$0xff] }
 0x7f6   : > { %14769 = vmatmul.mubr.bf16.gmra.mrb[148].mxu0 %v8567_v54 }
 0x7f7   : > { %14772 = vmatprep.mubr.msk.bf16.mxu0 %vm16227_vm2, %v18496_v14 }
 0x7f9   : > { %v8089_v32 = vpop.f32.mrb[44].mxu0 }
 0x7fa   : > { %v14618_v47 = vpop.f32.mrb[45].mxu0  ;;  %v18509_v1 = vadd.f32 %v8089_v32, %v18409_v23 }
 0x7fb   : > { %v8092_v42 = vpop.f32.mrb[46].mxu0 }
 0x7fc   : > { %v14619_v52 = vpop.f32.mrb[47].mxu0  ;;  %v18512_v9 = vadd.f32 %v8092_v42, %v18412_v50  ;;  %v8757_v50 = vld [vmem:[#allocation3 + $0x16] sm:$0xff] }
 0x7fd   : > { %v8773_v33 = vpack.c.bf16 %v8757_v50, %v8756_v28  ;;  %v8766_v52 = vld [vmem:[#allocation3 + $0x5e] sm:$0xff] }
 0x7fe   : > { %14773 = vmatmul.mubr.bf16.gmra.mrb[152].mxu0 %v8568_v37  ;;  %v8767_v37 = vld [vmem:[#allocation3 + $0x66] sm:$0xff] }
 0x7ff   : > { %14776 = vmatprep.mubr.msk.bf16.mxu0 %vm16227_vm2, %v18496_v14 }
 0x801   : > { %v8097_v34 = vpop.f32.mrb[48].mxu0 }
 0x802   : > { %v18517_v35 = vadd.f32 %v8097_v34, %v18417_v44  ;;  %v14622_v24 = vpop.f32.mrb[49].mxu0 }
 0x803   : > { %v8100_v27 = vpop.f32.mrb[50].mxu0 }
 0x804   : > { %v14623_v23 = vpop.f32.mrb[51].mxu0 }
 0x805   : > { %v8769_v23 = vld [vmem:[#allocation3 + $0x76] sm:$0xff] }
 0x806   : > { %14777 = vmatmul.mubr.bf16.gmra.mrb[156].mxu0 %v8569_v29 }
 0x807   : > { %14796 = vmatprep.mubr.msk.bf16.mxu0 %vm16227_vm2, %v18496_v14 }
 0x809   : > { %v8245_v21 = vpop.f32.mrb[52].mxu0 }
 0x80a   : > { %v18522_v43 = vadd.f32 %v8245_v21, %v18422_v22  ;;  %v14642_v3 = vpop.f32.mrb[53].mxu0 }
 0x80b   : > { %v8248_v8 = vpop.f32.mrb[54].mxu0 }
 0x80c   : > { %v18525_v55 = vadd.f32 %v8248_v8, %v18428_v10  ;;  %v14643_v44 = vpop.f32.mrb[55].mxu0 }
 0x80e   : > { %14797 = vmatmul.mubr.bf16.vlgmr.msra.gmra.mrb[160].mxu0 %v8773_v33  ;;  %v8770_v33 = vld [vmem:[#allocation3 + $0x7e] sm:$0xff] }
 0x80f   : > { %14800 = vmatprep.mubr.msk.bf16.mxu0 %vm16227_vm2, %v18496_v14 }
 0x811   : > { %v8253_v13 = vpop.f32.mrb[56].mxu0 }
 0x812   : > { %v18530_v41 = vadd.f32 %v8253_v13, %v18437_v61  ;;  %v14646_v22 = vpop.f32.mrb[57].mxu0  ;;  %v8771_v13 = vld [vmem:[#allocation3 + $0x86] sm:$0xff] }
 0x813   : > { %v8256_v48 = vpop.f32.mrb[58].mxu0 }
 0x814   : > { %v14647_v36 = vpop.f32.mrb[59].mxu0 }
 0x815   : > { %v8780_v36 = vpack.c.bf16 %v8771_v13, %v8770_v33 }
 0x816   : > { %14801 = vmatmul.mubr.bf16.gmra.mrb[164].mxu0 %v8774_v4  ;;  %v8772_v4 = vld [vmem:[#allocation3 + $0x8e] sm:$0x3] }
 0x817   : > { %14804 = vmatprep.mubr.msk.bf16.mxu0 %vm16227_vm2, %v18496_v14 }
 0x819   : > { %v8261_v10 = vpop.f32.mrb[60].mxu0 }
 0x81a   : > { %v18535_v59 = vadd.f32 %v8261_v10, %v18450_v7  ;;  %v14650_v5 = vpop.f32.mrb[61].mxu0 }
 0x81b   : > { %v8264_v31 = vpop.f32.mrb[62].mxu0  ;;  %v8781_v5 = vpack.c.bf16 %v8772_v4, %v8772_v4 }
 0x81c   : > { %v18538_v49 = vadd.f32 %v8264_v31, %v18457_v40  ;;  %v14651_v61 = vpop.f32.mrb[63].mxu0  ;;  %v8776_v40 = vpack.c.bf16 %v8763_v25, %v8762_v60 }
 0x81e   : > { %14805 = vmatmul.mubr.bf16.gmra.mrb[168].mxu0 %v8775_v19 }
 0x81f   : > { %14808 = vmatprep.mubr.msk.bf16.mxu0 %vm16227_vm2, %v18496_v14 }
 0x821   : > { %v8269_v12 = vpop.f32.mrb[64].mxu0 }
 0x822   : > { %v18543_v30 = vadd.f32 %v8269_v12, %v18466_v56  ;;  %v14654_v7 = vpop.f32.mrb[65].mxu0  ;;  %v8764_v56 = vld [vmem:[#allocation3 + $0x4e] sm:$0xff] }
 0x823   : > { %v8272_v51 = vpop.f32.mrb[66].mxu0 }
 0x824   : > { %v18546_v63 = vadd.f32 %v8272_v51, %v18473_v2  ;;  %v14655_v18 = vpop.f32.mrb[67].mxu0  ;;  %v8777_v2 = vpack.c.bf16 %v8765_v45, %v8764_v56 }
 0x826   : > { %14809 = vmatmul.mubr.bf16.gmra.mrb[172].mxu0 %v8776_v40  ;;  %v15970_v40 = vld [vmem:[%s19477_s2 + $0x4d0] sm:$0xff]  }
 0x827   : > { %14812 = vmatprep.mubr.msk.bf16.mxu0 %vm16227_vm2, %v18496_v14 }
 0x829   : > { %v8277_v46 = vpop.f32.mrb[68].mxu0 }
 0x82a   : > { %v18551_v54 = vadd.f32 %v8277_v46, %v18482_v0  ;;  %v14658_v32 = vpop.f32.mrb[69].mxu0 }
 0x82b   : > { %v8280_v17 = vpop.f32.mrb[70].mxu0 }
 0x82c   : > { %v18554_v62 = vadd.f32 %v8280_v17, %v18485_v53  ;;  %v14659_v47 = vpop.f32.mrb[71].mxu0  ;;  %v8778_v53 = vpack.c.bf16 %v8767_v37, %v8766_v52 }
 0x82e   : > { %14813 = vmatmul.mubr.bf16.gmra.mrb[176].mxu0 %v8777_v2 }
 0x82f   : > { %14816 = vmatprep.mubr.msk.bf16.mxu0 %vm16227_vm2, %v18496_v14 }
 0x831   : > { %v8285_v42 = vpop.f32.mrb[72].mxu0 }
 0x832   : > { %v18559_v16 = vadd.f32 %v8285_v42, %v18491_v26  ;;  %v14662_v0 = vpop.f32.mrb[73].mxu0  ;;  %v8768_v26 = vld [vmem:[#allocation3 + $0x6e] sm:$0xff] }
 0x833   : > { %v8288_v34 = vpop.f32.mrb[74].mxu0 }
 0x834   : > { %v18562_v24 = vadd.f32 %v8288_v34, %v18494_v39  ;;  %v14663_v29 = vpop.f32.mrb[75].mxu0  ;;  %v8779_v39 = vpack.c.bf16 %v8769_v23, %v8768_v26 }
 0x836   : > { %14817 = vmatmul.mubr.bf16.gmra.mrb[180].mxu0 %v8778_v53 }
 0x837   : > { %14820 = vmatprep.mubr.msk.bf16.mxu0 %vm16227_vm2, %v18496_v14 }
 0x839   : > { %v8293_v27 = vpop.f32.mrb[76].mxu0 }
 0x83a   : > { %v18567_v21 = vadd.f32 %v8293_v27, %v18501_v15  ;;  %v14666_v50 = vpop.f32.mrb[77].mxu0 }
 0x83b   : > { %v8296_v3 = vpop.f32.mrb[78].mxu0 }
 0x83c   : > { %v18570_v8 = vadd.f32 %v8296_v3, %v18504_v57  ;;  %v14667_v28 = vpop.f32.mrb[79].mxu0 }
 0x83e   : > { %14821 = vmatmul.mubr.bf16.gmra.mrb[184].mxu0 %v8779_v39 }
 0x83f   : > { %14824 = vmatprep.mubr.msk.bf16.mxu0 %vm16227_vm2, %v18496_v14 }
 0x841   : > { %v8301_v44 = vpop.f32.mrb[80].mxu0 }
 0x842   : > { %v18575_v38 = vadd.f32 %v8301_v44, %v18509_v1  ;;  %v14670_v15 = vpop.f32.mrb[81].mxu0 }
 0x843   : > { %v8304_v22 = vpop.f32.mrb[82].mxu0 }
 0x844   : > { %v18581_v57 = vadd.f32 %v8304_v22, %v18512_v9  ;;  %v14671_v48 = vpop.f32.mrb[83].mxu0  ;;  %v15969_v9 = vld [vmem:[%s19477_s2 + $0x4c8] sm:$0xff]  }
 0x845   : > { %14834 = vmatprep.subr.bf16.mxu1 %v15969_v9 }
 0x846   : > { %14825 = vmatmul.mubr.bf16.gmra.mrb[188].mxu0 %v8780_v36  ;;  %14835 = vmatpush3.bf16.msra.mxu1 %v15969_v9 }
 0x847   : > { %14828 = vmatprep.mubr.msk.bf16.mxu0 %vm16227_vm2, %v18496_v14  ;;  %14836 = vmatprep.subr.bf16.mxu1 %v15970_v40 }
 0x849   : > { %v8309_v1 = vpop.f32.mrb[84].mxu0 }
 0x84a   : > { %v18586_v10 = vadd.f32 %v8309_v1, %v18517_v35  ;;  %v14674_v6 = vpop.f32.mrb[85].mxu0  ;;  %14837 = vmatpush3.bf16.msra.mxu1 %v15970_v40 }
 0x84b   : > { %v8312_v31 = vpop.f32.mrb[86].mxu0 }
 0x84c   : > { %v14675_v11 = vpop.f32.mrb[87].mxu0 }
 0x84d   : > { %v15974_v11 = vld [vmem:[%s19477_s2 + $0x4f0] sm:$0xff]  }
 0x84e   : > { %14829 = vmatmul.mubr.bf16.gmra.mrb[192].mxu0 %v8781_v5 }
 0x84f   : > { %15064 = vmatprep.mubr.msk.bf16.mxu0 %vm16227_vm2, %v18496_v14 }
 0x851   : > { %v8457_v61 = vpop.f32.mrb[88].mxu0 }
 0x852   : > { %v18594_v19 = vadd.f32 %v8457_v61, %v18522_v43  ;;  %v14694_v35 = vpop.f32.mrb[89].mxu0 }
 0x853   : > { %v8460_v12 = vpop.f32.mrb[90].mxu0 }
 0x854   : > { %v18597_v60 = vadd.f32 %v8460_v12, %v18525_v55  ;;  %v14695_v25 = vpop.f32.mrb[91].mxu0 }
 0x859   : > { %v8465_v7 = vpop.f32.mrb[92].mxu0 }
 0x85a   : > { %v18600_v51 = vadd.f32 %v8465_v7, %v18530_v41  ;;  %v14698_v18 = vpop.f32.mrb[93].mxu0  ;;  %v15975_v7 = vld [vmem:[%s19477_s2 + $0x4f8] sm:$0xff]  }
 0x85b   : > { %v8468_v14 = vpop.f32.mrb[94].mxu0 }
 0x85c   : > { %v14699_v46 = vpop.f32.mrb[95].mxu0 }
 0x861   : > { %v8473_v43 = vpop.f32.mrb[96].mxu0 }
 0x862   : > { %v18606_v45 = vadd.f32 %v8473_v43, %v18535_v59  ;;  %v14702_v55 = vpop.f32.mrb[97].mxu0 }
 0x863   : > { %v8476_v32 = vpop.f32.mrb[98].mxu0  ;;  %v18675_v55 = vld [vmem:[%s19477_s2 + $0x480] sm:$0xff]  }
 0x864   : > { %v18609_v17 = vadd.f32 %v8476_v32, %v18538_v49  ;;  %v14703_v41 = vpop.f32.mrb[99].mxu0  ;;  %v15971_v49 = vld [vmem:[%s19477_s2 + $0x4d8] sm:$0xff]  }
 0x865   : > { %14838 = vmatprep.subr.bf16.mxu1 %v15971_v49 }
 0x866   : > { %14839 = vmatpush3.bf16.msra.mxu1 %v15971_v49 }
 0x869   : > { %v8481_v56 = vpop.f32.mrb[100].mxu0 }
 0x86a   : > { %v18612_v47 = vadd.f32 %v8481_v56, %v18543_v30  ;;  %v14706_v2 = vpop.f32.mrb[101].mxu0 }
 0x86b   : > { %v8484_v42 = vpop.f32.mrb[102].mxu0 }
 0x86c   : > { %v18615_v52 = vadd.f32 %v8484_v42, %v18546_v63  ;;  %v14707_v37 = vpop.f32.mrb[103].mxu0  ;;  %v15972_v63 = vld [vmem:[%s19477_s2 + $0x4e0] sm:$0xff]  }
 0x86d   : > { %14840 = vmatprep.subr.bf16.mxu1 %v15972_v63 }
 0x86e   : > { %14841 = vmatpush3.bf16.msra.mxu1 %v15972_v63 }
 0x871   : > { %v8489_v0 = vpop.f32.mrb[104].mxu0 }
 0x872   : > { %v18618_v59 = vadd.f32 %v8489_v0, %v18551_v54  ;;  %v14710_v34 = vpop.f32.mrb[105].mxu0 }
 0x873   : > { %v8492_v29 = vpop.f32.mrb[106].mxu0 }
 0x874   : > { %v18624_v53 = vadd.f32 %v8492_v29, %v18554_v62  ;;  %v14711_v30 = vpop.f32.mrb[107].mxu0 }
 0x879   : > { %v8497_v27 = vpop.f32.mrb[108].mxu0 }
 0x87a   : > { %v18630_v54 = vadd.f32 %v8497_v27, %v18559_v16  ;;  %v14714_v23 = vpop.f32.mrb[109].mxu0 }
 0x87b   : > { %v8500_v50 = vpop.f32.mrb[110].mxu0 }
 0x87c   : > { %v18633_v3 = vadd.f32 %v8500_v50, %v18562_v24  ;;  %v14715_v26 = vpop.f32.mrb[111].mxu0 }
 0x881   : > { %v8505_v62 = vpop.f32.mrb[112].mxu0 }
 0x882   : > { %v18636_v28 = vadd.f32 %v8505_v62, %v18567_v21  ;;  %v14718_v39 = vpop.f32.mrb[113].mxu0  ;;  %v15973_v21 = vld [vmem:[%s19477_s2 + $0x4e8] sm:$0xff]  }
 0x883   : > { %v8508_v44 = vpop.f32.mrb[114].mxu0  ;;  %14842 = vmatprep.subr.bf16.mxu1 %v15973_v21 }
 0x884   : > { %v18639_v33 = vadd.f32 %v8508_v44, %v18570_v8  ;;  %v14719_v13 = vpop.f32.mrb[115].mxu0  ;;  %14843 = vmatpush3.bf16.msra.mxu1 %v15973_v21 }
 0x885   : > { %14844 = vmatprep.subr.bf16.mxu1 %v15974_v11 }
 0x888   : > { %14845 = vmatpush3.bf16.msra.mxu1 %v15974_v11 }
 0x889   : > { %v8513_v16 = vpop.f32.mrb[116].mxu0  ;;  %14846 = vmatprep.subr.bf16.mxu1 %v15975_v7 }
 0x88a   : > { %v18642_v15 = vadd.f32 %v8513_v16, %v18575_v38  ;;  %v14722_v58 = vpop.f32.mrb[117].mxu0 }
 0x88b   : > { %v8516_v22 = vpop.f32.mrb[118].mxu0 }
 0x88c   : > { %v18645_v24 = vadd.f32 %v8516_v22, %v18581_v57  ;;  %v14723_v48 = vpop.f32.mrb[119].mxu0  ;;  %14847 = vmatpush3.bf16.msra.mxu1 %v15975_v7 }
 0x88d   : > { %14856 = vmatprep.subr.bf16.mxu1 %v18675_v55 }
 0x891   : > { %v8521_v36 = vpop.f32.mrb[120].mxu0 }
 0x892   : > { %v8543_v8 = vadd.f32 %v8521_v36, %v18586_v10  ;;  %v14726_v4 = vpop.f32.mrb[121].mxu0  ;;  %v16159_v36 = vld [vmem:[%s19478_s3] sm:$0x1f] }
 0x893   : > { %v8524_v1 = vpop.f32.mrb[122].mxu0 }
 0x894   : > { %v14727_v6 = vpop.f32.mrb[123].mxu0 }
 0x899   : > { %v8669_v38 = vpop.f32.mrb[124].mxu0 }
 0x89a   : > { %v18652_v5 = vadd.f32 %v8669_v38, %v18594_v19  ;;  %v14746_v31 = vpop.f32.mrb[125].mxu0 }
 0x89b   : > { %v8672_v57 = vpop.f32.mrb[126].mxu0 }
 0x89c   : > { %v18658_v9 = vadd.f32 %v8672_v57, %v18597_v60  ;;  %v14747_v61 = vpop.f32.mrb[127].mxu0 }
 0x8a1   : > { %v8677_v10 = vpop.f32.mrb[128].mxu0 }
 0x8a2   : > { %v18661_v35 = vadd.f32 %v8677_v10, %v18600_v51  ;;  %v14750_v12 = vpop.f32.mrb[129].mxu0 }
 0x8a3   : > { %v8680_v25 = vpop.f32.mrb[130].mxu0 }
 0x8a4   : > { %v14751_v19 = vpop.f32.mrb[131].mxu0 }
 0x8a9   : > { %v8685_v18 = vpop.f32.mrb[132].mxu0 }
 0x8aa   : > { %v18667_v60 = vadd.f32 %v8685_v18, %v18606_v45  ;;  %v14754_v40 = vpop.f32.mrb[133].mxu0 }
 0x8ab   : > { %v8688_v14 = vpop.f32.mrb[134].mxu0 }
 0x8ac   : > { %v18670_v46 = vadd.f32 %v8688_v14, %v18609_v17  ;;  %v14755_v51 = vpop.f32.mrb[135].mxu0 }
 0x8b1   : > { %v8693_v43 = vpop.f32.mrb[136].mxu0 }
 0x8b2   : > { %v18678_v32 = vadd.f32 %v8693_v43, %v18612_v47  ;;  %v14758_v41 = vpop.f32.mrb[137].mxu0 }
 0x8b3   : > { %v8696_v56 = vpop.f32.mrb[138].mxu0 }
 0x8b4   : > { %v18682_v45 = vadd.f32 %v8696_v56, %v18615_v52  ;;  %v14759_v2 = vpop.f32.mrb[139].mxu0 }
 0x8b9   : > { %v8701_v17 = vpop.f32.mrb[140].mxu0 }
 0x8ba   : > { %v18685_v42 = vadd.f32 %v8701_v17, %v18618_v59  ;;  %v14762_v37 = vpop.f32.mrb[141].mxu0 }
 0x8bb   : > { %v8704_v0 = vpop.f32.mrb[142].mxu0 }
 0x8bc   : > { %v18688_v34 = vadd.f32 %v8704_v0, %v18624_v53  ;;  %v14763_v29 = vpop.f32.mrb[143].mxu0 }
 0x8c1   : > { %v8709_v47 = vpop.f32.mrb[144].mxu0 }
 0x8c2   : > { %v18691_v49 = vadd.f32 %v8709_v47, %v18630_v54  ;;  %v14766_v30 = vpop.f32.mrb[145].mxu0 }
 0x8c3   : > { %v8712_v27 = vpop.f32.mrb[146].mxu0 }
 0x8c4   : > { %v18694_v52 = vadd.f32 %v8712_v27, %v18633_v3  ;;  %v14767_v63 = vpop.f32.mrb[147].mxu0 }
 0x8c9   : > { %v8717_v23 = vpop.f32.mrb[148].mxu0 }
 0x8ca   : > { %v18697_v59 = vadd.f32 %v8717_v23, %v18636_v28  ;;  %v14770_v50 = vpop.f32.mrb[149].mxu0 }
 0x8cb   : > { %v8720_v26 = vpop.f32.mrb[150].mxu0 }
 0x8cc   : > { %v18700_v53 = vadd.f32 %v8720_v26, %v18639_v33  ;;  %v14771_v62 = vpop.f32.mrb[151].mxu0  ;;  %v8970_v33 = vsub.s32 2, %v19619_v20 }
 0x8d1   : > { %v8725_v39 = vpop.f32.mrb[152].mxu0 }
 0x8d2   : > { %v18703_v54 = vadd.f32 %v8725_v39, %v18642_v15  ;;  %v14774_v44 = vpop.f32.mrb[153].mxu0  ;;  %v18714_v15 = vrot.slane %v16159_v36, %v8970_v33 }
 0x8d3   : > { %v8728_v13 = vpop.f32.mrb[154].mxu0 }
 0x8d4   : > { %v18706_v3 = vadd.f32 %v8728_v13, %v18645_v24  ;;  %v14775_v16 = vpop.f32.mrb[155].mxu0 }
 0x8d9   : > { %v8733_v58 = vpop.f32.mrb[156].mxu0 }
 0x8da   : > { %v18708_v22 = vadd.f32 %v8733_v58, %v8543_v8  ;;  %v14778_v28 = vpop.f32.mrb[157].mxu0 }
 0x8db   : > { %v8736_v48 = vpop.f32.mrb[158].mxu0 }
 0x8dc   : > { %v14779_v21 = vpop.f32.mrb[159].mxu0 }
 0x8e1   : > { %v8881_v4 = vpop.f32.mrb[160].mxu0 }
 0x8e2   : > { %v8951_v1 = vadd.f32 %v8881_v4, %v18652_v5  ;;  %v14798_v24 = vpop.f32.mrb[161].mxu0 }
 0x8e3   : > { %v8884_v6 = vpop.f32.mrb[162].mxu0 }
 0x8e4   : > { %v8972_v38 = vadd.f32 %v18714_v15, %v8951_v1  ;;  %v8952_v8 = vadd.f32 %v8884_v6, %v18658_v9  ;;  %v14799_v31 = vpop.f32.mrb[163].mxu0 }
 0x8e6   : > { %v8989_v57 = vmax.f32 %v8972_v38, 0.0  ;;  %v8973_v11 = vadd.f32 %v18714_v15, %v8952_v8 }
 0x8e8   : > { %v8990_v61 = vmax.f32 %v8973_v11, 0.0  ;;  %v9022_v10 = vrot.slane %v8989_v57, 1  ;;  %v9087_v12 = vrot.slane %v8989_v57, 6  ;;  %v9153_v25 = vrot.slane %v8989_v57, 7 }
 0x8e9   : > { %v8889_v19 = vpop.f32.mrb[164].mxu0 }
 0x8ea   : > { %v9023_v7 = vrot.slane %v8990_v61, 1  ;;  %v9088_v18 = vrot.slane %v8990_v61, 6  ;;  %v9154_v5 = vrot.slane %v8990_v61, 7  ;;  %v8953_v40 = vadd.f32 %v8889_v19, %v18661_v35  ;;  %v14802_v14 = vpop.f32.mrb[165].mxu0 }
 0x8eb   : > { %v8892_v51 = vpop.f32.mrb[166].mxu0 }
 0x8ec   : > { %v9024_v9 = vsel %vm1653_vm1, %v9022_v10, %v9023_v7  ;;  %v9089_v43 = vsel %vm9086_vm5, %v9087_v12, %v9088_v18  ;;  %v9155_v41 = vsel %vm9152_vm6, %v9153_v25, %v9154_v5  ;;  %v8974_v56 = vadd.f32 %v18714_v15, %v8953_v40  ;;  %v14803_v2 = vpop.f32.mrb[167].mxu0 }
 0x8ed   : > { %v9069_v17 = vmax.f32 %v8989_v57, %v9024_v9 }
 0x8ee   : > { %v8991_v37 = vmax.f32 %v8974_v56, 0.0 }
 0x8ef   : > { %v9136_v0 = vmax.f32 %v9069_v17, %v9089_v43 }
 0x8f0   : > { %v9025_v29 = vrot.slane %v8991_v37, 1  ;;  %v9090_v47 = vrot.slane %v8991_v37, 6  ;;  %v9156_v30 = vrot.slane %v8991_v37, 7 }
 0x8f1   : > { %v9202_v27 = vmax.f32 %v9136_v0, %v9155_v41  ;;  %v8897_v63 = vpop.f32.mrb[168].mxu0 }
 0x8f2   : > { %v9026_v35 = vsel %vm1653_vm1, %v9023_v7, %v9025_v29  ;;  %v9091_v23 = vsel %vm9086_vm5, %v9088_v18, %v9090_v47  ;;  %v9157_v50 = vsel %vm9152_vm6, %v9154_v5, %v9156_v30  ;;  %v8955_v26 = vadd.f32 %v8897_v63, %v18667_v60  ;;  %v14806_v62 = vpop.f32.mrb[169].mxu0 }
 0x8f3   : > { %9218 = vst [vmem:[#allocation6] sm:$0xff] %v9202_v27  ;;  %v9070_v39 = vmax.f32 %v8990_v61, %v9026_v35  ;;  %v8900_v44 = vpop.f32.mrb[170].mxu0 }
 0x8f4   : > { %v8976_v13 = vadd.f32 %v18714_v15, %v8955_v26  ;;  %v8956_v16 = vadd.f32 %v8900_v44, %v18670_v46  ;;  %v14807_v58 = vpop.f32.mrb[171].mxu0 }
 0x8f5   : > { %v9137_v28 = vmax.f32 %v9070_v39, %v9091_v23 }
 0x8f6   : > { %v8993_v48 = vmax.f32 %v8976_v13, 0.0  ;;  %v8977_v21 = vadd.f32 %v18714_v15, %v8956_v16 }
 0x8f7   : > { %v9203_v33 = vmax.f32 %v9137_v28, %v9157_v50 }
 0x8f8   : > { %v8994_v36 = vmax.f32 %v8977_v21, 0.0  ;;  %v9029_v4 = vrot.slane %v8993_v48, 1  ;;  %v9094_v1 = vrot.slane %v8993_v48, 6  ;;  %v9160_v24 = vrot.slane %v8993_v48, 7 }
 0x8f9   : > { %9219 = vst [vmem:[#allocation6 + $0x8] sm:$0xff] %v9203_v33  ;;  %v8905_v60 = vpop.f32.mrb[172].mxu0 }
 0x8fa   : > { %v9031_v6 = vrot.slane %v8994_v36, 1  ;;  %v9096_v38 = vrot.slane %v8994_v36, 6  ;;  %v9162_v8 = vrot.slane %v8994_v36, 7  ;;  %v8957_v31 = vadd.f32 %v8905_v60, %v18678_v32  ;;  %v14810_v57 = vpop.f32.mrb[173].mxu0 }
 0x8fb   : > { %v8908_v11 = vpop.f32.mrb[174].mxu0  ;;  %v9242_v46 = vld [vmem:[#allocation6] ss:$2 sm:$0x3] }
 0x8fc   : > { %v9032_v61 = vsel %vm1653_vm1, %v9029_v4, %v9031_v6  ;;  %v9097_v10 = vsel %vm9086_vm5, %v9094_v1, %v9096_v38  ;;  %v9163_v12 = vsel %vm9152_vm6, %v9160_v24, %v9162_v8  ;;  %v8978_v25 = vadd.f32 %v18714_v15, %v8957_v31  ;;  %v14811_v19 = vpop.f32.mrb[175].mxu0  ;;  %9243 = vst [vmem:[#allocation4 + $0x5] sm:$0x3] %v9242_v46 }
 0x8fd   : > { %v9073_v7 = vmax.f32 %v8993_v48, %v9032_v61  ;;  %v8958_v18 = vadd.f32 %v8908_v11, %v18682_v45 }
 0x8fe   : > { %v8995_v5 = vmax.f32 %v8978_v25, 0.0 }
 0x8ff   : > { %v9140_v40 = vmax.f32 %v9073_v7, %v9097_v10  ;;  %v8979_v32 = vadd.f32 %v18714_v15, %v8958_v18 }
 0x900   : > { %v9245_v14 = vld [vmem:[#allocation6 + $0xc] ss:$2 sm:$0x3]  ;;  %v9033_v41 = vrot.slane %v8995_v5, 1  ;;  %v9098_v56 = vrot.slane %v8995_v5, 6  ;;  %v9164_v37 = vrot.slane %v8995_v5, 7 }
 0x901   : > { %v9206_v51 = vmax.f32 %v9140_v40, %v9163_v12  ;;  %v8996_v9 = vmax.f32 %v8979_v32, 0.0  ;;  %v8913_v43 = vpop.f32.mrb[176].mxu0  ;;  %9246 = vst [vmem:[#allocation4 + $0x9] sm:$0x3] %v9245_v14 }
 0x902   : > { %v8959_v2 = vadd.f32 %v8913_v43, %v18685_v42  ;;  %v14814_v17 = vpop.f32.mrb[177].mxu0 }
 0x903   : > { %9222 = vst [vmem:[#allocation6 + $0x20] sm:$0xff] %v9206_v51  ;;  %v9035_v0 = vrot.slane %v8996_v9, 1  ;;  %v9100_v29 = vrot.slane %v8996_v9, 6  ;;  %v9166_v47 = vrot.slane %v8996_v9, 7  ;;  %v8916_v45 = vpop.f32.mrb[178].mxu0  ;;  %v9292_v58 = vld [vmem:[#allocation4 + $0x1] sm:$0xff] }
 0x904   : > { %v8980_v30 = vadd.f32 %v18714_v15, %v8959_v2  ;;  %v8960_v27 = vadd.f32 %v8916_v45, %v18688_v34  ;;  %v14815_v63 = vpop.f32.mrb[179].mxu0 }
 0x905   : > { %v9036_v35 = vsel %vm1653_vm1, %v9033_v41, %v9035_v0  ;;  %v9101_v23 = vsel %vm9086_vm5, %v9098_v56, %v9100_v29  ;;  %v9167_v50 = vsel %vm9152_vm6, %v9164_v37, %v9166_v47 }
 0x906   : > { %v9075_v26 = vmax.f32 %v8995_v5, %v9036_v35  ;;  %v8997_v42 = vmax.f32 %v8980_v30, 0.0  ;;  %v8981_v62 = vadd.f32 %v18714_v15, %v8960_v27 }
 0x908   : > { %v9142_v39 = vmax.f32 %v9075_v26, %v9101_v23  ;;  %v9037_v44 = vrot.slane %v8997_v42, 1  ;;  %v9102_v13 = vrot.slane %v8997_v42, 6  ;;  %v9168_v16 = vrot.slane %v8997_v42, 7  ;;  %v18746_v28 = vld [vmem:[#allocation4 + $0x9] sm:$0xff] }
 0x909   : > { %v8998_v48 = vmax.f32 %v8981_v62, 0.0  ;;  %v8921_v34 = vpop.f32.mrb[180].mxu0  ;;  %v9299_v21 = vpack.c.bf16 %v18746_v28, %v9292_v58 }
 0x90a   : > { %v9208_v33 = vmax.f32 %v9142_v39, %v9167_v50  ;;  %v9038_v36 = vsel %vm1653_vm1, %v9035_v0, %v9037_v44  ;;  %v9103_v4 = vsel %vm9086_vm5, %v9100_v29, %v9102_v13  ;;  %v9169_v1 = vsel %vm9152_vm6, %v9166_v47, %v9168_v16  ;;  %v14818_v24 = vpop.f32.mrb[181].mxu0  ;;  %v9248_v60 = vld [vmem:[#allocation6 + $0x24] ss:$2 sm:$0x3] }
 0x90b   : > { %v9076_v6 = vmax.f32 %v8996_v9, %v9038_v36  ;;  %v9039_v38 = vrot.slane %v8998_v48, 1  ;;  %v9104_v8 = vrot.slane %v8998_v48, 6  ;;  %v9170_v31 = vrot.slane %v8998_v48, 7  ;;  %v8924_v57 = vpop.f32.mrb[182].mxu0  ;;  %14848 = vmatprep.mubr.bf16.mxu1 %v9299_v21  ;;  %9249 = vst [vmem:[#allocation4 + $0x15] sm:$0x3] %v9248_v60 }
 0x90c   : > { %9224 = vst [vmem:[#allocation6 + $0x30] sm:$0xff] %v9208_v33  ;;  %v8961_v11 = vadd.f32 %v8921_v34, %v18691_v49  ;;  %v8962_v46 = vadd.f32 %v8924_v57, %v18694_v52  ;;  %v14819_v61 = vpop.f32.mrb[183].mxu0 }
 0x90d   : > { %v9143_v10 = vmax.f32 %v9076_v6, %v9103_v4  ;;  %v9040_v12 = vsel %vm1653_vm1, %v9037_v44, %v9039_v38  ;;  %v9105_v25 = vsel %vm9086_vm5, %v9102_v13, %v9104_v8  ;;  %v9171_v19 = vsel %vm9152_vm6, %v9168_v16, %v9170_v31 }
 0x90e   : > { %v9077_v7 = vmax.f32 %v8997_v42, %v9040_v12  ;;  %v8982_v18 = vadd.f32 %v18714_v15, %v8961_v11  ;;  %v8983_v5 = vadd.f32 %v18714_v15, %v8962_v46 }
 0x90f   : > { %v9209_v40 = vmax.f32 %v9143_v10, %v9169_v1 }
 0x910   : > { %v9144_v32 = vmax.f32 %v9077_v7, %v9105_v25  ;;  %v8999_v14 = vmax.f32 %v8982_v18, 0.0  ;;  %v9000_v51 = vmax.f32 %v8983_v5, 0.0 }
 0x911   : > { %9225 = vst [vmem:[#allocation6 + $0x38] sm:$0xff] %v9209_v40  ;;  %v8929_v49 = vpop.f32.mrb[184].mxu0 }
 0x912   : > { %v9210_v52 = vmax.f32 %v9144_v32, %v9171_v19  ;;  %v9041_v9 = vrot.slane %v8999_v14, 1  ;;  %v9106_v43 = vrot.slane %v8999_v14, 6  ;;  %v9172_v41 = vrot.slane %v8999_v14, 7  ;;  %v14822_v56 = vpop.f32.mrb[185].mxu0  ;;  %v18776_v10 = vld [vmem:[#allocation4 + $0x11] sm:$0xff] }
 0x913   : > { %v9043_v2 = vrot.slane %v9000_v51, 1  ;;  %v9108_v17 = vrot.slane %v9000_v51, 6  ;;  %v9174_v37 = vrot.slane %v9000_v51, 7  ;;  %v8963_v0 = vadd.f32 %v8929_v49, %v18697_v59  ;;  %v8932_v29 = vpop.f32.mrb[186].mxu0  ;;  %v15978_v32 = vld [vmem:[%s19477_s2 + $0x490] sm:$0xff]  }
 0x914   : > { %9226 = vst [vmem:[#allocation6 + $0x40] sm:$0xff] %v9210_v52  ;;  %v9042_v47 = vsel %vm1653_vm1, %v9039_v38, %v9041_v9  ;;  %v9107_v45 = vsel %vm9086_vm5, %v9104_v8, %v9106_v43  ;;  %v9173_v30 = vsel %vm9152_vm6, %v9170_v31, %v9172_v41  ;;  %v8964_v27 = vadd.f32 %v8932_v29, %v18700_v53  ;;  %v14823_v63 = vpop.f32.mrb[187].mxu0  ;;  %v9251_v35 = vld [vmem:[#allocation6 + $0x30] ss:$2 sm:$0x3] }
 0x915   : > { %v9078_v23 = vmax.f32 %v8998_v48, %v9042_v47  ;;  %v9044_v50 = vsel %vm1653_vm1, %v9041_v9, %v9043_v2  ;;  %v9109_v26 = vsel %vm9086_vm5, %v9106_v43, %v9108_v17  ;;  %v9175_v42 = vsel %vm9152_vm6, %v9172_v41, %v9174_v37  ;;  %9252 = vst [vmem:[#allocation4 + $0x19] sm:$0x3] %v9251_v35 }
 0x916   : > { %v9079_v59 = vmax.f32 %v8999_v14, %v9044_v50  ;;  %v8984_v62 = vadd.f32 %v18714_v15, %v8963_v0  ;;  %v8985_v39 = vadd.f32 %v18714_v15, %v8964_v27 }
 0x917   : > { %v9145_v44 = vmax.f32 %v9078_v23, %v9107_v45 }
 0x918   : > { %v9146_v13 = vmax.f32 %v9079_v59, %v9109_v26  ;;  %v9001_v16 = vmax.f32 %v8984_v62, 0.0  ;;  %v9002_v58 = vmax.f32 %v8985_v39, 0.0  ;;  %v18804_v39 = vld [vmem:[#allocation4 + $0x10] sm:$0xff] }
 0x919   : > { %v9211_v53 = vmax.f32 %v9145_v44, %v9173_v30  ;;  %v8937_v34 = vpop.f32.mrb[188].mxu0 }
 0x91a   : > { %v9212_v21 = vmax.f32 %v9146_v13, %v9175_v42  ;;  %v9045_v48 = vrot.slane %v9001_v16, 1  ;;  %v9110_v33 = vrot.slane %v9001_v16, 6  ;;  %v9176_v36 = vrot.slane %v9001_v16, 7  ;;  %v14826_v4 = vpop.f32.mrb[189].mxu0  ;;  %v15980_v42 = vld [vmem:[%s19477_s2 + $0x4a0] sm:$0xff]  }
 0x91b   : > { %9227 = vst [vmem:[#allocation6 + $0x48] sm:$0xff] %v9211_v53  ;;  %v9047_v1 = vrot.slane %v9002_v58, 1  ;;  %v9112_v24 = vrot.slane %v9002_v58, 6  ;;  %v9178_v60 = vrot.slane %v9002_v58, 7  ;;  %v8965_v6 = vadd.f32 %v8937_v34, %v18703_v54  ;;  %v8940_v38 = vpop.f32.mrb[190].mxu0  ;;  %v18810_v53 = vld [vmem:[#allocation4 + $0x8] sm:$0xff] }
 0x91c   : > { %9228 = vst [vmem:[#allocation6 + $0x50] sm:$0xff] %v9212_v21  ;;  %v8966_v8 = vadd.f32 %v8940_v38, %v18706_v3  ;;  %v14827_v31 = vpop.f32.mrb[191].mxu0  ;;  %v18771_v57 = vld [vmem:[#allocation4 + $0x19] sm:$0xff]  ;;  %v15977_v3 = vld [vmem:[%s19477_s2 + $0x488] sm:$0xff]   ;;  %v10139_v21 = vpack.c.bf16 %v18804_v39, %v18810_v53 }
 0x91d   : > { %v9048_v11 = vsel %vm1653_vm1, %v9045_v48, %v9047_v1  ;;  %v9113_v46 = vsel %vm9086_vm5, %v9110_v33, %v9112_v24  ;;  %v9179_v61 = vsel %vm9152_vm6, %v9176_v36, %v9178_v60  ;;  %v8986_v25 = vadd.f32 %v18714_v15, %v8965_v6  ;;  %v15981_v34 = vld [vmem:[%s19477_s2 + $0x4a8] sm:$0xff]   ;;  %v15982_v36 = vld [vmem:[%s19477_s2 + $0x4b0] sm:$0xff]   ;;  %v15983_v6 = vld [vmem:[%s19477_s2 + $0x4b8] sm:$0xff]  }
 0x91e   : > { %v9081_v12 = vmax.f32 %v9001_v16, %v9048_v11  ;;  %v8987_v54 = vadd.f32 %v18714_v15, %v8966_v8  ;;  %v9300_v19 = vpack.c.bf16 %v18771_v57, %v18776_v10  ;;  %v10286_v48 = vpack.c.bf16 %v18776_v10, %v18746_v28  ;;  %v9264_v11 = vld [vmem:[#allocation4] sm:$0xff]  ;;  %v16031_v28 = vld [vmem:[%s19477_s2 + $0x678] sm:$0xff]  }
 0x91f   : > { %v9003_v18 = vmax.f32 %v8986_v25, 0.0  ;;  %v16032_v10 = vld [vmem:[%s19477_s2 + $0x680] sm:$0xff]  }
 0x920   : > { %v9148_v7 = vmax.f32 %v9081_v12, %v9113_v46  ;;  %v9004_v5 = vmax.f32 %v8987_v54, 0.0  ;;  %14849 = vmatmul.mubr.bf16.vlgmr.msra.gmra.mrb[48].mxu1 %v9300_v19  ;;  %v15984_v46 = vld [vmem:[%s19477_s2 + $0x500] sm:$0xff]   ;;  %v18835_v12 = vld [vmem:[#allocation4 + $0x18] sm:$0xff] }
 0x921   : > { %v8945_v40 = vpop.f32.mrb[192].mxu0  ;;  %14857 = vmatpush3.bf16.msra.mxu1 %v18675_v55  ;;  %v9049_v51 = vrot.slane %v9003_v18, 1  ;;  %v9114_v49 = vrot.slane %v9003_v18, 6  ;;  %v9180_v52 = vrot.slane %v9003_v18, 7 }
 0x922   : > { %v9214_v14 = vmax.f32 %v9148_v7, %v9179_v61  ;;  %14858 = vmatprep.subr.bf16.mxu1 %v15977_v3  ;;  %v9254_v9 = vld [vmem:[#allocation6 + $0x48] ss:$2 sm:$0x3]  ;;  %v9051_v43 = vrot.slane %v9004_v5, 1  ;;  %v9116_v41 = vrot.slane %v9004_v5, 6  ;;  %v9182_v56 = vrot.slane %v9004_v5, 7 }
 0x923   : > { %v8967_v2 = vadd.f32 %v8945_v40, %v18708_v22  ;;  %9255 = vst [vmem:[#allocation4 + $0x25] sm:$0x3] %v9254_v9  ;;  %v9257_v17 = vld [vmem:[#allocation6 + $0x54] ss:$2 sm:$0x3]  ;;  %v9050_v55 = vsel %vm1653_vm1, %v9047_v1, %v9049_v51  ;;  %v9115_v37 = vsel %vm9086_vm5, %v9112_v24, %v9114_v49  ;;  %v9181_v0 = vsel %vm9152_vm6, %v9178_v60, %v9180_v52  ;;  %v14830_v29 = vpop.f32.mrb[193].mxu0 }
 0x924   : > { %9230 = vst [vmem:[#allocation6 + $0x60] sm:$0xff] %v9214_v14  ;;  %9258 = vst [vmem:[#allocation4 + $0x29] sm:$0x3] %v9257_v17  ;;  %v9082_v47 = vmax.f32 %v9002_v58, %v9050_v55  ;;  %v8948_v45 = vpop.f32.mrb[194].mxu0  ;;  %v15979_v22 = vld [vmem:[%s19477_s2 + $0x498] sm:$0xff]   ;;  %v9084_v59 = vmax.f32 %v9004_v5, %v9051_v43  ;;  %v18824_v24 = vld [vmem:[#allocation4 + $0xa] sm:$0xff]  ;;  %v9271_v61 = vpack.c.bf16 %v18810_v53, %v9264_v11 }
 0x925   : > { %14859 = vmatpush3.bf16.msra.mxu1 %v15977_v3  ;;  %v8988_v30 = vadd.f32 %v18714_v15, %v8967_v2  ;;  %v14831_v27 = vpop.f32.mrb[195].mxu0  ;;  %v18822_v1 = vld [vmem:[#allocation4 + $0x12] sm:$0xff]  ;;  %v9272_v3 = vpack.c.bf16 %v18835_v12, %v18804_v39  ;;  %v15985_v7 = vld [vmem:[%s19477_s2 + $0x508] sm:$0xff]   ;;  %v16024_v53 = vld [vmem:[%s19477_s2 + $0x640] sm:$0xff]  }
 0x926   : > { %14860 = vmatprep.subr.bf16.mxu1 %v15978_v32  ;;  %v9149_v63 = vmax.f32 %v9082_v47, %v9115_v37  ;;  %v10433_v60 = vpack.c.bf16 %v18822_v1, %v18824_v24  ;;  %v15986_v51 = vld [vmem:[%s19477_s2 + $0x510] sm:$0xff]   ;;  %v9544_v52 = vld [vmem:[#allocation4 + $0x2] sm:$0xff]  ;;  %v15987_v43 = vld [vmem:[%s19477_s2 + $0x518] sm:$0xff]  }
 0x927   : > { %v9005_v35 = vmax.f32 %v8988_v30, 0.0  ;;  %v15989_v2 = vld [vmem:[%s19477_s2 + $0x528] sm:$0xff]   ;;  %v15990_v17 = vld [vmem:[%s19477_s2 + $0x530] sm:$0xff]   ;;  %v15991_v55 = vld [vmem:[%s19477_s2 + $0x538] sm:$0xff]  }
 0x928   : > { %v9215_v23 = vmax.f32 %v9149_v63, %v9181_v0  ;;  %v15992_v37 = vld [vmem:[%s19477_s2 + $0x540] sm:$0xff]   ;;  %v15993_v47 = vld [vmem:[%s19477_s2 + $0x548] sm:$0xff]   ;;  %v15994_v30 = vld [vmem:[%s19477_s2 + $0x550] sm:$0xff]  }
 0x929   : > { %14861 = vmatpush3.bf16.msra.mxu1 %v15978_v32  ;;  %v9118_v50 = vrot.slane %v9005_v35, 6  ;;  %v9184_v26 = vrot.slane %v9005_v35, 7  ;;  %v18854_v32 = vld [vmem:[#allocation4 + $0x1a] sm:$0xff]  ;;  %v9691_v27 = vld [vmem:[#allocation4 + $0x4] sm:$0xff]  ;;  %v9692_v63 = vld [vmem:[#allocation4 + $0xc] sm:$0xff] }
 0x92a   : > { %14862 = vmatprep.subr.bf16.mxu1 %v15979_v22  ;;  %9231 = vst [vmem:[#allocation6 + $0x68] sm:$0xff] %v9215_v23  ;;  %v18800_v15 = vld [vmem:[#allocation4 + $0x21] sm:$0xff]  ;;  %v9552_v29 = vpack.c.bf16 %v18854_v32, %v18822_v1  ;;  %v15995_v23 = vld [vmem:[%s19477_s2 + $0x558] sm:$0xff]   ;;  %v9839_v11 = vld [vmem:[#allocation4 + $0xd] sm:$0xff] }
 0x92b   : > { %v18802_v62 = vld [vmem:[#allocation4 + $0x29] sm:$0xff]  ;;  %v9119_v44 = vsel %vm9086_vm5, %v9116_v41, %v9118_v50  ;;  %v9185_v13 = vsel %vm9152_vm6, %v9182_v56, %v9184_v26  ;;  %v18837_v25 = vld [vmem:[#allocation4 + $0x20] sm:$0xff]  ;;  %v10287_v5 = vpack.c.bf16 %v18800_v15, %v18771_v57  ;;  %v9551_v41 = vpack.c.bf16 %v18824_v24, %v9544_v52  ;;  %v16023_v39 = vld [vmem:[%s19477_s2 + $0x638] sm:$0xff]  }
 0x92c   : > { %v9301_v16 = vpack.c.bf16 %v18802_v62, %v18800_v15  ;;  %v9151_v58 = vmax.f32 %v9084_v59, %v9119_v44  ;;  %v18839_v54 = vld [vmem:[#allocation4 + $0x28] sm:$0xff]  ;;  %v10140_v18 = vpack.c.bf16 %v18837_v25, %v18835_v12  ;;  %v15988_v56 = vld [vmem:[%s19477_s2 + $0x520] sm:$0xff]   ;;  %v9698_v50 = vpack.c.bf16 %v9692_v63, %v9691_v27  ;;  %v15998_v59 = vld [vmem:[%s19477_s2 + $0x570] sm:$0xff]  }
 0x92d   : > { %14863 = vmatpush3.bf16.msra.mxu1 %v15979_v22  ;;  %v18841_v19 = vld [vmem:[#allocation4 + $0x22] sm:$0xff]  ;;  %v9273_v40 = vpack.c.bf16 %v18839_v54, %v18837_v25  ;;  %v18880_v0 = vld [vmem:[#allocation4 + $0x2a] sm:$0xff]  ;;  %v15999_v44 = vld [vmem:[%s19477_s2 + $0x578] sm:$0xff]  }
 0x92e   : > { %14852 = vmatprep.mubr.bf16.mxu1 %v9301_v16  ;;  %14864 = vmatprep.subr.bf16.mxu1 %v15980_v42  ;;  %v9217_v33 = vmax.f32 %v9151_v58, %v9185_v13  ;;  %v10434_v14 = vpack.c.bf16 %v18841_v19, %v18854_v32  ;;  %v9553_v45 = vpack.c.bf16 %v18880_v0, %v18841_v19  ;;  %v15996_v26 = vld [vmem:[%s19477_s2 + $0x560] sm:$0xff]   ;;  %v9693_v16 = vld [vmem:[#allocation4 + $0x14] sm:$0xff]  ;;  %v16029_v25 = vld [vmem:[%s19477_s2 + $0x668] sm:$0xff]  }
 0x92f   : > { %v16000_v13 = vld [vmem:[%s19477_s2 + $0x580] sm:$0xff]   ;;  %v16038_v1 = vld [vmem:[%s19477_s2 + $0x6b0] sm:$0xff]   ;;  %v16039_v24 = vld [vmem:[%s19477_s2 + $0x6b8] sm:$0xff]  }
 0x930   : > { %9233 = vst [vmem:[#allocation6 + $0x78] sm:$0x7] %v9217_v33  ;;  %v9694_v58 = vld [vmem:[#allocation4 + $0x1c] sm:$0xff]  ;;  %v9696_v33 = vld [vmem:[#allocation4 + $0x2c] sm:$0xff] }
 0x931   : > { %14865 = vmatpush3.bf16.msra.mxu1 %v15980_v42  ;;  %v9260_v4 = vld [vmem:[#allocation6 + $0x6c] ss:$2 sm:$0x3]  ;;  %v15997_v42 = vld [vmem:[%s19477_s2 + $0x568] sm:$0xff]   ;;  %v16008_v52 = vld [vmem:[%s19477_s2 + $0x5c0] sm:$0xff]  }
 0x932   : > { %14866 = vmatprep.subr.bf16.mxu1 %v15981_v34  ;;  %9261 = vst [vmem:[#allocation4 + $0x35] sm:$0x3] %v9260_v4  ;;  %v16001_v4 = vld [vmem:[%s19477_s2 + $0x588] sm:$0xff]   ;;  %v16012_v63 = vld [vmem:[%s19477_s2 + $0x5e0] sm:$0xff]  }
 0x933   : > { %v16028_v12 = vld [vmem:[%s19477_s2 + $0x660] sm:$0xff]   ;;  %v16041_v19 = vld [vmem:[%s19477_s2 + $0x708] sm:$0xff]  }
 0x934   : > { %v16036_v57 = vld [vmem:[%s19477_s2 + $0x6a0] sm:$0xff]  }
 0x935   : > { %14867 = vmatpush3.bf16.msra.mxu1 %v15981_v34  ;;  %v9695_v34 = vld [vmem:[#allocation4 + $0x24] sm:$0xff] }
 0x936   : > { %14868 = vmatprep.subr.bf16.mxu1 %v15982_v36  ;;  %v19054_v32 = vld [vmem:[#allocation2] sm:$0xff] }
 0x937   : > { %v9262_v38 = vld [vmem:[#allocation6 + $0x78] ss:$2 sm:$0x3] }
 0x938   : > { %9263 = vst [vmem:[#allocation4 + $0x39] sm:$0x3] %v9262_v38  ;;  %v16002_v38 = vld [vmem:[%s19477_s2 + $0x590] sm:$0xff]  }
 0x939   : > { %14869 = vmatpush3.bf16.msra.mxu1 %v15982_v36  ;;  %v9298_v8 = vld [vmem:[#allocation4 + $0x31] sm:$0x3f]  ;;  %v9699_v36 = vpack.c.bf16 %v9694_v58, %v9693_v16  ;;  %v9989_v16 = vld [vmem:[#allocation4 + $0x26] sm:$0xff] }
 0x93a   : > { %14870 = vmatprep.subr.bf16.mxu1 %v15983_v6  ;;  %v9302_v31 = vpack.c.bf16 %v9298_v8, %v9298_v8  ;;  %v9270_v49 = vld [vmem:[#allocation4 + $0x30] sm:$0x3f]  ;;  %v16017_v58 = vld [vmem:[%s19477_s2 + $0x608] sm:$0xff]  }
 0x93b   : > { %v9274_v9 = vpack.c.bf16 %v9270_v49, %v9270_v49  ;;  %v9550_v22 = vld [vmem:[#allocation4 + $0x32] sm:$0x3f]  ;;  %v16007_v49 = vld [vmem:[%s19477_s2 + $0x5b8] sm:$0xff]  }
 0x93c   : > { %14853 = vmatmul.mubr.bf16.gmra.mrb[52].mxu1 %v9302_v31  ;;  %v9554_v35 = vpack.c.bf16 %v9550_v22, %v9550_v22  ;;  %v9838_v31 = vld [vmem:[#allocation4 + $0x5] sm:$0xff]  ;;  %v16011_v22 = vld [vmem:[%s19477_s2 + $0x5d8] sm:$0xff]  }
 0x93d   : > { %14872 = vmatprep.mubr.bf16.mxu1 %v9271_v61  ;;  %14871 = vmatpush3.bf16.msra.mxu1 %v15983_v6  ;;  %v9700_v6 = vpack.c.bf16 %v9696_v33, %v9695_v34  ;;  %v16003_v61 = vld [vmem:[%s19477_s2 + $0x598] sm:$0xff]   ;;  %v16018_v33 = vld [vmem:[%s19477_s2 + $0x610] sm:$0xff]  }
 0x93e   : > { %14880 = vmatprep.subr.bf16.mxu1 %v15984_v46 }
 0x93f   : > { %v9697_v8 = vld [vmem:[#allocation4 + $0x34] sm:$0x3f] }
 0x944   : > { %14873 = vmatmul.mubr.bf16.vlgmr.msra.gmra.mrb[48].mxu1 %v9272_v3  ;;  %v9845_v3 = vpack.c.bf16 %v9839_v11, %v9838_v31  ;;  %v16022_v31 = vld [vmem:[%s19477_s2 + $0x630] sm:$0xff]   ;;  %v16025_v11 = vld [vmem:[%s19477_s2 + $0x648] sm:$0xff]  }
 0x945   : > { %14881 = vmatpush3.bf16.msra.mxu1 %v15984_v46  ;;  %14876 = vmatprep.mubr.bf16.mxu1 %v9273_v40  ;;  %v9701_v46 = vpack.c.bf16 %v9697_v8, %v9697_v8  ;;  %v16005_v40 = vld [vmem:[%s19477_s2 + $0x5a8] sm:$0xff]  }
 0x946   : > { %14882 = vmatprep.subr.bf16.mxu1 %v15985_v7  ;;  %v16021_v8 = vld [vmem:[%s19477_s2 + $0x628] sm:$0xff]  }
 0x949   : > { %14883 = vmatpush3.bf16.msra.mxu1 %v15985_v7  ;;  %v16004_v7 = vld [vmem:[%s19477_s2 + $0x5a0] sm:$0xff]  }
 0x94a   : > { %14884 = vmatprep.subr.bf16.mxu1 %v15986_v51 }
 0x94c   : > { %14877 = vmatmul.mubr.bf16.gmra.mrb[56].mxu1 %v9274_v9  ;;  %v9840_v9 = vld [vmem:[#allocation4 + $0x15] sm:$0xff] }
 0x94d   : > { %14885 = vmatpush3.bf16.msra.mxu1 %v15986_v51  ;;  %14896 = vmatprep.mubr.bf16.mxu1 %v9551_v41  ;;  %v16006_v51 = vld [vmem:[%s19477_s2 + $0x5b0] sm:$0xff]   ;;  %v9842_v41 = vld [vmem:[#allocation4 + $0x25] sm:$0xff] }
 0x94e   : > { %14886 = vmatprep.subr.bf16.mxu1 %v15987_v43 }
 0x951   : > { %14887 = vmatpush3.bf16.msra.mxu1 %v15987_v43  ;;  %v9841_v43 = vld [vmem:[#allocation4 + $0x1d] sm:$0xff] }
 0x952   : > { %14888 = vmatprep.subr.bf16.mxu1 %v15988_v56 }
 0x955   : > { %14889 = vmatpush3.bf16.msra.mxu1 %v15988_v56  ;;  %v9843_v56 = vld [vmem:[#allocation4 + $0x2d] sm:$0xff] }
 0x956   : > { %14890 = vmatprep.subr.bf16.mxu1 %v15989_v2 }
 0x959   : > { %14891 = vmatpush3.bf16.msra.mxu1 %v15989_v2  ;;  %v9846_v2 = vpack.c.bf16 %v9841_v43, %v9840_v9  ;;  %v16035_v43 = vld [vmem:[%s19477_s2 + $0x698] sm:$0xff]  }
 0x95a   : > { %14892 = vmatprep.subr.bf16.mxu1 %v15990_v17 }
 0x95d   : > { %14893 = vmatpush3.bf16.msra.mxu1 %v15990_v17  ;;  %v16009_v17 = vld [vmem:[%s19477_s2 + $0x5c8] sm:$0xff]  }
 0x95e   : > { %14894 = vmatprep.subr.bf16.mxu1 %v15991_v55 }
 0x961   : > { %14895 = vmatpush3.bf16.msra.mxu1 %v15991_v55  ;;  %v9847_v55 = vpack.c.bf16 %v9843_v56, %v9842_v41  ;;  %v16037_v56 = vld [vmem:[%s19477_s2 + $0x6a8] sm:$0xff]  }
 0x962   : > { %14904 = vmatprep.subr.bf16.mxu1 %v15992_v37 }
 0x964   : > { %14897 = vmatmul.mubr.bf16.vlgmr.msra.gmra.mrb[48].mxu1 %v9552_v29  ;;  %v9844_v29 = vld [vmem:[#allocation4 + $0x35] sm:$0x3f] }
 0x965   : > { %14900 = vmatprep.mubr.bf16.mxu1 %v9553_v45  ;;  %14905 = vmatpush3.bf16.msra.mxu1 %v15992_v37  ;;  %v16010_v37 = vld [vmem:[%s19477_s2 + $0x5d0] sm:$0xff]   ;;  %v9848_v45 = vpack.c.bf16 %v9844_v29, %v9844_v29 }
 0x966   : > { %14906 = vmatprep.subr.bf16.mxu1 %v15993_v47 }
 0x969   : > { %14907 = vmatpush3.bf16.msra.mxu1 %v15993_v47  ;;  %v9986_v47 = vld [vmem:[#allocation4 + $0xe] sm:$0xff] }
 0x96a   : > { %14908 = vmatprep.subr.bf16.mxu1 %v15994_v30 }
 0x96c   : > { %14901 = vmatmul.mubr.bf16.gmra.mrb[60].mxu1 %v9554_v35  ;;  %v16013_v35 = vld [vmem:[%s19477_s2 + $0x5e8] sm:$0xff]  }
 0x96d   : > { %14909 = vmatpush3.bf16.msra.mxu1 %v15994_v30  ;;  %14920 = vmatprep.mubr.bf16.mxu1 %v9698_v50  ;;  %v9985_v30 = vld [vmem:[#allocation4 + $0x6] sm:$0xff]  ;;  %v16015_v50 = vld [vmem:[%s19477_s2 + $0x5f8] sm:$0xff]  }
 0x96e   : > { %14910 = vmatprep.subr.bf16.mxu1 %v15995_v23  ;;  %v9992_v27 = vpack.c.bf16 %v9986_v47, %v9985_v30 }
 0x971   : > { %14911 = vmatpush3.bf16.msra.mxu1 %v15995_v23  ;;  %v16014_v23 = vld [vmem:[%s19477_s2 + $0x5f0] sm:$0xff]  }
 0x972   : > { %14912 = vmatprep.subr.bf16.mxu1 %v15996_v26 }
 0x975   : > { %14913 = vmatpush3.bf16.msra.mxu1 %v15996_v26  ;;  %v16016_v26 = vld [vmem:[%s19477_s2 + $0x600] sm:$0xff]  }
 0x976   : > { %14914 = vmatprep.subr.bf16.mxu1 %v15997_v42 }
 0x979   : > { %14915 = vmatpush3.bf16.msra.mxu1 %v15997_v42  ;;  %v9988_v42 = vld [vmem:[#allocation4 + $0x1e] sm:$0xff] }
 0x97a   : > { %14916 = vmatprep.subr.bf16.mxu1 %v15998_v59 }
 0x97d   : > { %14917 = vmatpush3.bf16.msra.mxu1 %v15998_v59  ;;  %v9990_v59 = vld [vmem:[#allocation4 + $0x2e] sm:$0xff] }
 0x97e   : > { %14918 = vmatprep.subr.bf16.mxu1 %v15999_v44  ;;  %v9994_v34 = vpack.c.bf16 %v9990_v59, %v9989_v16 }
 0x981   : > { %14919 = vmatpush3.bf16.msra.mxu1 %v15999_v44  ;;  %v9987_v44 = vld [vmem:[#allocation4 + $0x16] sm:$0xff] }
 0x982   : > { %14928 = vmatprep.subr.bf16.mxu1 %v16000_v13 }
 0x984   : > { %14921 = vmatmul.mubr.bf16.vlgmr.msra.gmra.mrb[48].mxu1 %v9699_v36  ;;  %v9991_v36 = vld [vmem:[#allocation4 + $0x36] sm:$0x3f] }
 0x985   : > { %14924 = vmatprep.mubr.bf16.mxu1 %v9700_v6  ;;  %14929 = vmatpush3.bf16.msra.mxu1 %v16000_v13  ;;  %v9993_v13 = vpack.c.bf16 %v9988_v42, %v9987_v44  ;;  %v16019_v6 = vld [vmem:[%s19477_s2 + $0x618] sm:$0xff]   ;;  %v16040_v44 = vld [vmem:[%s19477_s2 + $0x700] sm:$0xff]  }
 0x986   : > { %14930 = vmatprep.subr.bf16.mxu1 %v16001_v4  ;;  %15049 = vmatpush3.bf16.msra.mxu0 %v16040_v44 }
 0x987   : > { %15050 = vmatprep.subr.bf16.mxu0 %v19054_v32 }
 0x989   : > { %14931 = vmatpush3.bf16.msra.mxu1 %v16001_v4  ;;  %v9995_v4 = vpack.c.bf16 %v9991_v36, %v9991_v36 }
 0x98a   : > { %14932 = vmatprep.subr.bf16.mxu1 %v16002_v38  ;;  %15051 = vmatpush3.bf16.msra.mxu0 %v16041_v19 }
 0x98b   : > { %15052 = vmatprep.subr.bf16.mxu0 %v19054_v32 }
 0x98c   : > { %14925 = vmatmul.mubr.bf16.gmra.mrb[64].mxu1 %v9701_v46 }
 0x98d   : > { %14933 = vmatpush3.bf16.msra.mxu1 %v16002_v38  ;;  %14944 = vmatprep.mubr.bf16.mxu1 %v9845_v3  ;;  %v16020_v38 = vld [vmem:[%s19477_s2 + $0x620] sm:$0xff]   ;;  %v10138_v3 = vld [vmem:[#allocation4 + $0x38] sm:$0x3f] }
 0x98e   : > { %14934 = vmatprep.subr.bf16.mxu1 %v16003_v61 }
 0x991   : > { %14935 = vmatpush3.bf16.msra.mxu1 %v16003_v61  ;;  %v16026_v61 = vld [vmem:[%s19477_s2 + $0x650] sm:$0xff]  }
 0x992   : > { %14936 = vmatprep.subr.bf16.mxu1 %v16004_v7 }
 0x995   : > { %14937 = vmatpush3.bf16.msra.mxu1 %v16004_v7  ;;  %v10142_v7 = vpack.c.bf16 %v10138_v3, %v10138_v3  ;;  %v16047_v3 = vld [vmem:[%s19477_s2 + $0x738] sm:$0xff]  }
 0x996   : > { %14938 = vmatprep.subr.bf16.mxu1 %v16005_v40 }
 0x999   : > { %14939 = vmatpush3.bf16.msra.mxu1 %v16005_v40  ;;  %v16027_v40 = vld [vmem:[%s19477_s2 + $0x658] sm:$0xff]  }
 0x99a   : > { %14940 = vmatprep.subr.bf16.mxu1 %v16006_v51 }
 0x99d   : > { %14941 = vmatpush3.bf16.msra.mxu1 %v16006_v51 }
 0x99e   : > { %14942 = vmatprep.subr.bf16.mxu1 %v16007_v49 }
 0x9a1   : > { %14943 = vmatpush3.bf16.msra.mxu1 %v16007_v49  ;;  %v16034_v49 = vld [vmem:[%s19477_s2 + $0x690] sm:$0xff]  }
 0x9a2   : > { %14952 = vmatprep.subr.bf16.mxu1 %v16008_v52 }
 0x9a4   : > { %14945 = vmatmul.mubr.bf16.vlgmr.msra.gmra.mrb[48].mxu1 %v9846_v2 }
 0x9a5   : > { %14948 = vmatprep.mubr.bf16.mxu1 %v9847_v55  ;;  %14953 = vmatpush3.bf16.msra.mxu1 %v16008_v52  ;;  %v10285_v52 = vld [vmem:[#allocation4 + $0x39] sm:$0x3f] }
 0x9a6   : > { %14954 = vmatprep.subr.bf16.mxu1 %v16009_v17  ;;  %v10289_v9 = vpack.c.bf16 %v10285_v52, %v10285_v52  ;;  %v10431_v55 = vld [vmem:[#allocation4 + $0x32] sm:$0xff] }
 0x9a7   : > { %v10435_v30 = vpack.c.bf16 %v10431_v55, %v18880_v0 }
 0x9a9   : > { %14955 = vmatpush3.bf16.msra.mxu1 %v16009_v17 }
 0x9aa   : > { %14956 = vmatprep.subr.bf16.mxu1 %v16010_v37 }
 0x9ac   : > { %14949 = vmatmul.mubr.bf16.gmra.mrb[68].mxu1 %v9848_v45 }
 0x9ad   : > { %14957 = vmatpush3.bf16.msra.mxu1 %v16010_v37  ;;  %14968 = vmatprep.mubr.bf16.mxu1 %v9992_v27 }
 0x9ae   : > { %14958 = vmatprep.subr.bf16.mxu1 %v16011_v22 }
 0x9b1   : > { %14959 = vmatpush3.bf16.msra.mxu1 %v16011_v22  ;;  %v10432_v22 = vld [vmem:[#allocation4 + $0x3a] sm:$0x3f] }
 0x9b2   : > { %14960 = vmatprep.subr.bf16.mxu1 %v16012_v63  ;;  %v10436_v27 = vpack.c.bf16 %v10432_v22, %v10432_v22 }
 0x9b5   : > { %14961 = vmatpush3.bf16.msra.mxu1 %v16012_v63 }
 0x9b6   : > { %14962 = vmatprep.subr.bf16.mxu1 %v16013_v35 }
 0x9b9   : > { %14963 = vmatpush3.bf16.msra.mxu1 %v16013_v35 }
 0x9ba   : > { %14964 = vmatprep.subr.bf16.mxu1 %v16014_v23 }
 0x9bd   : > { %14965 = vmatpush3.bf16.msra.mxu1 %v16014_v23 }
 0x9be   : > { %14966 = vmatprep.subr.bf16.mxu1 %v16015_v50 }
 0x9c1   : > { %14967 = vmatpush3.bf16.msra.mxu1 %v16015_v50 }
 0x9c2   : > { %14976 = vmatprep.subr.bf16.mxu1 %v16016_v26 }
 0x9c4   : > { %14969 = vmatmul.mubr.bf16.vlgmr.msra.gmra.mrb[48].mxu1 %v9993_v13 }
 0x9c5   : > { %14972 = vmatprep.mubr.bf16.mxu1 %v9994_v34  ;;  %14977 = vmatpush3.bf16.msra.mxu1 %v16016_v26  ;;  %v16042_v34 = vld [vmem:[%s19477_s2 + $0x710] sm:$0xff]  }
 0x9c6   : > { %14978 = vmatprep.subr.bf16.mxu1 %v16017_v58  ;;  %15053 = vmatpush3.bf16.msra.mxu0 %v16042_v34 }
 0x9c7   : > { %15054 = vmatprep.subr.bf16.mxu0 %v19054_v32 }
 0x9c9   : > { %14979 = vmatpush3.bf16.msra.mxu1 %v16017_v58 }
 0x9ca   : > { %14980 = vmatprep.subr.bf16.mxu1 %v16018_v33 }
 0x9cc   : > { %14973 = vmatmul.mubr.bf16.gmra.mrb[72].mxu1 %v9995_v4  ;;  %v16043_v4 = vld [vmem:[%s19477_s2 + $0x718] sm:$0xff]  }
 0x9cd   : > { %14981 = vmatpush3.bf16.msra.mxu1 %v16018_v33  ;;  %14992 = vmatprep.mubr.bf16.mxu1 %v10139_v21  ;;  %v10137_v21 = vld [vmem:[#allocation4 + $0x30] sm:$0xff] }
 0x9ce   : > { %14982 = vmatprep.subr.bf16.mxu1 %v16019_v6  ;;  %v10141_v46 = vpack.c.bf16 %v10137_v21, %v18839_v54  ;;  %v16030_v54 = vld [vmem:[%s19477_s2 + $0x670] sm:$0xff]   ;;  %15055 = vmatpush3.bf16.msra.mxu0 %v16043_v4 }
 0x9cf   : > { %15056 = vmatprep.subr.bf16.mxu0 %v19054_v32 }
 0x9d1   : > { %14983 = vmatpush3.bf16.msra.mxu1 %v16019_v6  ;;  %v16044_v6 = vld [vmem:[%s19477_s2 + $0x720] sm:$0xff]  }
 0x9d2   : > { %14984 = vmatprep.subr.bf16.mxu1 %v16020_v38  ;;  %15057 = vmatpush3.bf16.msra.mxu0 %v16044_v6 }
 0x9d3   : > { %15058 = vmatprep.subr.bf16.mxu0 %v19054_v32 }
 0x9d5   : > { %14985 = vmatpush3.bf16.msra.mxu1 %v16020_v38 }
 0x9d6   : > { %14986 = vmatprep.subr.bf16.mxu1 %v16021_v8 }
 0x9d9   : > { %14987 = vmatpush3.bf16.msra.mxu1 %v16021_v8 }
 0x9da   : > { %14988 = vmatprep.subr.bf16.mxu1 %v16022_v31 }
 0x9dd   : > { %14989 = vmatpush3.bf16.msra.mxu1 %v16022_v31 }
 0x9de   : > { %14990 = vmatprep.subr.bf16.mxu1 %v16023_v39 }
 0x9e1   : > { %14991 = vmatpush3.bf16.msra.mxu1 %v16023_v39 }
 0x9e2   : > { %15000 = vmatprep.subr.bf16.mxu1 %v16024_v53 }
 0x9e4   : > { %14993 = vmatmul.mubr.bf16.vlgmr.msra.gmra.mrb[48].mxu1 %v10140_v18  ;;  %v16033_v18 = vld [vmem:[%s19477_s2 + $0x688] sm:$0xff]  }
 0x9e5   : > { %14996 = vmatprep.mubr.bf16.mxu1 %v10141_v46  ;;  %15001 = vmatpush3.bf16.msra.mxu1 %v16024_v53  ;;  %v16045_v46 = vld [vmem:[%s19477_s2 + $0x728] sm:$0xff]  }
 0x9e6   : > { %15002 = vmatprep.subr.bf16.mxu1 %v16025_v11  ;;  %15059 = vmatpush3.bf16.msra.mxu0 %v16045_v46 }
 0x9e7   : > { %15060 = vmatprep.subr.bf16.mxu0 %v19054_v32 }
 0x9e9   : > { %15003 = vmatpush3.bf16.msra.mxu1 %v16025_v11 }
 0x9ea   : > { %15004 = vmatprep.subr.bf16.mxu1 %v16026_v61 }
 0x9ec   : > { %14997 = vmatmul.mubr.bf16.gmra.mrb[76].mxu1 %v10142_v7 }
 0x9ed   : > { %15005 = vmatpush3.bf16.msra.mxu1 %v16026_v61  ;;  %15016 = vmatprep.mubr.bf16.mxu1 %v10286_v48  ;;  %v10284_v48 = vld [vmem:[#allocation4 + $0x31] sm:$0xff] }
 0x9ee   : > { %15006 = vmatprep.subr.bf16.mxu1 %v16027_v40  ;;  %v10288_v51 = vpack.c.bf16 %v10284_v48, %v18802_v62  ;;  %v16046_v61 = vld [vmem:[%s19477_s2 + $0x730] sm:$0xff]  }
 0x9ef   : > { %15061 = vmatpush3.bf16.msra.mxu0 %v16046_v61 }
 0x9f0   : > { %15062 = vmatprep.subr.bf16.mxu0 %v19054_v32 }
 0x9f1   : > { %15007 = vmatpush3.bf16.msra.mxu1 %v16027_v40 }
 0x9f2   : > { %15008 = vmatprep.subr.bf16.mxu1 %v16028_v12 }
 0x9f3   : > { %15063 = vmatpush3.bf16.msra.mxu0 %v16047_v3 }
 0x9f4   : > { %15076 = vmatprep.subr.bf16.mxu0 %v19054_v32 }
 0x9f5   : > { %15009 = vmatpush3.bf16.msra.mxu1 %v16028_v12 }
 0x9f6   : > { %15010 = vmatprep.subr.bf16.mxu1 %v16029_v25 }
 0x9f9   : > { %15011 = vmatpush3.bf16.msra.mxu1 %v16029_v25 }
 0x9fa   : > { %15012 = vmatprep.subr.bf16.mxu1 %v16030_v54 }
 0x9fd   : > { %15013 = vmatpush3.bf16.msra.mxu1 %v16030_v54 }
 0x9fe   : > { %15014 = vmatprep.subr.bf16.mxu1 %v16031_v28 }
 0xa01   : > { %15015 = vmatpush3.bf16.msra.mxu1 %v16031_v28 }
 0xa02   : > { %15024 = vmatprep.subr.bf16.mxu1 %v16032_v10 }
 0xa04   : > { %15017 = vmatmul.mubr.bf16.vlgmr.msra.gmra.mrb[48].mxu1 %v10287_v5 }
 0xa05   : > { %15020 = vmatprep.mubr.bf16.mxu1 %v10288_v51  ;;  %15025 = vmatpush3.bf16.msra.mxu1 %v16032_v10 }
 0xa06   : > { %15026 = vmatprep.subr.bf16.mxu1 %v16033_v18 }
 0xa09   : > { %15027 = vmatpush3.bf16.msra.mxu1 %v16033_v18 }
 0xa0a   : > { %15028 = vmatprep.subr.bf16.mxu1 %v16034_v49 }
 0xa0c   : > { %15021 = vmatmul.mubr.bf16.gmra.mrb[80].mxu1 %v10289_v9 }
 0xa0d   : > { %15029 = vmatpush3.bf16.msra.mxu1 %v16034_v49  ;;  %15040 = vmatprep.mubr.bf16.mxu1 %v10433_v60 }
 0xa0e   : > { %15030 = vmatprep.subr.bf16.mxu1 %v16035_v43 }
 0xa0f   : > { %v14854_v15 = vpop.f32.mrb[52].mxu1 }
 0xa10   : > { %v9418_v62 = vpop.f32.mrb[53].mxu1 }
 0xa11   : > { %15031 = vmatpush3.bf16.msra.mxu1 %v16035_v43  ;;  %v14855_v5 = vpop.f32.mrb[54].mxu1 }
 0xa12   : > { %v9421_v41 = vpop.f32.mrb[55].mxu1  ;;  %15032 = vmatprep.subr.bf16.mxu1 %v16036_v57 }
 0xa15   : > { %15033 = vmatpush3.bf16.msra.mxu1 %v16036_v57 }
 0xa16   : > { %15034 = vmatprep.subr.bf16.mxu1 %v16037_v56 }
 0xa19   : > { %15035 = vmatpush3.bf16.msra.mxu1 %v16037_v56 }
 0xa1a   : > { %15036 = vmatprep.subr.bf16.mxu1 %v16038_v1 }
 0xa1d   : > { %15037 = vmatpush3.bf16.msra.mxu1 %v16038_v1 }
 0xa1e   : > { %15038 = vmatprep.subr.bf16.mxu1 %v16039_v24 }
 0xa1f   : > { %v14878_v60 = vpop.f32.mrb[56].mxu1 }
 0xa20   : > { %v9539_v2 = vadd.f32 %v14878_v60, %v14854_v15  ;;  %v9530_v17 = vpop.f32.mrb[57].mxu1  ;;  %v19086_v60 = vld [vmem:[%s19478_s3] sm:$0x1f] }
 0xa21   : > { %v9531_v37 = vadd.f32 %v9530_v17, %v9418_v62  ;;  %15039 = vmatpush3.bf16.msra.mxu1 %v16039_v24  ;;  %v14879_v29 = vpop.f32.mrb[58].mxu1  ;;  %v10575_v24 = vsub.s32 3, %v19619_v20 }
 0xa22   : > { %v9533_v47 = vpop.f32.mrb[59].mxu1 }
 0xa23   : > { %v9534_v45 = vadd.f32 %v9533_v47, %v9421_v41 }
 0xa24   : > { %15041 = vmatmul.mubr.bf16.vlgmr.msra.gmra.mrb[48].mxu1 %v10434_v14 }
 0xa25   : > { %15044 = vmatprep.mubr.bf16.mxu1 %v10435_v30 }
 0xa2c   : > { %15045 = vmatmul.mubr.bf16.gmra.mrb[84].mxu1 %v10436_v27 }
 0xa3f   : > { %v14902_v63 = vpop.f32.mrb[60].mxu1 }
 0xa40   : > { %v9690_v35 = vadd.f32 %v14902_v63, %v9539_v2  ;;  %v9670_v23 = vpop.f32.mrb[61].mxu1  ;;  %v10576_v2 = vrot.slane %v19086_v60, %v10575_v24 }
 0xa41   : > { %v9688_v50 = vadd.f32 %v9670_v23, %v9531_v37  ;;  %v14903_v26 = vpop.f32.mrb[62].mxu1 }
 0xa42   : > { %v9673_v42 = vpop.f32.mrb[63].mxu1 }
 0xa43   : > { %v9689_v59 = vadd.f32 %v9673_v42, %v9534_v45 }
 0xa5f   : > { %v14926_v14 = vpop.f32.mrb[64].mxu1 }
 0xa60   : > { %v9837_v0 = vadd.f32 %v14926_v14, %v9690_v35  ;;  %v9817_v13 = vpop.f32.mrb[65].mxu1 }
 0xa61   : > { %v9835_v16 = vadd.f32 %v9817_v13, %v9688_v50  ;;  %v14927_v58 = vpop.f32.mrb[66].mxu1 }
 0xa62   : > { %v9820_v33 = vpop.f32.mrb[67].mxu1 }
 0xa63   : > { %v9836_v36 = vadd.f32 %v9820_v33, %v9689_v59 }
 0xa7f   : > { %v14950_v38 = vpop.f32.mrb[68].mxu1 }
 0xa80   : > { %v9984_v8 = vadd.f32 %v14950_v38, %v9837_v0  ;;  %v9964_v31 = vpop.f32.mrb[69].mxu1 }
 0xa81   : > { %v9982_v39 = vadd.f32 %v9964_v31, %v9835_v16  ;;  %v14951_v53 = vpop.f32.mrb[70].mxu1 }
 0xa82   : > { %v9967_v21 = vpop.f32.mrb[71].mxu1 }
 0xa83   : > { %v9983_v11 = vadd.f32 %v9967_v21, %v9836_v36 }
 0xa9f   : > { %v14974_v7 = vpop.f32.mrb[72].mxu1 }
 0xaa0   : > { %v10131_v40 = vadd.f32 %v14974_v7, %v9984_v8  ;;  %v10111_v12 = vpop.f32.mrb[73].mxu1 }
 0xaa1   : > { %v10129_v25 = vadd.f32 %v10111_v12, %v9982_v39  ;;  %v14975_v54 = vpop.f32.mrb[74].mxu1 }
 0xaa2   : > { %v10114_v28 = vpop.f32.mrb[75].mxu1 }
 0xaa3   : > { %v10130_v10 = vadd.f32 %v10114_v28, %v9983_v11 }
 0xabf   : > { %v14998_v48 = vpop.f32.mrb[76].mxu1 }
 0xac0   : > { %v10278_v18 = vadd.f32 %v14998_v48, %v10131_v40  ;;  %v10258_v51 = vpop.f32.mrb[77].mxu1 }
 0xac1   : > { %v10276_v49 = vadd.f32 %v10258_v51, %v10129_v25  ;;  %v14999_v52 = vpop.f32.mrb[78].mxu1 }
 0xac2   : > { %v10261_v9 = vpop.f32.mrb[79].mxu1 }
 0xac3   : > { %v10277_v43 = vadd.f32 %v10261_v9, %v10130_v10 }
 0xadf   : > { %v15022_v57 = vpop.f32.mrb[80].mxu1 }
 0xae0   : > { %v10425_v15 = vadd.f32 %v15022_v57, %v10278_v18  ;;  %v10405_v62 = vpop.f32.mrb[81].mxu1 }
 0xae1   : > { %v10423_v5 = vadd.f32 %v10405_v62, %v10276_v49  ;;  %v15023_v41 = vpop.f32.mrb[82].mxu1 }
 0xae2   : > { %v10408_v56 = vpop.f32.mrb[83].mxu1 }
 0xae3   : > { %v10424_v1 = vadd.f32 %v10408_v56, %v10277_v43  ;;  %v16049_v56 = vld [vmem:[%s19477_s2 + $0x6c8] sm:$0xff]  }
 0xaf7   : > { %v15042_v17 = vpop.f32.mrb[48].mxu1 }
 0xaf8   : > { %v10579_v55 = vadd.f32 %v15042_v17, %v10576_v2  ;;  %v10536_v37 = vpop.f32.mrb[49].mxu1 }
 0xaf9   : > { %v10577_v29 = vadd.f32 %v10576_v2, %v10536_v37  ;;  %v15043_v47 = vpop.f32.mrb[50].mxu1  ;;  %v16052_v37 = vld [vmem:[%s19477_s2 + $0x6e0] sm:$0xff]  }
 0xafa   : > { %v10586_v45 = vmax.f32 %v10579_v55, 0.0  ;;  %v10580_v30 = vadd.f32 %v15043_v47, %v10576_v2  ;;  %v10539_v22 = vpop.f32.mrb[51].mxu1  ;;  %v16051_v55 = vld [vmem:[%s19477_s2 + $0x6d8] sm:$0xff]  }
 0xafb   : > { %v10584_v27 = vmax.f32 %v10577_v29, 0.0  ;;  %v10578_v63 = vadd.f32 %v10576_v2, %v10539_v22  ;;  %v16055_v22 = vld [vmem:[%s19477_s2 + $0x6f8] sm:$0xff]  }
 0xafc   : > { %v10587_v35 = vmax.f32 %v10580_v30, 0.0  ;;  %v10601_v50 = vrot.slane %v10586_v45, 1  ;;  %v16054_v30 = vld [vmem:[%s19477_s2 + $0x6f0] sm:$0xff]  }
 0xafd   : > { %v10585_v23 = vmax.f32 %v10578_v63, 0.0  ;;  %v10598_v42 = vrot.slane %v10584_v27, 1  ;;  %v16056_v63 = vld [vmem:[%s19477_s2 + $0x740] sm:$0xff]  }
 0xafe   : > { %v10603_v26 = vrot.slane %v10587_v35, 1 }
 0xaff   : > { %v10599_v59 = vrot.slane %v10585_v23, 1  ;;  %v15046_v44 = vpop.f32.mrb[84].mxu1 }
 0xb00   : > { %v10604_v19 = vsel %vm1653_vm1, %v10601_v50, %v10603_v26  ;;  %v10572_v14 = vadd.f32 %v15046_v44, %v10425_v15  ;;  %v10552_v0 = vpop.f32.mrb[85].mxu1  ;;  %v16048_v15 = vld [vmem:[%s19477_s2 + $0x6c0] sm:$0xff]   ;;  %v16059_v44 = vld [vmem:[%s19477_s2 + $0x758] sm:$0xff]  }
 0xb01   : > { %v10620_v13 = vmax.f32 %v10586_v45, %v10604_v19  ;;  %v10600_v16 = vsel %vm1653_vm1, %v10598_v42, %v10599_v59  ;;  %v10602_v58 = vsel %vm1653_vm1, %v10599_v59, %v10601_v50  ;;  %v10570_v34 = vadd.f32 %v10552_v0, %v10423_v5  ;;  %v15047_v33 = vpop.f32.mrb[86].mxu1  ;;  %v16053_v45 = vld [vmem:[%s19477_s2 + $0x6e8] sm:$0xff]   ;;  %v16058_v42 = vld [vmem:[%s19477_s2 + $0x750] sm:$0xff]  }
 0xb02   : > { %v10618_v36 = vmax.f32 %v10584_v27, %v10600_v16  ;;  %v10619_v4 = vmax.f32 %v10585_v23, %v10602_v58  ;;  %v10583_v6 = vadd.f32 %v10576_v2, %v10572_v14  ;;  %v10555_v38 = vpop.f32.mrb[87].mxu1  ;;  %v16057_v23 = vld [vmem:[%s19477_s2 + $0x748] sm:$0xff]   ;;  %v10664_v19 = vpack.c.bf16 %v19054_v32, %v19054_v32  ;;  %v16060_v14 = vld [vmem:[%s19477_s2 + $0x760] sm:$0xff]   ;;  %v16063_v16 = vld [vmem:[%s19477_s2 + $0x778] sm:$0xff]  }
 0xb03   : > { %10627 = vst [vmem:[#allocation6 + $0x10] sm:$0xff] %v10620_v13  ;;  %v10581_v8 = vadd.f32 %v10576_v2, %v10570_v34  ;;  %v10571_v31 = vadd.f32 %v10555_v38, %v10424_v1  ;;  %v16050_v1 = vld [vmem:[%s19477_s2 + $0x6d0] sm:$0xff]   ;;  %v16061_v0 = vld [vmem:[%s19477_s2 + $0x768] sm:$0xff]   ;;  %v16064_v33 = vld [vmem:[%s19477_s2 + $0x780] sm:$0xff]  }
 0xb04   : > { %10625 = vst [vmem:[#allocation6] sm:$0xff] %v10618_v36  ;;  %10626 = vst [vmem:[#allocation6 + $0x8] sm:$0xff] %v10619_v4  ;;  %v10590_v39 = vmax.f32 %v10583_v6, 0.0  ;;  %v16062_v13 = vld [vmem:[%s19477_s2 + $0x770] sm:$0xff]   ;;  %v16065_v4 = vld [vmem:[%s19477_s2 + $0x788] sm:$0xff]  }
 0xb05   : > { %v10588_v53 = vmax.f32 %v10581_v8, 0.0  ;;  %v10582_v21 = vadd.f32 %v10576_v2, %v10571_v31  ;;  %v16066_v8 = vld [vmem:[%s19477_s2 + $0x790] sm:$0xff]  }
 0xb06   : > { %v10609_v11 = vrot.slane %v10590_v39, 1 }
 0xb07   : > { %v10605_v46 = vrot.slane %v10588_v53, 1  ;;  %v10589_v61 = vmax.f32 %v10582_v21, 0.0  ;;  %v16068_v21 = vld [vmem:[%s19477_s2 + $0x7a0] sm:$0xff]  }
 0xb08   : > { %v10624_v3 = vmax.f32 %v10590_v39, %v10609_v11  ;;  %v16067_v39 = vld [vmem:[%s19477_s2 + $0x798] sm:$0xff]  }
 0xb09   : > { %v10606_v7 = vsel %vm1653_vm1, %v10603_v26, %v10605_v46  ;;  %v10607_v40 = vrot.slane %v10589_v61, 1 }
 0xb0a   : > { %v10644_v12 = vld [vmem:[#allocation6 + $0x10] ss:$2 sm:$0x1]  ;;  %v10646_v25 = vld [vmem:[#allocation6 + $0x14] ss:$2 sm:$0x1]  ;;  %v10621_v54 = vmax.f32 %v10587_v35, %v10606_v7 }
 0xb0b   : > { %10631 = vst [vmem:[#allocation6 + $0x30] sm:$0x1f] %v10624_v3  ;;  %10645 = vst [vmem:[#allocation5 + $0x10] sm:$0x1] %v10644_v12  ;;  %v10608_v48 = vsel %vm1653_vm1, %v10605_v46, %v10607_v40  ;;  %v10610_v18 = vsel %vm1653_vm1, %v10607_v40, %v10609_v11  ;;  %v16069_v46 = vld [vmem:[%s19477_s2 + $0x7a8] sm:$0xff]   ;;  %v16071_v3 = vld [vmem:[%s19477_s2 + $0x7b8] sm:$0xff]  }
 0xb0c   : > { %10647 = vst [vmem:[#allocation5 + $0x13] sm:$0x1] %v10646_v25  ;;  %v10638_v28 = vld [vmem:[#allocation6] ss:$2 sm:$0x1]  ;;  %10628 = vst [vmem:[#allocation6 + $0x18] sm:$0xff] %v10621_v54  ;;  %v10622_v51 = vmax.f32 %v10588_v53, %v10608_v48  ;;  %v10623_v49 = vmax.f32 %v10589_v61, %v10610_v18 }
 0xb0d   : > { %v10641_v10 = vld [vmem:[#allocation6 + $0x4] ss:$2 sm:$0x1]  ;;  %10639 = vst [vmem:[#allocation5 + $0x4] sm:$0x1] %v10638_v28  ;;  %v16072_v12 = vld [vmem:[%s19477_s2 + $0x7c0] sm:$0xff]  }
 0xb0e   : > { %10642 = vst [vmem:[#allocation5 + $0x7] sm:$0x1] %v10641_v10  ;;  %10629 = vst [vmem:[#allocation6 + $0x20] sm:$0xff] %v10622_v51  ;;  %v16070_v61 = vld [vmem:[%s19477_s2 + $0x7b0] sm:$0xff]   ;;  %v16073_v54 = vld [vmem:[%s19477_s2 + $0x7c8] sm:$0xff]  }
 0xb0f   : > { %10630 = vst [vmem:[#allocation6 + $0x28] sm:$0xff] %v10623_v49  ;;  %v16074_v48 = vld [vmem:[%s19477_s2 + $0x7d0] sm:$0xff]   ;;  %v16075_v51 = vld [vmem:[%s19477_s2 + $0x7d8] sm:$0xff]  }
 0xb12   : > { %v10652_v52 = vld [vmem:[#allocation6 + $0x30] ss:$2 sm:$0x1]  ;;  %v10655_v9 = vld [vmem:[#allocation6 + $0x34] ss:$2 sm:$0x1] }
 0xb13   : > { %10653 = vst [vmem:[#allocation5 + $0x28] sm:$0x1] %v10652_v52  ;;  %10656 = vst [vmem:[#allocation5 + $0x2b] sm:$0x1] %v10655_v9  ;;  %v10683_v43 = vld [vmem:[#allocation5 + $0x9] sm:$0xff]  ;;  %v10684_v24 = vld [vmem:[#allocation5 + $0x11] sm:$0xff] }
 0xb14   : > { %v19145_v26 = vld [vmem:[#allocation5 + $0x10] sm:$0xff]  ;;  %v16076_v52 = vld [vmem:[%s19477_s2 + $0x7e0] sm:$0xff]  }
 0xb15   : > { %v10682_v57 = vld [vmem:[#allocation5 + $0x1] sm:$0xff]  ;;  %v10648_v5 = vld [vmem:[#allocation6 + $0x20] ss:$2 sm:$0x1]  ;;  %v10915_v38 = vld [vmem:[#allocation5 + $0x12] sm:$0xff] }
 0xb16   : > { %v10687_v62 = vpack.c.bf16 %v10683_v43, %v10682_v57  ;;  %v10650_v41 = vld [vmem:[#allocation6 + $0x24] ss:$2 sm:$0x1]  ;;  %10649 = vst [vmem:[#allocation5 + $0x1c] sm:$0x1] %v10648_v5  ;;  %v10657_v27 = vld [vmem:[#allocation5] sm:$0xff] }
 0xb17   : > { %10651 = vst [vmem:[#allocation5 + $0x1f] sm:$0x1] %v10650_v41  ;;  %v10662_v35 = vpack.c.bf16 %v19054_v32, %v10657_v27  ;;  %v10913_v58 = vld [vmem:[#allocation5 + $0x2] sm:$0xff]  ;;  %v10914_v34 = vld [vmem:[#allocation5 + $0xa] sm:$0xff]  ;;  %v11047_v10 = vld [vmem:[#allocation5 + $0x13] sm:$0xff] }
 0xb18   : > { %15065 = vmatmul.mubr.bf16.vlgmr.msra.gmra.mrb[196].mxu0 %v10687_v62  ;;  %v10918_v36 = vpack.c.bf16 %v10914_v34, %v10913_v58  ;;  %v11045_v7 = vld [vmem:[#allocation5 + $0x3] sm:$0xff]  ;;  %v11046_v40 = vld [vmem:[#allocation5 + $0xb] sm:$0xff]  ;;  %v16087_v27 = vld [vmem:[%s19477_s2 + $0x838] sm:$0xff]  }
 0xb19   : > { %15077 = vmatpush3.bf16.msra.mxu0 %v16048_v15  ;;  %15068 = vmatprep.mubr.msk.bf16.mxu0 %vm16227_vm2, %v19054_v32  ;;  %v11050_v25 = vpack.c.bf16 %v11046_v40, %v11045_v7  ;;  %v16077_v43 = vld [vmem:[%s19477_s2 + $0x7e8] sm:$0xff]   ;;  %v16078_v57 = vld [vmem:[%s19477_s2 + $0x7f0] sm:$0xff]   ;;  %v16079_v15 = vld [vmem:[%s19477_s2 + $0x7f8] sm:$0xff]  }
 0xb1a   : > { %15078 = vmatprep.subr.bf16.mxu0 %v19054_v32  ;;  %v10686_v29 = vld [vmem:[#allocation5 + $0x21] sm:$0xff]  ;;  %v11178_v5 = vld [vmem:[#allocation5 + $0xc] sm:$0xff] }
 0xb1b   : > { %v10689_v47 = vpack.c.bf16 %v10686_v29, %v10686_v29  ;;  %v10917_v53 = vld [vmem:[#allocation5 + $0x22] sm:$0xff] }
 0xb1c   : > { %v10920_v11 = vpack.c.bf16 %v10917_v53, %v10917_v53  ;;  %v11049_v49 = vld [vmem:[#allocation5 + $0x23] sm:$0xff] }
 0xb1d   : > { %15079 = vmatpush3.bf16.msra.mxu0 %v16049_v56  ;;  %v11052_v9 = vpack.c.bf16 %v11049_v49, %v11049_v49  ;;  %v11177_v62 = vld [vmem:[#allocation5 + $0x4] sm:$0xff]  ;;  %v11443_v53 = vld [vmem:[#allocation5 + $0x16] sm:$0xff] }
 0xb1e   : > { %15080 = vmatprep.subr.bf16.mxu0 %v19054_v32  ;;  %v10685_v2 = vld [vmem:[#allocation5 + $0x19] sm:$0xff]  ;;  %v11182_v56 = vpack.c.bf16 %v11178_v5, %v11177_v62  ;;  %v11181_v29 = vld [vmem:[#allocation5 + $0x24] sm:$0xff]  ;;  %v11574_v49 = vld [vmem:[#allocation5 + $0xf] sm:$0xff] }
 0xb1f   : > { %v10688_v17 = vpack.c.bf16 %v10685_v2, %v10684_v24  ;;  %v19143_v50 = vld [vmem:[#allocation5 + $0x18] sm:$0xff]  ;;  %v16080_v41 = vld [vmem:[%s19477_s2 + $0x800] sm:$0xff]   ;;  %v16105_v5 = vld [vmem:[%s19477_s2 + $0x8c8] sm:$0xff]  }
 0xb20   : > { %v10663_v59 = vpack.c.bf16 %v19143_v50, %v19145_v26  ;;  %v10916_v6 = vld [vmem:[#allocation5 + $0x1a] sm:$0xff] }
 0xb21   : > { %15081 = vmatpush3.bf16.msra.mxu0 %v16050_v1  ;;  %v10919_v31 = vpack.c.bf16 %v10916_v6, %v10915_v38  ;;  %v11048_v28 = vld [vmem:[#allocation5 + $0x1b] sm:$0xff]  ;;  %v16081_v1 = vld [vmem:[%s19477_s2 + $0x808] sm:$0xff]  }
 0xb22   : > { %15069 = vmatmul.mubr.bf16.gmra.mrb[200].mxu0 %v10688_v17  ;;  %15082 = vmatprep.subr.bf16.mxu0 %v19054_v32  ;;  %v11051_v18 = vpack.c.bf16 %v11048_v28, %v11047_v10  ;;  %v11179_v24 = vld [vmem:[#allocation5 + $0x14] sm:$0xff]  ;;  %v11180_v2 = vld [vmem:[#allocation5 + $0x1c] sm:$0xff]  ;;  %v11441_v6 = vld [vmem:[#allocation5 + $0x6] sm:$0xff] }
 0xb23   : > { %15072 = vmatprep.mubr.msk.bf16.mxu0 %vm16227_vm2, %v19054_v32  ;;  %v16082_v17 = vld [vmem:[%s19477_s2 + $0x810] sm:$0xff]   ;;  %v16092_v58 = vld [vmem:[%s19477_s2 + $0x860] sm:$0xff]  }
 0xb24   : > { %v11442_v38 = vld [vmem:[#allocation5 + $0xe] sm:$0xff]  ;;  %v16100_v7 = vld [vmem:[%s19477_s2 + $0x8a0] sm:$0xff]  }
 0xb25   : > { %15083 = vmatpush3.bf16.msra.mxu0 %v16051_v55  ;;  %v11183_v55 = vpack.c.bf16 %v11180_v2, %v11179_v24  ;;  %v16102_v10 = vld [vmem:[%s19477_s2 + $0x8b0] sm:$0xff]  }
 0xb26   : > { %15084 = vmatprep.subr.bf16.mxu0 %v19054_v32  ;;  %v16106_v24 = vld [vmem:[%s19477_s2 + $0x8d0] sm:$0xff]  }
 0xb29   : > { %15085 = vmatpush3.bf16.msra.mxu0 %v16052_v37  ;;  %v16083_v37 = vld [vmem:[%s19477_s2 + $0x818] sm:$0xff]  }
 0xb2a   : > { %15073 = vmatmul.mubr.bf16.gmra.mrb[204].mxu0 %v10689_v47  ;;  %15086 = vmatprep.subr.bf16.mxu0 %v19054_v32  ;;  %v16084_v47 = vld [vmem:[%s19477_s2 + $0x820] sm:$0xff]  }
 0xb2b   : > { %15092 = vmatprep.mubr.msk.bf16.mxu0 %vm16227_vm2, %v19054_v32 }
 0xb2d   : > { %15087 = vmatpush3.bf16.msra.mxu0 %v16053_v45  ;;  %v11184_v45 = vpack.c.bf16 %v11181_v29, %v11181_v29  ;;  %v16107_v29 = vld [vmem:[%s19477_s2 + $0x8d8] sm:$0xff]  }
 0xb2e   : > { %15088 = vmatprep.subr.bf16.mxu0 %v19054_v32 }
 0xb31   : > { %15089 = vmatpush3.bf16.msra.mxu0 %v16054_v30  ;;  %v16085_v30 = vld [vmem:[%s19477_s2 + $0x828] sm:$0xff]  }
 0xb32   : > { %15090 = vmatprep.subr.bf16.mxu0 %v19054_v32 }
 0xb35   : > { %15091 = vmatpush3.bf16.msra.mxu0 %v16055_v22  ;;  %v16086_v22 = vld [vmem:[%s19477_s2 + $0x830] sm:$0xff]  }
 0xb36   : > { %15104 = vmatprep.subr.bf16.mxu0 %v19054_v32 }
 0xb38   : > { %15093 = vmatmul.mubr.bf16.vlgmr.msra.gmra.mrb[208].mxu0 %v10662_v35  ;;  %v11310_v35 = vld [vmem:[#allocation5 + $0xd] sm:$0xff] }
 0xb39   : > { %15105 = vmatpush3.bf16.msra.mxu0 %v16056_v63  ;;  %15096 = vmatprep.mubr.msk.bf16.mxu0 %vm16227_vm2, %v19054_v32  ;;  %v11309_v63 = vld [vmem:[#allocation5 + $0x5] sm:$0xff] }
 0xb3a   : > { %15106 = vmatprep.subr.bf16.mxu0 %v19054_v32 }
 0xb3d   : > { %15107 = vmatpush3.bf16.msra.mxu0 %v16057_v23  ;;  %v16088_v23 = vld [vmem:[%s19477_s2 + $0x840] sm:$0xff]  }
 0xb3e   : > { %15108 = vmatprep.subr.bf16.mxu0 %v19054_v32 }
 0xb40   : > { %15097 = vmatmul.mubr.bf16.gmra.mrb[212].mxu0 %v10663_v59  ;;  %v16089_v59 = vld [vmem:[%s19477_s2 + $0x848] sm:$0xff]  }
 0xb41   : > { %15109 = vmatpush3.bf16.msra.mxu0 %v16058_v42  ;;  %15100 = vmatprep.mubr.msk.bf16.mxu0 %vm16227_vm2, %v19054_v32  ;;  %v11314_v42 = vpack.c.bf16 %v11310_v35, %v11309_v63 }
 0xb42   : > { %15110 = vmatprep.subr.bf16.mxu0 %v19054_v32 }
 0xb45   : > { %15111 = vmatpush3.bf16.msra.mxu0 %v16059_v44  ;;  %v11311_v44 = vld [vmem:[#allocation5 + $0x15] sm:$0xff] }
 0xb46   : > { %15112 = vmatprep.subr.bf16.mxu0 %v19054_v32 }
 0xb48   : > { %15101 = vmatmul.mubr.bf16.gmra.mrb[216].mxu0 %v10664_v19  ;;  %v11312_v19 = vld [vmem:[#allocation5 + $0x1d] sm:$0xff] }
 0xb49   : > { %15113 = vmatpush3.bf16.msra.mxu0 %v16060_v14  ;;  %15120 = vmatprep.mubr.msk.bf16.mxu0 %vm16227_vm2, %v19054_v32  ;;  %v16090_v14 = vld [vmem:[%s19477_s2 + $0x850] sm:$0xff]  }
 0xb4a   : > { %15114 = vmatprep.subr.bf16.mxu0 %v19054_v32 }
 0xb4d   : > { %15115 = vmatpush3.bf16.msra.mxu0 %v16061_v0  ;;  %v11315_v0 = vpack.c.bf16 %v11312_v19, %v11311_v44  ;;  %v16111_v19 = vld [vmem:[%s19477_s2 + $0x8f8] sm:$0xff]  }
 0xb4e   : > { %15116 = vmatprep.subr.bf16.mxu0 %v19054_v32 }
 0xb51   : > { %15117 = vmatpush3.bf16.msra.mxu0 %v16062_v13  ;;  %v16091_v13 = vld [vmem:[%s19477_s2 + $0x858] sm:$0xff]  }
 0xb52   : > { %15118 = vmatprep.subr.bf16.mxu0 %v19054_v32 }
 0xb55   : > { %15119 = vmatpush3.bf16.msra.mxu0 %v16063_v16  ;;  %v11313_v16 = vld [vmem:[#allocation5 + $0x25] sm:$0xff] }
 0xb56   : > { %15132 = vmatprep.subr.bf16.mxu0 %v19054_v32  ;;  %v11316_v34 = vpack.c.bf16 %v11313_v16, %v11313_v16 }
 0xb58   : > { %15121 = vmatmul.mubr.bf16.vlgmr.msra.gmra.mrb[220].mxu0 %v10918_v36  ;;  %v16094_v36 = vld [vmem:[%s19477_s2 + $0x870] sm:$0xff]  }
 0xb59   : > { %15133 = vmatpush3.bf16.msra.mxu0 %v16064_v33  ;;  %15124 = vmatprep.mubr.msk.bf16.mxu0 %vm16227_vm2, %v19054_v32  ;;  %v16093_v33 = vld [vmem:[%s19477_s2 + $0x868] sm:$0xff]  }
 0xb5a   : > { %15134 = vmatprep.subr.bf16.mxu0 %v19054_v32 }
 0xb5d   : > { %15135 = vmatpush3.bf16.msra.mxu0 %v16065_v4  ;;  %v16095_v4 = vld [vmem:[%s19477_s2 + $0x878] sm:$0xff]  }
 0xb5e   : > { %15136 = vmatprep.subr.bf16.mxu0 %v19054_v32 }
 0xb60   : > { %15125 = vmatmul.mubr.bf16.gmra.mrb[224].mxu0 %v10919_v31  ;;  %v11446_v31 = vpack.c.bf16 %v11442_v38, %v11441_v6  ;;  %v11711_v38 = vpack.c.bf16 %v19054_v32, %v19143_v50 }
 0xb61   : > { %15137 = vmatpush3.bf16.msra.mxu0 %v16066_v8  ;;  %15128 = vmatprep.mubr.msk.bf16.mxu0 %vm16227_vm2, %v19054_v32  ;;  %v16096_v8 = vld [vmem:[%s19477_s2 + $0x880] sm:$0xff]  }
 0xb62   : > { %15138 = vmatprep.subr.bf16.mxu0 %v19054_v32 }
 0xb65   : > { %15139 = vmatpush3.bf16.msra.mxu0 %v16067_v39  ;;  %v16097_v39 = vld [vmem:[%s19477_s2 + $0x888] sm:$0xff]  }
 0xb66   : > { %15140 = vmatprep.subr.bf16.mxu0 %v19054_v32 }
 0xb68   : > { %15129 = vmatmul.mubr.bf16.gmra.mrb[228].mxu0 %v10920_v11  ;;  %v16098_v11 = vld [vmem:[%s19477_s2 + $0x890] sm:$0xff]  }
 0xb69   : > { %15141 = vmatpush3.bf16.msra.mxu0 %v16068_v21  ;;  %15148 = vmatprep.mubr.msk.bf16.mxu0 %vm16227_vm2, %v19054_v32  ;;  %v11444_v21 = vld [vmem:[#allocation5 + $0x1e] sm:$0xff] }
 0xb6a   : > { %15142 = vmatprep.subr.bf16.mxu0 %v19054_v32 }
 0xb6d   : > { %15143 = vmatpush3.bf16.msra.mxu0 %v16069_v46  ;;  %v11447_v46 = vpack.c.bf16 %v11444_v21, %v11443_v53 }
 0xb6e   : > { %15144 = vmatprep.subr.bf16.mxu0 %v19054_v32 }
 0xb71   : > { %15145 = vmatpush3.bf16.msra.mxu0 %v16070_v61  ;;  %v16099_v61 = vld [vmem:[%s19477_s2 + $0x898] sm:$0xff]  }
 0xb72   : > { %15146 = vmatprep.subr.bf16.mxu0 %v19054_v32 }
 0xb75   : > { %15147 = vmatpush3.bf16.msra.mxu0 %v16071_v3  ;;  %v11445_v3 = vld [vmem:[#allocation5 + $0x26] sm:$0xff] }
 0xb76   : > { %15160 = vmatprep.subr.bf16.mxu0 %v19054_v32  ;;  %v11448_v40 = vpack.c.bf16 %v11445_v3, %v11445_v3 }
 0xb78   : > { %15149 = vmatmul.mubr.bf16.vlgmr.msra.gmra.mrb[232].mxu0 %v11050_v25 }
 0xb79   : > { %15161 = vmatpush3.bf16.msra.mxu0 %v16072_v12  ;;  %15152 = vmatprep.mubr.msk.bf16.mxu0 %vm16227_vm2, %v19054_v32  ;;  %v16101_v12 = vld [vmem:[%s19477_s2 + $0x8a8] sm:$0xff]  }
 0xb7a   : > { %15162 = vmatprep.subr.bf16.mxu0 %v19054_v32 }
 0xb7d   : > { %15163 = vmatpush3.bf16.msra.mxu0 %v16073_v54 }
 0xb7e   : > { %15164 = vmatprep.subr.bf16.mxu0 %v19054_v32 }
 0xb80   : > { %15153 = vmatmul.mubr.bf16.gmra.mrb[236].mxu0 %v11051_v18  ;;  %v16103_v18 = vld [vmem:[%s19477_s2 + $0x8b8] sm:$0xff]  }
 0xb81   : > { %15165 = vmatpush3.bf16.msra.mxu0 %v16074_v48  ;;  %15156 = vmatprep.mubr.msk.bf16.mxu0 %vm16227_vm2, %v19054_v32 }
 0xb82   : > { %15166 = vmatprep.subr.bf16.mxu0 %v19054_v32 }
 0xb85   : > { %15167 = vmatpush3.bf16.msra.mxu0 %v16075_v51  ;;  %v11573_v51 = vld [vmem:[#allocation5 + $0x7] sm:$0xff] }
 0xb86   : > { %15168 = vmatprep.subr.bf16.mxu0 %v19054_v32 }
 0xb88   : > { %15157 = vmatmul.mubr.bf16.gmra.mrb[240].mxu0 %v11052_v9  ;;  %v16104_v9 = vld [vmem:[%s19477_s2 + $0x8c0] sm:$0xff]  }
 0xb89   : > { %15169 = vmatpush3.bf16.msra.mxu0 %v16076_v52  ;;  %15176 = vmatprep.mubr.msk.bf16.mxu0 %vm16227_vm2, %v19054_v32 }
 0xb8a   : > { %15170 = vmatprep.subr.bf16.mxu0 %v19054_v32 }
 0xb8d   : > { %15171 = vmatpush3.bf16.msra.mxu0 %v16077_v43 }
 0xb8e   : > { %15172 = vmatprep.subr.bf16.mxu0 %v19054_v32 }
 0xb91   : > { %15173 = vmatpush3.bf16.msra.mxu0 %v16078_v57  ;;  %v11578_v57 = vpack.c.bf16 %v11574_v49, %v11573_v51 }
 0xb92   : > { %15174 = vmatprep.subr.bf16.mxu0 %v19054_v32 }
 0xb95   : > { %15175 = vmatpush3.bf16.msra.mxu0 %v16079_v15 }
 0xb96   : > { %15188 = vmatprep.subr.bf16.mxu0 %v19054_v32 }
 0xb98   : > { %15177 = vmatmul.mubr.bf16.vlgmr.msra.gmra.mrb[244].mxu0 %v11182_v56  ;;  %v11576_v56 = vld [vmem:[#allocation5 + $0x1f] sm:$0xff] }
 0xb99   : > { %15189 = vmatpush3.bf16.msra.mxu0 %v16080_v41  ;;  %15180 = vmatprep.mubr.msk.bf16.mxu0 %vm16227_vm2, %v19054_v32  ;;  %v11575_v41 = vld [vmem:[#allocation5 + $0x17] sm:$0xff] }
 0xb9a   : > { %15190 = vmatprep.subr.bf16.mxu0 %v19054_v32 }
 0xb9d   : > { %15191 = vmatpush3.bf16.msra.mxu0 %v16081_v1 }
 0xb9e   : > { %15192 = vmatprep.subr.bf16.mxu0 %v19054_v32 }
 0xba0   : > { %15181 = vmatmul.mubr.bf16.gmra.mrb[248].mxu0 %v11183_v55 }
 0xba1   : > { %15193 = vmatpush3.bf16.msra.mxu0 %v16082_v17  ;;  %15184 = vmatprep.mubr.msk.bf16.mxu0 %vm16227_vm2, %v19054_v32  ;;  %v11579_v17 = vpack.c.bf16 %v11576_v56, %v11575_v41 }
 0xba2   : > { %15194 = vmatprep.subr.bf16.mxu0 %v19054_v32 }
 0xba5   : > { %15195 = vmatpush3.bf16.msra.mxu0 %v16083_v37 }
 0xba6   : > { %15196 = vmatprep.subr.bf16.mxu0 %v19054_v32 }
 0xba8   : > { %15185 = vmatmul.mubr.bf16.gmra.mrb[252].mxu0 %v11184_v45  ;;  %v16108_v45 = vld [vmem:[%s19477_s2 + $0x8e0] sm:$0xff]  }
 0xba9   : > { %15197 = vmatpush3.bf16.msra.mxu0 %v16084_v47  ;;  %15204 = vmatprep.mubr.msk.bf16.mxu0 %vm16227_vm2, %v19054_v32  ;;  %v11577_v47 = vld [vmem:[#allocation5 + $0x27] sm:$0xff] }
 0xbaa   : > { %15198 = vmatprep.subr.bf16.mxu0 %v19054_v32 }
 0xbad   : > { %15199 = vmatpush3.bf16.msra.mxu0 %v16085_v30  ;;  %v11580_v30 = vpack.c.bf16 %v11577_v47, %v11577_v47 }
 0xbae   : > { %15200 = vmatprep.subr.bf16.mxu0 %v19054_v32 }
 0xbb1   : > { %15201 = vmatpush3.bf16.msra.mxu0 %v16086_v22  ;;  %v16109_v22 = vld [vmem:[%s19477_s2 + $0x8e8] sm:$0xff]  }
 0xbb2   : > { %15202 = vmatprep.subr.bf16.mxu0 %v19054_v32 }
 0xbb5   : > { %15203 = vmatpush3.bf16.msra.mxu0 %v16087_v27 }
 0xbb6   : > { %15216 = vmatprep.subr.bf16.mxu0 %v19054_v32 }
 0xbb8   : > { %15205 = vmatmul.mubr.bf16.vlgmr.msra.gmra.mrb[0].mxu0 %v11314_v42  ;;  %v16110_v42 = vld [vmem:[%s19477_s2 + $0x8f0] sm:$0xff]  }
 0xbb9   : > { %15217 = vmatpush3.bf16.msra.mxu0 %v16088_v23  ;;  %15208 = vmatprep.mubr.msk.bf16.mxu0 %vm16227_vm2, %v19054_v32 }
 0xbba   : > { %15218 = vmatprep.subr.bf16.mxu0 %v19054_v32 }
 0xbbd   : > { %15219 = vmatpush3.bf16.msra.mxu0 %v16089_v59 }
 0xbbe   : > { %15220 = vmatprep.subr.bf16.mxu0 %v19054_v32 }
 0xbc0   : > { %15209 = vmatmul.mubr.bf16.gmra.mrb[4].mxu0 %v11315_v0 }
 0xbc1   : > { %15221 = vmatpush3.bf16.msra.mxu0 %v16090_v14  ;;  %15212 = vmatprep.mubr.msk.bf16.mxu0 %vm16227_vm2, %v19054_v32 }
 0xbc2   : > { %15222 = vmatprep.subr.bf16.mxu0 %v19054_v32 }
 0xbc5   : > { %15223 = vmatpush3.bf16.msra.mxu0 %v16091_v13 }
 0xbc6   : > { %15224 = vmatprep.subr.bf16.mxu0 %v19054_v32 }
 0xbc8   : > { %15213 = vmatmul.mubr.bf16.gmra.mrb[8].mxu0 %v11316_v34  ;;  %v11710_v34 = vpack.c.bf16 %v19145_v26, %v19054_v32 }
 0xbc9   : > { %15225 = vmatpush3.bf16.msra.mxu0 %v16092_v58  ;;  %15232 = vmatprep.mubr.msk.bf16.mxu0 %vm16227_vm2, %v19054_v32 }
 0xbca   : > { %15226 = vmatprep.subr.bf16.mxu0 %v19054_v32 }
 0xbcd   : > { %15227 = vmatpush3.bf16.msra.mxu0 %v16093_v33 }
 0xbce   : > { %15228 = vmatprep.subr.bf16.mxu0 %v19054_v32 }
 0xbd1   : > { %15229 = vmatpush3.bf16.msra.mxu0 %v16094_v36 }
 0xbd2   : > { %15230 = vmatprep.subr.bf16.mxu0 %v19054_v32 }
 0xbd5   : > { %15231 = vmatpush3.bf16.msra.mxu0 %v16095_v4 }
 0xbd6   : > { %15244 = vmatprep.subr.bf16.mxu0 %v19054_v32 }
 0xbd8   : > { %15233 = vmatmul.mubr.bf16.vlgmr.msra.gmra.mrb[12].mxu0 %v11446_v31  ;;  %v11709_v31 = vld [vmem:[#allocation5 + $0x28] sm:$0xff] }
 0xbd9   : > { %15245 = vmatpush3.bf16.msra.mxu0 %v16096_v8  ;;  %15236 = vmatprep.mubr.msk.bf16.mxu0 %vm16227_vm2, %v19054_v32 }
 0xbda   : > { %15246 = vmatprep.subr.bf16.mxu0 %v19054_v32 }
 0xbdd   : > { %15247 = vmatpush3.bf16.msra.mxu0 %v16097_v39  ;;  %v11712_v39 = vpack.c.bf16 %v11709_v31, %v11709_v31 }
 0xbde   : > { %15248 = vmatprep.subr.bf16.mxu0 %v19054_v32 }
 0xbe0   : > { %15237 = vmatmul.mubr.bf16.gmra.mrb[16].mxu0 %v11447_v46 }
 0xbe1   : > { %15249 = vmatpush3.bf16.msra.mxu0 %v16098_v11  ;;  %15240 = vmatprep.mubr.msk.bf16.mxu0 %vm16227_vm2, %v19054_v32 }
 0xbe2   : > { %15250 = vmatprep.subr.bf16.mxu0 %v19054_v32 }
 0xbe5   : > { %15251 = vmatpush3.bf16.msra.mxu0 %v16099_v61 }
 0xbe6   : > { %15252 = vmatprep.subr.bf16.mxu0 %v19054_v32 }
 0xbe8   : > { %15241 = vmatmul.mubr.bf16.gmra.mrb[20].mxu0 %v11448_v40 }
 0xbe9   : > { %15253 = vmatpush3.bf16.msra.mxu0 %v16100_v7  ;;  %15260 = vmatprep.mubr.msk.bf16.mxu0 %vm16227_vm2, %v19054_v32 }
 0xbea   : > { %15254 = vmatprep.subr.bf16.mxu0 %v19054_v32 }
 0xbeb   : > { %v10789_v25 = vpop.f32.mrb[196].mxu0 }
 0xbec   : > { %v15066_v54 = vpop.f32.mrb[197].mxu0 }
 0xbed   : > { %15255 = vmatpush3.bf16.msra.mxu0 %v16101_v12  ;;  %v10792_v28 = vpop.f32.mrb[198].mxu0 }
 0xbee   : > { %v15067_v48 = vpop.f32.mrb[199].mxu0  ;;  %15256 = vmatprep.subr.bf16.mxu0 %v19054_v32 }
 0xbf1   : > { %15257 = vmatpush3.bf16.msra.mxu0 %v16102_v10 }
 0xbf2   : > { %15258 = vmatprep.subr.bf16.mxu0 %v19054_v32 }
 0xbf5   : > { %15259 = vmatpush3.bf16.msra.mxu0 %v16103_v18  ;;  %v10797_v52 = vpop.f32.mrb[200].mxu0 }
 0xbf6   : > { %v15070_v43 = vpop.f32.mrb[201].mxu0  ;;  %15272 = vmatprep.subr.bf16.mxu0 %v19054_v32 }
 0xbf7   : > { %v10799_v15 = vpop.f32.mrb[202].mxu0 }
 0xbf8   : > { %15261 = vmatmul.mubr.bf16.vlgmr.msra.gmra.mrb[24].mxu0 %v11578_v57  ;;  %v15071_v62 = vpop.f32.mrb[203].mxu0 }
 0xbf9   : > { %15273 = vmatpush3.bf16.msra.mxu0 %v16104_v9  ;;  %15264 = vmatprep.mubr.msk.bf16.mxu0 %vm16227_vm2, %v19054_v32 }
 0xbfa   : > { %15274 = vmatprep.subr.bf16.mxu0 %v19054_v32 }
 0xbfd   : > { %15275 = vmatpush3.bf16.msra.mxu0 %v16105_v5  ;;  %v10804_v1 = vpop.f32.mrb[204].mxu0 }
 0xbfe   : > { %v15074_v2 = vpop.f32.mrb[205].mxu0  ;;  %15276 = vmatprep.subr.bf16.mxu0 %v19054_v32 }
 0xbff   : > { %v10807_v55 = vpop.f32.mrb[206].mxu0 }
 0xc00   : > { %15265 = vmatmul.mubr.bf16.gmra.mrb[28].mxu0 %v11579_v17  ;;  %v15075_v37 = vpop.f32.mrb[207].mxu0 }
 0xc01   : > { %15277 = vmatpush3.bf16.msra.mxu0 %v16106_v24  ;;  %15268 = vmatprep.mubr.msk.bf16.mxu0 %vm16227_vm2, %v19054_v32 }
 0xc02   : > { %15278 = vmatprep.subr.bf16.mxu0 %v19054_v32 }
 0xc05   : > { %15279 = vmatpush3.bf16.msra.mxu0 %v16107_v29 }
 0xc06   : > { %15280 = vmatprep.subr.bf16.mxu0 %v19054_v32 }
 0xc08   : > { %15269 = vmatmul.mubr.bf16.gmra.mrb[32].mxu0 %v11580_v30 }
 0xc09   : > { %15281 = vmatpush3.bf16.msra.mxu0 %v16108_v45  ;;  %15288 = vmatprep.mubr.msk.bf16.mxu0 %vm16227_vm2, %v19054_v32 }
 0xc0a   : > { %15282 = vmatprep.subr.bf16.mxu0 %v19054_v32 }
 0xc0b   : > { %v10892_v27 = vpop.f32.mrb[208].mxu0 }
 0xc0c   : > { %v10893_v63 = vadd.f32 %v10892_v27, %v10789_v25  ;;  %v15094_v35 = vpop.f32.mrb[209].mxu0 }
 0xc0d   : > { %v10895_v23 = vpop.f32.mrb[210].mxu0  ;;  %15283 = vmatpush3.bf16.msra.mxu0 %v16109_v22 }
 0xc0e   : > { %v10896_v59 = vadd.f32 %v10895_v23, %v10792_v28  ;;  %v15095_v44 = vpop.f32.mrb[211].mxu0  ;;  %15284 = vmatprep.subr.bf16.mxu0 %v19054_v32 }
 0xc11   : > { %15285 = vmatpush3.bf16.msra.mxu0 %v16110_v42 }
 0xc12   : > { %15286 = vmatprep.subr.bf16.mxu0 %v19054_v32 }
 0xc13   : > { %v10900_v14 = vpop.f32.mrb[212].mxu0 }
 0xc14   : > { %v15098_v0 = vpop.f32.mrb[213].mxu0 }
 0xc15   : > { %v10902_v13 = vpop.f32.mrb[214].mxu0  ;;  %15287 = vmatpush3.bf16.msra.mxu0 %v16111_v19 }
 0xc16   : > { %v10903_v16 = vadd.f32 %v10902_v13, %v10799_v15  ;;  %v15099_v58 = vpop.f32.mrb[215].mxu0 }
 0xc18   : > { %15289 = vmatmul.mubr.bf16.vlgmr.msra.gmra.mrb[36].mxu0 %v11710_v34 }
 0xc19   : > { %15292 = vmatprep.mubr.msk.bf16.mxu0 %vm16227_vm2, %v19054_v32 }
 0xc1b   : > { %v10907_v33 = vpop.f32.mrb[216].mxu0 }
 0xc1c   : > { %v10908_v36 = vadd.f32 %v10907_v33, %v10804_v1  ;;  %v15102_v4 = vpop.f32.mrb[217].mxu0 }
 0xc1d   : > { %v10910_v6 = vpop.f32.mrb[218].mxu0 }
 0xc1e   : > { %v15103_v8 = vpop.f32.mrb[219].mxu0 }
 0xc20   : > { %15293 = vmatmul.mubr.bf16.gmra.mrb[40].mxu0 %v11711_v38 }
 0xc21   : > { %15296 = vmatprep.mubr.msk.bf16.mxu0 %vm16227_vm2, %v19054_v32 }
 0xc28   : > { %15297 = vmatmul.mubr.bf16.gmra.mrb[44].mxu0 %v11712_v39 }
 0xc2b   : > { %v11020_v26 = vpop.f32.mrb[220].mxu0 }
 0xc2c   : > { %v11041_v53 = vadd.f32 %v11020_v26, %v10893_v63  ;;  %v15122_v21 = vpop.f32.mrb[221].mxu0 }
 0xc2d   : > { %v11023_v11 = vpop.f32.mrb[222].mxu0 }
 0xc2e   : > { %v11042_v46 = vadd.f32 %v11023_v11, %v10896_v59  ;;  %v15123_v61 = vpop.f32.mrb[223].mxu0 }
 0xc33   : > { %v11028_v3 = vpop.f32.mrb[224].mxu0 }
 0xc34   : > { %v15126_v7 = vpop.f32.mrb[225].mxu0 }
 0xc35   : > { %v11030_v40 = vpop.f32.mrb[226].mxu0 }
 0xc36   : > { %v11043_v12 = vadd.f32 %v11030_v40, %v10903_v16  ;;  %v15127_v25 = vpop.f32.mrb[227].mxu0 }
 0xc3b   : > { %v11035_v50 = vpop.f32.mrb[228].mxu0 }
 0xc3c   : > { %v11044_v54 = vadd.f32 %v11035_v50, %v10908_v36  ;;  %v15130_v28 = vpop.f32.mrb[229].mxu0 }
 0xc3d   : > { %v11038_v10 = vpop.f32.mrb[230].mxu0 }
 0xc3e   : > { %v15131_v48 = vpop.f32.mrb[231].mxu0 }
 0xc4b   : > { %v11152_v32 = vpop.f32.mrb[232].mxu0 }
 0xc4c   : > { %v11173_v18 = vadd.f32 %v11152_v32, %v11041_v53  ;;  %v15150_v51 = vpop.f32.mrb[233].mxu0 }
 0xc4d   : > { %v11155_v49 = vpop.f32.mrb[234].mxu0 }
 0xc4e   : > { %v11174_v52 = vadd.f32 %v11155_v49, %v11042_v46  ;;  %v15151_v9 = vpop.f32.mrb[235].mxu0 }
 0xc53   : > { %v11160_v43 = vpop.f32.mrb[236].mxu0 }
 0xc54   : > { %v15154_v57 = vpop.f32.mrb[237].mxu0 }
 0xc55   : > { %v11162_v15 = vpop.f32.mrb[238].mxu0 }
 0xc56   : > { %v11175_v62 = vadd.f32 %v11162_v15, %v11043_v12  ;;  %v15155_v5 = vpop.f32.mrb[239].mxu0 }
 0xc5b   : > { %v11167_v41 = vpop.f32.mrb[240].mxu0 }
 0xc5c   : > { %v11176_v56 = vadd.f32 %v11167_v41, %v11044_v54  ;;  %v15158_v1 = vpop.f32.mrb[241].mxu0 }
 0xc5d   : > { %v11170_v24 = vpop.f32.mrb[242].mxu0 }
 0xc5e   : > { %v15159_v2 = vpop.f32.mrb[243].mxu0 }
 0xc6b   : > { %v11284_v17 = vpop.f32.mrb[244].mxu0 }
 0xc6c   : > { %v11305_v55 = vadd.f32 %v11284_v17, %v11173_v18  ;;  %v15178_v37 = vpop.f32.mrb[245].mxu0 }
 0xc6d   : > { %v11287_v29 = vpop.f32.mrb[246].mxu0  ;;  %v11839_v37 = vsub.s32 4, %v19619_v20 }
 0xc6e   : > { %v11306_v47 = vadd.f32 %v11287_v29, %v11174_v52  ;;  %v15179_v45 = vpop.f32.mrb[247].mxu0 }
 0xc6f   : > { %v11840_v29 = vrot.slane %v19086_v60, %v11839_v37 }
 0xc73   : > { %v11292_v30 = vpop.f32.mrb[248].mxu0 }
 0xc74   : > { %v15182_v22 = vpop.f32.mrb[249].mxu0 }
 0xc75   : > { %v11294_v27 = vpop.f32.mrb[250].mxu0 }
 0xc76   : > { %v11307_v63 = vadd.f32 %v11294_v27, %v11175_v62  ;;  %v15183_v35 = vpop.f32.mrb[251].mxu0 }
 0xc7b   : > { %v11299_v23 = vpop.f32.mrb[252].mxu0 }
 0xc7c   : > { %v11308_v42 = vadd.f32 %v11299_v23, %v11176_v56  ;;  %v15186_v59 = vpop.f32.mrb[253].mxu0 }
 0xc7d   : > { %v11302_v44 = vpop.f32.mrb[254].mxu0 }
 0xc7e   : > { %v15187_v19 = vpop.f32.mrb[255].mxu0 }
 0xc8b   : > { %v11416_v14 = vpop.f32.mrb[0].mxu0 }
 0xc8c   : > { %v11437_v0 = vadd.f32 %v11416_v14, %v11305_v55  ;;  %v15206_v13 = vpop.f32.mrb[1].mxu0 }
 0xc8d   : > { %v11419_v16 = vpop.f32.mrb[2].mxu0 }
 0xc8e   : > { %v11438_v58 = vadd.f32 %v11419_v16, %v11306_v47  ;;  %v15207_v34 = vpop.f32.mrb[3].mxu0 }
 0xc93   : > { %v11424_v33 = vpop.f32.mrb[4].mxu0 }
 0xc94   : > { %v15210_v36 = vpop.f32.mrb[5].mxu0 }
 0xc95   : > { %v11426_v4 = vpop.f32.mrb[6].mxu0 }
 0xc96   : > { %v11439_v6 = vadd.f32 %v11426_v4, %v11307_v63  ;;  %v15211_v38 = vpop.f32.mrb[7].mxu0 }
 0xc9b   : > { %v11431_v8 = vpop.f32.mrb[8].mxu0 }
 0xc9c   : > { %v11440_v31 = vadd.f32 %v11431_v8, %v11308_v42  ;;  %v15214_v39 = vpop.f32.mrb[9].mxu0 }
 0xc9d   : > { %v11434_v26 = vpop.f32.mrb[10].mxu0 }
 0xc9e   : > { %v15215_v53 = vpop.f32.mrb[11].mxu0 }
 0xcab   : > { %v11548_v21 = vpop.f32.mrb[12].mxu0 }
 0xcac   : > { %v11569_v11 = vadd.f32 %v11548_v21, %v11437_v0  ;;  %v15234_v46 = vpop.f32.mrb[13].mxu0 }
 0xcad   : > { %v11551_v61 = vpop.f32.mrb[14].mxu0 }
 0xcae   : > { %v11570_v3 = vadd.f32 %v11551_v61, %v11438_v58  ;;  %v15235_v7 = vpop.f32.mrb[15].mxu0 }
 0xcb3   : > { %v11556_v40 = vpop.f32.mrb[16].mxu0 }
 0xcb4   : > { %v15238_v12 = vpop.f32.mrb[17].mxu0 }
 0xcb5   : > { %v11558_v25 = vpop.f32.mrb[18].mxu0 }
 0xcb6   : > { %v11571_v50 = vadd.f32 %v11558_v25, %v11439_v6  ;;  %v15239_v54 = vpop.f32.mrb[19].mxu0 }
 0xcbb   : > { %v11563_v28 = vpop.f32.mrb[20].mxu0 }
 0xcbc   : > { %v11572_v10 = vadd.f32 %v11563_v28, %v11440_v31  ;;  %v15242_v48 = vpop.f32.mrb[21].mxu0 }
 0xcbd   : > { %v11566_v32 = vpop.f32.mrb[22].mxu0 }
 0xcbe   : > { %v15243_v18 = vpop.f32.mrb[23].mxu0 }
 0xccb   : > { %v11680_v51 = vpop.f32.mrb[24].mxu0 }
 0xccc   : > { %v11701_v49 = vadd.f32 %v11680_v51, %v11569_v11  ;;  %v15262_v52 = vpop.f32.mrb[25].mxu0 }
 0xccd   : > { %v11683_v9 = vpop.f32.mrb[26].mxu0 }
 0xcce   : > { %v11702_v43 = vadd.f32 %v11683_v9, %v11570_v3  ;;  %v15263_v57 = vpop.f32.mrb[27].mxu0 }
 0xcd3   : > { %v11688_v15 = vpop.f32.mrb[28].mxu0 }
 0xcd4   : > { %v15266_v62 = vpop.f32.mrb[29].mxu0 }
 0xcd5   : > { %v11690_v5 = vpop.f32.mrb[30].mxu0 }
 0xcd6   : > { %v11703_v41 = vadd.f32 %v11690_v5, %v11571_v50  ;;  %v15267_v56 = vpop.f32.mrb[31].mxu0 }
 0xcdb   : > { %v11695_v1 = vpop.f32.mrb[32].mxu0 }
 0xcdc   : > { %v11704_v24 = vadd.f32 %v11695_v1, %v11572_v10  ;;  %v15270_v2 = vpop.f32.mrb[33].mxu0 }
 0xcdd   : > { %v11698_v17 = vpop.f32.mrb[34].mxu0 }
 0xcde   : > { %v15271_v55 = vpop.f32.mrb[35].mxu0 }
 0xceb   : > { %v11812_v47 = vpop.f32.mrb[36].mxu0 }
 0xcec   : > { %v11833_v45 = vadd.f32 %v11812_v47, %v11701_v49  ;;  %v15290_v30 = vpop.f32.mrb[37].mxu0 }
 0xced   : > { %v11815_v22 = vpop.f32.mrb[38].mxu0 }
 0xcee   : > { %v11841_v27 = vadd.f32 %v11840_v29, %v11833_v45  ;;  %v11834_v63 = vadd.f32 %v11815_v22, %v11702_v43  ;;  %v15291_v35 = vpop.f32.mrb[39].mxu0 }
 0xcf0   : > { %v11845_v23 = vmax.f32 %v11841_v27, 0.0  ;;  %v11842_v42 = vadd.f32 %v11840_v29, %v11834_v63 }
 0xcf2   : > { %v11850_v59 = vrot.slane %v11845_v23, 2  ;;  %v11846_v44 = vmax.f32 %v11842_v42, 0.0 }
 0xcf3   : > { %v11820_v19 = vpop.f32.mrb[40].mxu0 }
 0xcf4   : > { %v11852_v14 = vsel %vm9152_vm6, %v11845_v23, %v11850_v59  ;;  %v11855_v20 = vrot.slane %v11846_v44, 4  ;;  %v11857_v0 = vrot.slane %v11846_v44, 6  ;;  %v15294_v60 = vpop.f32.mrb[41].mxu0 }
 0xcf5   : > { %11853 = vst [vmem:[%s191_s27] sm:$0x3] %v11852_v14  ;;  %v11822_v13 = vpop.f32.mrb[42].mxu0 }
 0xcf6   : > { %v11859_v16 = vsel %vm9152_vm6, %v11855_v20, %v11857_v0  ;;  %v11835_v58 = vadd.f32 %v11822_v13, %v11703_v41  ;;  %v15295_v34 = vpop.f32.mrb[43].mxu0 }
 0xcf7   : > { %12936 = vst [vmem:[%s191_s27 + $0x2] sm:$0x3] %v11859_v16 }
 0xcf8   : > { %v11843_v33 = vadd.f32 %v11840_v29, %v11835_v58 }
 0xcfa   : > { %v11847_v36 = vmax.f32 %v11843_v33, 0.0 }
 0xcfb   : > { %v11827_v4 = vpop.f32.mrb[44].mxu0 }
 0xcfc   : > { %v11863_v6 = vrot.slane %v11847_v36, 2  ;;  %v11836_v38 = vadd.f32 %v11827_v4, %v11704_v24  ;;  %v15298_v8 = vpop.f32.mrb[45].mxu0 }
 0xcfd   : > { %v11830_v31 = vpop.f32.mrb[46].mxu0 }
 0xcfe   : > { %v11865_v39 = vsel %vm9152_vm6, %v11847_v36, %v11863_v6  ;;  %v11844_v26 = vadd.f32 %v11840_v29, %v11836_v38  ;;  %v15299_v53 = vpop.f32.mrb[47].mxu0 }
 0xcff   : > { %12937 = vst [vmem:[%s191_s27 + $0x4] sm:$0x3] %v11865_v39 }
 0xd00   : > { %v11848_v21 = vmax.f32 %v11844_v26, 0.0 }
 0xd02   : > { %v11869_v11 = vrot.slane %v11848_v21, 4  ;;  %v11871_v46 = vrot.slane %v11848_v21, 6 }
 0xd04   : > { %v11873_v61 = vsel %vm9152_vm6, %v11869_v11, %v11871_v46 }
 0xd05   : > { %12938 = vst [vmem:[%s191_s27 + $0x6] sm:$0x3] %v11873_v61 }
 0xd06   : > { %16175 = shalt.err (!%p16172_p3)
}
 0xd07   : > { %s16176_s11 = scalar_lea.hbm %s19427_s6, 128  ;;  %s16180_s14 = scalar_lea.hbm %s19479_s4, 256 }
 0xd08   : > { %p16177_p4 = scmp.ne.s32.totalorder %s19427_s6, %s16176_s11  ;;  %p16181_p9 = scmp.lt.u32.totalorder %s19427_s6, %s19479_s4 }
 0xd09   : > { %p16182_p10 = scmp.lt.u32.totalorder %s16180_s14, %s16176_s11  ;;  %p16184_p12 = scmp.lt.u32.totalorder %s16176_s11, %s19427_s6 }
 0xd0a   : > { %p16178_p7 = pnand %p16177_p4, %p16291_p5 }
 0xd0b   : > { %p16183_p11 = por %p16182_p10, %p16181_p9 }
 0xd0c   : > { %p16179_p8 = pneg %p16178_p7 }
 0xd0d   : > { %p16185_p13 = por %p16184_p12, %p16183_p11 }
 0xd0f   : > { %p16186_p0 = pnand %p16185_p13, %p16179_p8 }
 0xd11   : > { %16189 = shalt.err (!%p16186_p0)
}
 0xd12   : > { %s16229_s22 = smov 32   ;;  %s16230_s23 = smov 2  }
 0xd13   : > { %15716 = dma.vmem_to_hbm [thread:$0]  (%p16291_p5), %s19429_s28, 128, %s19427_s6, %s19434_s7, %s16229_s22, %s16229_s22, %s16230_s23  }
 0xd14 PF: > { %p15722_p1 = scmp.ge.s32.totalorder %s16224_s18, 2  ;;  %s11905_s27 = sand.u32 1, %s16212_s15  }
 0xd15   : > { %s11906_s30 = scalar_lea.sflag [#allocation8], %s11905_s27 }
 0xd16   : > { %p15719_p2 = pnand %p15722_p1, %p16295_p6 }
 0xd18   : > { %16207 = dma.done.wait (!%p15719_p2), %s11906_s30, 128  }
 0xd19   : > { %16209 = vsyncadd (!%p15719_p2), %s11906_s30, 4294967168  ;;  %p14_p3 = scmp.ge.s32.totalorder %s16279_s21, 4   ;;  %s19620_s15 = smov %s16216_s16 }
 0xd1a   : > { %s19621_s16 = smov %s16220_s17  ;;  %s19622_s17 = smov %s16289_s24 }
 0xd1b   : > { %s19623_s18 = smov %s16279_s21  ;;  %16 = sbr.rel (!%p14_p3) target bundleno = 3 (0x3), region = 162 }
 0xd22   :  { %11911 = vsyncpa [#allocation8], 1 }
 0xd23   :  { %11913 = vsyncpa [#allocation8 + $0x1], 1 }

</bundles_post_ra>
